<compile_context>
chip_gen: v6e
topology: v6e:2x2x1
jax: 0.10.0
libtpu: 0.0.40
codegen_flags: <defaults>
</compile_context>

<pallas_src>
import functools

import jax
import jax.numpy as jnp
from jax.experimental import pallas as pl
from jax.experimental.pallas import tpu as pltpu

_C = 128  # lane-padded channel width used for every in-kernel tensor


# --------------------------------- kernel -------------------------------------
def _inception_kernel(W, pa_ref, tm_ref, wa_ref, ba_ref, wb_ref, bb_ref,
                      wc_ref, bc_ref, out_ref):
    M, C = out_ref.shape                       # (B_blk*H*W, 128)
    halo = ((W + 1 + 7) // 8) * 8              # >= W+1, 8-sublane aligned

    # Stage A: one im2col matmul; the patch matrix (incl. its zero padding) was
    # built by XLA in the wrapper, so the kernel does no input relayout work.
    a = jnp.dot(pa_ref[...], wa_ref[...],
                preferred_element_type=jnp.float32) + ba_ref[...]

    # Per-tap validity masks (columns 0..8), precomputed host-side and tiled to
    # the batch block -> no in-kernel integer div/mod and no re-padding.
    tmask = tm_ref[...]                        # (M, 128) f32 of 0.0 / 1.0

    def conv3x3(x, w_flat, bias):
        # x: (M, C) activations, rows ordered (image, y, x).
        # w_flat: (9*C, C) per-tap packed weights, bias: (1, C).
        zhalo = jnp.zeros((halo, C), jnp.float32)
        xe = jnp.concatenate([zhalo, x, zhalo], axis=0)       # zero halo rows
        taps = []
        for dy in range(3):
            for dx in range(3):
                t = dy * 3 + dx
                off = (dy - 1) * W + (dx - 1)                 # row shift of tap
                tap = xe[halo + off: halo + off + M, :]       # sublane slice
                taps.append(tap * tmask[:, t:t + 1])          # zero invalid rows
        # 128-aligned lane concat -> cheap; one MXU matmul per stage.
        patches = jnp.concatenate(taps, axis=1)               # (M, 9*C)
        return jnp.dot(patches, w_flat,
                       preferred_element_type=jnp.float32) + bias

    b = conv3x3(a, wb_ref[...], bb_ref[...])   # [branch1 | 0 | branch_pool | b3b]
    c = conv3x3(b, wc_ref[...], bc_ref[...])   # [0 | branch3_3 | 0 | 0]

    # Single lane-dense 128-wide store; cols 96:128 are scratch (sliced off
    # by the wrapper), so no concatenate / partial store is needed.
    out_ref[...] = b + c


# ------------------------- host-side weight packing ---------------------------
def _pack_params(params, Cin):
    """One-time packing of the 6 convs (+ avg-pool) into 3 fused weight mats."""
    f32 = jnp.float32
    C = _C
    KA = max(C, ((9 * Cin + C - 1) // C) * C)
    assert 32 + Cin <= C, "stage-A channel packing assumes 32 + in_channel <= 128"

    w11 = params['w11'].astype(f32); b11 = params['b11'].astype(f32).reshape(-1)
    w12 = params['w12'].astype(f32); b12 = params['b12'].astype(f32).reshape(-1)
    w31 = params['w31'].astype(f32); b31 = params['b31'].astype(f32).reshape(-1)
    w32 = params['w32'].astype(f32); b32 = params['b32'].astype(f32).reshape(-1)
    w33 = params['w33'].astype(f32); b33 = params['b33'].astype(f32).reshape(-1)
    wp = params['wp'].astype(f32);   bp = params['bp'].astype(f32).reshape(-1)

    # Stage A output channels: [b1a 0:16 | b3a 16:32 | pooled 32:32+Cin | 0].
    # avg_pool2d(3,1,1, count_include_pad=True) is linear -> eye(Cin)/9 per tap.
    wa = jnp.zeros((KA, C), f32)
    pool_eye = jnp.eye(Cin, dtype=f32) / 9.0
    for dy in range(3):
        for dx in range(3):
            t = dy * 3 + dx
            r = t * Cin
            wa = wa.at[r:r + Cin, 0:16].set(w11[dy, dx])
            if t == 4:                      # 1x1 conv lives on the centre tap
                wa = wa.at[r:r + Cin, 16:32].set(w31)
            wa = wa.at[r:r + Cin, 32:32 + Cin].set(pool_eye)
    ba = jnp.zeros((1, C), f32).at[0, 0:16].set(b11).at[0, 16:32].set(b31)

    # Stage B: rows (tap, stage-A channel) -> columns already in FINAL order:
    #   [branch1 0:32 | branch3_3 slot (zero) 32:64 | branch_pool 64:96 | b3b 96:128]
    wb = jnp.zeros((9 * C, C), f32)
    for dy in range(3):
        for dx in range(3):
            r = (dy * 3 + dx) * C
            wb = wb.at[r + 0:r + 16, 0:32].set(w12[dy, dx])        # b1a -> branch1
            wb = wb.at[r + 16:r + 32, 96:128].set(w32[dy, dx])     # b3a -> b3b
            wb = wb.at[r + 32:r + 32 + Cin, 64:96].set(wp[dy, dx])  # pooled -> bpool
    bb = (jnp.zeros((1, C), f32).at[0, 0:32].set(b12)
          .at[0, 64:96].set(bp).at[0, 96:128].set(b32))

    # Stage C: reads b3b (96:128), writes branch3_3 into the 32:64 output slot.
    wc = jnp.zeros((9 * C, C), f32)
    for dy in range(3):
        for dx in range(3):
            r = (dy * 3 + dx) * C
            wc = wc.at[r + 96:r + 128, 32:64].set(w33[dy, dx])
    bc = jnp.zeros((1, C), f32).at[0, 32:64].set(b33)

    return wa, ba, wb, bb, wc, bc, KA


def _pick_batch_block(N):
    """Images per grid step; keep >= 2 grid steps so v7x's 2 TCs share work."""
    if N < 4:
        return 1
    cap = min(8, N // 2)
    for b in range(cap, 0, -1):
        if N % b == 0:
            return b
    return 1


# --------------------------------- wrapper ------------------------------------
def inception_forward(x_nchw, params):
    N, Cin, H, W = x_nchw.shape
    C = _C
    wa, ba, wb, bb, wc, bc, KA = _pack_params(params, Cin)
    B_blk = _pick_batch_block(N)
    M_blk = B_blk * H * W

    # Hoisted stage-A im2col (done by XLA): (N*H*W, 9*Cin), lane-padded to KA.
    x = jnp.transpose(x_nchw, (0, 2, 3, 1)).astype(jnp.float32)     # NHWC
    xp = jnp.pad(x, ((0, 0), (1, 1), (1, 1), (0, 0)))
    cols = [xp[:, dy:dy + H, dx:dx + W, :] for dy in range(3) for dx in range(3)]
    pa = jnp.concatenate(cols, axis=-1).reshape(N * H * W, 9 * Cin)
    pa = jnp.pad(pa, ((0, 0), (0, KA - 9 * Cin)))

    # Per-tap validity masks (cols 0..8 of a lane-dense (M_blk, 128) array).
    yy = jnp.arange(H).reshape(H, 1)
    xx = jnp.arange(W).reshape(1, W)
    mcols = []
    for dy in range(3):
        for dx in range(3):
            vy = (yy + dy - 1 >= 0) & (yy + dy - 1 < H)
            vx = (xx + dx - 1 >= 0) & (xx + dx - 1 < W)
            mcols.append((vy & vx).astype(jnp.float32).reshape(H * W))
    tm = jnp.stack(mcols, axis=-1)                                   # (H*W, 9)
    tm = jnp.pad(tm, ((0, 0), (0, C - 9)))
    tm = jnp.tile(tm, (B_blk, 1))                                    # (M_blk, 128)

    kern = functools.partial(_inception_kernel, W)
    flops = 2 * N * H * W * (KA * C + 2 * 9 * C * C)
    bytes_accessed = 4 * (pa.size + tm.size + wa.size + ba.size + wb.size
                          + bb.size + wc.size + bc.size + N * H * W * C)

    out = pl.pallas_call(
        kern,
        grid=(N // B_blk,),
        in_specs=[
            pl.BlockSpec((M_blk, KA), lambda n: (n, 0)),     # stage-A patches
            pl.BlockSpec((M_blk, C), lambda n: (0, 0)),      # tap masks
            pl.BlockSpec((KA, C), lambda n: (0, 0)),         # wa
            pl.BlockSpec((1, C), lambda n: (0, 0)),          # ba
            pl.BlockSpec((9 * C, C), lambda n: (0, 0)),      # wb
            pl.BlockSpec((1, C), lambda n: (0, 0)),          # bb
            pl.BlockSpec((9 * C, C), lambda n: (0, 0)),      # wc
            pl.BlockSpec((1, C), lambda n: (0, 0)),          # bc
        ],
        out_specs=pl.BlockSpec((M_blk, C), lambda n: (n, 0)),
        out_shape=jax.ShapeDtypeStruct((N * H * W, C), jnp.float32),
        compiler_params=pltpu.CompilerParams(
            dimension_semantics=("parallel",)),
        cost_estimate=pl.CostEstimate(
            flops=int(flops), transcendentals=0,
            bytes_accessed=int(bytes_accessed)),
    )(pa, tm, wa, ba, wb, bb, wc, bc)

    out = out.reshape(N, H, W, C)[..., :96]     # drop the scratch/pad channels
    return jnp.transpose(out, (0, 3, 1, 2))     # back to NCHW


# ---------------- pure-JAX reference (for correctness check) -----------------
def _ref_forward(x_nchw, params):
    x = jnp.transpose(x_nchw, (0, 2, 3, 1)).astype(jnp.float32)     # NHWC

    def conv(x_nhwc, w_hwio, b, padding):
        y = jax.lax.conv_general_dilated(
            x_nhwc, w_hwio, (1, 1), padding,
            dimension_numbers=('NHWC', 'HWIO', 'NHWC'))
        return y + b.reshape(1, 1, 1, -1)

    same = ((1, 1), (1, 1))
    b1 = conv(x, params['w11'], params['b11'], same)
    b1 = conv(b1, params['w12'], params['b12'], same)

    Cin = x.shape[-1]
    b3 = conv(x, params['w31'].reshape(1, 1, Cin, 16), params['b31'],
              ((0, 0), (0, 0)))
    b3 = conv(b3, params['w32'], params['b32'], same)
    b3 = conv(b3, params['w33'], params['b33'], same)

    xpad = jnp.pad(x, ((0, 0), (1, 1), (1, 1), (0, 0)))
    pooled = jax.lax.reduce_window(xpad, 0.0, jax.lax.add,
                                   (1, 3, 3, 1), (1, 1, 1, 1), 'VALID') / 9.0
    bp = conv(pooled, params['wp'], params['bp'], same)

    out = jnp.concatenate([b1, b3, bp], axis=-1)
    return jnp.transpose(out, (0, 3, 1, 2))


if __name__ == "__main__":
    N, Cin, H, W = 2, 4, 16, 16
    key = jax.random.PRNGKey(0)
    keys = jax.random.split(key, 13)

    def init(k, shape, scale=0.1):
        return scale * jax.random.normal(k, shape, dtype=jnp.float32)

    # weights stored HWIO (kh, kw, Cin, Cout); 1x1 conv stored as (Cin, Cout)
    params = {
        'w11': init(keys[0], (3, 3, Cin, 16)), 'b11': init(keys[1], (16,)),
        'w12': init(keys[2], (3, 3, 16, 32)),  'b12': init(keys[3], (32,)),
        'w31': init(keys[4], (Cin, 16)),       'b31': init(keys[5], (16,)),
        'w32': init(keys[6], (3, 3, 16, 32)),  'b32': init(keys[7], (32,)),
        'w33': init(keys[8], (3, 3, 32, 32)),  'b33': init(keys[9], (32,)),
        'wp':  init(keys[10], (3, 3, Cin, 32)), 'bp': init(keys[11], (32,)),
    }

    x = jax.random.normal(keys[12], (N, Cin, H, W), dtype=jnp.float32)

    fwd = jax.jit(inception_forward)
    out = jax.block_until_ready(fwd(x, params))
    assert out.shape == (N, 96, H, W), out.shape

    ref = jax.block_until_ready(_ref_forward(x, params))
    err = float(jnp.max(jnp.abs(out - ref)))
    assert jnp.allclose(out, ref, atol=1e-3, rtol=1e-3), err

    print("KERNEL_OK")
</pallas_src>

<mosaic_0001>
module attributes {stable_mosaic.version = 11 : i64} {
  func.func @_inception_kernel(%arg0: i32, %arg1: memref<256x128xf32, #tpu.memory_space<vmem>>, %arg2: memref<256x128xf32, #tpu.memory_space<vmem>>, %arg3: memref<128x128xf32, #tpu.memory_space<vmem>>, %arg4: memref<1x128xf32, #tpu.memory_space<vmem>>, %arg5: memref<1152x128xf32, #tpu.memory_space<vmem>>, %arg6: memref<1x128xf32, #tpu.memory_space<vmem>>, %arg7: memref<1152x128xf32, #tpu.memory_space<vmem>>, %arg8: memref<1x128xf32, #tpu.memory_space<vmem>>, %arg9: memref<256x128xf32, #tpu.memory_space<vmem>>) attributes {dimension_semantics = [#tpu.dimension_semantics<parallel>], iteration_bounds = array<i64: 2>, scalar_prefetch = 0 : i64, scratch_operands = 0 : i64, tpu.core_type = #tpu.core_type<tc>, window_params = [{transform_indices = @transform_0, window_bounds = array<i64: 256, 128>}, {pipeline_mode = #tpu.pipeline_mode<synchronous>, transform_indices = @transform_1, window_bounds = array<i64: 256, 128>}, {pipeline_mode = #tpu.pipeline_mode<synchronous>, transform_indices = @transform_2, window_bounds = array<i64: 128, 128>}, {pipeline_mode = #tpu.pipeline_mode<synchronous>, transform_indices = @transform_3, window_bounds = array<i64: 1, 128>}, {pipeline_mode = #tpu.pipeline_mode<synchronous>, transform_indices = @transform_4, window_bounds = array<i64: 1152, 128>}, {pipeline_mode = #tpu.pipeline_mode<synchronous>, transform_indices = @transform_5, window_bounds = array<i64: 1, 128>}, {pipeline_mode = #tpu.pipeline_mode<synchronous>, transform_indices = @transform_6, window_bounds = array<i64: 1152, 128>}, {pipeline_mode = #tpu.pipeline_mode<synchronous>, transform_indices = @transform_7, window_bounds = array<i64: 1, 128>}, {transform_indices = @transform_8, window_bounds = array<i64: 256, 128>}]} {
    %c0 = arith.constant 0 : index
    %c0_0 = arith.constant 0 : index
    %0 = vector.load %arg1[%c0, %c0_0] : memref<256x128xf32, #tpu.memory_space<vmem>>, vector<256x128xf32>
    %c0_1 = arith.constant 0 : index
    %c0_2 = arith.constant 0 : index
    %1 = vector.load %arg3[%c0_1, %c0_2] : memref<128x128xf32, #tpu.memory_space<vmem>>, vector<128x128xf32>
    %cst = arith.constant dense<0.000000e+00> : vector<256x128xf32>
    %2 = tpu.matmul %0, %1, %cst {dimension_numbers = #tpu.dot_dimension_numbers<[1], [0], [0], [1], [0, 0, 1, 1], [], []>} : vector<256x128xf32>, vector<128x128xf32>, vector<256x128xf32> -> vector<256x128xf32>
    %c0_3 = arith.constant 0 : index
    %c0_4 = arith.constant 0 : index
    %3 = vector.load %arg4[%c0_3, %c0_4] : memref<1x128xf32, #tpu.memory_space<vmem>>, vector<1x128xf32>
    %4 = vector.broadcast %3 : vector<1x128xf32> to vector<256x128xf32>
    %5 = arith.addf %2, %4 : vector<256x128xf32>
    %c0_5 = arith.constant 0 : index
    %c0_6 = arith.constant 0 : index
    %6 = vector.load %arg2[%c0_5, %c0_6] : memref<256x128xf32, #tpu.memory_space<vmem>>, vector<256x128xf32>
    %c0_7 = arith.constant 0 : index
    %c0_8 = arith.constant 0 : index
    %7 = vector.load %arg5[%c0_7, %c0_8] : memref<1152x128xf32, #tpu.memory_space<vmem>>, vector<1152x128xf32>
    %c0_9 = arith.constant 0 : index
    %c0_10 = arith.constant 0 : index
    %8 = vector.load %arg6[%c0_9, %c0_10] : memref<1x128xf32, #tpu.memory_space<vmem>>, vector<1x128xf32>
    %cst_11 = arith.constant 0.000000e+00 : f32
    %9 = vector.broadcast %cst_11 : f32 to vector<24x128xf32>
    %10 = tpu.concatenate %9, %5, %9 in 0 : vector<24x128xf32>, vector<256x128xf32>, vector<24x128xf32> -> vector<304x128xf32>
    %11 = vector.extract_strided_slice %10 {offsets = [7, 0], sizes = [256, 128], strides = [1, 1]} : vector<304x128xf32> to vector<256x128xf32>
    %12 = vector.extract_strided_slice %6 {offsets = [0, 0], sizes = [256, 1], strides = [1, 1]} : vector<256x128xf32> to vector<256x1xf32>
    %13 = vector.broadcast %12 : vector<256x1xf32> to vector<256x128xf32>
    %14 = arith.mulf %11, %13 : vector<256x128xf32>
    %15 = vector.extract_strided_slice %10 {offsets = [8, 0], sizes = [256, 128], strides = [1, 1]} : vector<304x128xf32> to vector<256x128xf32>
    %16 = vector.extract_strided_slice %6 {offsets = [0, 1], sizes = [256, 1], strides = [1, 1]} : vector<256x128xf32> to vector<256x1xf32>
    %17 = vector.broadcast %16 : vector<256x1xf32> to vector<256x128xf32>
    %18 = arith.mulf %15, %17 : vector<256x128xf32>
    %19 = vector.extract_strided_slice %10 {offsets = [9, 0], sizes = [256, 128], strides = [1, 1]} : vector<304x128xf32> to vector<256x128xf32>
    %20 = vector.extract_strided_slice %6 {offsets = [0, 2], sizes = [256, 1], strides = [1, 1]} : vector<256x128xf32> to vector<256x1xf32>
    %21 = vector.broadcast %20 : vector<256x1xf32> to vector<256x128xf32>
    %22 = arith.mulf %19, %21 : vector<256x128xf32>
    %23 = vector.extract_strided_slice %10 {offsets = [23, 0], sizes = [256, 128], strides = [1, 1]} : vector<304x128xf32> to vector<256x128xf32>
    %24 = vector.extract_strided_slice %6 {offsets = [0, 3], sizes = [256, 1], strides = [1, 1]} : vector<256x128xf32> to vector<256x1xf32>
    %25 = vector.broadcast %24 : vector<256x1xf32> to vector<256x128xf32>
    %26 = arith.mulf %23, %25 : vector<256x128xf32>
    %27 = vector.extract_strided_slice %10 {offsets = [24, 0], sizes = [256, 128], strides = [1, 1]} : vector<304x128xf32> to vector<256x128xf32>
    %28 = vector.extract_strided_slice %6 {offsets = [0, 4], sizes = [256, 1], strides = [1, 1]} : vector<256x128xf32> to vector<256x1xf32>
    %29 = vector.broadcast %28 : vector<256x1xf32> to vector<256x128xf32>
    %30 = arith.mulf %27, %29 : vector<256x128xf32>
    %31 = vector.extract_strided_slice %10 {offsets = [25, 0], sizes = [256, 128], strides = [1, 1]} : vector<304x128xf32> to vector<256x128xf32>
    %32 = vector.extract_strided_slice %6 {offsets = [0, 5], sizes = [256, 1], strides = [1, 1]} : vector<256x128xf32> to vector<256x1xf32>
    %33 = vector.broadcast %32 : vector<256x1xf32> to vector<256x128xf32>
    %34 = arith.mulf %31, %33 : vector<256x128xf32>
    %35 = vector.extract_strided_slice %10 {offsets = [39, 0], sizes = [256, 128], strides = [1, 1]} : vector<304x128xf32> to vector<256x128xf32>
    %36 = vector.extract_strided_slice %6 {offsets = [0, 6], sizes = [256, 1], strides = [1, 1]} : vector<256x128xf32> to vector<256x1xf32>
    %37 = vector.broadcast %36 : vector<256x1xf32> to vector<256x128xf32>
    %38 = arith.mulf %35, %37 : vector<256x128xf32>
    %39 = vector.extract_strided_slice %10 {offsets = [40, 0], sizes = [256, 128], strides = [1, 1]} : vector<304x128xf32> to vector<256x128xf32>
    %40 = vector.extract_strided_slice %6 {offsets = [0, 7], sizes = [256, 1], strides = [1, 1]} : vector<256x128xf32> to vector<256x1xf32>
    %41 = vector.broadcast %40 : vector<256x1xf32> to vector<256x128xf32>
    %42 = arith.mulf %39, %41 : vector<256x128xf32>
    %43 = vector.extract_strided_slice %10 {offsets = [41, 0], sizes = [256, 128], strides = [1, 1]} : vector<304x128xf32> to vector<256x128xf32>
    %44 = vector.extract_strided_slice %6 {offsets = [0, 8], sizes = [256, 1], strides = [1, 1]} : vector<256x128xf32> to vector<256x1xf32>
    %45 = vector.broadcast %44 : vector<256x1xf32> to vector<256x128xf32>
    %46 = arith.mulf %43, %45 : vector<256x128xf32>
    %47 = tpu.concatenate %14, %18, %22, %26, %30, %34, %38, %42, %46 in 1 : vector<256x128xf32>, vector<256x128xf32>, vector<256x128xf32>, vector<256x128xf32>, vector<256x128xf32>, vector<256x128xf32>, vector<256x128xf32>, vector<256x128xf32>, vector<256x128xf32> -> vector<256x1152xf32>
    %cst_12 = arith.constant dense<0.000000e+00> : vector<256x128xf32>
    %48 = tpu.matmul %47, %7, %cst_12 {dimension_numbers = #tpu.dot_dimension_numbers<[1], [0], [0], [1], [0, 0, 1, 1], [], []>} : vector<256x1152xf32>, vector<1152x128xf32>, vector<256x128xf32> -> vector<256x128xf32>
    %49 = vector.broadcast %8 : vector<1x128xf32> to vector<256x128xf32>
    %50 = arith.addf %48, %49 : vector<256x128xf32>
    %c0_13 = arith.constant 0 : index
    %c0_14 = arith.constant 0 : index
    %51 = vector.load %arg7[%c0_13, %c0_14] : memref<1152x128xf32, #tpu.memory_space<vmem>>, vector<1152x128xf32>
    %c0_15 = arith.constant 0 : index
    %c0_16 = arith.constant 0 : index
    %52 = vector.load %arg8[%c0_15, %c0_16] : memref<1x128xf32, #tpu.memory_space<vmem>>, vector<1x128xf32>
    %cst_17 = arith.constant 0.000000e+00 : f32
    %53 = vector.broadcast %cst_17 : f32 to vector<24x128xf32>
    %54 = tpu.concatenate %53, %50, %53 in 0 : vector<24x128xf32>, vector<256x128xf32>, vector<24x128xf32> -> vector<304x128xf32>
    %55 = vector.extract_strided_slice %54 {offsets = [7, 0], sizes = [256, 128], strides = [1, 1]} : vector<304x128xf32> to vector<256x128xf32>
    %56 = vector.extract_strided_slice %6 {offsets = [0, 0], sizes = [256, 1], strides = [1, 1]} : vector<256x128xf32> to vector<256x1xf32>
    %57 = vector.broadcast %56 : vector<256x1xf32> to vector<256x128xf32>
    %58 = arith.mulf %55, %57 : vector<256x128xf32>
    %59 = vector.extract_strided_slice %54 {offsets = [8, 0], sizes = [256, 128], strides = [1, 1]} : vector<304x128xf32> to vector<256x128xf32>
    %60 = vector.extract_strided_slice %6 {offsets = [0, 1], sizes = [256, 1], strides = [1, 1]} : vector<256x128xf32> to vector<256x1xf32>
    %61 = vector.broadcast %60 : vector<256x1xf32> to vector<256x128xf32>
    %62 = arith.mulf %59, %61 : vector<256x128xf32>
    %63 = vector.extract_strided_slice %54 {offsets = [9, 0], sizes = [256, 128], strides = [1, 1]} : vector<304x128xf32> to vector<256x128xf32>
    %64 = vector.extract_strided_slice %6 {offsets = [0, 2], sizes = [256, 1], strides = [1, 1]} : vector<256x128xf32> to vector<256x1xf32>
    %65 = vector.broadcast %64 : vector<256x1xf32> to vector<256x128xf32>
    %66 = arith.mulf %63, %65 : vector<256x128xf32>
    %67 = vector.extract_strided_slice %54 {offsets = [23, 0], sizes = [256, 128], strides = [1, 1]} : vector<304x128xf32> to vector<256x128xf32>
    %68 = vector.extract_strided_slice %6 {offsets = [0, 3], sizes = [256, 1], strides = [1, 1]} : vector<256x128xf32> to vector<256x1xf32>
    %69 = vector.broadcast %68 : vector<256x1xf32> to vector<256x128xf32>
    %70 = arith.mulf %67, %69 : vector<256x128xf32>
    %71 = vector.extract_strided_slice %54 {offsets = [24, 0], sizes = [256, 128], strides = [1, 1]} : vector<304x128xf32> to vector<256x128xf32>
    %72 = vector.extract_strided_slice %6 {offsets = [0, 4], sizes = [256, 1], strides = [1, 1]} : vector<256x128xf32> to vector<256x1xf32>
    %73 = vector.broadcast %72 : vector<256x1xf32> to vector<256x128xf32>
    %74 = arith.mulf %71, %73 : vector<256x128xf32>
    %75 = vector.extract_strided_slice %54 {offsets = [25, 0], sizes = [256, 128], strides = [1, 1]} : vector<304x128xf32> to vector<256x128xf32>
    %76 = vector.extract_strided_slice %6 {offsets = [0, 5], sizes = [256, 1], strides = [1, 1]} : vector<256x128xf32> to vector<256x1xf32>
    %77 = vector.broadcast %76 : vector<256x1xf32> to vector<256x128xf32>
    %78 = arith.mulf %75, %77 : vector<256x128xf32>
    %79 = vector.extract_strided_slice %54 {offsets = [39, 0], sizes = [256, 128], strides = [1, 1]} : vector<304x128xf32> to vector<256x128xf32>
    %80 = vector.extract_strided_slice %6 {offsets = [0, 6], sizes = [256, 1], strides = [1, 1]} : vector<256x128xf32> to vector<256x1xf32>
    %81 = vector.broadcast %80 : vector<256x1xf32> to vector<256x128xf32>
    %82 = arith.mulf %79, %81 : vector<256x128xf32>
    %83 = vector.extract_strided_slice %54 {offsets = [40, 0], sizes = [256, 128], strides = [1, 1]} : vector<304x128xf32> to vector<256x128xf32>
    %84 = vector.extract_strided_slice %6 {offsets = [0, 7], sizes = [256, 1], strides = [1, 1]} : vector<256x128xf32> to vector<256x1xf32>
    %85 = vector.broadcast %84 : vector<256x1xf32> to vector<256x128xf32>
    %86 = arith.mulf %83, %85 : vector<256x128xf32>
    %87 = vector.extract_strided_slice %54 {offsets = [41, 0], sizes = [256, 128], strides = [1, 1]} : vector<304x128xf32> to vector<256x128xf32>
    %88 = vector.extract_strided_slice %6 {offsets = [0, 8], sizes = [256, 1], strides = [1, 1]} : vector<256x128xf32> to vector<256x1xf32>
    %89 = vector.broadcast %88 : vector<256x1xf32> to vector<256x128xf32>
    %90 = arith.mulf %87, %89 : vector<256x128xf32>
    %91 = tpu.concatenate %58, %62, %66, %70, %74, %78, %82, %86, %90 in 1 : vector<256x128xf32>, vector<256x128xf32>, vector<256x128xf32>, vector<256x128xf32>, vector<256x128xf32>, vector<256x128xf32>, vector<256x128xf32>, vector<256x128xf32>, vector<256x128xf32> -> vector<256x1152xf32>
    %cst_18 = arith.constant dense<0.000000e+00> : vector<256x128xf32>
    %92 = tpu.matmul %91, %51, %cst_18 {dimension_numbers = #tpu.dot_dimension_numbers<[1], [0], [0], [1], [0, 0, 1, 1], [], []>} : vector<256x1152xf32>, vector<1152x128xf32>, vector<256x128xf32> -> vector<256x128xf32>
    %93 = vector.broadcast %52 : vector<1x128xf32> to vector<256x128xf32>
    %94 = arith.addf %92, %93 : vector<256x128xf32>
    %95 = arith.addf %50, %94 : vector<256x128xf32>
    %c0_19 = arith.constant 0 : index
    %c0_20 = arith.constant 0 : index
    %96 = vector.load %arg9[%c0_19, %c0_20] : memref<256x128xf32, #tpu.memory_space<vmem>>, vector<256x128xf32>
    tpu.vector_store %arg9[%c0_19, %c0_20], %95 {strides = array<i32>} : memref<256x128xf32, #tpu.memory_space<vmem>>, vector<256x128xf32>,
    return
  }
  func.func @transform_0(%arg0: i32) -> (i32, i32) {
    %c0_i32 = arith.constant 0 : i32
    %c0_i32_0 = arith.constant 0 : i32
    return %arg0, %c0_i32 : i32, i32
  }
  func.func @transform_1(%arg0: i32) -> (i32, i32) {
    %c0_i32 = arith.constant 0 : i32
    %c0_i32_0 = arith.constant 0 : i32
    %c0_i32_1 = arith.constant 0 : i32
    return %c0_i32, %c0_i32_0 : i32, i32
  }
  func.func @transform_2(%arg0: i32) -> (i32, i32) {
    %c0_i32 = arith.constant 0 : i32
    %c0_i32_0 = arith.constant 0 : i32
    %c0_i32_1 = arith.constant 0 : i32
    return %c0_i32, %c0_i32_0 : i32, i32
  }
  func.func @transform_3(%arg0: i32) -> (i32, i32) {
    %c0_i32 = arith.constant 0 : i32
    %c0_i32_0 = arith.constant 0 : i32
    %c0_i32_1 = arith.constant 0 : i32
    return %c0_i32, %c0_i32_0 : i32, i32
  }
  func.func @transform_4(%arg0: i32) -> (i32, i32) {
    %c0_i32 = arith.constant 0 : i32
    %c0_i32_0 = arith.constant 0 : i32
    %c0_i32_1 = arith.constant 0 : i32
    return %c0_i32, %c0_i32_0 : i32, i32
  }
  func.func @transform_5(%arg0: i32) -> (i32, i32) {
    %c0_i32 = arith.constant 0 : i32
    %c0_i32_0 = arith.constant 0 : i32
    %c0_i32_1 = arith.constant 0 : i32
    return %c0_i32, %c0_i32_0 : i32, i32
  }
  func.func @transform_6(%arg0: i32) -> (i32, i32) {
    %c0_i32 = arith.constant 0 : i32
    %c0_i32_0 = arith.constant 0 : i32
    %c0_i32_1 = arith.constant 0 : i32
    return %c0_i32, %c0_i32_0 : i32, i32
  }
  func.func @transform_7(%arg0: i32) -> (i32, i32) {
    %c0_i32 = arith.constant 0 : i32
    %c0_i32_0 = arith.constant 0 : i32
    %c0_i32_1 = arith.constant 0 : i32
    return %c0_i32, %c0_i32_0 : i32, i32
  }
  func.func @transform_8(%arg0: i32) -> (i32, i32) {
    %c0_i32 = arith.constant 0 : i32
    %c0_i32_0 = arith.constant 0 : i32
    return %arg0, %c0_i32 : i32, i32
  }
}

</mosaic_0001>

<bundles_post_ra>
// kernel: inception_forward.1
= control target key start
LH: loop header
LB: loop body
LE: loop exit
PB: predicated region body
PF: predicated region fallthrough
CT: control target
= control target key end

     0   :  { %s9234_s27 = smov 0   ;;  %s18906_s0 = inlined_call_operand.vmem [shape: f32[512,128], index: 0, kind: input, shape index: {}]   ;;  %s18907_s1 = inlined_call_operand.vmem [shape: f32[256,128], index: 1, kind: input, shape index: {}]   ;;  %s18908_s2 = inlined_call_operand.vmem [shape: f32[128,128], index: 2, kind: input, shape index: {}]   ;;  %s18909_s3 = inlined_call_operand.vmem [shape: f32[1,128], index: 3, kind: input, shape index: {}]   ;;  %s18910_s4 = inlined_call_operand.vmem [shape: f32[1152,128], index: 4, kind: input, shape index: {}]   ;;  %s18911_s5 = inlined_call_operand.vmem [shape: f32[1,128], index: 5, kind: input, shape index: {}]   ;;  %s18912_s6 = inlined_call_operand.vmem [shape: f32[1152,128], index: 6, kind: input, shape index: {}]   ;;  %s18913_s7 = inlined_call_operand.vmem [shape: f32[1,128], index: 7, kind: input, shape index: {}]   ;;  %s18914_s8 = inlined_call_operand.vmem [shape: f32[512,128], index: 8, kind: output, shape index: {}]  }
   0x1 LB: > { %s8479_s28 = sadd.s32 4294967295, %s9177_s27   ;;  %p8483_p0 = scmp.ge.s32.totalorder %s9177_s27, 1  ;;  %s9177_s27 = sphi %s9234_s27, %s18_s27  }
   0x2   : > { %p263_p1 = scmp.lt.s32.totalorder %s9177_s27, 3 }
   0x4   : > { %p264_p2 = pnand %p8483_p0, %p263_p1 }
   0x6   : > { %267 = sbr.rel (%p264_p2) target bundleno = 1613 (0x64d), region = 52 }
   0xb   : > { %v356_v0 = vld [vmem:[%s18908_s2 + $0x78] sm:$0xff]  ;;  %v9248_v1 = vld [vmem:[%s18907_s1 + $0x10] sm:$0xff]  ;;  %v9253_v2 = vld [vmem:[%s18907_s1 + $0x8] sm:$0xff]  ;;  %s8484_s13 = sshll.u32 %s8479_s28, 5  ;;  %v9179_v3 = vmov 1   ;;  %v9180_v4 = vmov 0  }
   0xc   : > { %8929 = vset.pattern.permute.xlu0 %v9179_v3  ;;  %8927 = vset.pattern.permute.xlu1 %v9180_v4  ;;  %v355_v5 = vld [vmem:[%s18908_s2 + $0x70] sm:$0xff]  ;;  %p298_p3 = scmp.lt.s32.totalorder %s8484_s13, 63  ;;  %v354_v6 = vld [vmem:[%s18908_s2 + $0x68] sm:$0xff]  ;;  %v9268_v7 = vld [vmem:[%s18907_s1 + $0x18] sm:$0xff]  ;;  %v18926_v52 = vmov 0.0   ;;  %vm894_vm0 = vcmask 1046528  }
   0xd   : > { %8637 = vmatprep.subr.mxu0 %v356_v0  ;;  %776 = vperm.xlu1 %8927, %v9248_v1   ;;  %v9275_v8 = vld [vmem:[%s18907_s1 + $0x20] sm:$0xff]  ;;  %v352_v10 = vld [vmem:[%s18908_s2 + $0x58] sm:$0xff]  ;;  %v9289_v11 = vld [vmem:[%s18907_s1 + $0x28] sm:$0xff]  ;;  %vm1280_vm1 = vcmask 1040384   ;;  %vm2758_vm2 = vcmask 1045504  }
   0xe   : > { %1029 = vperm.xlu0 %8929, %v9253_v2   ;;  %8638 = vmatpush3.msra.mxu0 %v356_v0  ;;  %s21006_s13 = smov (!%p298_p3, %s8484_s13), 63  ;;  %v353_v9 = vld [vmem:[%s18908_s2 + $0x60] sm:$0xff]  ;;  %v9301_v12 = vld [vmem:[%s18907_s1 + $0x30] sm:$0xff]  ;;  %v350_v15 = vld [vmem:[%s18908_s2 + $0x48] sm:$0xff] }
   0xf   : > { %8639 = vmatprep.subr.mxu0 %v355_v5  ;;  %s8485_s24 = sshll.u32 %s21006_s13, 3  ;;  %v351_v13 = vld [vmem:[%s18908_s2 + $0x50] sm:$0xff]  ;;  %v9315_v16 = vld [vmem:[%s18907_s1 + $0x38] sm:$0xff]  ;;  %v9320_v17 = vld [vmem:[%s18907_s1 + $0x40] sm:$0xff]  ;;  %4188 = vmatprep.subr.mxu1 %v18926_v52 }
  0x10   : > { %8640 = vmatpush3.msra.mxu0 %v355_v5  ;;  %s9296_s10 = scalar_lea.vmem %s18906_s0, %s8485_s24  ;;  %v349_v18 = vld [vmem:[%s18908_s2 + $0x40] sm:$0xff]  ;;  %v348_v19 = vld [vmem:[%s18908_s2 + $0x38] sm:$0xff]  ;;  %v9333_v20 = vld [vmem:[%s18907_s1 + $0x48] sm:$0xff]  ;;  %s18801_s9 = scalar_lea.vmem %s18914_s8, %s8485_s24 }
  0x11   : > { %8641 = vmatprep.subr.mxu0 %v354_v6  ;;  %780 = vperm.xlu1 %8927, %v9268_v7   ;;  %v309_v14 = vld [vmem:[%s9296_s10] sm:$0xff]  ;;  %v9338_v21 = vld [vmem:[%s18907_s1 + $0x50] sm:$0xff]  ;;  %v346_v23 = vld [vmem:[%s18908_s2 + $0x28] sm:$0xff] }
  0x12   : > { %1041 = vperm.xlu0 %8929, %v9275_v8   ;;  %8642 = vmatpush3.msra.mxu0 %v354_v6  ;;  %v347_v22 = vld [vmem:[%s18908_s2 + $0x30] sm:$0xff]  ;;  %v9351_v24 = vld [vmem:[%s18907_s1 + $0x58] sm:$0xff]  ;;  %v9356_v25 = vld [vmem:[%s18907_s1 + $0x60] sm:$0xff] }
  0x13   : > { %8643 = vmatprep.subr.mxu0 %v353_v9  ;;  %8669 = vmatprep.mubr.f32.mxu0 %v309_v14  ;;  %v345_v26 = vld [vmem:[%s18908_s2 + $0x20] sm:$0xff]  ;;  %v344_v27 = vld [vmem:[%s18908_s2 + $0x18] sm:$0xff]  ;;  %v9369_v28 = vld [vmem:[%s18907_s1 + $0x68] sm:$0xff] }
  0x14   : > { %8644 = vmatpush3.msra.mxu0 %v353_v9  ;;  %v9374_v29 = vld [vmem:[%s18907_s1 + $0x70] sm:$0xff]  ;;  %v342_v31 = vld [vmem:[%s18908_s2 + $0x8] sm:$0xff]  ;;  %v9387_v32 = vld [vmem:[%s18907_s1 + $0x78] sm:$0xff] }
  0x15   : > { %8645 = vmatprep.subr.mxu0 %v352_v10  ;;  %788 = vperm.xlu1 %8927, %v9289_v11   ;;  %v343_v30 = vld [vmem:[%s18908_s2 + $0x10] sm:$0xff]  ;;  %v9392_v33 = vld [vmem:[%s18907_s1 + $0x80] sm:$0xff]  ;;  %v310_v35 = vld [vmem:[%s9296_s10 + $0x8] sm:$0xff] }
  0x16   : > { %1049 = vperm.xlu0 %8929, %v9301_v12   ;;  %8646 = vmatpush3.msra.mxu0 %v352_v10  ;;  %v341_v34 = vld [vmem:[%s18908_s2] sm:$0xff]  ;;  %v9403_v36 = vld [vmem:[%s18907_s1 + $0x88] sm:$0xff]  ;;  %v9408_v37 = vld [vmem:[%s18907_s1 + $0x90] sm:$0xff] }
  0x17   : > { %8647 = vmatprep.subr.mxu0 %v351_v13  ;;  %v311_v38 = vld [vmem:[%s9296_s10 + $0x10] sm:$0xff]  ;;  %v312_v39 = vld [vmem:[%s9296_s10 + $0x18] sm:$0xff]  ;;  %v9422_v41 = vld [vmem:[%s18907_s1 + $0xa0] sm:$0xff] }
  0x18   : > { %8648 = vmatpush3.msra.mxu0 %v351_v13  ;;  %v9417_v40 = vld [vmem:[%s18907_s1 + $0x98] sm:$0xff]  ;;  %v313_v42 = vld [vmem:[%s9296_s10 + $0x20] sm:$0xff]  ;;  %v314_v43 = vld [vmem:[%s9296_s10 + $0x28] sm:$0xff] }
  0x19   : > { %8649 = vmatprep.subr.mxu0 %v350_v15  ;;  %796 = vperm.xlu1 %8927, %v9315_v16   ;;  %v9431_v44 = vld [vmem:[%s18907_s1 + $0xa8] sm:$0xff]  ;;  %v9436_v45 = vld [vmem:[%s18907_s1 + $0xb0] sm:$0xff]  ;;  %v636_v47 = vld [vmem:[%s18910_s4 + $0x78] sm:$0xff] }
  0x1a   : > { %1057 = vperm.xlu0 %8929, %v9320_v17   ;;  %8650 = vmatpush3.msra.mxu0 %v350_v15  ;;  %v315_v46 = vld [vmem:[%s9296_s10 + $0x30] sm:$0xff]  ;;  %v316_v48 = vld [vmem:[%s9296_s10 + $0x38] sm:$0xff]  ;;  %v9453_v50 = vld [vmem:[%s18907_s1 + $0xc0] sm:$0xff] }
  0x1b   : > { %8651 = vmatprep.subr.mxu0 %v349_v18  ;;  %v9448_v49 = vld [vmem:[%s18907_s1 + $0xb8] sm:$0xff]  ;;  %v317_v51 = vld [vmem:[%s9296_s10 + $0x40] sm:$0xff]  ;;  %4189 = vmatpush1.msra.mxu1 %v636_v47  ;;  %v635_v53 = vld [vmem:[%s18910_s4 + $0x70] sm:$0xff] }
  0x1c   : > { %8652 = vmatpush3.msra.mxu0 %v349_v18  ;;  %v318_v54 = vld [vmem:[%s9296_s10 + $0x48] sm:$0xff]  ;;  %v9472_v56 = vld [vmem:[%s18907_s1 + $0xd0] sm:$0xff]  ;;  %4190 = vmatprep.subr.mxu1 %v18926_v52  ;;  %v320_v59 = vld [vmem:[%s9296_s10 + $0x58] sm:$0xff] }
  0x1d   : > { %8653 = vmatprep.subr.mxu0 %v348_v19  ;;  %804 = vperm.xlu1 %8927, %v9333_v20   ;;  %v9467_v55 = vld [vmem:[%s18907_s1 + $0xc8] sm:$0xff]  ;;  %v319_v57 = vld [vmem:[%s9296_s10 + $0x50] sm:$0xff]  ;;  %v9485_v60 = vld [vmem:[%s18907_s1 + $0xd8] sm:$0xff] }
  0x1e   : > { %1065 = vperm.xlu0 %8929, %v9338_v21   ;;  %8654 = vmatpush3.msra.mxu0 %v348_v19  ;;  %v634_v58 = vld [vmem:[%s18910_s4 + $0x68] sm:$0xff]  ;;  %v9490_v61 = vld [vmem:[%s18907_s1 + $0xe0] sm:$0xff]  ;;  %v9508_v6 = vld [vmem:[%s18907_s1 + $0xf0] sm:$0xff] }
  0x1f   : > { %8655 = vmatprep.subr.mxu0 %v347_v22  ;;  %4191 = vmatpush1.msra.mxu1 %v635_v53  ;;  %v321_v62 = vld [vmem:[%s9296_s10 + $0x60] sm:$0xff]  ;;  %v322_v0 = vld [vmem:[%s9296_s10 + $0x68] sm:$0xff]  ;;  %v323_v9 = vld [vmem:[%s9296_s10 + $0x70] sm:$0xff] }
  0x20   : > { %8656 = vmatpush3.msra.mxu0 %v347_v22  ;;  %4192 = vmatprep.subr.mxu1 %v18926_v52  ;;  %v633_v63 = vld [vmem:[%s18910_s4 + $0x60] sm:$0xff]  ;;  %v9503_v5 = vld [vmem:[%s18907_s1 + $0xe8] sm:$0xff]  ;;  %v632_v10 = vld [vmem:[%s18910_s4 + $0x58] sm:$0xff] }
  0x21   : > { %8657 = vmatprep.subr.mxu0 %v346_v23  ;;  %812 = vperm.xlu1 %8927, %v9351_v24   ;;  %v324_v13 = vld [vmem:[%s9296_s10 + $0x78] sm:$0xff]  ;;  %v9521_v14 = vld [vmem:[%s18907_s1] sm:$0xff]  ;;  %v326_v18 = vld [vmem:[%s9296_s10 + $0x88] sm:$0xff] }
  0x22   : > { %1073 = vperm.xlu0 %8929, %v9356_v25   ;;  %8658 = vmatpush3.msra.mxu0 %v346_v23  ;;  %v325_v15 = vld [vmem:[%s9296_s10 + $0x80] sm:$0xff]  ;;  %v631_v19 = vld [vmem:[%s18910_s4 + $0x50] sm:$0xff]  ;;  %v624_v47 = vld [vmem:[%s18910_s4 + $0x18] sm:$0xff] }
  0x23   : > { %8659 = vmatprep.subr.mxu0 %v345_v26  ;;  %4193 = vmatpush1.msra.mxu1 %v634_v58  ;;  %v327_v22 = vld [vmem:[%s9296_s10 + $0x90] sm:$0xff]  ;;  %v329_v23 = vld [vmem:[%s9296_s10 + $0xa0] sm:$0xff] }
  0x24   : > { %8660 = vmatpush3.msra.mxu0 %v345_v26  ;;  %4194 = vmatprep.subr.mxu1 %v18926_v52  ;;  %v629_v26 = vld [vmem:[%s18910_s4 + $0x40] sm:$0xff]  ;;  %v623_v53 = vld [vmem:[%s18910_s4 + $0x10] sm:$0xff] }
  0x25   : > { %8661 = vmatprep.subr.mxu0 %v344_v27  ;;  %820 = vperm.xlu1 %8927, %v9369_v28   ;;  %v621_v58 = vld [vmem:[%s18910_s4] sm:$0xff] }
  0x26   : > { %1081 = vperm.xlu0 %8929, %v9374_v29   ;;  %8662 = vmatpush3.msra.mxu0 %v344_v27  ;;  %v330_v27 = vld [vmem:[%s9296_s10 + $0xa8] sm:$0xff] }
  0x27   : > { %8663 = vmatprep.subr.mxu0 %v343_v30  ;;  %4195 = vmatpush1.msra.mxu1 %v633_v63  ;;  %v650_v63 = vld [vmem:[%s18910_s4 + $0xe8] sm:$0xff] }
  0x28   : > { %8664 = vmatpush3.msra.mxu0 %v343_v30  ;;  %4196 = vmatprep.subr.mxu1 %v18926_v52  ;;  %v628_v30 = vld [vmem:[%s18910_s4 + $0x38] sm:$0xff] }
  0x29   : > { %8665 = vmatprep.subr.mxu0 %v342_v31  ;;  %828 = vperm.xlu1 %8927, %v9387_v32  }
  0x2a   : > { %1089 = vperm.xlu0 %8929, %v9392_v33   ;;  %8666 = vmatpush3.msra.mxu0 %v342_v31  ;;  %v331_v31 = vld [vmem:[%s9296_s10 + $0xb0] sm:$0xff] }
  0x2b   : > { %8667 = vmatprep.subr.mxu0 %v341_v34  ;;  %4197 = vmatpush1.msra.mxu1 %v632_v10  ;;  %v666_v10 = vld [vmem:[%s18910_s4 + $0x168] sm:$0xff] }
  0x2c   : > { %8668 = vmatpush3.msra.mxu0 %v341_v34  ;;  %4198 = vmatprep.subr.mxu1 %v18926_v52  ;;  %v627_v34 = vld [vmem:[%s18910_s4 + $0x30] sm:$0xff] }
  0x2d   : > { %8670 = vmatmul.mubr.f32.vlgmr.msra.gmra.mxu0 %v310_v35  ;;  %836 = vperm.xlu1 %8927, %v9403_v36   ;;  %v332_v35 = vld [vmem:[%s9296_s10 + $0xb8] sm:$0xff] }
  0x2e   : > { %1097 = vperm.xlu0 %8929, %v9408_v37   ;;  %8672 = vmatprep.mubr.f32.mxu0 %v311_v38  ;;  %v333_v38 = vld [vmem:[%s9296_s10 + $0xc0] sm:$0xff] }
  0x2f   : > { %4413 = vmatprep.subr.mxu0 %v18926_v52  ;;  %4199 = vmatpush1.msra.mxu1 %v631_v19  ;;  %v664_v19 = vld [vmem:[%s18910_s4 + $0x158] sm:$0xff] }
  0x30   : > { %4200 = vmatprep.subr.mxu1 %v18926_v52 }
  0x31   : > { %8673 = vmatmul.mubr.f32.gmra.mxu0 %v312_v39  ;;  %844 = vperm.xlu1 %8927, %v9417_v40   ;;  %v626_v39 = vld [vmem:[%s18910_s4 + $0x28] sm:$0xff] }
  0x32   : > { %1105 = vperm.xlu0 %8929, %v9422_v41   ;;  %8675 = vmatprep.mubr.f32.mxu0 %v313_v42  ;;  %v334_v42 = vld [vmem:[%s9296_s10 + $0xc8] sm:$0xff] }
  0x35   : > { %8676 = vmatmul.mubr.f32.gmra.mxu0 %v314_v43  ;;  %852 = vperm.xlu1 %8927, %v9431_v44   ;;  %v625_v43 = vld [vmem:[%s18910_s4 + $0x20] sm:$0xff] }
  0x36   : > { %1113 = vperm.xlu0 %8929, %v9436_v45   ;;  %8678 = vmatprep.mubr.f32.mxu0 %v315_v46  ;;  %v335_v46 = vld [vmem:[%s9296_s10 + $0xd0] sm:$0xff] }
  0x39   : > { %8679 = vmatmul.mubr.f32.gmra.mxu0 %v316_v48  ;;  %860 = vperm.xlu1 %8927, %v9448_v49   ;;  %v336_v48 = vld [vmem:[%s9296_s10 + $0xd8] sm:$0xff] }
  0x3a   : > { %1121 = vperm.xlu0 %8929, %v9453_v50   ;;  %8681 = vmatprep.mubr.f32.mxu0 %v317_v51  ;;  %v337_v51 = vld [vmem:[%s9296_s10 + $0xe0] sm:$0xff] }
  0x3d   : > { %8682 = vmatmul.mubr.f32.gmra.mxu0 %v318_v54  ;;  %868 = vperm.xlu1 %8927, %v9467_v55   ;;  %v338_v54 = vld [vmem:[%s9296_s10 + $0xe8] sm:$0xff] }
  0x3e   : > { %1129 = vperm.xlu0 %8929, %v9472_v56   ;;  %8684 = vmatprep.mubr.f32.mxu0 %v319_v57  ;;  %v622_v57 = vld [vmem:[%s18910_s4 + $0x8] sm:$0xff] }
  0x41   : > { %8685 = vmatmul.mubr.f32.gmra.mxu0 %v320_v59  ;;  %876 = vperm.xlu1 %8927, %v9485_v60   ;;  %v652_v59 = vld [vmem:[%s18910_s4 + $0xf8] sm:$0xff] }
  0x42   : > { %1137 = vperm.xlu0 %8929, %v9490_v61   ;;  %8687 = vmatprep.mubr.f32.mxu0 %v321_v62  ;;  %v668_v62 = vld [vmem:[%s18910_s4 + $0x178] sm:$0xff] }
  0x43   : > { %4414 = vmatpush1.msra.mxu0 %v668_v62  ;;  %v684_v62 = vld [vmem:[%s18910_s4 + $0x1f8] sm:$0xff] }
  0x44   : > { %4415 = vmatprep.subr.mxu0 %v18926_v52 }
  0x45   : > { %8688 = vmatmul.mubr.f32.gmra.mxu0 %v322_v0  ;;  %884 = vperm.xlu1 %8927, %v9503_v5   ;;  %v667_v0 = vld [vmem:[%s18910_s4 + $0x170] sm:$0xff] }
  0x46   : > { %1145 = vperm.xlu0 %8929, %v9508_v6   ;;  %8690 = vmatprep.mubr.f32.mxu0 %v323_v9  ;;  %v649_v9 = vld [vmem:[%s18910_s4 + $0xe0] sm:$0xff] }
  0x47   : > { %4416 = vmatpush1.msra.mxu0 %v667_v0  ;;  %v683_v0 = vld [vmem:[%s18910_s4 + $0x1f0] sm:$0xff] }
  0x48   : > { %4417 = vmatprep.subr.mxu0 %v18926_v52 }
  0x49   : > { %8691 = vmatmul.mubr.f32.gmra.mxu0 %v324_v13  ;;  %8928 = vset.pattern.permute.xlu1 %v9179_v3  ;;  %v630_v3 = vld [vmem:[%s18910_s4 + $0x48] sm:$0xff]  ;;  %v647_v13 = vld [vmem:[%s18910_s4 + $0xd0] sm:$0xff] }
  0x4a   : > { %8930 = vset.pattern.permute.xlu0 %v9180_v4  ;;  %1025 = vperm.xlu1 %8928, %v9521_v14   ;;  %v328_v4 = vld [vmem:[%s9296_s10 + $0x98] sm:$0xff] }
  0x4b   : > { %768 = vperm.xlu0 %8930, %v9521_v14   ;;  %8693 = vmatprep.mubr.f32.mxu0 %v325_v15  ;;  %v646_v15 = vld [vmem:[%s18910_s4 + $0xc8] sm:$0xff] }
  0x4c   : > { %4201 = vmatpush1.msra.mxu1 %v630_v3  ;;  %4418 = vmatpush1.msra.mxu0 %v666_v10  ;;  %v641_v3 = vld [vmem:[%s18910_s4 + $0xa0] sm:$0xff] }
  0x4d   : > { %8694 = vmatmul.mubr.f32.gmra.mxu0 %v326_v18  ;;  %4202 = vmatprep.subr.mxu1 %v18926_v52  ;;  %v645_v18 = vld [vmem:[%s18910_s4 + $0xc0] sm:$0xff] }
  0x4e   : > { %1033 = vperm.xlu1 %8928, %v9248_v1   ;;  %8696 = vmatprep.mubr.f32.mxu0 %v327_v22  ;;  %v643_v22 = vld [vmem:[%s18910_s4 + $0xb0] sm:$0xff]  ;;  %v681_v10 = vld [vmem:[%s18910_s4 + $0x1e0] sm:$0xff] }
  0x4f   : > { %772 = vperm.xlu0 %8930, %v9253_v2   ;;  %4203 = vmatpush1.msra.mxu1 %v629_v26  ;;  %v661_v26 = vld [vmem:[%s18910_s4 + $0x140] sm:$0xff] }
  0x50   : > { %4204 = vmatprep.subr.mxu1 %v18926_v52  ;;  %4419 = vmatprep.subr.mxu0 %v18926_v52 }
  0x51   : > { %8697 = vmatmul.mubr.f32.gmra.mxu0 %v328_v4  ;;  %4205 = vmatpush1.msra.mxu1 %v628_v30  ;;  %v640_v4 = vld [vmem:[%s18910_s4 + $0x98] sm:$0xff] }
  0x52   : > { %1037 = vperm.xlu1 %8928, %v9268_v7   ;;  %8699 = vmatprep.mubr.f32.mxu0 %v329_v23  ;;  %v639_v23 = vld [vmem:[%s18910_s4 + $0x90] sm:$0xff] }
  0x53   : > { %784 = vperm.xlu0 %8930, %v9275_v8   ;;  %4206 = vmatprep.subr.mxu1 %v18926_v52 }
  0x54   : > { %4207 = vmatpush1.msra.mxu1 %v627_v34 }
  0x55   : > { %8700 = vmatmul.mubr.f32.gmra.mxu0 %v330_v27  ;;  %4208 = vmatprep.subr.mxu1 %v18926_v52  ;;  %v637_v27 = vld [vmem:[%s18910_s4 + $0x80] sm:$0xff] }
  0x56   : > { %1045 = vperm.xlu1 %8928, %v9289_v11   ;;  %8702 = vmatprep.mubr.f32.mxu0 %v331_v31  ;;  %v659_v31 = vld [vmem:[%s18910_s4 + $0x130] sm:$0xff] }
  0x57   : > { %792 = vperm.xlu0 %8930, %v9301_v12   ;;  %4209 = vmatpush1.msra.mxu1 %v626_v39  ;;  %v657_v39 = vld [vmem:[%s18910_s4 + $0x120] sm:$0xff] }
  0x58   : > { %4210 = vmatprep.subr.mxu1 %v18926_v52 }
  0x59   : > { %8703 = vmatmul.mubr.f32.gmra.mxu0 %v332_v35  ;;  %4211 = vmatpush1.msra.mxu1 %v625_v43  ;;  %v18922_v43 = vmov 3  }
  0x5a   : > { %1053 = vperm.xlu1 %8928, %v9315_v16   ;;  %8705 = vmatprep.mubr.f32.mxu0 %v333_v38 }
  0x5b   : > { %800 = vperm.xlu0 %8930, %v9320_v17   ;;  %4212 = vmatprep.subr.mxu1 %v18926_v52 }
  0x5c   : > { %4213 = vmatpush1.msra.mxu1 %v624_v47 }
  0x5d   : > { %8706 = vmatmul.mubr.f32.gmra.mxu0 %v334_v42  ;;  %4214 = vmatprep.subr.mxu1 %v18926_v52  ;;  %v18915_v42 = vmov 5  }
  0x5e   : > { %1061 = vperm.xlu1 %8928, %v9333_v20   ;;  %8708 = vmatprep.mubr.f32.mxu0 %v335_v46  ;;  %v656_v46 = vld [vmem:[%s18910_s4 + $0x118] sm:$0xff] }
  0x5f   : > { %808 = vperm.xlu0 %8930, %v9338_v21   ;;  %4215 = vmatpush1.msra.mxu1 %v623_v53  ;;  %v654_v53 = vld [vmem:[%s18910_s4 + $0x108] sm:$0xff] }
  0x60   : > { %4216 = vmatprep.subr.mxu1 %v18926_v52 }
  0x61   : > { %8709 = vmatmul.mubr.f32.gmra.mxu0 %v336_v48  ;;  %4217 = vmatpush1.msra.mxu1 %v622_v57 }
  0x62   : > { %1069 = vperm.xlu1 %8928, %v9351_v24   ;;  %8711 = vmatprep.mubr.f32.mxu0 %v337_v51  ;;  %v655_v51 = vld [vmem:[%s18910_s4 + $0x110] sm:$0xff] }
  0x63   : > { %816 = vperm.xlu0 %8930, %v9356_v25   ;;  %4218 = vmatprep.subr.mxu1 %v18926_v52  ;;  %v651_v25 = vld [vmem:[%s18910_s4 + $0xf0] sm:$0xff] }
  0x64   : > { %4219 = vmatpush1.msra.mxu1 %v621_v58  ;;  %v653_v58 = vld [vmem:[%s18910_s4 + $0x100] sm:$0xff] }
  0x65   : > { %8712 = vmatmul.mubr.f32.gmra.mxu0 %v338_v54  ;;  %4220 = vmatprep.subr.mxu1 %v18926_v52 }
  0x66   : > { %1077 = vperm.xlu1 %8928, %v9369_v28   ;;  %4221 = vmatpush2.msra.mxu1 %v652_v59  ;;  %v18917_v59 = vmov 2  }
  0x67   : > { %824 = vperm.xlu0 %8930, %v9374_v29   ;;  %4222 = vmatprep.subr.mxu1 %v18926_v52 }
  0x68   : > { %4223 = vmatpush2.msra.mxu1 %v651_v25 }
  0x69   : > { %4224 = vmatprep.subr.mxu1 %v18926_v52 }
  0x6a   : > { %1085 = vperm.xlu1 %8928, %v9387_v32   ;;  %4225 = vmatpush2.msra.mxu1 %v650_v63  ;;  %v648_v32 = vld [vmem:[%s18910_s4 + $0xd8] sm:$0xff] }
  0x6b   : > { %832 = vperm.xlu0 %8930, %v9392_v33   ;;  %4226 = vmatprep.subr.mxu1 %v18926_v52 }
  0x6c   : > { %4227 = vmatpush2.msra.mxu1 %v649_v9 }
  0x6d   : > { %4228 = vmatprep.subr.mxu1 %v18926_v52 }
  0x6e   : > { %1093 = vperm.xlu1 %8928, %v9403_v36   ;;  %4229 = vmatpush2.msra.mxu1 %v648_v32  ;;  %v682_v32 = vld [vmem:[%s18910_s4 + $0x1e8] sm:$0xff] }
  0x6f   : > { %840 = vperm.xlu0 %8930, %v9408_v37   ;;  %4230 = vmatprep.subr.mxu1 %v18926_v52  ;;  %v665_v37 = vld [vmem:[%s18910_s4 + $0x160] sm:$0xff] }
  0x70   : > { %4231 = vmatpush2.msra.mxu1 %v647_v13  ;;  %4420 = vmatpush1.msra.mxu0 %v665_v37  ;;  %v680_v37 = vld [vmem:[%s18910_s4 + $0x1d8] sm:$0xff] }
  0x71   : > { %4232 = vmatprep.subr.mxu1 %v18926_v52  ;;  %4421 = vmatprep.subr.mxu0 %v18926_v52 }
  0x72   : > { %1101 = vperm.xlu1 %8928, %v9417_v40   ;;  %4233 = vmatpush2.msra.mxu1 %v646_v15  ;;  %v644_v40 = vld [vmem:[%s18910_s4 + $0xb8] sm:$0xff]  ;;  %v18920_v15 = vmov 4  }
  0x73   : > { %848 = vperm.xlu0 %8930, %v9422_v41   ;;  %4234 = vmatprep.subr.mxu1 %v18926_v52 }
  0x74   : > { %4235 = vmatpush2.msra.mxu1 %v645_v18  ;;  %4422 = vmatpush1.msra.mxu0 %v664_v19 }
  0x75   : > { %4236 = vmatprep.subr.mxu1 %v18926_v52  ;;  %4423 = vmatprep.subr.mxu0 %v18926_v52 }
  0x76   : > { %1109 = vperm.xlu1 %8928, %v9431_v44   ;;  %4237 = vmatpush2.msra.mxu1 %v644_v40  ;;  %v642_v44 = vld [vmem:[%s18910_s4 + $0xa8] sm:$0xff]  ;;  %v679_v40 = vld [vmem:[%s18910_s4 + $0x1d0] sm:$0xff] }
  0x77   : > { %856 = vperm.xlu0 %8930, %v9436_v45   ;;  %4238 = vmatprep.subr.mxu1 %v18926_v52  ;;  %v663_v45 = vld [vmem:[%s18910_s4 + $0x150] sm:$0xff] }
  0x78   : > { %4239 = vmatpush2.msra.mxu1 %v643_v22  ;;  %4424 = vmatpush1.msra.mxu0 %v663_v45  ;;  %v678_v22 = vld [vmem:[%s18910_s4 + $0x1c8] sm:$0xff] }
  0x79   : > { %4240 = vmatprep.subr.mxu1 %v18926_v52  ;;  %4425 = vmatprep.subr.mxu0 %v18926_v52 }
  0x7a   : > { %1117 = vperm.xlu1 %8928, %v9448_v49   ;;  %4241 = vmatpush2.msra.mxu1 %v642_v44  ;;  %v340_v44 = vld [vmem:[%s9296_s10 + $0xf8] sm:$0xff] }
  0x7b   : > { %864 = vperm.xlu0 %8930, %v9453_v50   ;;  %4242 = vmatprep.subr.mxu1 %v18926_v52  ;;  %v662_v50 = vld [vmem:[%s18910_s4 + $0x148] sm:$0xff] }
  0x7c   : > { %4243 = vmatpush2.msra.mxu1 %v641_v3  ;;  %4426 = vmatpush1.msra.mxu0 %v662_v50  ;;  %v677_v3 = vld [vmem:[%s18910_s4 + $0x1c0] sm:$0xff] }
  0x7d   : > { %4244 = vmatprep.subr.mxu1 %v18926_v52  ;;  %4427 = vmatprep.subr.mxu0 %v18926_v52 }
  0x7e   : > { %1125 = vperm.xlu1 %8928, %v9467_v55   ;;  %4245 = vmatpush2.msra.mxu1 %v640_v4  ;;  %v638_v55 = vld [vmem:[%s18910_s4 + $0x88] sm:$0xff]  ;;  %v676_v4 = vld [vmem:[%s18910_s4 + $0x1b8] sm:$0xff] }
  0x7f   : > { %872 = vperm.xlu0 %8930, %v9472_v56   ;;  %4246 = vmatprep.subr.mxu1 %v18926_v52 }
  0x80   : > { %4247 = vmatpush2.msra.mxu1 %v639_v23  ;;  %4428 = vmatpush1.msra.mxu0 %v661_v26 }
  0x81   : > { %4248 = vmatprep.subr.mxu1 %v18926_v52  ;;  %4429 = vmatprep.subr.mxu0 %v18926_v52 }
  0x82   : > { %1133 = vperm.xlu1 %8928, %v9485_v60   ;;  %4249 = vmatpush2.msra.mxu1 %v638_v55  ;;  %v660_v60 = vld [vmem:[%s18910_s4 + $0x138] sm:$0xff]  ;;  %v674_v55 = vld [vmem:[%s18910_s4 + $0x1a8] sm:$0xff] }
  0x83   : > { %880 = vperm.xlu0 %8930, %v9490_v61   ;;  %4250 = vmatprep.subr.mxu1 %v18926_v52  ;;  %v620_v61 = vld [vmem:[%s18907_s1 + $0xf8] sm:$0xff] }
  0x84   : > { %4251 = vmatpush2.msra.mxu1 %v637_v27  ;;  %4430 = vmatpush1.msra.mxu0 %v660_v60  ;;  %v672_v60 = vld [vmem:[%s18910_s4 + $0x198] sm:$0xff] }
  0x85   : > { %4638 = vmatprep.subr.mxu1 %v18926_v52  ;;  %4431 = vmatprep.subr.mxu0 %v18926_v52 }
  0x86   : > { %1141 = vperm.xlu1 %8928, %v9503_v5   ;;  %4432 = vmatpush1.msra.mxu0 %v659_v31 }
  0x87   : > { %888 = vperm.xlu0 %8930, %v9508_v6   ;;  %v658_v6 = vld [vmem:[%s18910_s4 + $0x128] sm:$0xff]  ;;  %4433 = vmatprep.subr.mxu0 %v18926_v52 }
  0x88   : > { %v9717_v30 = vpop.permute.xlu1 %776  ;;  %4434 = vmatpush1.msra.mxu0 %v658_v6 }
  0x89   : > { %v9724_v34 = vpop.permute.xlu0 %1029  ;;  %4435 = vmatprep.subr.mxu0 %v18926_v52 }
  0x8a   : > { %1149 = vperm.xlu1 %8928, %v620_v61   ;;  %4436 = vmatpush1.msra.mxu0 %v657_v39 }
  0x8b   : > { %892 = vperm.xlu0 %8930, %v620_v61   ;;  %4437 = vmatprep.subr.mxu0 %v18926_v52 }
  0x8c   : > { %v9730_v35 = vpop.permute.xlu1 %780  ;;  %4438 = vmatpush1.msra.mxu0 %v656_v46 }
  0x8d   : > { %v9733_v38 = vpop.permute.xlu0 %1041  ;;  %4439 = vmatprep.subr.mxu0 %v18926_v52 }
  0x8e   : > { %19522 = vst [vmem:[#allocation2_spill] sm:$0xff] %v9733_v38  ;;  %8931 = vset.pattern.permute.xlu1 %v18915_v42  ;;  %4440 = vmatpush1.msra.mxu0 %v655_v51  ;;  %v669_v51 = vld [vmem:[%s18910_s4 + $0x180] sm:$0xff] }
  0x8f   : > { %8934 = vset.pattern.permute.xlu0 %v18922_v43  ;;  %1796 = vperm.xlu1 %8931, %v9521_v14  }
  0x90   : > { %1414 = vperm.xlu0 %8934, %v9253_v2   ;;  %v9746_v47 = vpop.permute.xlu1 %788  ;;  %4441 = vmatprep.subr.mxu0 %v18926_v52 }
  0x91   : > { %v9748_v48 = vpop.permute.xlu0 %1049  ;;  %4442 = vmatpush1.msra.mxu0 %v654_v53 }
  0x92   : > { %19523 = vst [vmem:[#allocation3_spill] sm:$0xff] %v9748_v48  ;;  %4443 = vmatprep.subr.mxu0 %v18926_v52 }
  0x93   : > { %1799 = vperm.xlu1 %8931, %v9253_v2   ;;  %4444 = vmatpush1.msra.mxu0 %v653_v58 }
  0x94   : > { %1420 = vperm.xlu0 %8934, %v9268_v7   ;;  %v9760_v54 = vpop.permute.xlu1 %796  ;;  %4445 = vmatprep.subr.mxu0 %v18926_v52 }
  0x95   : > { %v9762_v57 = vpop.permute.xlu0 %1057  ;;  %4446 = vmatpush2.msra.mxu0 %v684_v62  ;;  %v1153_v62 = vmul.f32 0.0, %v9724_v34 }
  0x96   : > { %19524 = vst [vmem:[#allocation4_spill] sm:$0xff] %v9762_v57  ;;  %4447 = vmatprep.subr.mxu0 %v18926_v52 }
  0x97   : > { %8932 = vset.pattern.permute.xlu1 %v18917_v59  ;;  %4448 = vmatpush2.msra.mxu0 %v683_v0 }
  0x98   : > { %1429 = vperm.xlu0 %8934, %v9301_v12   ;;  %v9771_v25 = vpop.permute.xlu1 %804  ;;  %1188 = vperm.xlu1 %8932, %v9253_v2  }
  0x99   : > { %v9777_v63 = vpop.permute.xlu0 %1065  ;;  %4449 = vmatprep.subr.mxu0 %v18926_v52 }
  0x9a   : > { %19525 = vst [vmem:[#allocation5_spill] sm:$0xff] %v9777_v63  ;;  %4450 = vmatpush2.msra.mxu0 %v682_v32  ;;  %v9913_v32 = vrot.slane %v1153_v62, 1 }
  0x9b   : > { %4451 = vmatprep.subr.mxu0 %v18926_v52 }
  0x9c   : > { %1438 = vperm.xlu0 %8934, %v9333_v20   ;;  %v9784_v12 = vpop.permute.xlu1 %812  ;;  %8933 = vset.pattern.permute.xlu1 %v18922_v43  ;;  %19541 = vst [vmem:[#allocation21_spill] sm:$0xff] %v9913_v32 }
  0x9d   : > { %v9787_v9 = vpop.permute.xlu0 %1073  ;;  %1411 = vperm.xlu1 %8933, %v9521_v14   ;;  %4452 = vmatpush2.msra.mxu0 %v681_v10 }
  0x9e   : > { %19526 = vst [vmem:[#allocation6_spill] sm:$0xff] %v9787_v9  ;;  %4453 = vmatprep.subr.mxu0 %v18926_v52 }
  0x9f   : > { %4454 = vmatpush2.msra.mxu0 %v680_v37 }
  0xa0   : > { %8956 = vset.pattern.permute.xlu0 %v18917_v59  ;;  %v9796_v20 = vpop.permute.xlu1 %820  ;;  %4455 = vmatprep.subr.mxu0 %v18926_v52 }
  0xa1   : > { %1185 = vperm.xlu0 %8956, %v9521_v14   ;;  %v9802_v13 = vpop.permute.xlu0 %1081  ;;  %8935 = vset.pattern.permute.xlu1 %v18920_v15 }
  0xa2   : > { %19527 = vst [vmem:[#allocation7_spill] sm:$0xff] %v9802_v13  ;;  %1636 = vperm.xlu1 %8935, %v9521_v14   ;;  %v339_v14 = vld [vmem:[%s9296_s10 + $0xf0] sm:$0xff]  ;;  %4456 = vmatpush2.msra.mxu0 %v679_v40 }
  0xa3   : > { %8714 = vmatprep.mubr.f32.mxu0 %v339_v14  ;;  %4457 = vmatprep.subr.mxu0 %v18926_v52 }
  0xa4   : > { %v9810_v18 = vpop.permute.xlu1 %828  ;;  %8715 = vmatmul.mubr.f32.gmra.mxu0 %v340_v44 }
  0xa5   : > { %1197 = vperm.xlu0 %8956, %v9275_v8   ;;  %v9817_v19 = vpop.permute.xlu0 %1089  ;;  %4458 = vmatpush2.msra.mxu0 %v678_v22 }
  0xa6   : > { %19528 = vst [vmem:[#allocation8_spill] sm:$0xff] %v9817_v19  ;;  %1640 = vperm.xlu1 %8935, %v9253_v2   ;;  %4459 = vmatprep.subr.mxu0 %v18926_v52 }
  0xa7   : > { %4460 = vmatpush2.msra.mxu0 %v677_v3 }
  0xa8   : > { %v9826_v45 = vpop.permute.xlu1 %836  ;;  %4461 = vmatprep.subr.mxu0 %v18926_v52 }
  0xa9   : > { %1206 = vperm.xlu0 %8956, %v9315_v16   ;;  %v9833_v2 = vpop.permute.xlu0 %1097  ;;  %v675_v16 = vld [vmem:[%s18910_s4 + $0x1b0] sm:$0xff]  ;;  %4462 = vmatpush2.msra.mxu0 %v676_v4 }
  0xaa   : > { %19529 = vst [vmem:[#allocation9_spill] sm:$0xff] %v9833_v2  ;;  %8936 = vset.pattern.permute.xlu1 %v18917_v59  ;;  %4463 = vmatprep.subr.mxu0 %v18926_v52 }
  0xab   : > { %1191 = vperm.xlu1 %8936, %v9248_v1   ;;  %4464 = vmatpush2.msra.mxu0 %v675_v16 }
  0xac   : > { %v9841_v50 = vpop.permute.xlu1 %844  ;;  %4465 = vmatprep.subr.mxu0 %v18926_v52 }
  0xad   : > { %1215 = vperm.xlu0 %8956, %v9338_v21   ;;  %v9848_v23 = vpop.permute.xlu0 %1105  ;;  %v673_v21 = vld [vmem:[%s18910_s4 + $0x1a0] sm:$0xff]  ;;  %4466 = vmatpush2.msra.mxu0 %v674_v55 }
  0xae   : > { %19530 = vst [vmem:[#allocation10_spill] sm:$0xff] %v9848_v23  ;;  %4467 = vmatprep.subr.mxu0 %v18926_v52 }
  0xaf   : > { %8937 = vset.pattern.permute.xlu1 %v18922_v43  ;;  %4468 = vmatpush2.msra.mxu0 %v673_v21 }
  0xb0   : > { %v9855_v26 = vpop.permute.xlu1 %852  ;;  %1417 = vperm.xlu1 %8937, %v9248_v1   ;;  %4469 = vmatprep.subr.mxu0 %v18926_v52 }
  0xb1   : > { %19531 = vst [vmem:[#allocation11_spill] sm:$0xff] %v9855_v26  ;;  %1224 = vperm.xlu0 %8956, %v9369_v28   ;;  %v9863_v27 = vpop.permute.xlu0 %1113  ;;  %v671_v28 = vld [vmem:[%s18910_s4 + $0x190] sm:$0xff]  ;;  %4470 = vmatpush2.msra.mxu0 %v672_v60 }
  0xb2   : > { %19532 = vst [vmem:[#allocation12_spill] sm:$0xff] %v9863_v27  ;;  %4471 = vmatprep.subr.mxu0 %v18926_v52  ;;  %v19563_v27 = vmov 4  }
  0xb3   : > { %4472 = vmatpush2.msra.mxu0 %v671_v28 }
  0xb4   : > { %v9869_v61 = vpop.permute.xlu1 %860  ;;  %8938 = vset.pattern.permute.xlu1 %v18915_v42  ;;  %4473 = vmatprep.subr.mxu0 %v18926_v52 }
  0xb5   : > { %19533 = vst [vmem:[#allocation13_spill] sm:$0xff] %v9869_v61  ;;  %1233 = vperm.xlu0 %8956, %v9392_v33   ;;  %v9874_v31 = vpop.permute.xlu0 %1121  ;;  %1805 = vperm.xlu1 %8938, %v9268_v7   ;;  %v670_v33 = vld [vmem:[%s18910_s4 + $0x188] sm:$0xff] }
  0xb6   : > { %19534 = vst [vmem:[#allocation14_spill] sm:$0xff] %v9874_v31  ;;  %4474 = vmatpush2.msra.mxu0 %v670_v33 }
  0xb7   : > { %4475 = vmatprep.subr.mxu0 %v18926_v52 }
  0xb8   : > { %v9881_v6 = vpop.permute.xlu1 %868  ;;  %4476 = vmatpush2.msra.mxu0 %v669_v51  ;;  %v700_v51 = vld [vmem:[%s18910_s4 + $0x278] sm:$0xff] }
  0xb9   : > { %19535 = vst [vmem:[#allocation15_spill] sm:$0xff] %v9881_v6  ;;  %8975 = vset.pattern.permute.xlu0 %v18915_v42  ;;  %v9884_v39 = vpop.permute.xlu0 %1129  ;;  %8939 = vset.pattern.permute.xlu1 %v18917_v59  ;;  %v9085_v6 = vld [vmem:[%s18907_s1 + $0x70] sm:$0xff] }
  0xba   : > { %19536 = vst [vmem:[#allocation16_spill] sm:$0xff] %v9884_v39  ;;  %1802 = vperm.xlu0 %8975, %v9248_v1   ;;  %1194 = vperm.xlu1 %8939, %v9268_v7   ;;  %v685_v39 = vld [vmem:[%s18910_s4 + $0x200] sm:$0xff] }
  0xbb   : > { %4863 = vmatprep.subr.mxu0 %v18926_v52 }
  0xbc   : > { %v9893_v46 = vpop.permute.xlu1 %876 }
  0xbd   : > { %19537 = vst [vmem:[#allocation17_spill] sm:$0xff] %v9893_v46  ;;  %v9898_v53 = vpop.permute.xlu0 %1137 }
  0xbe   : > { %19538 = vst [vmem:[#allocation18_spill] sm:$0xff] %v9898_v53  ;;  %1811 = vperm.xlu0 %8975, %v9289_v11   ;;  %8940 = vset.pattern.permute.xlu1 %v18920_v15  ;;  %v686_v53 = vld [vmem:[%s18910_s4 + $0x208] sm:$0xff] }
  0xbf   : > { %1648 = vperm.xlu1 %8940, %v9268_v7  }
  0xc0   : > { %v9904_v1 = vpop.permute.xlu1 %884 }
  0xc1   : > { %19539 = vst [vmem:[#allocation19_spill] sm:$0xff] %v9904_v1  ;;  %v9907_v58 = vpop.permute.xlu0 %1145 }
  0xc2   : > { %19540 = vst [vmem:[#allocation20_spill] sm:$0xff] %v9907_v58  ;;  %1820 = vperm.xlu0 %8975, %v9320_v17   ;;  %v19557_v58 = vmov 0.0  }
  0xc3   : > { %8941 = vset.pattern.permute.xlu1 %v18915_v42 }
  0xc4   : > { %1808 = vperm.xlu1 %8941, %v9275_v8  }
  0xc5   : > { %v1026_v0 = vpop.permute.xlu1 %1025 }
  0xc6   : > { %1829 = vperm.xlu0 %8975, %v9351_v24   ;;  %v769_v7 = vpop.permute.xlu0 %768  ;;  %v1152_v10 = vmul.f32 0.0, %v1026_v0 }
  0xc7   : > { %v895_v37 = vrot.slane %v769_v7, 1 }
  0xc8   : > { %v2662_v40 = vrot.slane %v1152_v10, 1  ;;  %8942 = vset.pattern.permute.xlu1 %v18922_v43  ;;  %v697_v10 = vld [vmem:[%s18910_s4 + $0x260] sm:$0xff] }
  0xc9   : > { %1423 = vperm.xlu1 %8942, %v9275_v8   ;;  %v9918_v34 = vpop.permute.xlu1 %1033  ;;  %v991_v17 = vmul.f32 0.0, %v895_v37 }
  0xca   : > { %19542 = vst [vmem:[#allocation22_spill] sm:$0xff] %v9918_v34  ;;  %v3318_v14 = vrot.slane %v2662_v40, 7  ;;  %1838 = vperm.xlu0 %8975, %v9374_v29   ;;  %v9921_v22 = vpop.permute.xlu0 %772  ;;  %v2664_v24 = vsel %vm894_vm0, %v2662_v40, %v9913_v32 }
  0xcb   : > { %v896_v44 = vrot.slane %v9921_v22, 1  ;;  %v9926_v3 = vrot.slane %v2664_v24, 7  ;;  %v3315_v55 = vrot.slane %v991_v17, 7  ;;  %v9079_v17 = vld [vmem:[%s18907_s1 + $0x30] sm:$0xff] }
  0xcd   : > { %19543 = vst [vmem:[#allocation23_spill] sm:$0xff] %v9926_v3  ;;  %v897_v4 = vsel %vm894_vm0, %v895_v37, %v896_v44  ;;  %8943 = vset.pattern.permute.xlu1 %v18920_v15  ;;  %v9932_v16 = vpop.permute.xlu1 %1037  ;;  %v9936_v29 = vsel %vm1280_vm1, %v3318_v14, %v9926_v3 }
  0xce   : > { %19544 = vst [vmem:[#allocation24_spill] sm:$0xff] %v9932_v16  ;;  %19545 = vst [vmem:[#allocation25_spill] sm:$0xff] %v9936_v29  ;;  %v9938_v21 = vmul.f32 0.0, %v897_v4  ;;  %1847 = vperm.xlu0 %8975, %v9403_v36   ;;  %v9941_v60 = vpop.permute.xlu0 %784  ;;  %1652 = vperm.xlu1 %8943, %v9275_v8   ;;  %v699_v36 = vld [vmem:[%s18910_s4 + $0x270] sm:$0xff]  ;;  %v693_v4 = vld [vmem:[%s18910_s4 + $0x240] sm:$0xff] }
  0xcf   : > { %4252 = vmatprep.mubr.f32.mxu1 %v9936_v29  ;;  %v902_v31 = vrot.slane %v9941_v60, 1 }
  0xd0   : > { %v18919_v28 = vrot.slane %v9938_v21, 7 }
  0xd1   : > { %v9946_v33 = vpop.permute.xlu1 %1045 }
  0xd2   : > { %19546 = vst [vmem:[#allocation26_spill] sm:$0xff] %v9946_v33  ;;  %1856 = vperm.xlu0 %8975, %v9422_v41   ;;  %v9952_v62 = vpop.permute.xlu0 %792  ;;  %8944 = vset.pattern.permute.xlu1 %v18917_v59  ;;  %v9958_v8 = vsel %vm1280_vm1, %v3315_v55, %v18919_v28  ;;  %v698_v41 = vld [vmem:[%s18910_s4 + $0x268] sm:$0xff] }
  0xd3   : > { %19547 = vst [vmem:[#allocation27_spill] sm:$0xff] %v9958_v8  ;;  %1200 = vperm.xlu1 %8944, %v9289_v11   ;;  %4253 = vmatmul.mubr.f32.vlgmr.msra.gmra.mxu1 %v9958_v8  ;;  %v687_v8 = vld [vmem:[%s18910_s4 + $0x210] sm:$0xff] }
  0xd4   : > { %4639 = vmatpush1.msra.mxu1 %v700_v51 }
  0xd5   : > { %v9965_v0 = vpop.permute.xlu1 %1053  ;;  %4640 = vmatprep.subr.mxu1 %v18926_v52 }
  0xd6   : > { %19548 = vst [vmem:[#allocation28_spill] sm:$0xff] %v9965_v0  ;;  %1865 = vperm.xlu0 %8975, %v9448_v49   ;;  %v9972_v7 = vpop.permute.xlu0 %800  ;;  %4641 = vmatpush1.msra.mxu1 %v699_v36  ;;  %v696_v49 = vld [vmem:[%s18910_s4 + $0x258] sm:$0xff]  ;;  %v9080_v36 = vld [vmem:[%s18907_s1 + $0x10] sm:$0xff] }
  0xd7   : > { %8945 = vset.pattern.permute.xlu1 %v18922_v43  ;;  %4642 = vmatprep.subr.mxu1 %v18926_v52 }
  0xd8   : > { %1426 = vperm.xlu1 %8945, %v9289_v11   ;;  %4643 = vmatpush1.msra.mxu1 %v698_v41  ;;  %v695_v11 = vld [vmem:[%s18910_s4 + $0x250] sm:$0xff] }
  0xd9   : > { %v9980_v37 = vpop.permute.xlu1 %1061  ;;  %4644 = vmatprep.subr.mxu1 %v18926_v52 }
  0xda   : > { %19549 = vst [vmem:[#allocation29_spill] sm:$0xff] %v9980_v37  ;;  %1874 = vperm.xlu0 %8975, %v9472_v56   ;;  %v9987_v40 = vpop.permute.xlu0 %808  ;;  %4645 = vmatpush1.msra.mxu1 %v697_v10  ;;  %v694_v56 = vld [vmem:[%s18910_s4 + $0x248] sm:$0xff]  ;;  %v691_v10 = vld [vmem:[%s18910_s4 + $0x230] sm:$0xff] }
  0xdb   : > { %4646 = vmatprep.subr.mxu1 %v18926_v52 }
  0xdc   : > { %8946 = vset.pattern.permute.xlu1 %v18915_v42  ;;  %4647 = vmatpush1.msra.mxu1 %v696_v49 }
  0xdd   : > { %1814 = vperm.xlu1 %8946, %v9079_v17   ;;  %v9997_v14 = vpop.permute.xlu1 %1069  ;;  %4648 = vmatprep.subr.mxu1 %v18926_v52 }
  0xde   : > { %19550 = vst [vmem:[#allocation30_spill] sm:$0xff] %v9997_v14  ;;  %1883 = vperm.xlu0 %8975, %v9503_v5   ;;  %v10004_v24 = vpop.permute.xlu0 %816  ;;  %4649 = vmatpush1.msra.mxu1 %v695_v11  ;;  %v692_v5 = vld [vmem:[%s18910_s4 + $0x238] sm:$0xff]  ;;  %v9081_v11 = vld [vmem:[%s18907_s1 + $0x28] sm:$0xff] }
  0xdf   : > { %4650 = vmatprep.subr.mxu1 %v18926_v52 }
  0xe0   : > { %4651 = vmatpush1.msra.mxu1 %v694_v56  ;;  %v690_v56 = vld [vmem:[%s18910_s4 + $0x228] sm:$0xff] }
  0xe1   : > { %8947 = vset.pattern.permute.xlu1 %v18917_v59  ;;  %v10011_v55 = vpop.permute.xlu1 %1077  ;;  %4652 = vmatprep.subr.mxu1 %v18926_v52 }
  0xe2   : > { %19551 = vst [vmem:[#allocation31_spill] sm:$0xff] %v10011_v55  ;;  %9010 = vset.pattern.permute.xlu0 %v18920_v15  ;;  %v10015_v51 = vpop.permute.xlu0 %824  ;;  %1203 = vperm.xlu1 %8947, %v9079_v17  }
  0xe3   : > { %1644 = vperm.xlu0 %9010, %v9080_v36   ;;  %4653 = vmatpush1.msra.mxu1 %v693_v4  ;;  %v689_v36 = vld [vmem:[%s18910_s4 + $0x220] sm:$0xff] }
  0xe4   : > { %4654 = vmatprep.subr.mxu1 %v18926_v52 }
  0xe5   : > { %v10024_v41 = vpop.permute.xlu1 %1085  ;;  %4655 = vmatpush1.msra.mxu1 %v692_v5 }
  0xe6   : > { %19552 = vst [vmem:[#allocation32_spill] sm:$0xff] %v10024_v41  ;;  %v10029_v49 = vpop.permute.xlu0 %832  ;;  %8948 = vset.pattern.permute.xlu1 %v18920_v15  ;;  %4656 = vmatprep.subr.mxu1 %v18926_v52 }
  0xe7   : > { %1656 = vperm.xlu0 %9010, %v9081_v11   ;;  %1660 = vperm.xlu1 %8948, %v9079_v17   ;;  %v10051_v17 = vld [vmem:[%s18909_s3] ss:$0 sm:$0xff]  ;;  %v898_v11 = vrot.slane %v9717_v30, 1 }
  0xe8   : > { %4657 = vmatpush1.msra.mxu1 %v691_v10  ;;  %v10056_v10 = vld [vmem:[%s18907_s1 + $0x40] sm:$0xff] }
  0xe9   : > { %v10039_v4 = vpop.permute.xlu1 %1093  ;;  %4658 = vmatprep.subr.mxu1 %v18926_v52  ;;  %v899_v15 = vsel %vm894_vm0, %v896_v44, %v898_v11  ;;  %v19556_v44 = vmov 3  }
  0xea   : > { %19553 = vst [vmem:[#allocation33_spill] sm:$0xff] %v10039_v4  ;;  %v10042_v5 = vpop.permute.xlu0 %840  ;;  %4659 = vmatpush1.msra.mxu1 %v690_v56  ;;  %v9083_v56 = vld [vmem:[%s18907_s1 + $0x38] sm:$0xff]  ;;  %v993_v1 = vmul.f32 0.0, %v899_v15 }
  0xeb   : > { %8949 = vset.pattern.permute.xlu1 %v18915_v42  ;;  %1668 = vperm.xlu0 %9010, %v10056_v10   ;;  %v688_v42 = vld [vmem:[%s18910_s4 + $0x218] sm:$0xff] }
  0xec   : > { %1817 = vperm.xlu1 %8949, %v9083_v56   ;;  %4660 = vmatprep.subr.mxu1 %v18926_v52 }
  0xed   : > { %v8671_v59 = vpop.f32.mrf.mxu0  ;;  %v10067_v28 = vpop.permute.xlu1 %1101  ;;  %4661 = vmatpush1.msra.mxu1 %v689_v36  ;;  %v10084_v36 = vld [vmem:[%s18907_s1 + $0x58] sm:$0xff] }
  0xee   : > { %19554 = vst [vmem:[#allocation34_spill] sm:$0xff] %v10067_v28  ;;  %v10073_v30 = vadd.f32 %v8671_v59, %v10051_v17  ;;  %v10075_v43 = vpop.permute.xlu0 %848  ;;  %4662 = vmatprep.subr.mxu1 %v18926_v52  ;;  %v900_v59 = vrot.slane %v9730_v35, 1 }
  0xef   : > { %v430_v29 = vpop.f32.mrf.mxu0  ;;  %1680 = vperm.xlu0 %9010, %v10084_v36   ;;  %4663 = vmatpush1.msra.mxu1 %v688_v42 }
  0xf0   : > { %19555 = vst [vmem:[#allocation35_spill] sm:$0xff] %v10073_v30  ;;  %v10089_v22 = vadd.f32 %v10051_v17, %v430_v29  ;;  %8950 = vset.pattern.permute.xlu1 %v19556_v44  ;;  %v10094_v52 = vmul.f32 %v9932_v16, %v10073_v30  ;;  %4664 = vmatprep.subr.mxu1 %v19557_v58 }
  0xf1   : > { %v8674_v46 = vpop.f32.mrf.mxu0  ;;  %1432 = vperm.xlu1 %8950, %v9083_v56   ;;  %v10100_v42 = vpop.permute.xlu1 %1109  ;;  %4665 = vmatpush1.msra.mxu1 %v687_v8 }
  0xf2   : > { %19558 = vst [vmem:[#allocation36_spill] sm:$0xff] %v10100_v42  ;;  %v10103_v35 = vadd.f32 %v8674_v46, %v10051_v17  ;;  %v10105_v29 = vpop.permute.xlu0 %856  ;;  %v1154_v16 = vmul.f32 %v9918_v34, %v10089_v22  ;;  %4666 = vmatprep.subr.mxu1 %v19557_v58  ;;  %v10117_v46 = vsel %vm894_vm0, %v898_v11, %v900_v59  ;;  %v2667_v61 = vrot.slane %v10094_v52, 1  ;;  %v716_v52 = vld [vmem:[%s18910_s4 + $0x2f8] sm:$0xff]  ;;  %v9086_v42 = vld [vmem:[%s18907_s1 + $0x88] sm:$0xff] }
  0xf3   : > { %19560 = vst [vmem:[#allocation38_spill] sm:$0xff] %v10105_v29  ;;  %v440_v15 = vpop.f32.mrf.mxu0  ;;  %1692 = vperm.xlu0 %9010, %v9085_v6   ;;  %4667 = vmatpush1.msra.mxu1 %v686_v53  ;;  %19561 = vst [vmem:[#allocation39_spill] sm:$0xff] %v10117_v46  ;;  %v10128_v6 = vrot.slane %v993_v1, 7  ;;  %v10132_v53 = vmul.f32 %v10117_v46, %v10089_v22 }
  0xf4   : > { %19559 = vst [vmem:[#allocation37_spill] sm:$0xff] %v10103_v35  ;;  %v10120_v8 = vadd.f32 %v10051_v17, %v440_v15  ;;  %v2665_v34 = vrot.slane %v1154_v16, 1  ;;  %4668 = vmatprep.subr.mxu1 %v19557_v58  ;;  %v1157_v1 = vmul.f32 %v9946_v33, %v10103_v35 }
  0xf5   : > { %v8677_v29 = vpop.f32.mrf.mxu0  ;;  %8951 = vset.pattern.permute.xlu1 %v19563_v27  ;;  %v10126_v26 = vpop.permute.xlu1 %1117  ;;  %19565 = vst [vmem:[#allocation42_spill] sm:$0xff] %v10128_v6  ;;  %4669 = vmatpush1.msra.mxu1 %v685_v39 }
  0xf6   : > { %19562 = vst [vmem:[#allocation40_spill] sm:$0xff] %v10120_v8  ;;  %19564 = vst [vmem:[#allocation41_spill] sm:$0xff] %v10126_v26  ;;  %v10137_v16 = vpop.permute.xlu0 %864  ;;  %1664 = vperm.xlu1 %8951, %v9083_v56   ;;  %v2666_v60 = vsel %vm894_vm0, %v9913_v32, %v2665_v34  ;;  %v2668_v11 = vsel %vm894_vm0, %v2665_v34, %v2667_v61  ;;  %v1156_v39 = vmul.f32 %v9733_v38, %v10120_v8 }
  0xf7   : > { %19566 = vst [vmem:[#allocation43_spill] sm:$0xff] %v10137_v16  ;;  %v450_v15 = vpop.f32.mrf.mxu0  ;;  %v3344_v26 = vrot.slane %v2666_v60, 7  ;;  %v3362_v46 = vrot.slane %v2668_v11, 7  ;;  %1704 = vperm.xlu0 %9010, %v9086_v42   ;;  %4670 = vmatprep.subr.mxu1 %v19557_v58  ;;  %v10154_v34 = vsel %vm894_vm0, %v900_v59, %v902_v31  ;;  %v19570_v38 = vrot.slane %v9938_v21, 7 }
  0xf8   : > { %v10151_v56 = vadd.f32 %v10051_v17, %v450_v15  ;;  %4671 = vmatpush2.msra.mxu1 %v716_v52  ;;  %19568 = vst [vmem:[#allocation45_spill] sm:$0xff] %v10154_v34  ;;  %v3360_v32 = vrot.slane %v10132_v53, 7  ;;  %v10169_v52 = vadd.f32 %v8677_v29, %v10051_v17  ;;  %v19574_v15 = vmov 2  }
  0xf9   : > { %v8680_v33 = vpop.f32.mrf.mxu0  ;;  %v10156_v60 = vpop.permute.xlu1 %1125  ;;  %v3345_v11 = vsel %vm1280_vm1, %v9926_v3, %v3344_v26  ;;  %v10164_v42 = vsel %vm1280_vm1, %v19570_v38, %v10128_v6  ;;  %4672 = vmatprep.subr.mxu1 %v19557_v58  ;;  %v2671_v3 = vrot.slane %v1157_v1, 1  ;;  %v715_v38 = vld [vmem:[%s18910_s4 + $0x2f0] sm:$0xff]  ;;  %v904_v53 = vrot.slane %v9746_v47, 1 }
  0xfa   : > { %19567 = vst [vmem:[#allocation44_spill] sm:$0xff] %v10151_v56  ;;  %19569 = vst [vmem:[#allocation46_spill] sm:$0xff] %v10156_v60  ;;  %v10171_v59 = vpop.permute.xlu0 %872  ;;  %4257 = vmatprep.mubr.f32.mxu1 %v3345_v11  ;;  %8952 = vset.pattern.permute.xlu1 %v19574_v15  ;;  %v2669_v60 = vrot.slane %v1156_v39, 1  ;;  %v1158_v21 = vmul.f32 %v9748_v48, %v10151_v56  ;;  %v3363_v29 = vsel %vm1280_vm1, %v3344_v26, %v3362_v46 }
  0xfb   : > { %19571 = vst [vmem:[#allocation47_spill] sm:$0xff] %v10164_v42  ;;  %19572 = vst [vmem:[#allocation48_spill] sm:$0xff] %v10169_v52  ;;  %v460_v16 = vpop.f32.mrf.mxu0  ;;  %4258 = vmatmul.mubr.f32.gmra.mxu1 %v10164_v42  ;;  %1209 = vperm.xlu1 %8952, %v10056_v10   ;;  %v10185_v39 = vmul.f32 %v10154_v34, %v10073_v30  ;;  %v10192_v48 = vsel %vm894_vm0, %v902_v31, %v904_v53 }
  0xfc   : > { %19573 = vst [vmem:[#allocation49_spill] sm:$0xff] %v10171_v59  ;;  %4262 = vmatprep.mubr.f32.mxu1 %v3363_v29  ;;  %v2670_v1 = vsel %vm894_vm0, %v2667_v61, %v2669_v60  ;;  %v10189_v11 = vsel %vm894_vm0, %v2669_v60, %v2671_v3  ;;  %19575 = vst [vmem:[#allocation50_spill] sm:$0xff] %v10192_v48  ;;  %v3361_v26 = vsel %vm1280_vm1, %v10128_v6, %v3360_v32  ;;  %v9087_v29 = vld [vmem:[%s18907_s1 + $0xa0] sm:$0xff] }
  0xfd   : > { %v10194_v47 = vpop.f32.mrf.mxu0  ;;  %v10196_v42 = vpop.permute.xlu1 %1133  ;;  %v3380_v59 = vrot.slane %v2670_v1, 7  ;;  %1716 = vperm.xlu0 %9010, %v9087_v29   ;;  %4673 = vmatpush2.msra.mxu1 %v715_v38  ;;  %v10204_v61 = vadd.f32 %v10051_v17, %v460_v16  ;;  %v10210_v31 = vmul.f32 %v10192_v48, %v10120_v8  ;;  %v2673_v34 = vrot.slane %v1158_v21, 1  ;;  %v714_v1 = vld [vmem:[%s18910_s4 + $0x2e8] sm:$0xff] }
  0xfe   : > { %19576 = vst [vmem:[#allocation51_spill] sm:$0xff] %v10196_v42  ;;  %v10206_v60 = vpop.permute.xlu0 %880  ;;  %v1159_v6 = vmul.f32 %v9965_v0, %v10169_v52  ;;  %4674 = vmatprep.subr.mxu1 %v19557_v58  ;;  %v906_v38 = vrot.slane %v9952_v62, 1  ;;  %v3378_v48 = vrot.slane %v10185_v39, 7  ;;  %v3398_v21 = vrot.slane %v10189_v11, 7 }
  0xff   : > { %19577 = vst [vmem:[#allocation52_spill] sm:$0xff] %v10204_v61  ;;  %19578 = vst [vmem:[#allocation53_spill] sm:$0xff] %v10206_v60  ;;  %v470_v16 = vpop.f32.mrf.mxu0  ;;  %4263 = vmatmul.mubr.f32.gmra.mxu1 %v3361_v26  ;;  %8953 = vset.pattern.permute.xlu1 %v19556_v44  ;;  %v3381_v29 = vsel %vm1280_vm1, %v3362_v46, %v3380_v59  ;;  %v10225_v0 = vsel %vm894_vm0, %v2671_v3, %v2673_v34  ;;  %v9088_v26 = vld [vmem:[%s18907_s1 + $0xb8] sm:$0xff]  ;;  %v3396_v3 = vrot.slane %v10210_v31, 7  ;;  %v713_v31 = vld [vmem:[%s18910_s4 + $0x2e0] sm:$0xff] }
 0x100   : > { %4267 = vmatprep.mubr.f32.mxu1 %v3381_v29  ;;  %1435 = vperm.xlu1 %8953, %v10056_v10   ;;  %v3379_v62 = vsel %vm1280_vm1, %v3360_v32, %v3378_v48  ;;  %v10234_v46 = vadd.f32 %v8680_v33, %v10051_v17  ;;  %v2675_v10 = vrot.slane %v1159_v6, 1  ;;  %v1160_v29 = vmul.f32 %v9762_v57, %v10204_v61 }
 0x101   : > { %v10227_v42 = vpop.permute.xlu1 %1141  ;;  %1728 = vperm.xlu0 %9010, %v9088_v26   ;;  %4675 = vmatpush2.msra.mxu1 %v714_v1  ;;  %v10236_v39 = vpop.f32.mrf.mxu0  ;;  %v908_v32 = vrot.slane %v9760_v54, 1  ;;  %v10246_v26 = vsel %vm894_vm0, %v904_v53, %v906_v38  ;;  %v3399_v33 = vsel %vm1280_vm1, %v3380_v59, %v3398_v21  ;;  %v3416_v1 = vrot.slane %v10225_v0, 7  ;;  %v9089_v0 = vld [vmem:[%s18907_s1 + $0x48] sm:$0xff] }
 0x102   : > { %19579 = vst [vmem:[#allocation54_spill] sm:$0xff] %v10227_v42  ;;  %19580 = vst [vmem:[#allocation55_spill] sm:$0xff] %v10234_v46  ;;  %v10238_v11 = vpop.permute.xlu0 %888  ;;  %4676 = vmatprep.subr.mxu1 %v19557_v58  ;;  %v10254_v6 = vadd.f32 %v10051_v17, %v470_v16  ;;  %v19584_v57 = vmov 5   ;;  %v997_v54 = vmul.f32 %v10246_v26, %v10103_v35  ;;  %v10260_v53 = vsel %vm894_vm0, %v2673_v34, %v2675_v10  ;;  %v712_v34 = vld [vmem:[%s18910_s4 + $0x2d8] sm:$0xff] }
 0x103   : > { %19581 = vst [vmem:[#allocation56_spill] sm:$0xff] %v10238_v11  ;;  %19582 = vst [vmem:[#allocation57_spill] sm:$0xff] %v10246_v26  ;;  %4268 = vmatmul.mubr.f32.gmra.mxu1 %v3379_v62  ;;  %v2677_v62 = vrot.slane %v1160_v29, 1  ;;  %v10263_v59 = vsel %vm894_vm0, %v906_v38, %v908_v32  ;;  %v480_v29 = vpop.f32.mrf.mxu0  ;;  %v3397_v38 = vsel %vm1280_vm1, %v3378_v48, %v3396_v3  ;;  %v910_v11 = vrot.slane %v9972_v7, 1  ;;  %v711_v7 = vld [vmem:[%s18910_s4 + $0x2d0] sm:$0xff] }
 0x104   : > { %19583 = vst [vmem:[#allocation58_spill] sm:$0xff] %v10254_v6  ;;  %4272 = vmatprep.mubr.f32.mxu1 %v3399_v33  ;;  %8954 = vset.pattern.permute.xlu1 %v19584_v57  ;;  %19585 = vst [vmem:[#allocation59_spill] sm:$0xff] %v10263_v59  ;;  %v9090_v33 = vld [vmem:[%s18907_s1 + $0xd0] sm:$0xff]  ;;  %v10281_v42 = vmul.f32 %v10263_v59, %v10151_v56  ;;  %v3434_v60 = vrot.slane %v10260_v53, 7  ;;  %v3414_v48 = vrot.slane %v997_v54, 7 }
 0x105   : > { %1823 = vperm.xlu1 %8954, %v9089_v0   ;;  %v10268_v16 = vpop.permute.xlu1 %1149  ;;  %1740 = vperm.xlu0 %9010, %v9090_v33   ;;  %v3417_v33 = vsel %vm1280_vm1, %v3398_v21, %v3416_v1  ;;  %v10294_v59 = vmul.f32 %v9777_v63, %v10254_v6  ;;  %v10302_v21 = vadd.f32 %v10194_v47, %v10051_v17 }
 0x106   : > { %19586 = vst [vmem:[#allocation60_spill] sm:$0xff] %v10268_v16  ;;  %v10277_v26 = vpop.permute.xlu0 %892  ;;  %v1161_v16 = vmul.f32 %v9980_v37, %v10234_v46  ;;  %4677 = vmatpush2.msra.mxu1 %v713_v31  ;;  %v10304_v31 = vpop.f32.mrf.mxu0  ;;  %v3415_v54 = vsel %vm1280_vm1, %v3396_v3, %v3414_v48  ;;  %v3432_v53 = vrot.slane %v10281_v42, 7  ;;  %v10315_v47 = vsel %vm894_vm0, %v908_v32, %v910_v11 }
 0x107   : > { %19587 = vst [vmem:[#allocation61_spill] sm:$0xff] %v10277_v26  ;;  %4273 = vmatmul.mubr.f32.gmra.mxu1 %v3397_v38  ;;  %4678 = vmatprep.subr.mxu1 %v19557_v58  ;;  %v10290_v26 = vsel %vm894_vm0, %v2675_v10, %v2677_v62  ;;  %19588 = vst [vmem:[#allocation62_spill] sm:$0xff] %v10302_v21  ;;  %v9091_v38 = vld [vmem:[%s18907_s1 + $0xe8] sm:$0xff]  ;;  %v3435_v37 = vsel %vm1280_vm1, %v3416_v1, %v3434_v60  ;;  %v2681_v32 = vrot.slane %v10294_v59, 1 }
 0x108   : > { %4277 = vmatprep.mubr.f32.mxu1 %v3417_v33  ;;  %4679 = vmatpush2.msra.mxu1 %v712_v34  ;;  %v2679_v34 = vrot.slane %v1161_v16, 1  ;;  %v912_v33 = vrot.slane %v9771_v25, 1  ;;  %19589 = vst [vmem:[#allocation63_spill] sm:$0xff] %v10315_v47  ;;  %v3452_v3 = vrot.slane %v10290_v26, 7  ;;  %v10323_v42 = vadd.f32 %v10051_v17, %v480_v29  ;;  %v490_v26 = vpop.f32.mrf.mxu0 }
 0x109   : > { %8955 = vset.pattern.permute.xlu1 %v19574_v15  ;;  %1752 = vperm.xlu0 %9010, %v9091_v38   ;;  %v999_v16 = vmul.f32 %v10315_v47, %v10169_v52  ;;  %v914_v59 = vrot.slane %v9987_v40, 1  ;;  %v10366_v40 = vld [vmem:[%s18907_s1 + $0x60] sm:$0xff] }
 0x10a   : > { %1212 = vperm.xlu1 %8955, %v9089_v0   ;;  %v10306_v10 = vpop.permute.xlu1 %1796  ;;  %4680 = vmatprep.subr.mxu1 %v19557_v58  ;;  %19590 = vst [vmem:[#allocation64_spill] sm:$0xff] %v10323_v42  ;;  %v10328_v25 = vsel %vm894_vm0, %v2677_v62, %v2679_v34  ;;  %v10345_v62 = vmul.f32 %v9997_v14, %v10302_v21 }
 0x10b   : > { %4278 = vmatmul.mubr.f32.gmra.mxu1 %v3415_v54  ;;  %v10317_v63 = vpop.permute.xlu0 %1414  ;;  %v10332_v54 = vsel %vm894_vm0, %v910_v11, %v912_v33  ;;  %v710_v11 = vld [vmem:[%s18910_s4 + $0x2c8] sm:$0xff]  ;;  %v3470_v38 = vrot.slane %v10328_v25, 7  ;;  %v10357_v14 = vsel %vm894_vm0, %v2679_v34, %v2681_v32  ;;  %v10361_v47 = vmul.f32 %v9787_v9, %v10323_v42  ;;  %v10374_v34 = vpop.f32.mrf.mxu0 }
 0x10c   : > { %4282 = vmatprep.mubr.f32.mxu1 %v3435_v37  ;;  %4681 = vmatpush2.msra.mxu1 %v711_v7  ;;  %19591 = vst [vmem:[#allocation65_spill] sm:$0xff] %v10332_v54  ;;  %v3433_v37 = vsel %vm1280_vm1, %v3414_v48, %v3432_v53  ;;  %v10341_v29 = vmul.f32 %v10332_v54, %v10204_v61  ;;  %v3450_v54 = vrot.slane %v999_v16, 7 }
 0x10d   : > { %4682 = vmatprep.subr.mxu1 %v19557_v58  ;;  %9013 = vset.pattern.permute.xlu0 %v19556_v44  ;;  %v3453_v48 = vsel %vm1280_vm1, %v3434_v60, %v3452_v3  ;;  %v916_v60 = vrot.slane %v9784_v12, 1  ;;  %v10384_v12 = vsel %vm894_vm0, %v912_v33, %v914_v59  ;;  %v10400_v33 = vld [vmem:[%s18907_s1 + $0x50] sm:$0xff] }
 0x10e   : > { %8957 = vset.pattern.permute.xlu1 %v19563_v27  ;;  %v10336_v1 = vpop.permute.xlu1 %1799  ;;  %1447 = vperm.xlu0 %9013, %v10366_v40   ;;  %v3451_v16 = vsel %vm1280_vm1, %v3432_v53, %v3450_v54  ;;  %v3468_v25 = vrot.slane %v10341_v29, 7  ;;  %19593 = vst [vmem:[#allocation67_spill] sm:$0xff] %v10384_v12  ;;  %v3471_v53 = vsel %vm1280_vm1, %v3452_v3, %v3470_v38  ;;  %v3488_v29 = vrot.slane %v10357_v14, 7 }
 0x10f   : > { %4283 = vmatmul.mubr.f32.gmra.mxu1 %v3433_v37  ;;  %v10352_v7 = vpop.permute.xlu0 %1420  ;;  %1672 = vperm.xlu1 %8957, %v9089_v0   ;;  %v10372_v0 = vadd.f32 %v10236_v39, %v10051_v17  ;;  %v2683_v37 = vrot.slane %v10345_v62, 1  ;;  %v918_v39 = vrot.slane %v10004_v24, 1  ;;  %v10393_v62 = vadd.f32 %v10051_v17, %v490_v26 }
 0x110   : > { %4287 = vmatprep.mubr.f32.mxu1 %v3453_v48  ;;  %4683 = vmatpush2.msra.mxu1 %v710_v11  ;;  %v709_v48 = vld [vmem:[%s18910_s4 + $0x2c0] sm:$0xff]  ;;  %v10405_v24 = vmul.f32 %v10384_v12, %v10234_v46  ;;  %v2685_v14 = vrot.slane %v10361_v47, 1  ;;  %v10412_v26 = vsel %vm894_vm0, %v914_v59, %v916_v60  ;;  %v500_v12 = vpop.f32.mrf.mxu0  ;;  %v3469_v46 = vsel %vm1280_vm1, %v3450_v54, %v3468_v25  ;;  %v708_v59 = vld [vmem:[%s18910_s4 + $0x2b8] sm:$0xff] }
 0x111   : > { %19592 = vst [vmem:[#allocation66_spill] sm:$0xff] %v10372_v0  ;;  %4684 = vmatprep.subr.mxu1 %v19557_v58  ;;  %19594 = vst [vmem:[#allocation68_spill] sm:$0xff] %v10393_v62  ;;  %v10408_v3 = vsel %vm894_vm0, %v2681_v32, %v2683_v37  ;;  %v10424_v32 = vmul.f32 %v10412_v26, %v10254_v6  ;;  %v10428_v47 = vmul.f32 %v10011_v55, %v10372_v0 }
 0x112   : > { %19595 = vst [vmem:[#allocation69_spill] sm:$0xff] %v10412_v26  ;;  %4685 = vmatpush2.msra.mxu1 %v709_v48  ;;  %v3489_v26 = vsel %vm1280_vm1, %v3470_v38, %v3488_v29  ;;  %v3506_v6 = vrot.slane %v10408_v3, 7  ;;  %v10441_v55 = vsel %vm894_vm0, %v916_v60, %v918_v39  ;;  %v3486_v52 = vrot.slane %v10405_v24, 7 }
 0x113   : > { %4288 = vmatmul.mubr.f32.gmra.mxu1 %v3451_v16  ;;  %v10387_v11 = vpop.permute.xlu0 %1429  ;;  %8958 = vset.pattern.permute.xlu1 %v19584_v57  ;;  %v10395_v9 = vpop.permute.xlu1 %1188  ;;  %v10417_v16 = vld [vmem:[%s18907_s1 + $0x78] sm:$0xff]  ;;  %19597 = vst [vmem:[#allocation71_spill] sm:$0xff] %v10441_v55  ;;  %v10446_v48 = vsel %vm894_vm0, %v2683_v37, %v2685_v14  ;;  %v19598_v38 = vrot.slane %v9796_v20, 1  ;;  %v922_v60 = vrot.slane %v10015_v51, 1  ;;  %v10461_v24 = vmul.f32 %v10441_v55, %v10302_v21 }
 0x114   : > { %4292 = vmatprep.mubr.f32.mxu1 %v3471_v53  ;;  %1826 = vperm.xlu1 %8958, %v10400_v33   ;;  %v10465_v37 = vadd.f32 %v10304_v31, %v10051_v17  ;;  %v10467_v53 = vpop.f32.mrf.mxu0  ;;  %v2687_v51 = vrot.slane %v10428_v47, 1  ;;  %v19601_v31 = vrot.slane %v10317_v63, 1  ;;  %v3524_v47 = vrot.slane %v10446_v48, 7 }
 0x115   : > { %1456 = vperm.xlu0 %9013, %v10417_v16   ;;  %4686 = vmatprep.subr.mxu1 %v19557_v58  ;;  %v10455_v3 = vsel %vm894_vm0, %v918_v39, %v19598_v38  ;;  %v3504_v39 = vrot.slane %v10424_v32, 7  ;;  %v3507_v32 = vsel %vm1280_vm1, %v3488_v29, %v3506_v6  ;;  %v10489_v55 = vadd.f32 %v10051_v17, %v500_v12 }
 0x116   : > { %19599 = vst [vmem:[#allocation72_spill] sm:$0xff] %v10455_v3  ;;  %4687 = vmatpush2.msra.mxu1 %v708_v59  ;;  %19600 = vst [vmem:[#allocation73_spill] sm:$0xff] %v10465_v37  ;;  %v9095_v59 = vld [vmem:[%s18907_s1 + $0x90] sm:$0xff]  ;;  %v10517_v29 = vmul.f32 %v10024_v41, %v10465_v37 }
 0x117   : > { %4293 = vmatmul.mubr.f32.gmra.mxu1 %v3469_v46  ;;  %v10436_v54 = vpop.permute.xlu0 %1438  ;;  %v10450_v46 = vmul.f32 %v9802_v13, %v10393_v62  ;;  %v3487_v13 = vsel %vm1280_vm1, %v3468_v25, %v3486_v52  ;;  %4688 = vmatprep.subr.mxu1 %v19557_v58  ;;  %19604 = vst [vmem:[#allocation76_spill] sm:$0xff] %v10489_v55 }
 0x118   : > { %19596 = vst [vmem:[#allocation70_spill] sm:$0xff] %v10436_v54  ;;  %4297 = vmatprep.mubr.f32.mxu1 %v3489_v26  ;;  %8959 = vset.pattern.permute.xlu1 %v19556_v44  ;;  %v1412_v61 = vpop.permute.xlu1 %1411 }
 0x119   : > { %v1506_v26 = vrot.slane %v1412_v61, 1  ;;  %1441 = vperm.xlu1 %8959, %v10400_v33   ;;  %v707_v61 = vld [vmem:[%s18910_s4 + $0x2b0] sm:$0xff]  ;;  %1465 = vperm.xlu0 %9013, %v9095_v59  }
 0x11a   : > { %4689 = vmatpush2.msra.mxu1 %v707_v61  ;;  %v19606_v61 = vrot.slane %v10395_v9, 7 }
 0x11b   : > { %v10482_v38 = vsel %vm894_vm0, %v1506_v26, %v19601_v31  ;;  %v10484_v25 = vmul.f32 0.0, %v1506_v26  ;;  %4298 = vmatmul.mubr.f32.gmra.mxu1 %v3487_v13  ;;  %v10496_v31 = vsel %vm894_vm0, %v2685_v14, %v2687_v51  ;;  %v2689_v26 = vrot.slane %v10450_v46, 1  ;;  %v510_v14 = vpop.f32.mrf.mxu0  ;;  %4690 = vmatprep.subr.mxu1 %v19557_v58  ;;  %v705_v13 = vld [vmem:[%s18910_s4 + $0x2a0] sm:$0xff] }
 0x11c   : > { %19602 = vst [vmem:[#allocation74_spill] sm:$0xff] %v10482_v38  ;;  %v1186_v21 = vpop.permute.xlu0 %1185  ;;  %4302 = vmatprep.mubr.f32.mxu1 %v3507_v32  ;;  %v10493_v59 = vmul.f32 %v10482_v38, %v10089_v22  ;;  %v706_v32 = vld [vmem:[%s18910_s4 + $0x2a8] sm:$0xff]  ;;  %v3505_v46 = vsel %vm1280_vm1, %v3486_v52, %v3504_v39  ;;  %v3525_v52 = vsel %vm1280_vm1, %v3506_v6, %v3524_v47 }
 0x11d   : > { %19603 = vst [vmem:[#allocation75_spill] sm:$0xff] %v10484_v25  ;;  %v1281_v54 = vrot.slane %v1186_v21, 7  ;;  %8960 = vset.pattern.permute.xlu1 %v19563_v27  ;;  %v10502_v12 = vpop.permute.xlu1 %1636  ;;  %v10513_v21 = vmul.f32 %v10455_v3, %v10323_v42  ;;  %v9096_v3 = vld [vmem:[%s18907_s1 + $0xa8] sm:$0xff]  ;;  %4691 = vmatpush2.msra.mxu1 %v706_v32  ;;  %v10562_v32 = vpop.f32.mrf.mxu0 }
 0x11e   : > { %19605 = vst [vmem:[#allocation77_spill] sm:$0xff] %v10502_v12  ;;  %1676 = vperm.xlu1 %8960, %v10400_v33   ;;  %v3542_v33 = vrot.slane %v10496_v31, 7  ;;  %1474 = vperm.xlu0 %9013, %v9096_v3   ;;  %v10539_v31 = vsel %vm894_vm0, %v2687_v51, %v2689_v26  ;;  %v19609_v3 = vrot.slane %v9796_v20, 1 }
 0x11f   : > { %v1283_v48 = vsel %vm1280_vm1, %v1281_v54, %v19606_v61  ;;  %v1377_v38 = vmul.f32 0.0, %v1281_v54  ;;  %4303 = vmatmul.mubr.f32.gmra.mxu1 %v3505_v46  ;;  %v19607_v54 = vrot.slane %v10493_v59, 7  ;;  %v19608_v46 = vrot.slane %v10484_v25, 7  ;;  %4692 = vmatprep.subr.mxu1 %v19557_v58 }
 0x120   : > { %v1378_v41 = vmul.f32 0.0, %v1283_v48  ;;  %4307 = vmatprep.mubr.f32.mxu1 %v3525_v52  ;;  %v10531_v42 = vpop.permute.xlu0 %1197  ;;  %v10543_v61 = vmul.f32 %v9817_v19, %v10489_v55  ;;  %v10548_v48 = vsel %vm894_vm0, %v19609_v3, %v922_v60  ;;  %v19611_v52 = vrot.slane %v9810_v18, 1  ;;  %4693 = vmatpush2.msra.mxu1 %v705_v13 }
 0x121   : > { %v3326_v6 = vsel %vm1280_vm1, %v19608_v46, %v19607_v54  ;;  %19610 = vst [vmem:[#allocation78_spill] sm:$0xff] %v10548_v48  ;;  %v10557_v54 = vadd.f32 %v10374_v34, %v10051_v17  ;;  %v2759_v51 = vrot.slane %v1377_v38, 2  ;;  %v10559_v46 = vpop.permute.xlu1 %1640  ;;  %v19616_v3 = vrot.slane %v10461_v24, 7  ;;  %v704_v38 = vld [vmem:[%s18910_s4 + $0x298] sm:$0xff]  ;;  %4694 = vmatprep.subr.mxu1 %v19557_v58 }
 0x122   : > { %v10553_v12 = vsel %vm894_vm0, %v922_v60, %v19611_v52  ;;  %19614 = vst [vmem:[#allocation81_spill] sm:$0xff] %v10559_v46  ;;  %4477 = vmatprep.mubr.f32.mxu0 %v3326_v6  ;;  %v10564_v20 = vrot.slane %v1378_v41, 2  ;;  %8961 = vset.pattern.permute.xlu1 %v19574_v15  ;;  %v3540_v52 = vrot.slane %v10513_v21, 7  ;;  %v2691_v34 = vrot.slane %v10517_v29, 1 }
 0x123   : > { %19612 = vst [vmem:[#allocation79_spill] sm:$0xff] %v10553_v12  ;;  %19613 = vst [vmem:[#allocation80_spill] sm:$0xff] %v10557_v54  ;;  %v3523_v60 = vsel %vm1280_vm1, %v3504_v39, %v19616_v3  ;;  %v926_v6 = vrot.slane %v10029_v49, 1  ;;  %v3321_v19 = vrot.slane %v2759_v51, 7  ;;  %1218 = vperm.xlu1 %8961, %v10084_v36   ;;  %v3543_v41 = vsel %vm1280_vm1, %v3524_v47, %v3542_v33  ;;  %v9097_v3 = vld [vmem:[%s18907_s1 + $0xc0] sm:$0xff] }
 0x124   : > { %19615 = vst [vmem:[#allocation82_spill] sm:$0xff] %v10564_v20  ;;  %4308 = vmatmul.mubr.f32.gmra.mxu1 %v3523_v60  ;;  %v3560_v25 = vrot.slane %v10539_v31, 7  ;;  %v2761_v39 = vsel %vm2758_vm2, %v2759_v51, %v10564_v20  ;;  %v10581_v29 = vpop.permute.xlu0 %1206  ;;  %v1005_v13 = vmul.f32 %v10548_v48, %v10372_v0  ;;  %v10586_v21 = vsel %vm894_vm0, %v2689_v26, %v2691_v34 }
 0x125   : > { %4312 = vmatprep.mubr.f32.mxu1 %v3543_v41  ;;  %v2693_v49 = vrot.slane %v10543_v61, 1  ;;  %v10591_v47 = vadd.f32 %v10051_v17, %v510_v14  ;;  %v10593_v31 = vrot.slane %v2761_v39, 7  ;;  %v10597_v51 = vmul.f32 %v10553_v12, %v10393_v62  ;;  %4695 = vmatpush2.msra.mxu1 %v704_v38  ;;  %v520_v61 = vpop.f32.mrf.mxu0  ;;  %v703_v38 = vld [vmem:[%s18910_s4 + $0x290] sm:$0xff] }
 0x126   : > { %1483 = vperm.xlu0 %9013, %v9097_v3   ;;  %v10603_v60 = vpop.permute.xlu1 %1191  ;;  %v19619_v14 = vrot.slane %v10461_v24, 7  ;;  %v10610_v39 = vmul.f32 %v10039_v4, %v10557_v54  ;;  %4696 = vmatprep.subr.mxu1 %v19557_v58  ;;  %v3561_v26 = vsel %vm1280_vm1, %v3542_v33, %v3560_v25  ;;  %v19621_v12 = vrot.slane %v9810_v18, 1 }
 0x127   : > { %19617 = vst [vmem:[#allocation83_spill] sm:$0xff] %v10591_v47  ;;  %19618 = vst [vmem:[#allocation84_spill] sm:$0xff] %v10593_v31  ;;  %8962 = vset.pattern.permute.xlu1 %v19556_v44  ;;  %v10621_v24 = vsel %vm1280_vm1, %v3321_v19, %v10593_v31  ;;  %v19623_v48 = vrot.slane %v9826_v45, 1  ;;  %v10638_v19 = vsel %vm894_vm0, %v2691_v34, %v2693_v49  ;;  %4697 = vmatpush2.msra.mxu1 %v703_v38 }
 0x128   : > { %v3541_v41 = vsel %vm1280_vm1, %v19619_v14, %v3540_v52  ;;  %19620 = vst [vmem:[#allocation85_spill] sm:$0xff] %v10621_v24  ;;  %v3578_v14 = vrot.slane %v10586_v21, 7  ;;  %v10627_v4 = vsel %vm894_vm0, %v19621_v12, %v926_v6  ;;  %4478 = vmatmul.mubr.f32.vlgmr.msra.gmra.mxu0 %v10621_v24  ;;  %v10635_v33 = vpop.permute.xlu0 %1215  ;;  %v10642_v18 = vadd.f32 %v10467_v53, %v10051_v17  ;;  %v702_v53 = vld [vmem:[%s18910_s4 + $0x288] sm:$0xff]  ;;  %v701_v24 = vld [vmem:[%s18910_s4 + $0x280] sm:$0xff] }
 0x129   : > { %4313 = vmatmul.mubr.f32.gmra.mxu1 %v3541_v41  ;;  %19622 = vst [vmem:[#allocation86_spill] sm:$0xff] %v10627_v4  ;;  %v10632_v3 = vsel %vm894_vm0, %v926_v6, %v19623_v48  ;;  %v3558_v41 = vrot.slane %v1005_v13, 7  ;;  %v19626_v12 = vrot.slane %v10603_v60, 7  ;;  %v19627_v21 = vrot.slane %v10395_v9, 7  ;;  %1444 = vperm.xlu1 %8962, %v10084_v36  }
 0x12a   : > { %19624 = vst [vmem:[#allocation87_spill] sm:$0xff] %v10632_v3  ;;  %4317 = vmatprep.mubr.f32.mxu1 %v3561_v26  ;;  %19625 = vst [vmem:[#allocation88_spill] sm:$0xff] %v10642_v18  ;;  %v3576_v6 = vrot.slane %v10597_v51, 7  ;;  %v10655_v13 = vmul.f32 %v9833_v2, %v10591_v47  ;;  %v10661_v26 = vpop.f32.mrf.mxu0  ;;  %v2695_v51 = vrot.slane %v10610_v39, 1  ;;  %4698 = vmatprep.subr.mxu1 %v19557_v58  ;;  %v3596_v2 = vrot.slane %v10638_v19, 7 }
 0x12b   : > { %v10649_v48 = vsel %vm1280_vm1, %v19627_v21, %v19626_v12  ;;  %v3559_v36 = vsel %vm1280_vm1, %v3540_v52, %v3558_v41  ;;  %v10672_v12 = vadd.f32 %v10051_v17, %v520_v61  ;;  %v1418_v21 = vpop.permute.xlu1 %1417  ;;  %v3579_v34 = vsel %vm1280_vm1, %v3560_v25, %v3578_v14  ;;  %v9098_v52 = vld [vmem:[%s18907_s1 + $0xd8] sm:$0xff]  ;;  %4699 = vmatpush2.msra.mxu1 %v702_v53 }
 0x12c   : > { %19628 = vst [vmem:[#allocation89_spill] sm:$0xff] %v10649_v48  ;;  %v10665_v9 = vmul.f32 %v10649_v48, %v10089_v22  ;;  %1492 = vperm.xlu0 %9013, %v9098_v52   ;;  %v1509_v38 = vrot.slane %v1418_v21, 1  ;;  %v10683_v61 = vpop.permute.xlu0 %1224  ;;  %v1007_v25 = vmul.f32 %v10627_v4, %v10465_v37  ;;  %v10688_v19 = vsel %vm894_vm0, %v2693_v49, %v2695_v51  ;;  %v530_v39 = vpop.f32.mrf.mxu0 }
 0x12d   : > { %19629 = vst [vmem:[#allocation90_spill] sm:$0xff] %v10672_v12  ;;  %4318 = vmatmul.mubr.f32.gmra.mxu1 %v3559_v36  ;;  %19630 = vst [vmem:[#allocation91_spill] sm:$0xff] %v10683_v61  ;;  %8963 = vset.pattern.permute.xlu1 %v19584_v57  ;;  %v3577_v36 = vsel %vm1280_vm1, %v3558_v41, %v3576_v6  ;;  %v10694_v52 = vmul.f32 %v10632_v3, %v10489_v55  ;;  %v2697_v21 = vrot.slane %v10655_v13, 1  ;;  %v19666_v55 = vld [vmem:[#allocation13_spill] sm:$0xff] }
 0x12e   : > { %4322 = vmatprep.mubr.f32.mxu1 %v3579_v34  ;;  %v10699_v34 = vmul.f32 %v10067_v28, %v10642_v18  ;;  %4700 = vmatprep.subr.mxu1 %v19557_v58  ;;  %v19631_v49 = vrot.slane %v10317_v63, 1  ;;  %v19633_v41 = vrot.slane %v10352_v7, 1  ;;  %v19635_v13 = vrot.slane %v10665_v9, 2  ;;  %v19688_v61 = vld [vmem:[#allocation53_spill] sm:$0xff] }
 0x12f   : > { %1832 = vperm.xlu1 %8963, %v10366_v40   ;;  %4701 = vmatpush2.msra.mxu1 %v701_v24  ;;  %v3597_v63 = vsel %vm1280_vm1, %v3578_v14, %v3596_v2  ;;  %v19637_v24 = vrot.slane %v9826_v45, 1  ;;  %v10751_v45 = vadd.f32 %v10051_v17, %v530_v39  ;;  %v932_v48 = vrot.slane %v9841_v50, 1  ;;  %v10769_v39 = vpop.f32.mrf.mxu0 }
 0x130   : > { %v10705_v53 = vsel %vm894_vm0, %v19631_v49, %v1509_v38  ;;  %v10710_v4 = vsel %vm894_vm0, %v1509_v38, %v19633_v41  ;;  %v10717_v28 = vsel %vm2758_vm2, %v10564_v20, %v19635_v13  ;;  %v3614_v49 = vrot.slane %v10688_v19, 7  ;;  %v9099_v41 = vld [vmem:[%s18907_s1 + $0xf0] sm:$0xff]  ;;  %v10737_v19 = vpop.permute.xlu0 %1233 }
 0x131   : > { %19632 = vst [vmem:[#allocation92_spill] sm:$0xff] %v10705_v53  ;;  %19634 = vst [vmem:[#allocation93_spill] sm:$0xff] %v10710_v4  ;;  %4323 = vmatmul.mubr.f32.gmra.mxu1 %v3577_v36  ;;  %v1604_v3 = vmul.f32 %v10705_v53, %v10073_v30  ;;  %v10725_v38 = vmul.f32 %v10710_v4, %v10120_v8  ;;  %1501 = vperm.xlu0 %9013, %v9099_v41   ;;  %v19636_v13 = vrot.slane %v10042_v5, 1  ;;  %v10739_v36 = vpop.permute.xlu1 %1805 }
 0x132   : > { %4327 = vmatprep.mubr.f32.mxu1 %v3597_v63  ;;  %19639 = vst [vmem:[#allocation95_spill] sm:$0xff] %v10737_v19  ;;  %v3594_v20 = vrot.slane %v1007_v25, 7  ;;  %v10744_v53 = vmul.f32 %v9848_v23, %v10672_v12  ;;  %v10748_v41 = vadd.f32 %v10562_v32, %v10051_v17  ;;  %19641 = vst [vmem:[#allocation97_spill] sm:$0xff] %v10751_v45  ;;  %v2699_v23 = vrot.slane %v10699_v34, 1 }
 0x133   : > { %v10735_v14 = vsel %vm894_vm0, %v19637_v24, %v19636_v13  ;;  %v3348_v13 = vrot.slane %v1604_v3, 7  ;;  %v2698_v63 = vsel %vm894_vm0, %v2695_v51, %v2697_v21  ;;  %8964 = vset.pattern.permute.xlu1 %v19574_v15  ;;  %v3612_v24 = vrot.slane %v10694_v52, 7 }
 0x134   : > { %19638 = vst [vmem:[#allocation94_spill] sm:$0xff] %v10735_v14  ;;  %19640 = vst [vmem:[#allocation96_spill] sm:$0xff] %v10748_v41  ;;  %v3595_v25 = vsel %vm1280_vm1, %v3576_v6, %v3594_v20  ;;  %1221 = vperm.xlu1 %8964, %v10366_v40   ;;  %v3615_v32 = vsel %vm1280_vm1, %v3596_v2, %v3614_v49  ;;  %v19642_v3 = vrot.slane %v10493_v59, 7  ;;  %v19643_v52 = vrot.slane %v10717_v28, 7 }
 0x135   : > { %4328 = vmatmul.mubr.f32.gmra.mxu1 %v3595_v25  ;;  %v10767_v6 = vmul.f32 %v10735_v14, %v10557_v54  ;;  %v3632_v34 = vrot.slane %v2698_v63, 7  ;;  %v10776_v2 = vsel %vm894_vm0, %v2697_v21, %v2699_v23  ;;  %v2701_v59 = vrot.slane %v10744_v53, 1  ;;  %9016 = vset.pattern.permute.xlu0 %v19574_v15 }
 0x136   : > { %v3349_v51 = vsel %vm1280_vm1, %v19642_v3, %v3348_v13  ;;  %4332 = vmatprep.mubr.f32.mxu1 %v3615_v32  ;;  %v3347_v50 = vsel %vm1280_vm1, %v10593_v31, %v19643_v52  ;;  %v19644_v25 = vrot.slane %v10042_v5, 1  ;;  %v934_v4 = vrot.slane %v10075_v43, 1  ;;  %v10785_v32 = vpop.permute.xlu0 %1802  ;;  %v19647_v43 = vld [vmem:[#allocation36_spill] sm:$0xff] }
 0x137   : > { %4482 = vmatprep.mubr.f32.mxu0 %v3349_v51  ;;  %v1195_v51 = vpop.permute.xlu1 %1194  ;;  %v19646_v14 = vrot.slane %v10725_v38, 7  ;;  %v3613_v53 = vsel %vm1280_vm1, %v3594_v20, %v3612_v24  ;;  %v1173_v52 = vmul.f32 %v19647_v43, %v10748_v41  ;;  %v3630_v20 = vrot.slane %v10767_v6, 7 }
 0x138   : > { %v10782_v3 = vsel %vm894_vm0, %v19644_v25, %v932_v48  ;;  %4483 = vmatmul.mubr.f32.gmra.mxu0 %v3347_v50  ;;  %v1286_v21 = vrot.slane %v1195_v51, 7  ;;  %v10801_v50 = vld [vmem:[%s18907_s1 + $0x98] sm:$0xff]  ;;  %8965 = vset.pattern.permute.xlu1 %v19563_v27  ;;  %v3650_v51 = vrot.slane %v10776_v2, 7  ;;  %v19649_v43 = vrot.slane %v10603_v60, 7  ;;  %v19651_v25 = vld [vmem:[#allocation12_spill] sm:$0xff] }
 0x139   : > { %19645 = vst [vmem:[#allocation98_spill] sm:$0xff] %v10782_v3  ;;  %v3367_v63 = vsel %vm1280_vm1, %v3348_v13, %v19646_v14  ;;  %v10794_v5 = vmul.f32 %v10782_v3, %v10591_v47  ;;  %1242 = vperm.xlu0 %9016, %v10801_v50   ;;  %v19648_v14 = vld [vmem:[#allocation11_spill] sm:$0xff]  ;;  %4333 = vmatmul.mubr.f32.gmra.mxu1 %v3613_v53  ;;  %v2703_v58 = vrot.slane %v1173_v52, 1 }
 0x13a   : > { %4487 = vmatprep.mubr.f32.mxu0 %v3367_v63  ;;  %v540_v63 = vpop.f32.mrf.mxu0  ;;  %v10812_v3 = vsel %vm1280_vm1, %v19649_v43, %v1286_v21  ;;  %1684 = vperm.xlu1 %8965, %v10366_v40   ;;  %v3633_v31 = vsel %vm1280_vm1, %v3614_v49, %v3632_v34  ;;  %v10817_v13 = vsel %vm894_vm0, %v2699_v23, %v2701_v59  ;;  %v19653_v2 = vrot.slane %v19648_v14, 1  ;;  %v10835_v49 = vpop.permute.xlu0 %1811 }
 0x13b   : > { %19650 = vst [vmem:[#allocation11_spill] sm:$0xff] %v10812_v3  ;;  %v10821_v53 = vmul.f32 %v19651_v25, %v10751_v45  ;;  %v10824_v6 = vsel %vm894_vm0, %v932_v48, %v934_v4  ;;  %v10833_v40 = vmul.f32 %v10812_v3, %v10073_v30  ;;  %4337 = vmatprep.mubr.f32.mxu1 %v3633_v31  ;;  %v10841_v43 = vpop.permute.xlu1 %1648  ;;  %v3648_v25 = vrot.slane %v10794_v5, 7 }
 0x13c   : > { %19652 = vst [vmem:[#allocation99_spill] sm:$0xff] %v10824_v6  ;;  %v10829_v60 = vsel %vm894_vm0, %v934_v4, %v19653_v2  ;;  %v10839_v23 = vadd.f32 %v10661_v26, %v10051_v17  ;;  %19656 = vst [vmem:[#allocation102_spill] sm:$0xff] %v10841_v43  ;;  %v3631_v48 = vsel %vm1280_vm1, %v3612_v24, %v3630_v20  ;;  %v9101_v4 = vld [vmem:[%s18907_s1 + $0xb0] sm:$0xff]  ;;  %v19657_v31 = vrot.slane %v10531_v42, 7  ;;  %v10859_v52 = vpop.f32.mrf.mxu0 }
 0x13d   : > { %19654 = vst [vmem:[#allocation100_spill] sm:$0xff] %v10829_v60  ;;  %1251 = vperm.xlu0 %9016, %v9101_v4   ;;  %v19012_v26 = vrot.slane %v10833_v40, 2  ;;  %4338 = vmatmul.mubr.f32.gmra.mxu1 %v3631_v48  ;;  %v3651_v3 = vsel %vm1280_vm1, %v3632_v34, %v3650_v51  ;;  %v3668_v24 = vrot.slane %v10817_v13, 7  ;;  %v10857_v5 = vadd.f32 %v10051_v17, %v540_v63  ;;  %v10871_v34 = vld [vmem:[%s18907_s1 + $0x68] sm:$0xff] }
 0x13e   : > { %19655 = vst [vmem:[#allocation101_spill] sm:$0xff] %v10839_v23  ;;  %v10851_v2 = vsel %vm1280_vm1, %v1286_v21, %v19657_v31  ;;  %8966 = vset.pattern.permute.xlu1 %v19584_v57  ;;  %4342 = vmatprep.mubr.f32.mxu1 %v3651_v3  ;;  %v1011_v4 = vmul.f32 %v10824_v6, %v10642_v18  ;;  %v2705_v48 = vrot.slane %v10821_v53, 1  ;;  %19660 = vst [vmem:[#allocation105_spill] sm:$0xff] %v10871_v34  ;;  %v10874_v13 = vpop.permute.xlu0 %1820  ;;  %v19662_v18 = vld [vmem:[#allocation41_spill] sm:$0xff] }
 0x13f   : > { %19658 = vst [vmem:[#allocation103_spill] sm:$0xff] %v10851_v2  ;;  %19659 = vst [vmem:[#allocation104_spill] sm:$0xff] %v10857_v5  ;;  %v10865_v21 = vsel %vm894_vm0, %v2701_v59, %v2703_v58  ;;  %1835 = vperm.xlu1 %8966, %v10871_v34   ;;  %v19661_v3 = vrot.slane %v10665_v9, 2  ;;  %v10885_v59 = vmul.f32 %v10829_v60, %v10672_v12  ;;  %v9103_v9 = vld [vmem:[%s18907_s1 + $0xc8] sm:$0xff]  ;;  %v10899_v60 = vpop.permute.xlu1 %1808 }
 0x140   : > { %v10889_v53 = vmul.f32 %v10851_v2, %v10120_v8  ;;  %v3649_v31 = vsel %vm1280_vm1, %v3630_v20, %v3648_v25  ;;  %v1175_v47 = vmul.f32 %v19662_v18, %v10839_v23  ;;  %v3669_v2 = vsel %vm1280_vm1, %v3650_v51, %v3668_v24  ;;  %v550_v20 = vpop.f32.mrf.mxu0 }
 0x141   : > { %v10881_v63 = vsel %vm2758_vm2, %v19661_v3, %v19012_v26  ;;  %1260 = vperm.xlu0 %9016, %v9103_v9   ;;  %v19663_v3 = vld [vmem:[#allocation38_spill] sm:$0xff]  ;;  %4343 = vmatmul.mubr.f32.gmra.mxu1 %v3649_v31  ;;  %v3686_v12 = vrot.slane %v10865_v21, 7  ;;  %v19664_v18 = vrot.slane %v10717_v28, 7  ;;  %v3666_v54 = vrot.slane %v1011_v4, 7 }
 0x142   : > { %v19022_v6 = vrot.slane %v10881_v63, 7  ;;  %v938_v26 = vrot.slane %v19663_v3, 1  ;;  %4347 = vmatprep.mubr.f32.mxu1 %v3669_v2  ;;  %v10909_v9 = vsel %vm894_vm0, %v2703_v58, %v2705_v48  ;;  %v19665_v31 = vld [vmem:[#allocation14_spill] sm:$0xff]  ;;  %v940_v51 = vrot.slane %v19666_v55, 1  ;;  %v10917_v21 = vpop.permute.xlu0 %1829 }
 0x143   : > { %v10913_v3 = vmul.f32 %v19665_v31, %v10857_v5  ;;  %8967 = vset.pattern.permute.xlu1 %v19556_v44  ;;  %19667 = vst [vmem:[#allocation38_spill] sm:$0xff] %v10917_v21  ;;  %v3684_v2 = vrot.slane %v10885_v59, 7  ;;  %v10922_v28 = vadd.f32 %v10769_v39, %v10051_v17  ;;  %v2707_v4 = vrot.slane %v1175_v47, 1  ;;  %v9104_v55 = vld [vmem:[%s18907_s1 + $0xe0] sm:$0xff]  ;;  %v10941_v47 = vpop.f32.mrf.mxu0 }
 0x144   : > { %v3365_v19 = vsel %vm1280_vm1, %v19664_v18, %v19022_v6  ;;  %1450 = vperm.xlu1 %8967, %v10871_v34   ;;  %v3667_v18 = vsel %vm1280_vm1, %v3648_v25, %v3666_v54  ;;  %v19671_v6 = vld [vmem:[#allocation43_spill] sm:$0xff]  ;;  %v3687_v58 = vsel %vm1280_vm1, %v3668_v24, %v3686_v12  ;;  %v3704_v31 = vrot.slane %v10909_v9, 7  ;;  %v10943_v37 = vpop.permute.xlu1 %1423  ;;  %v19678_v9 = vld [vmem:[#allocation46_spill] sm:$0xff] }
 0x145   : > { %4488 = vmatmul.mubr.f32.gmra.mxu0 %v3365_v19  ;;  %19668 = vst [vmem:[#allocation13_spill] sm:$0xff] %v10922_v28  ;;  %1269 = vperm.xlu0 %9016, %v9104_v55   ;;  %v19669_v19 = vrot.slane %v19648_v14, 1  ;;  %v942_v39 = vrot.slane %v19671_v6, 1  ;;  %v10939_v25 = vadd.f32 %v10051_v17, %v550_v20  ;;  %v10948_v55 = vsel %vm894_vm0, %v2705_v48, %v2707_v4 }
 0x146   : > { %4348 = vmatmul.mubr.f32.gmra.mxu1 %v3667_v18  ;;  %v2709_v6 = vrot.slane %v10913_v3, 1  ;;  %v10952_v24 = vsel %vm894_vm0, %v938_v26, %v940_v51  ;;  %v10955_v17 = vpop.permute.xlu0 %1838  ;;  %v3685_v20 = vsel %vm1280_vm1, %v3666_v54, %v3684_v2  ;;  %v19676_v48 = vrot.slane %v10889_v53, 2  ;;  %v9105_v54 = vld [vmem:[%s18907_s1 + $0xf8] sm:$0xff] }
 0x147   : > { %v10933_v59 = vsel %vm894_vm0, %v19669_v19, %v938_v26  ;;  %19672 = vst [vmem:[#allocation43_spill] sm:$0xff] %v10939_v25  ;;  %4352 = vmatprep.mubr.f32.mxu1 %v3687_v58  ;;  %19673 = vst [vmem:[#allocation107_spill] sm:$0xff] %v10952_v24  ;;  %v19675_v58 = vld [vmem:[#allocation15_spill] sm:$0xff]  ;;  %v10962_v19 = vmul.f32 %v10952_v24, %v10751_v45  ;;  %v19677_v3 = vrot.slane %v10833_v40, 2  ;;  %v19680_v24 = vrot.slane %v10943_v37, 1 }
 0x148   : > { %19670 = vst [vmem:[#allocation106_spill] sm:$0xff] %v10933_v59  ;;  %v1013_v14 = vmul.f32 %v10933_v59, %v10748_v41  ;;  %19674 = vst [vmem:[#allocation108_spill] sm:$0xff] %v10955_v17  ;;  %v944_v18 = vrot.slane %v19675_v58, 1  ;;  %8968 = vset.pattern.permute.xlu1 %v19563_v27  ;;  %v10973_v59 = vmul.f32 %v19678_v9, %v10922_v28  ;;  %v19681_v45 = vrot.slane %v10352_v7, 1  ;;  %v560_v9 = vpop.f32.mrf.mxu0  ;;  %v19683_v7 = vld [vmem:[#allocation16_spill] sm:$0xff] }
 0x149   : > { %v10969_v26 = vsel %vm2758_vm2, %v19677_v3, %v19676_v48  ;;  %1278 = vperm.xlu0 %9016, %v9105_v54   ;;  %v10979_v58 = vsel %vm894_vm0, %v940_v51, %v942_v39  ;;  %1688 = vperm.xlu1 %8968, %v10871_v34   ;;  %v3705_v48 = vsel %vm1280_vm1, %v3686_v12, %v3704_v31  ;;  %v3722_v3 = vrot.slane %v10948_v55, 7  ;;  %v19685_v12 = vld [vmem:[#allocation49_spill] sm:$0xff] }
 0x14a   : > { %19679 = vst [vmem:[#allocation15_spill] sm:$0xff] %v10979_v58  ;;  %v10986_v40 = vsel %vm894_vm0, %v19681_v45, %v19680_v24  ;;  %4353 = vmatmul.mubr.f32.gmra.mxu1 %v3685_v20  ;;  %v3702_v54 = vrot.slane %v1013_v14, 7  ;;  %v10996_v41 = vsel %vm894_vm0, %v2707_v4, %v2709_v6  ;;  %v11000_v45 = vmul.f32 %v19683_v7, %v10939_v25  ;;  %v11009_v14 = vld [vmem:[%s18909_s3] ss:$0 sm:$0xff]  ;;  %v11015_v4 = vpop.permute.xlu1 %1652  ;;  %v11018_v7 = vpop.permute.xlu0 %1847 }
 0x14b   : > { %19682 = vst [vmem:[#allocation109_spill] sm:$0xff] %v10986_v40  ;;  %4357 = vmatprep.mubr.f32.mxu1 %v3705_v48  ;;  %v10993_v51 = vmul.f32 %v10986_v40, %v10103_v35  ;;  %v11003_v24 = vsel %vm894_vm0, %v942_v39, %v944_v18  ;;  %v946_v20 = vrot.slane %v19685_v12, 1  ;;  %v11013_v55 = vadd.f32 %v11009_v14, %v10859_v52 }
 0x14c   : > { %19684 = vst [vmem:[#allocation110_spill] sm:$0xff] %v11003_v24  ;;  %19686 = vst [vmem:[#allocation49_spill] sm:$0xff] %v11015_v4  ;;  %v3703_v39 = vsel %vm1280_vm1, %v3684_v2, %v3702_v54  ;;  %v3720_v12 = vrot.slane %v10962_v19, 7  ;;  %v2711_v17 = vrot.slane %v10973_v59, 1  ;;  %v11026_v34 = vadd.f32 %v11009_v14, %v560_v9  ;;  %v9107_v2 = vld [vmem:[%s18907_s1 + $0x70] sm:$0xff] }
 0x14d   : > { %19687 = vst [vmem:[#allocation111_spill] sm:$0xff] %v11018_v7  ;;  %v19041_v40 = vrot.slane %v10993_v51, 7  ;;  %8969 = vset.pattern.permute.xlu1 %v19574_v15  ;;  %v3723_v52 = vsel %vm1280_vm1, %v3704_v31, %v3722_v3  ;;  %v3740_v48 = vrot.slane %v10996_v41, 7  ;;  %v11031_v7 = vpop.f32.mrf.mxu0  ;;  %v19689_v59 = vrot.slane %v10725_v38, 7 }
 0x14e   : > { %4358 = vmatmul.mubr.f32.gmra.mxu1 %v3703_v39  ;;  %1227 = vperm.xlu1 %8969, %v9107_v2   ;;  %v1015_v19 = vmul.f32 %v10979_v58, %v10839_v23  ;;  %v2712_v31 = vsel %vm894_vm0, %v2709_v6, %v2711_v17  ;;  %v2713_v41 = vrot.slane %v11000_v45, 1  ;;  %v19690_v39 = vld [vmem:[#allocation17_spill] sm:$0xff]  ;;  %v19691_v0 = vrot.slane %v10969_v26, 7  ;;  %v11059_v6 = vpop.permute.xlu1 %1200 }
 0x14f   : > { %4362 = vmatprep.mubr.f32.mxu1 %v3723_v52  ;;  %v3385_v9 = vsel %vm1280_vm1, %v19689_v59, %v19041_v40  ;;  %v948_v62 = vrot.slane %v19690_v39, 1  ;;  %v19692_v52 = vrot.slane %v10881_v63, 7  ;;  %v11053_v38 = vmul.f32 %v11003_v24, %v10857_v5  ;;  %v19693_v59 = vld [vmem:[#allocation19_spill] sm:$0xff]  ;;  %v570_v5 = vpop.f32.mrf.mxu0 }
 0x150   : > { %4492 = vmatprep.mubr.f32.mxu0 %v3385_v9  ;;  %v11057_v58 = vsel %vm894_vm0, %v944_v18, %v946_v20  ;;  %v3721_v45 = vsel %vm1280_vm1, %v3702_v54, %v3720_v12  ;;  %v19695_v9 = vld [vmem:[#allocation51_spill] sm:$0xff]  ;;  %v3758_v40 = vrot.slane %v2712_v31, 7  ;;  %v19697_v18 = vrot.slane %v19688_v61, 1  ;;  %v11074_v54 = vpop.permute.xlu0 %1856 }
 0x151   : > { %v3383_v21 = vsel %vm1280_vm1, %v19692_v52, %v19691_v0  ;;  %19694 = vst [vmem:[#allocation53_spill] sm:$0xff] %v11057_v58  ;;  %v1179_v39 = vmul.f32 %v19695_v9, %v11013_v55  ;;  %v11065_v63 = vsel %vm894_vm0, %v946_v20, %v948_v62  ;;  %v3741_v52 = vsel %vm1280_vm1, %v3722_v3, %v3740_v48  ;;  %v19699_v0 = vld [vmem:[#allocation18_spill] sm:$0xff]  ;;  %v19700_v3 = vld [vmem:[#allocation56_spill] sm:$0xff] }
 0x152   : > { %4493 = vmatmul.mubr.f32.gmra.mxu0 %v3383_v21  ;;  %19696 = vst [vmem:[#allocation17_spill] sm:$0xff] %v11065_v63  ;;  %4363 = vmatmul.mubr.f32.gmra.mxu1 %v3721_v45  ;;  %v11072_v24 = vsel %vm894_vm0, %v948_v62, %v19697_v18  ;;  %v3738_v21 = vrot.slane %v1015_v19, 7  ;;  %v2714_v20 = vsel %vm894_vm0, %v2711_v17, %v2713_v41  ;;  %v19701_v62 = vrot.slane %v11059_v6, 7 }
 0x153   : > { %19698 = vst [vmem:[#allocation19_spill] sm:$0xff] %v11072_v24  ;;  %8970 = vset.pattern.permute.xlu1 %v19556_v44  ;;  %4367 = vmatprep.mubr.f32.mxu1 %v3741_v52  ;;  %v11080_v45 = vmul.f32 %v19699_v0, %v11026_v34  ;;  %v19702_v18 = vrot.slane %v10531_v42, 7  ;;  %v3756_v19 = vrot.slane %v11053_v38, 7  ;;  %v11094_v17 = vadd.f32 %v11009_v14, %v10941_v47  ;;  %v1427_v42 = vpop.permute.xlu1 %1426 }
 0x154   : > { %1453 = vperm.xlu1 %8970, %v9107_v2   ;;  %v3739_v31 = vsel %vm1280_vm1, %v3720_v12, %v3738_v21  ;;  %v2715_v9 = vrot.slane %v1179_v39, 1  ;;  %v11102_v0 = vadd.f32 %v11009_v14, %v570_v5  ;;  %v3759_v2 = vsel %vm1280_vm1, %v3740_v48, %v3758_v40  ;;  %v19711_v39 = vld [vmem:[#allocation54_spill] sm:$0xff] }
 0x155   : > { %v11089_v23 = vsel %vm1280_vm1, %v19702_v18, %v19701_v62  ;;  %v3776_v62 = vrot.slane %v2714_v20, 7  ;;  %v1017_v38 = vmul.f32 %v11057_v58, %v10922_v28  ;;  %v1515_v18 = vrot.slane %v1427_v42, 1 }
 0x156   : > { %19703 = vst [vmem:[#allocation56_spill] sm:$0xff] %v11089_v23  ;;  %v11098_v52 = vmul.f32 %v11089_v23, %v10103_v35  ;;  %4368 = vmatmul.mubr.f32.gmra.mxu1 %v3739_v31  ;;  %v11109_v23 = vsel %vm894_vm0, %v2713_v41, %v2715_v9  ;;  %v2717_v12 = vrot.slane %v11080_v45, 1  ;;  %v11113_v5 = vrot.slane %v10306_v10, 7  ;;  %v11122_v31 = vpop.permute.xlu0 %1865 }
 0x157   : > { %4372 = vmatprep.mubr.f32.mxu1 %v3759_v2  ;;  %v3757_v48 = vsel %vm1280_vm1, %v3738_v21, %v3756_v19  ;;  %v11120_v20 = vmul.f32 %v11065_v63, %v10939_v25  ;;  %19705 = vst [vmem:[#allocation113_spill] sm:$0xff] %v11122_v31  ;;  %v19706_v41 = vrot.slane %v10943_v37, 1  ;;  %v19708_v10 = vrot.slane %v10387_v11, 1 }
 0x158   : > { %v19051_v47 = vrot.slane %v11098_v52, 2  ;;  %19704 = vst [vmem:[#allocation112_spill] sm:$0xff] %v11113_v5  ;;  %8971 = vset.pattern.permute.xlu1 %v19584_v57  ;;  %v19710_v21 = vrot.slane %v10889_v53, 2  ;;  %v1181_v37 = vmul.f32 %v19711_v39, %v11094_v17  ;;  %v3794_v63 = vrot.slane %v11109_v23, 7  ;;  %v11152_v53 = vpop.permute.xlu1 %1814  ;;  %v19714_v23 = vld [vmem:[#allocation61_spill] sm:$0xff] }
 0x159   : > { %v11127_v42 = vsel %vm894_vm0, %v19706_v41, %v1515_v18  ;;  %v11132_v45 = vsel %vm894_vm0, %v1515_v18, %v19708_v10  ;;  %1841 = vperm.xlu1 %8971, %v10417_v16   ;;  %v3777_v41 = vsel %vm1280_vm1, %v3758_v40, %v3776_v62  ;;  %v19712_v10 = vld [vmem:[#allocation48_spill] sm:$0xff]  ;;  %v2718_v39 = vsel %vm894_vm0, %v2715_v9, %v2717_v12 }
 0x15a   : > { %19707 = vst [vmem:[#allocation114_spill] sm:$0xff] %v11127_v42  ;;  %19709 = vst [vmem:[#allocation115_spill] sm:$0xff] %v11132_v45  ;;  %v11140_v2 = vsel %vm2758_vm2, %v19710_v21, %v19051_v47  ;;  %4373 = vmatmul.mubr.f32.gmra.mxu1 %v3757_v48  ;;  %v1607_v18 = vmul.f32 %v11127_v42, %v10151_v56  ;;  %v11150_v58 = vmul.f32 %v11132_v45, %v19712_v10  ;;  %v19713_v48 = vld [vmem:[#allocation20_spill] sm:$0xff] }
 0x15b   : > { %4377 = vmatprep.mubr.f32.mxu1 %v3777_v41  ;;  %v3774_v21 = vrot.slane %v1017_v38, 7  ;;  %v11158_v40 = vmul.f32 %v19713_v48, %v11102_v0  ;;  %v11161_v25 = vrot.slane %v19714_v23, 1  ;;  %v19716_v42 = vrot.slane %v10336_v1, 7  ;;  %v11189_v38 = vpop.permute.xlu0 %1874 }
 0x15c   : > { %v3402_v41 = vrot.slane %v1607_v18, 7  ;;  %v11172_v47 = vadd.f32 %v11009_v14, %v11031_v7  ;;  %v3792_v23 = vrot.slane %v11120_v20, 7  ;;  %v2719_v48 = vrot.slane %v1181_v37, 1 }
 0x15d   : > { %19715 = vst [vmem:[#allocation61_spill] sm:$0xff] %v11161_v25  ;;  %v11167_v45 = vsel %vm1280_vm1, %v11113_v5, %v19716_v42  ;;  %8972 = vset.pattern.permute.xlu1 %v19574_v15  ;;  %v3775_v9 = vsel %vm1280_vm1, %v3756_v19, %v3774_v21  ;;  %v19718_v28 = vrot.slane %v19693_v59, 1  ;;  %v19719_v31 = vrot.slane %v19688_v61, 1 }
 0x15e   : > { %19717 = vst [vmem:[#allocation116_spill] sm:$0xff] %v11167_v45  ;;  %1230 = vperm.xlu1 %8972, %v10417_v16   ;;  %4378 = vmatmul.mubr.f32.gmra.mxu1 %v3775_v9  ;;  %v3795_v7 = vsel %vm1280_vm1, %v3776_v62, %v3794_v63  ;;  %v19721_v14 = vrot.slane %v10993_v51, 7  ;;  %v3812_v19 = vrot.slane %v2718_v39, 7  ;;  %v19722_v20 = vrot.slane %v11140_v2, 7 }
 0x15f   : > { %v11182_v42 = vsel %vm894_vm0, %v19719_v31, %v19718_v28  ;;  %4382 = vmatprep.mubr.f32.mxu1 %v3795_v7  ;;  %v19723_v61 = vrot.slane %v10969_v26, 7  ;;  %v1019_v31 = vmul.f32 %v11072_v24, %v11013_v55  ;;  %v2720_v62 = vsel %vm894_vm0, %v2717_v12, %v2719_v48  ;;  %v1204_v12 = vpop.permute.xlu1 %1203 }
 0x160   : > { %19720 = vst [vmem:[#allocation117_spill] sm:$0xff] %v11182_v42  ;;  %v3403_v18 = vsel %vm1280_vm1, %v19721_v14, %v3402_v41  ;;  %v2721_v51 = vrot.slane %v11158_v40, 1  ;;  %v19724_v37 = vrot.slane %v19700_v3, 1  ;;  %v19725_v39 = vrot.slane %v19693_v59, 1 }
 0x161   : > { %4497 = vmatprep.mubr.f32.mxu0 %v3403_v18  ;;  %v3401_v28 = vsel %vm1280_vm1, %v19723_v61, %v19722_v20  ;;  %v11215_v14 = vmul.f32 %v11167_v45, %v10073_v30  ;;  %v19729_v40 = vrot.slane %v11150_v58, 7  ;;  %v1292_v59 = vrot.slane %v1204_v12, 7  ;;  %v19730_v61 = vld [vmem:[#allocation60_spill] sm:$0xff] }
 0x162   : > { %v11205_v9 = vsel %vm894_vm0, %v19725_v39, %v19724_v37  ;;  %v19727_v7 = vmov %v19724_v37  ;;  %4498 = vmatmul.mubr.f32.gmra.mxu0 %v3401_v28  ;;  %v3793_v20 = vsel %vm1280_vm1, %v3774_v21, %v3792_v23  ;;  %v11223_v3 = vmul.f32 %v11182_v42, %v11026_v34  ;;  %v19731_v39 = vld [vmem:[#allocation77_spill] sm:$0xff]  ;;  %8973 = vset.pattern.permute.xlu1 %v19563_v27 }
 0x163   : > { %19726 = vst [vmem:[#allocation118_spill] sm:$0xff] %v11205_v9  ;;  %v11211_v26 = vsel %vm894_vm0, %v19727_v7, %v11161_v25  ;;  %v3421_v18 = vsel %vm1280_vm1, %v3402_v41, %v19729_v40  ;;  %v11227_v37 = vmul.f32 %v19730_v61, %v11172_v47  ;;  %v11231_v7 = vmul.f32 %v19731_v39, %v10089_v22 }
 0x164   : > { %19728 = vst [vmem:[#allocation119_spill] sm:$0xff] %v11211_v26  ;;  %4502 = vmatprep.mubr.f32.mxu0 %v3421_v18  ;;  %v19062_v28 = vrot.slane %v10581_v29, 7  ;;  %4383 = vmatmul.mubr.f32.gmra.mxu1 %v3793_v20  ;;  %v3813_v21 = vsel %vm1280_vm1, %v3794_v63, %v3812_v19  ;;  %v3830_v41 = vrot.slane %v2720_v62, 7  ;;  %v1894_v12 = vrot.slane %v10785_v32, 7 }
 0x165   : > { %v19732_v40 = vrot.slane %v11059_v6, 7  ;;  %1696 = vperm.xlu1 %8973, %v10417_v16   ;;  %4387 = vmatprep.mubr.f32.mxu1 %v3813_v21  ;;  %v3810_v61 = vrot.slane %v1019_v31, 7  ;;  %v11244_v42 = vsel %vm894_vm0, %v2719_v48, %v2721_v51  ;;  %v11248_v20 = vmul.f32 %v11113_v5, %v10089_v22  ;;  %v11260_v31 = vpop.permute.xlu0 %1883  ;;  %v11262_v48 = vpop.permute.xlu1 %1660 }
 0x166   : > { %v11253_v32 = vmul.f32 %v10559_v46, %v10073_v30  ;;  %v1896_v16 = vrot.slane %v10739_v36, 7  ;;  %19734 = vst [vmem:[#allocation121_spill] sm:$0xff] %v11262_v48  ;;  %v3828_v22 = vrot.slane %v11223_v3, 7  ;;  %v2723_v21 = vrot.slane %v11227_v37, 1 }
 0x167   : > { %v11240_v18 = vsel %vm1280_vm1, %v19732_v40, %v1292_v59  ;;  %v3811_v62 = vsel %vm1280_vm1, %v3792_v23, %v3810_v61  ;;  %v11270_v40 = vsel %vm1280_vm1, %v1292_v59, %v19062_v28  ;;  %v3831_v36 = vsel %vm1280_vm1, %v3812_v19, %v3830_v41 }
 0x168   : > { %19733 = vst [vmem:[#allocation120_spill] sm:$0xff] %v11240_v18  ;;  %v11257_v6 = vmul.f32 %v11240_v18, %v10151_v56  ;;  %19735 = vst [vmem:[#allocation122_spill] sm:$0xff] %v11270_v40  ;;  %4388 = vmatmul.mubr.f32.gmra.mxu1 %v3811_v62  ;;  %v3848_v24 = vrot.slane %v11244_v42, 7  ;;  %v2856_v46 = vrot.slane %v11231_v7, 1  ;;  %v19736_v23 = vrot.slane %v10336_v1, 7  ;;  %v9108_v1 = vld [vmem:[%s18907_s1 + $0x80] sm:$0xff] }
 0x169   : > { %8974 = vset.pattern.permute.xlu1 %v19584_v57  ;;  %4392 = vmatprep.mubr.f32.mxu1 %v3831_v36  ;;  %v1021_v59 = vmul.f32 %v11205_v9, %v11094_v17  ;;  %v11285_v37 = vsel %vm894_vm0, %v2721_v51, %v2723_v21  ;;  %v11289_v42 = vsel %vm1280_vm1, %v1894_v12, %v1896_v16  ;;  %v1898_v7 = vrot.slane %v10899_v60, 7 }
 0x16a   : > { %v19063_v63 = vrot.slane %v11257_v6, 2  ;;  %v11279_v3 = vsel %vm1280_vm1, %v19736_v23, %v1894_v12  ;;  %19738 = vst [vmem:[#allocation124_spill] sm:$0xff] %v11289_v42  ;;  %1844 = vperm.xlu1 %8974, %v9108_v1   ;;  %v19739_v62 = vrot.slane %v11098_v52, 2  ;;  %v11304_v51 = vmul.f32 %v11270_v40, %v19712_v10  ;;  %v11314_v52 = vpop.permute.xlu1 %1817 }
 0x16b   : > { %19737 = vst [vmem:[#allocation123_spill] sm:$0xff] %v11279_v3  ;;  %v3829_v12 = vsel %vm1280_vm1, %v3810_v61, %v3828_v22  ;;  %v1022_v23 = vmul.f32 %v11211_v26, %v11102_v0  ;;  %v11312_v28 = vmul.f32 %v11279_v3, %v10120_v8  ;;  %v11320_v19 = vmul.f32 %v11289_v42, %v10103_v35  ;;  %v11322_v61 = vpop.permute.xlu0 %1644 }
 0x16c   : > { %v11300_v36 = vsel %vm2758_vm2, %v19739_v62, %v19063_v63  ;;  %4393 = vmatmul.mubr.f32.gmra.mxu1 %v3829_v12  ;;  %v3849_v62 = vsel %vm1280_vm1, %v3830_v41, %v3848_v24  ;;  %v3866_v63 = vrot.slane %v11285_v37, 7  ;;  %19740 = vst [vmem:[#allocation125_spill] sm:$0xff] %v11322_v61  ;;  %v19741_v26 = vrot.slane %v11140_v2, 7 }
 0x16d   : > { %v19070_v60 = vrot.slane %v11300_v36, 7  ;;  %4397 = vmatprep.mubr.f32.mxu1 %v3849_v62  ;;  %v3846_v12 = vrot.slane %v1021_v59, 7  ;;  %v1023_v3 = vmul.f32 %v11161_v25, %v11172_v47  ;;  %v19068_v41 = vmov 7  }
 0x16e   : > { %9022 = vset.pattern.permute.xlu0 %v19068_v41  ;;  %v2952_v37 = vrot.slane %v11248_v20, 2  ;;  %v11333_v42 = vrot.slane %v2856_v46, 7  ;;  %v1900_v39 = vrot.slane %v10835_v49, 7  ;;  %v11337_v62 = vsel %vm1280_vm1, %v1896_v16, %v1898_v7  ;;  %8976 = vset.pattern.permute.xlu1 %v19556_v44  ;;  %v11350_v49 = vld [vmem:[%s18907_s1] sm:$0xff] }
 0x16f   : > { %v3419_v9 = vsel %vm1280_vm1, %v19741_v26, %v19070_v60  ;;  %19742 = vst [vmem:[#allocation126_spill] sm:$0xff] %v11337_v62  ;;  %v19743_v2 = vrot.slane %v11253_v32, 1  ;;  %1459 = vperm.xlu1 %8976, %v9108_v1   ;;  %v3847_v20 = vsel %vm1280_vm1, %v3828_v22, %v3846_v12  ;;  %v3864_v41 = vrot.slane %v1022_v23, 7  ;;  %2246 = vperm.xlu0 %9022, %v11350_v49  }
 0x170   : > { %4503 = vmatmul.mubr.f32.gmra.mxu0 %v3419_v9  ;;  %v2955_v9 = vrot.slane %v11312_v28, 2  ;;  %v11356_v16 = vmul.f32 %v11322_v61, %v10120_v8  ;;  %4398 = vmatmul.mubr.f32.gmra.mxu1 %v3847_v20  ;;  %v2957_v23 = vrot.slane %v11320_v19, 2  ;;  %v11367_v60 = vmul.f32 %v11337_v62, %v10151_v56  ;;  %v11369_v28 = vpop.permute.xlu1 %1432  ;;  %v11380_v19 = vpop.permute.xlu0 %1656 }
 0x171   : > { %v11343_v26 = vsel %vm894_vm0, %v2856_v46, %v19743_v2  ;;  %v3867_v46 = vsel %vm1280_vm1, %v3848_v24, %v3866_v63  ;;  %v19744_v2 = vrot.slane %v11215_v14, 2  ;;  %v3882_v59 = vrot.slane %v1023_v3, 7  ;;  %19746 = vst [vmem:[#allocation128_spill] sm:$0xff] %v11380_v19 }
 0x172   : > { %4402 = vmatprep.mubr.f32.mxu1 %v3867_v46  ;;  %v11372_v25 = vsel %vm1280_vm1, %v1898_v7, %v1900_v39  ;;  %v3884_v61 = vrot.slane %v2723_v21, 7  ;;  %v3865_v46 = vsel %vm1280_vm1, %v3846_v12, %v3864_v41  ;;  %v19747_v7 = vrot.slane %v11304_v51, 2 }
 0x173   : > { %v11362_v22 = vsel %vm2758_vm2, %v2952_v37, %v19744_v2  ;;  %19745 = vst [vmem:[#allocation127_spill] sm:$0xff] %v11372_v25  ;;  %v11378_v2 = vmul.f32 %v10841_v43, %v10103_v35  ;;  %8977 = vset.pattern.permute.xlu1 %v19563_v27  ;;  %v19748_v62 = vrot.slane %v11257_v6, 2  ;;  %v19076_v21 = vmov 6  }
 0x174   : > { %v3331_v3 = vrot.slane %v11362_v22, 7  ;;  %9025 = vset.pattern.permute.xlu0 %v19076_v21  ;;  %v2859_v20 = vrot.slane %v11356_v16, 1  ;;  %v19749_v43 = vrot.slane %v11369_v28, 1  ;;  %v19750_v5 = vrot.slane %v10387_v11, 1  ;;  %1700 = vperm.xlu1 %8977, %v9108_v1  }
 0x175   : > { %v11390_v24 = vsel %vm2758_vm2, %v19748_v62, %v19747_v7  ;;  %4403 = vmatmul.mubr.f32.gmra.mxu1 %v3865_v46  ;;  %v3885_v22 = vsel %vm1280_vm1, %v3866_v63, %v3884_v61  ;;  %v19752_v6 = vrot.slane %v11215_v14, 2  ;;  %v11409_v7 = vmul.f32 %v11372_v25, %v19712_v10  ;;  %v9110_v14 = vld [vmem:[%s18907_s1 + $0x8] sm:$0xff]  ;;  %v11429_v61 = vpop.permute.xlu1 %1664 }
 0x176   : > { %v11399_v12 = vsel %vm894_vm0, %v19750_v5, %v19749_v43  ;;  %v2959_v16 = vrot.slane %v11367_v60, 2  ;;  %4407 = vmatprep.mubr.f32.mxu1 %v3885_v22  ;;  %v3883_v11 = vsel %vm1280_vm1, %v3864_v41, %v3882_v59  ;;  %v19753_v43 = vld [vmem:[#allocation52_spill] sm:$0xff]  ;;  %2024 = vperm.xlu0 %9025, %v9110_v14   ;;  %v11422_v63 = vmul.f32 %v11015_v4, %v10151_v56 }
 0x177   : > { %19751 = vst [vmem:[#allocation129_spill] sm:$0xff] %v11399_v12  ;;  %v11405_v62 = vsel %vm2758_vm2, %v19752_v6, %v2955_v9  ;;  %v11415_v5 = vmul.f32 %v11399_v12, %v19753_v43  ;;  %v19754_v1 = vrot.slane %v11152_v53, 7  ;;  %19756 = vst [vmem:[#allocation131_spill] sm:$0xff] %v11429_v61  ;;  %v3330_v41 = vrot.slane %v2952_v37, 7  ;;  %v11434_v6 = vpop.permute.xlu0 %1668 }
 0x178   : > { %v3328_v46 = vrot.slane %v11343_v26, 7  ;;  %v2861_v22 = vrot.slane %v11378_v2, 1  ;;  %19757 = vst [vmem:[#allocation132_spill] sm:$0xff] %v11434_v6  ;;  %v3352_v21 = vrot.slane %v11405_v62, 7  ;;  %8978 = vset.pattern.permute.xlu1 %v19574_v15  ;;  %v19758_v37 = vrot.slane %v11253_v32, 1  ;;  %v11453_v62 = vld [vmem:[%s18907_s1 + $0x88] sm:$0xff] }
 0x179   : > { %v11427_v60 = vsel %vm1280_vm1, %v1900_v39, %v19754_v1  ;;  %v19079_v14 = vrot.slane %v11415_v5, 7  ;;  %4408 = vmatmul.mubr.f32.gmra.mxu1 %v3883_v11  ;;  %v3332_v39 = vsel %vm1280_vm1, %v3330_v41, %v3331_v3  ;;  %v2958_v26 = vsel %vm2758_vm2, %v2955_v9, %v2957_v23  ;;  %1236 = vperm.xlu1 %8978, %v11453_v62  }
 0x17a   : > { %19755 = vst [vmem:[#allocation130_spill] sm:$0xff] %v11427_v60  ;;  %v2860_v1 = vsel %vm894_vm0, %v19758_v37, %v2859_v20  ;;  %v2961_v2 = vrot.slane %v11409_v7, 2  ;;  %v11448_v59 = vmul.f32 %v11427_v60, %v19753_v43  ;;  %4702 = vmatprep.mubr.f32.mxu1 %v3332_v39  ;;  %v19759_v32 = vrot.slane %v11150_v58, 7 }
 0x17b   : > { %v11462_v7 = vsel %vm2758_vm2, %v2957_v23, %v2959_v16  ;;  %v2863_v11 = vrot.slane %v11422_v63, 1  ;;  %v11467_v41 = vmul.f32 %v11380_v19, %v19712_v10  ;;  %v1904_v37 = vrot.slane %v11314_v52, 7  ;;  %v9112_v23 = vld [vmem:[%s18907_s1 + $0x18] sm:$0xff] }
 0x17c   : > { %v3439_v9 = vsel %vm1280_vm1, %v19759_v32, %v19079_v14  ;;  %v19760_v39 = vrot.slane %v11390_v24, 7  ;;  %v19761_v25 = vrot.slane %v11300_v36, 7  ;;  %2030 = vperm.xlu0 %9025, %v9112_v23   ;;  %v11478_v32 = vpop.permute.xlu1 %1209  ;;  %v3329_v63 = vsel %vm1280_vm1, %v11333_v42, %v3328_v46  ;;  %v11486_v36 = vpop.permute.xlu0 %1680 }
 0x17d   : > { %4507 = vmatprep.mubr.f32.mxu0 %v3439_v9  ;;  %v3353_v52 = vsel %vm1280_vm1, %v3331_v3, %v3352_v21  ;;  %v3350_v9 = vrot.slane %v2860_v1, 7  ;;  %v11484_v14 = vsel %vm894_vm0, %v2859_v20, %v2861_v22  ;;  %19762 = vst [vmem:[#allocation133_spill] sm:$0xff] %v11486_v36  ;;  %4703 = vmatmul.mubr.f32.vlgmr.msra.gmra.mxu1 %v3329_v63  ;;  %v3388_v60 = vrot.slane %v11462_v7, 7 }
 0x17e   : > { %v3437_v58 = vsel %vm1280_vm1, %v19761_v25, %v19760_v39  ;;  %v19082_v25 = vrot.slane %v11478_v32, 7  ;;  %v3370_v39 = vrot.slane %v2958_v26, 7  ;;  %8979 = vset.pattern.permute.xlu1 %v19556_v44  ;;  %4707 = vmatprep.mubr.f32.mxu1 %v3353_v52  ;;  %v11497_v42 = vsel %vm2758_vm2, %v2959_v16, %v2961_v2  ;;  %v19767_v16 = vld [vmem:[#allocation70_spill] sm:$0xff] }
 0x17f   : > { %4508 = vmatmul.mubr.f32.gmra.mxu0 %v3437_v58  ;;  %v11493_v58 = vmul.f32 %v11262_v48, %v19753_v43  ;;  %v2865_v20 = vrot.slane %v11467_v41, 1  ;;  %v19763_v3 = vrot.slane %v11152_v53, 7  ;;  %v19765_v26 = vrot.slane %v10581_v29, 7  ;;  %1462 = vperm.xlu1 %8979, %v11453_v62  }
 0x180   : > { %v3368_v63 = vrot.slane %v11484_v14, 7  ;;  %v3351_v53 = vsel %vm1280_vm1, %v3328_v46, %v3350_v9  ;;  %v19084_v19 = vmov 8   ;;  %v19768_v29 = vrot.slane %v10874_v13, 7  ;;  %v1436_v14 = vpop.permute.xlu1 %1435  ;;  %v19770_v46 = vld [vmem:[#allocation55_spill] sm:$0xff] }
 0x181   : > { %v11503_v1 = vsel %vm1280_vm1, %v19763_v3, %v1904_v37  ;;  %v11510_v7 = vsel %vm1280_vm1, %v19765_v26, %v19082_v25  ;;  %v11521_v3 = vsel %vm894_vm0, %v2861_v22, %v2863_v11  ;;  %9030 = vset.pattern.permute.xlu0 %v19084_v19  ;;  %4708 = vmatmul.mubr.f32.gmra.mxu1 %v3351_v53  ;;  %v1521_v19 = vrot.slane %v1436_v14, 1  ;;  %v19773_v14 = vld [vmem:[#allocation58_spill] sm:$0xff] }
 0x182   : > { %19764 = vst [vmem:[#allocation134_spill] sm:$0xff] %v11503_v1  ;;  %19766 = vst [vmem:[#allocation135_spill] sm:$0xff] %v11510_v7  ;;  %v11517_v41 = vmul.f32 %v11510_v7, %v19753_v43  ;;  %v11527_v26 = vsel %vm1280_vm1, %v1904_v37, %v19768_v29  ;;  %v3371_v25 = vsel %vm1280_vm1, %v3352_v21, %v3370_v39  ;;  %2406 = vperm.xlu0 %9030, %v11350_v49   ;;  %v11538_v37 = vpop.permute.xlu0 %1692 }
 0x183   : > { %19769 = vst [vmem:[#allocation70_spill] sm:$0xff] %v11527_v26  ;;  %v3389_v52 = vsel %vm1280_vm1, %v3370_v39, %v3388_v60  ;;  %v11534_v22 = vmul.f32 %v11503_v1, %v19770_v46  ;;  %4712 = vmatprep.mubr.f32.mxu1 %v3371_v25  ;;  %v3406_v4 = vrot.slane %v11497_v42, 7  ;;  %19771 = vst [vmem:[#allocation136_spill] sm:$0xff] %v11538_v37  ;;  %v2867_v53 = vrot.slane %v11493_v58, 1 }
 0x184   : > { %8980 = vset.pattern.permute.xlu1 %v19584_v57  ;;  %v3369_v21 = vsel %vm1280_vm1, %v3350_v9, %v3368_v63  ;;  %v11544_v49 = vsel %vm894_vm0, %v2863_v11, %v2865_v20  ;;  %v19772_v39 = vrot.slane %v11448_v59, 2  ;;  %v11553_v25 = vmul.f32 %v11527_v26, %v19773_v14  ;;  %v9113_v11 = vld [vmem:[%s18907_s1 + $0x90] sm:$0xff] }
 0x185   : > { %v19774_v42 = vrot.slane %v11369_v28, 1  ;;  %v19776_v48 = vrot.slane %v19767_v16, 1  ;;  %1850 = vperm.xlu1 %8980, %v9113_v11   ;;  %v11577_v28 = vmul.f32 %v11429_v61, %v19770_v46  ;;  %4713 = vmatmul.mubr.f32.gmra.mxu1 %v3369_v21 }
 0x186   : > { %v11549_v29 = vsel %vm2758_vm2, %v2961_v2, %v19772_v39  ;;  %v19778_v2 = vrot.slane %v11517_v41, 2  ;;  %v19779_v39 = vrot.slane %v11304_v51, 2  ;;  %2415 = vperm.xlu0 %9030, %v9112_v23   ;;  %4717 = vmatprep.mubr.f32.mxu1 %v3389_v52  ;;  %v11586_v51 = vpop.permute.xlu1 %1823  ;;  %v11596_v23 = vmul.f32 %v11434_v6, %v19773_v14 }
 0x187   : > { %v11558_v58 = vsel %vm894_vm0, %v19774_v42, %v1521_v19  ;;  %v11563_v9 = vsel %vm894_vm0, %v1521_v19, %v19776_v48  ;;  %v2965_v42 = vrot.slane %v11534_v22, 2  ;;  %v19093_v21 = vrot.slane %v11586_v51, 7  ;;  %v11602_v22 = vpop.permute.xlu0 %1704 }
 0x188   : > { %19775 = vst [vmem:[#allocation137_spill] sm:$0xff] %v11558_v58  ;;  %19777 = vst [vmem:[#allocation138_spill] sm:$0xff] %v11563_v9  ;;  %v11573_v26 = vsel %vm2758_vm2, %v19779_v39, %v19778_v2  ;;  %v1610_v48 = vmul.f32 %v11558_v58, %v19770_v46  ;;  %v11583_v19 = vmul.f32 %v11563_v9, %v19773_v14  ;;  %v3386_v2 = vrot.slane %v11521_v3, 7 }
 0x189   : > { %v3407_v39 = vsel %vm1280_vm1, %v3388_v60, %v3406_v4  ;;  %v3424_v9 = vrot.slane %v11549_v29, 7  ;;  %8981 = vset.pattern.permute.xlu1 %v19574_v15  ;;  %v3404_v3 = vrot.slane %v11544_v49, 7  ;;  %v2868_v60 = vsel %vm894_vm0, %v2865_v20, %v2867_v53  ;;  %19780 = vst [vmem:[#allocation139_spill] sm:$0xff] %v11602_v22  ;;  %v19784_v20 = vld [vmem:[#allocation62_spill] sm:$0xff] }
 0x18a   : > { %v3456_v1 = vrot.slane %v1610_v48, 7  ;;  %v3387_v52 = vsel %vm1280_vm1, %v3368_v63, %v3386_v2  ;;  %v2967_v48 = vrot.slane %v11553_v25, 2  ;;  %v2869_v45 = vrot.slane %v11577_v28, 1  ;;  %1239 = vperm.xlu1 %8981, %v9113_v11  }
 0x18b   : > { %v19781_v29 = vrot.slane %v10874_v13, 7  ;;  %4718 = vmatmul.mubr.f32.gmra.mxu1 %v3387_v52  ;;  %v19783_v63 = vrot.slane %v11415_v5, 7  ;;  %v19785_v25 = vrot.slane %v11573_v26, 7  ;;  %v19786_v28 = vrot.slane %v11390_v24, 7 }
 0x18c   : > { %4722 = vmatprep.mubr.f32.mxu1 %v3407_v39  ;;  %v11635_v39 = vld [vmem:[%s18907_s1 + $0x28] sm:$0xff]  ;;  %v2871_v24 = vrot.slane %v11596_v23, 1  ;;  %v19789_v5 = vrot.slane %v11478_v32, 7 }
 0x18d   : > { %v11611_v61 = vsel %vm1280_vm1, %v19781_v29, %v19093_v21  ;;  %v3457_v49 = vsel %vm1280_vm1, %v19783_v63, %v3456_v1  ;;  %v3455_v13 = vsel %vm1280_vm1, %v19786_v28, %v19785_v25  ;;  %v19787_v29 = vrot.slane %v11448_v59, 2  ;;  %v1213_v21 = vpop.permute.xlu1 %1212  ;;  %2421 = vperm.xlu0 %9030, %v11635_v39  }
 0x18e   : > { %19782 = vst [vmem:[#allocation140_spill] sm:$0xff] %v11611_v61  ;;  %v11618_v6 = vmul.f32 %v11611_v61, %v19784_v20  ;;  %4512 = vmatprep.mubr.f32.mxu0 %v3457_v49  ;;  %v19788_v63 = vrot.slane %v11583_v19, 7  ;;  %v1298_v59 = vrot.slane %v1213_v21, 7  ;;  %v3405_v49 = vsel %vm1280_vm1, %v3386_v2, %v3404_v3  ;;  %8982 = vset.pattern.permute.xlu1 %v19563_v27 }
 0x18f   : > { %v2966_v52 = vsel %vm2758_vm2, %v19787_v29, %v2965_v42  ;;  %4513 = vmatmul.mubr.f32.gmra.mxu0 %v3455_v13  ;;  %v3422_v25 = vrot.slane %v2868_v60, 7  ;;  %4723 = vmatmul.mubr.f32.gmra.mxu1 %v3405_v49  ;;  %v3425_v28 = vsel %vm1280_vm1, %v3406_v4, %v3424_v9  ;;  %v2870_v13 = vsel %vm894_vm0, %v2867_v53, %v2869_v45  ;;  %v11657_v4 = vld [vmem:[%s18907_s1 + $0x38] sm:$0xff] }
 0x190   : > { %v3475_v61 = vsel %vm1280_vm1, %v3456_v1, %v19788_v63  ;;  %v3442_v1 = vrot.slane %v2966_v52, 7  ;;  %v2968_v29 = vsel %vm2758_vm2, %v2965_v42, %v2967_v48  ;;  %v19095_v63 = vrot.slane %v11618_v6, 2  ;;  %1708 = vperm.xlu1 %8982, %v9113_v11   ;;  %4727 = vmatprep.mubr.f32.mxu1 %v3425_v28 }
 0x191   : > { %4517 = vmatprep.mubr.f32.mxu0 %v3475_v61  ;;  %v11648_v21 = vsel %vm1280_vm1, %v19789_v5, %v1298_v59  ;;  %v11650_v61 = vpop.permute.xlu0 %1716  ;;  %2427 = vperm.xlu0 %9030, %v11657_v4   ;;  %v11660_v53 = vpop.permute.xlu1 %1672  ;;  %v3423_v32 = vsel %vm1280_vm1, %v3404_v3, %v3422_v25  ;;  %v3440_v42 = vrot.slane %v2870_v13, 7  ;;  %v3460_v23 = vrot.slane %v2968_v29, 7 }
 0x192   : > { %19790 = vst [vmem:[#allocation141_spill] sm:$0xff] %v11648_v21  ;;  %19791 = vst [vmem:[#allocation142_spill] sm:$0xff] %v11650_v61  ;;  %v1386_v2 = vmul.f32 %v11648_v21, %v19770_v46  ;;  %v2872_v11 = vsel %vm894_vm0, %v2869_v45, %v2871_v24  ;;  %v19793_v60 = vrot.slane %v10635_v33, 7  ;;  %v11671_v49 = vmul.f32 %v11660_v53, %v19784_v20 }
 0x193   : > { %19792 = vst [vmem:[#allocation143_spill] sm:$0xff] %v11660_v53  ;;  %4728 = vmatmul.mubr.f32.gmra.mxu1 %v3423_v32  ;;  %v3443_v28 = vsel %vm1280_vm1, %v3424_v9, %v3442_v1  ;;  %v2970_v45 = vsel %vm2758_vm2, %v2967_v48, %v19095_v63  ;;  %v3458_v29 = vrot.slane %v2872_v11, 7  ;;  %v11688_v9 = vld [vmem:[%s18907_s1 + $0x48] sm:$0xff] }
 0x194   : > { %v11667_v52 = vsel %vm1280_vm1, %v1298_v59, %v19793_v60  ;;  %v2776_v5 = vrot.slane %v1386_v2, 2  ;;  %8983 = vset.pattern.permute.xlu1 %v19584_v57  ;;  %4732 = vmatprep.mubr.f32.mxu1 %v3443_v28  ;;  %v19098_v3 = vrot.slane %v11671_v49, 1  ;;  %v19795_v59 = vrot.slane %v11517_v41, 2  ;;  %v19796_v2 = vld [vmem:[#allocation38_spill] sm:$0xff] }
 0x195   : > { %19794 = vst [vmem:[#allocation144_spill] sm:$0xff] %v11667_v52  ;;  %1853 = vperm.xlu1 %8983, %v10801_v50   ;;  %2433 = vperm.xlu0 %9030, %v11688_v9   ;;  %v11694_v48 = vmul.f32 %v11667_v52, %v19773_v14  ;;  %v3441_v60 = vsel %vm1280_vm1, %v3422_v25, %v3440_v42  ;;  %v11698_v28 = vpop.permute.xlu0 %1728  ;;  %v1827_v11 = vpop.permute.xlu1 %1826  ;;  %v3478_v63 = vrot.slane %v2970_v45, 7  ;;  %v19798_v52 = vrot.slane %v11573_v26, 7 }
 0x196   : > { %v11683_v13 = vsel %vm2758_vm2, %v19795_v59, %v2776_v5  ;;  %19797 = vst [vmem:[#allocation38_spill] sm:$0xff] %v11698_v28  ;;  %v3461_v59 = vsel %vm1280_vm1, %v3442_v1, %v3460_v23  ;;  %v11704_v53 = vsel %vm894_vm0, %v2871_v24, %v19098_v3  ;;  %v1910_v32 = vrot.slane %v1827_v11, 7 }
 0x197   : > { %v3472_v41 = vrot.slane %v11683_v13, 7  ;;  %4733 = vmatmul.mubr.f32.gmra.mxu1 %v3441_v60  ;;  %v3459_v13 = vsel %vm1280_vm1, %v3440_v42, %v3458_v29  ;;  %v19799_v1 = vrot.slane %v11586_v51, 7  ;;  %v19801_v24 = vrot.slane %v19796_v2, 7  ;;  %v11727_v42 = vld [vmem:[%s18907_s1 + $0x58] sm:$0xff]  ;;  %v19803_v51 = vld [vmem:[#allocation64_spill] sm:$0xff] }
 0x198   : > { %4737 = vmatprep.mubr.f32.mxu1 %v3461_v59  ;;  %v3476_v26 = vrot.slane %v11704_v53, 7  ;;  %v19804_v59 = vld [vmem:[#allocation66_spill] sm:$0xff] }
 0x199   : > { %v3473_v25 = vsel %vm1280_vm1, %v19798_v52, %v3472_v41  ;;  %8984 = vset.pattern.permute.xlu1 %v19556_v44  ;;  %v11715_v45 = vsel %vm1280_vm1, %v19799_v1, %v1910_v32  ;;  %v11720_v11 = vsel %vm1280_vm1, %v1910_v32, %v19801_v24  ;;  %2439 = vperm.xlu0 %9030, %v11727_v42   ;;  %v11739_v53 = vpop.permute.xlu1 %1441  ;;  %v11741_v1 = vpop.permute.xlu0 %1740 }
 0x19a   : > { %4518 = vmatmul.mubr.f32.gmra.mxu0 %v3473_v25  ;;  %19800 = vst [vmem:[#allocation145_spill] sm:$0xff] %v11715_v45  ;;  %19802 = vst [vmem:[#allocation146_spill] sm:$0xff] %v11720_v11  ;;  %1468 = vperm.xlu1 %8984, %v10801_v50   ;;  %v1997_v52 = vmul.f32 %v11715_v45, %v19803_v51  ;;  %v11734_v25 = vmul.f32 %v11720_v11, %v19804_v59  ;;  %v11737_v50 = vpop.f32.mrf.mxu1  ;;  %v19102_v3 = vrot.slane %v11739_v53, 1  ;;  %v19807_v11 = vld [vmem:[#allocation105_spill] sm:$0xff] }
 0x19b   : > { %4738 = vmatmul.mubr.f32.gmra.mxu1 %v3459_v13  ;;  %v3479_v32 = vsel %vm1280_vm1, %v3460_v23, %v3478_v63  ;;  %19805 = vst [vmem:[#allocation147_spill] sm:$0xff] %v11741_v1  ;;  %v11746_v45 = vmul.f32 %v11486_v36, %v19804_v59  ;;  %v3477_v13 = vsel %vm1280_vm1, %v3458_v29, %v3476_v26  ;;  %v19806_v23 = vrot.slane %v11694_v48, 2  ;;  %v11767_v29 = vld [vmem:[%s18907_s1 + $0x98] sm:$0xff] }
 0x19c   : > { %4742 = vmatprep.mubr.f32.mxu1 %v3479_v32  ;;  %v2971_v24 = vrot.slane %v1997_v52, 2  ;;  %v4256_v60 = vpop.f32.mrf.mxu1 }
 0x19d   : > { %v11753_v32 = vsel %vm2758_vm2, %v2776_v5, %v19806_v23  ;;  %2445 = vperm.xlu0 %9030, %v19807_v11   ;;  %v19808_v60 = vrot.slane %v19767_v16, 1  ;;  %v19810_v5 = vrot.slane %v11618_v6, 2  ;;  %v11777_v16 = vpop.permute.xlu1 %1676  ;;  %v11785_v58 = vpop.permute.xlu0 %1752  ;;  %v19818_v7 = vrot.slane %v11746_v45, 1 }
 0x19e   : > { %8985 = vset.pattern.permute.xlu1 %v19563_v27  ;;  %19811 = vst [vmem:[#allocation148_spill] sm:$0xff] %v11777_v16  ;;  %v1773_v21 = vmul.f32 %v11777_v16, %v19803_v51  ;;  %19812 = vst [vmem:[#allocation149_spill] sm:$0xff] %v11785_v58  ;;  %v9119_v16 = vld [vmem:[%s18907_s1 + $0xa0] sm:$0xff] }
 0x19f   : > { %v11762_v36 = vsel %vm894_vm0, %v19808_v60, %v19102_v3  ;;  %1712 = vperm.xlu1 %8985, %v11767_v29   ;;  %4743 = vmatmul.mubr.f32.gmra.mxu1 %v3477_v13  ;;  %v2972_v11 = vsel %vm2758_vm2, %v19810_v5, %v2971_v24  ;;  %v19813_v5 = vmov 6  }
 0x1a0   : > { %19809 = vst [vmem:[#allocation105_spill] sm:$0xff] %v11762_v36  ;;  %v3496_v23 = vrot.slane %v2972_v11, 7  ;;  %v11775_v52 = vmul.f32 %v11762_v36, %v19784_v20  ;;  %v19814_v11 = vrot.slane %v11734_v25, 2  ;;  %v2875_v3 = vrot.slane %v1773_v21, 1 }
 0x1a1   : > { %9044 = vset.pattern.permute.xlu0 %v19813_v5  ;;  %v1219_v12 = vpop.permute.xlu1 %1218  ;;  %v19817_v21 = vrot.slane %v11671_v49, 1 }
 0x1a2   : > { %v3497_v13 = vsel %vm1280_vm1, %v3478_v63, %v3496_v23  ;;  %v3492_v6 = vrot.slane %v11775_v52, 7  ;;  %v11792_v60 = vsel %vm2758_vm2, %v2971_v24, %v19814_v11  ;;  %v19815_v63 = vrot.slane %v11583_v19, 7  ;;  %2036 = vperm.xlu0 %9044, %v11635_v39  }
 0x1a3   : > { %8986 = vset.pattern.permute.xlu1 %v19574_v15  ;;  %4747 = vmatprep.mubr.f32.mxu1 %v3497_v13  ;;  %v19816_v13 = vrot.slane %v11753_v32, 7  ;;  %v2876_v24 = vsel %vm894_vm0, %v19817_v21, %v2875_v3  ;;  %v19111_v11 = vrot.slane %v11792_v60, 7  ;;  %v11811_v19 = vsel %vm894_vm0, %v2875_v3, %v19818_v7  ;;  %v11838_v21 = vld [vmem:[%s18907_s1 + $0xa8] sm:$0xff] }
 0x1a4   : > { %1245 = vperm.xlu1 %8986, %v9119_v16   ;;  %v3493_v52 = vsel %vm1280_vm1, %v19815_v63, %v3492_v6  ;;  %v1302_v63 = vrot.slane %v1219_v12, 7  ;;  %v3494_v39 = vrot.slane %v2876_v24, 7 }
 0x1a5   : > { %4522 = vmatprep.mubr.f32.mxu0 %v3493_v52  ;;  %v3491_v36 = vsel %vm1280_vm1, %v3472_v41, %v19816_v13  ;;  %v11814_v52 = vpop.permute.xlu0 %1447  ;;  %v19110_v13 = vrot.slane %v11811_v19, 7  ;;  %v3515_v7 = vsel %vm1280_vm1, %v3496_v23, %v19111_v11  ;;  %v1445_v3 = vpop.permute.xlu1 %1444  ;;  %v19821_v23 = vrot.slane %v11694_v48, 2 }
 0x1a6   : > { %4523 = vmatmul.mubr.f32.gmra.mxu0 %v3491_v36  ;;  %2042 = vperm.xlu0 %9044, %v11657_v4   ;;  %v19819_v36 = vrot.slane %v10635_v33, 7  ;;  %v3495_v41 = vsel %vm1280_vm1, %v3476_v26, %v3494_v39  ;;  %v19109_v4 = vrot.slane %v11814_v52, 1 }
 0x1a7   : > { %4748 = vmatmul.mubr.f32.gmra.mxu1 %v3495_v41  ;;  %v3513_v26 = vsel %vm1280_vm1, %v3494_v39, %v19110_v13 }
 0x1a8   : > { %8987 = vset.pattern.permute.xlu1 %v19556_v44  ;;  %v11820_v49 = vsel %vm1280_vm1, %v19819_v36, %v1302_v63  ;;  %4752 = vmatprep.mubr.f32.mxu1 %v3515_v7 }
 0x1a9   : > { %19820 = vst [vmem:[#allocation150_spill] sm:$0xff] %v11820_v49  ;;  %1471 = vperm.xlu1 %8987, %v9119_v16   ;;  %v1388_v12 = vmul.f32 %v11820_v49, %v19784_v20  ;;  %v1527_v16 = vrot.slane %v1445_v3, 1 }
 0x1aa   : > { %2048 = vperm.xlu0 %9044, %v11688_v9   ;;  %v19822_v9 = vrot.slane %v11739_v53, 1  ;;  %v1833_v48 = vpop.permute.xlu1 %1832 }
 0x1ab   : > { %v2780_v33 = vrot.slane %v1388_v12, 2  ;;  %4753 = vmatmul.mubr.f32.gmra.mxu1 %v3513_v26  ;;  %v11852_v39 = vsel %vm894_vm0, %v1527_v16, %v19109_v4  ;;  %v1914_v53 = vrot.slane %v1833_v48, 7 }
 0x1ac   : > { %v11847_v36 = vsel %vm894_vm0, %v19822_v9, %v1527_v16  ;;  %19824 = vst [vmem:[#allocation152_spill] sm:$0xff] %v11852_v39  ;;  %v11858_v12 = vmul.f32 %v11852_v39, %v19804_v59  ;;  %v19825_v16 = vrot.slane %v19796_v2, 7  ;;  %v19836_v39 = vrot.slane %v11746_v45, 1 }
 0x1ad   : > { %8988 = vset.pattern.permute.xlu1 %v19584_v57  ;;  %v2781_v24 = vsel %vm2758_vm2, %v19821_v23, %v2780_v33  ;;  %19823 = vst [vmem:[#allocation151_spill] sm:$0xff] %v11847_v36  ;;  %v1613_v41 = vmul.f32 %v11847_v36, %v19803_v51  ;;  %v19841_v36 = vld [vmem:[#allocation73_spill] sm:$0xff] }
 0x1ae   : > { %1859 = vperm.xlu1 %8988, %v11838_v21   ;;  %2054 = vperm.xlu0 %9044, %v11727_v42   ;;  %v3508_v7 = vrot.slane %v2781_v24, 7  ;;  %v19112_v26 = vrot.slane %v11858_v12, 7  ;;  %v11867_v23 = vsel %vm1280_vm1, %v19825_v16, %v1914_v53  ;;  %v9121_v42 = vld [vmem:[%s18907_s1 + $0x68] sm:$0xff]  ;;  %v19827_v24 = vld [vmem:[#allocation68_spill] sm:$0xff] }
 0x1af   : > { %v3510_v3 = vrot.slane %v1613_v41, 7  ;;  %19826 = vst [vmem:[#allocation153_spill] sm:$0xff] %v11867_v23  ;;  %v11875_v48 = vmul.f32 %v11867_v23, %v19827_v24  ;;  %v19828_v41 = vrot.slane %v11753_v32, 7  ;;  %v1222_v2 = vpop.permute.xlu1 %1221  ;;  %v9122_v32 = vld [vmem:[%s18907_s1 + $0x78] sm:$0xff] }
 0x1b0   : > { %v1304_v13 = vrot.slane %v1222_v2, 7 }
 0x1b1   : > { %v3511_v9 = vsel %vm1280_vm1, %v3492_v6, %v3510_v3  ;;  %v3509_v4 = vsel %vm1280_vm1, %v19828_v41, %v3508_v7  ;;  %v3529_v6 = vsel %vm1280_vm1, %v3510_v3, %v19112_v26  ;;  %v2975_v16 = vrot.slane %v11875_v48, 2 }
 0x1b2   : > { %8989 = vset.pattern.permute.xlu1 %v19574_v15  ;;  %2060 = vperm.xlu0 %9044, %v9121_v42   ;;  %v19829_v42 = vld [vmem:[#allocation91_spill] sm:$0xff]  ;;  %v19831_v3 = vrot.slane %v11734_v25, 2  ;;  %v19834_v25 = vrot.slane %v11792_v60, 7 }
 0x1b3   : > { %1248 = vperm.xlu1 %8989, %v11838_v21   ;;  %4527 = vmatprep.mubr.f32.mxu0 %v3511_v9  ;;  %v19113_v11 = vrot.slane %v19829_v42, 7 }
 0x1b4   : > { %4528 = vmatmul.mubr.f32.gmra.mxu0 %v3509_v4  ;;  %v11891_v4 = vsel %vm1280_vm1, %v1302_v63, %v1304_v13  ;;  %v2976_v9 = vsel %vm2758_vm2, %v19831_v3, %v2975_v16 }
 0x1b5   : > { %4532 = vmatprep.mubr.f32.mxu0 %v3529_v6  ;;  %19830 = vst [vmem:[#allocation91_spill] sm:$0xff] %v11891_v4  ;;  %v1389_v48 = vmul.f32 %v11891_v4, %v19803_v51  ;;  %v3532_v41 = vrot.slane %v2976_v9, 7  ;;  %v11898_v2 = vpop.permute.xlu1 %1684  ;;  %v11903_v6 = vsel %vm1280_vm1, %v1304_v13, %v19113_v11  ;;  %v9123_v9 = vld [vmem:[%s18907_s1 + $0xb0] sm:$0xff] }
 0x1b6   : > { %2066 = vperm.xlu0 %9044, %v9122_v32   ;;  %19832 = vst [vmem:[#allocation154_spill] sm:$0xff] %v11898_v2  ;;  %19833 = vst [vmem:[#allocation155_spill] sm:$0xff] %v11903_v6  ;;  %v11907_v63 = vmul.f32 %v11898_v2, %v19827_v24  ;;  %v19835_v11 = vld [vmem:[#allocation108_spill] sm:$0xff]  ;;  %v11922_v23 = vmul.f32 %v11903_v6, %v19804_v59 }
 0x1b7   : > { %8990 = vset.pattern.permute.xlu1 %v19563_v27  ;;  %v2782_v26 = vrot.slane %v1389_v48, 2  ;;  %v3533_v3 = vsel %vm1280_vm1, %v19834_v25, %v3532_v41  ;;  %v19838_v45 = vrot.slane %v19835_v11, 7 }
 0x1b8   : > { %1720 = vperm.xlu1 %8990, %v11838_v21   ;;  %4757 = vmatprep.mubr.f32.mxu1 %v3533_v3  ;;  %v2879_v13 = vrot.slane %v11907_v63, 1 }
 0x1b9   : > { %v2783_v48 = vsel %vm2758_vm2, %v2780_v33, %v2782_v26 }
 0x1ba   : > { %2072 = vperm.xlu0 %9044, %v11453_v62   ;;  %v3526_v60 = vrot.slane %v2783_v48, 7  ;;  %v1836_v25 = vpop.permute.xlu1 %1835  ;;  %v11927_v4 = vsel %vm894_vm0, %v19836_v39, %v2879_v13 }
 0x1bb   : > { %v1916_v3 = vrot.slane %v1836_v25, 7  ;;  %v3530_v63 = vrot.slane %v11927_v4, 7  ;;  %v11942_v6 = vpop.f32.mrf.mxu1  ;;  %v19840_v25 = vrot.slane %v11811_v19, 7 }
 0x1bc   : > { %8991 = vset.pattern.permute.xlu1 %v19584_v57  ;;  %v3527_v33 = vsel %vm1280_vm1, %v3508_v7, %v3526_v60 }
 0x1bd   : > { %1862 = vperm.xlu1 %8991, %v9123_v9   ;;  %4533 = vmatmul.mubr.f32.gmra.mxu0 %v3527_v33  ;;  %v11935_v48 = vsel %vm1280_vm1, %v1914_v53, %v1916_v3  ;;  %v11940_v39 = vsel %vm1280_vm1, %v1916_v3, %v19838_v45  ;;  %v3531_v7 = vsel %vm1280_vm1, %v19840_v25, %v3530_v63  ;;  %v19842_v33 = vld [vmem:[#allocation76_spill] sm:$0xff]  ;;  %v19843_v53 = vmov 8   ;;  %v4261_v3 = vpop.f32.mrf.mxu1 }
 0x1be   : > { %2078 = vperm.xlu0 %9044, %v11767_v29   ;;  %19837 = vst [vmem:[#allocation108_spill] sm:$0xff] %v11935_v48  ;;  %19839 = vst [vmem:[#allocation156_spill] sm:$0xff] %v11940_v39  ;;  %v2000_v4 = vmul.f32 %v11935_v48, %v19841_v36  ;;  %v11951_v2 = vmul.f32 %v11940_v39, %v19842_v33  ;;  %4758 = vmatmul.mubr.f32.gmra.mxu1 %v3531_v7  ;;  %v19844_v7 = vrot.slane %v11922_v23, 2 }
 0x1bf   : > { %v11954_v49 = vpop.permute.xlu1 %1450  ;;  %v11960_v19 = vmul.f32 %v11538_v37, %v19842_v33  ;;  %v11962_v25 = vpop.f32.mrf.mxu1 }
 0x1c0   : > { %v2977_v45 = vrot.slane %v2000_v4, 2  ;;  %v19126_v40 = vrot.slane %v11954_v49, 1  ;;  %v11967_v39 = vsel %vm2758_vm2, %v2782_v26, %v19844_v7 }
 0x1c1   : > { %8992 = vset.pattern.permute.xlu1 %v19556_v44  ;;  %v4266_v48 = vpop.f32.mrf.mxu1 }
 0x1c2   : > { %1477 = vperm.xlu1 %8992, %v9123_v9   ;;  %9056 = vset.pattern.permute.xlu0 %v19843_v53  ;;  %v2978_v37 = vsel %vm2758_vm2, %v2975_v16, %v2977_v45 }
 0x1c3   : > { %2451 = vperm.xlu0 %9056, %v9122_v32   ;;  %v19845_v32 = vrot.slane %v11814_v52, 1  ;;  %v11990_v16 = vpop.f32.mrf.mxu1 }
 0x1c4   : > { %v11983_v26 = vpop.permute.xlu1 %1688 }
 0x1c5   : > { %v11975_v4 = vsel %vm894_vm0, %v19845_v32, %v19126_v40  ;;  %19847 = vst [vmem:[#allocation158_spill] sm:$0xff] %v11983_v26  ;;  %v1776_v52 = vmul.f32 %v11983_v26, %v19841_v36  ;;  %v19848_v32 = vrot.slane %v11951_v2, 2  ;;  %v4271_v7 = vpop.f32.mrf.mxu1  ;;  %v19849_v26 = vrot.slane %v11858_v12, 7 }
 0x1c6   : > { %8993 = vset.pattern.permute.xlu1 %v19563_v27  ;;  %19846 = vst [vmem:[#allocation157_spill] sm:$0xff] %v11975_v4  ;;  %v11980_v18 = vmul.f32 %v11975_v4, %v19827_v24  ;;  %v19851_v12 = vrot.slane %v11960_v19, 1 }
 0x1c7   : > { %1724 = vperm.xlu1 %8993, %v9123_v9   ;;  %v3550_v9 = vrot.slane %v2978_v37, 7  ;;  %2457 = vperm.xlu0 %9056, %v11453_v62   ;;  %v11997_v62 = vld [vmem:[%s18907_s1 + $0xb8] sm:$0xff]  ;;  %v12003_v40 = vsel %vm2758_vm2, %v2977_v45, %v19848_v32  ;;  %v2881_v3 = vrot.slane %v1776_v52, 1 }
 0x1c8   : > { %v3546_v48 = vrot.slane %v11980_v18, 7  ;;  %v19850_v18 = vrot.slane %v11967_v39, 7  ;;  %v19130_v7 = vrot.slane %v12003_v40, 7 }
 0x1c9   : > { %v3551_v37 = vsel %vm1280_vm1, %v3532_v41, %v3550_v9  ;;  %v12012_v59 = vpop.permute.xlu1 %1227  ;;  %v2882_v45 = vsel %vm894_vm0, %v2879_v13, %v2881_v3  ;;  %v19852_v13 = vrot.slane %v19829_v42, 7 }
 0x1ca   : > { %4762 = vmatprep.mubr.f32.mxu1 %v3551_v37  ;;  %v3547_v41 = vsel %vm1280_vm1, %v19849_v26, %v3546_v48  ;;  %v3545_v4 = vsel %vm1280_vm1, %v3526_v60, %v19850_v18  ;;  %v12014_v37 = vpop.f32.mrf.mxu1  ;;  %v12021_v26 = vsel %vm894_vm0, %v2881_v3, %v19851_v12  ;;  %v3548_v52 = vrot.slane %v2882_v45, 7  ;;  %v12025_v60 = vpop.permute.xlu0 %1456 }
 0x1cb   : > { %8994 = vset.pattern.permute.xlu1 %v19574_v15  ;;  %2463 = vperm.xlu0 %9056, %v11767_v29   ;;  %v1308_v29 = vrot.slane %v12012_v59, 7  ;;  %v3569_v42 = vsel %vm1280_vm1, %v3550_v9, %v19130_v7  ;;  %v19854_v9 = vrot.slane %v11954_v49, 1 }
 0x1cc   : > { %1254 = vperm.xlu1 %8994, %v11997_v62   ;;  %4537 = vmatprep.mubr.f32.mxu0 %v3547_v41  ;;  %v4276_v32 = vpop.f32.mrf.mxu1  ;;  %v3549_v3 = vsel %vm1280_vm1, %v3530_v63, %v3548_v52  ;;  %v19133_v41 = vrot.slane %v12021_v26, 7 }
 0x1cd   : > { %4538 = vmatmul.mubr.f32.gmra.mxu0 %v3545_v4  ;;  %v12032_v4 = vsel %vm1280_vm1, %v19852_v13, %v1308_v29  ;;  %4763 = vmatmul.mubr.f32.gmra.mxu1 %v3549_v3  ;;  %v9125_v3 = vld [vmem:[%s18907_s1 + $0xc0] sm:$0xff] }
 0x1ce   : > { %19853 = vst [vmem:[#allocation159_spill] sm:$0xff] %v12032_v4  ;;  %v12038_v59 = vmul.f32 %v12032_v4, %v19827_v24  ;;  %v12040_v18 = vpop.f32.mrf.mxu1  ;;  %4767 = vmatprep.mubr.f32.mxu1 %v3569_v42  ;;  %v3567_v45 = vsel %vm1280_vm1, %v3548_v52, %v19133_v41  ;;  %v19858_v4 = vrot.slane %v11922_v23, 2 }
 0x1cf   : > { %2469 = vperm.xlu0 %9056, %v11838_v21   ;;  %v1454_v12 = vpop.permute.xlu1 %1453 }
 0x1d0   : > { %8995 = vset.pattern.permute.xlu1 %v19556_v44  ;;  %v19134_v32 = vrot.slane %v12038_v59, 2  ;;  %v1533_v63 = vrot.slane %v1454_v12, 1  ;;  %v4281_v13 = vpop.f32.mrf.mxu1  ;;  %v19856_v12 = vrot.slane %v12025_v60, 1 }
 0x1d1   : > { %1480 = vperm.xlu1 %8995, %v11997_v62   ;;  %4768 = vmatmul.mubr.f32.gmra.mxu1 %v3567_v45  ;;  %v12086_v45 = vld [vmem:[%s18907_s1 + $0xc8] sm:$0xff] }
 0x1d2   : > { %v12058_v42 = vsel %vm894_vm0, %v19854_v9, %v1533_v63  ;;  %v12063_v13 = vsel %vm894_vm0, %v1533_v63, %v19856_v12  ;;  %v12065_v7 = vpop.f32.mrf.mxu1  ;;  %v12072_v24 = vsel %vm2758_vm2, %v19858_v4, %v19134_v32 }
 0x1d3   : > { %2475 = vperm.xlu0 %9056, %v11997_v62   ;;  %19855 = vst [vmem:[#allocation160_spill] sm:$0xff] %v12058_v42  ;;  %19857 = vst [vmem:[#allocation161_spill] sm:$0xff] %v12063_v13  ;;  %v1616_v49 = vmul.f32 %v12058_v42, %v19841_v36  ;;  %v12078_v52 = vmul.f32 %v12063_v13, %v19842_v33  ;;  %v3562_v12 = vrot.slane %v12072_v24, 7  ;;  %v19861_v42 = vld [vmem:[#allocation80_spill] sm:$0xff] }
 0x1d4   : > { %v12080_v9 = vpop.permute.xlu1 %1841  ;;  %v4286_v63 = vpop.f32.mrf.mxu1 }
 0x1d5   : > { %8996 = vset.pattern.permute.xlu1 %v19584_v57  ;;  %v1920_v23 = vrot.slane %v12080_v9, 7  ;;  %v3564_v4 = vrot.slane %v1616_v49, 7  ;;  %v19859_v63 = vrot.slane %v19835_v11, 7  ;;  %v19862_v49 = vrot.slane %v11967_v39, 7  ;;  %v19864_v39 = vld [vmem:[#allocation95_spill] sm:$0xff] }
 0x1d6   : > { %1868 = vperm.xlu1 %8996, %v9125_v3   ;;  %v12092_v32 = vpop.f32.mrf.mxu1  ;;  %v19863_v11 = vrot.slane %v12078_v52, 7 }
 0x1d7   : > { %2481 = vperm.xlu0 %9056, %v12086_v45   ;;  %v12097_v24 = vsel %vm1280_vm1, %v19859_v63, %v1920_v23  ;;  %v3565_v13 = vsel %vm1280_vm1, %v3546_v48, %v3564_v4  ;;  %v3563_v41 = vsel %vm1280_vm1, %v19862_v49, %v3562_v12 }
 0x1d8   : > { %19860 = vst [vmem:[#allocation162_spill] sm:$0xff] %v12097_v24  ;;  %v12102_v51 = vmul.f32 %v12097_v24, %v19861_v42  ;;  %v4291_v9 = vpop.f32.mrf.mxu1  ;;  %4542 = vmatprep.mubr.f32.mxu0 %v3565_v13  ;;  %v3583_v63 = vsel %vm1280_vm1, %v3564_v4, %v19863_v11  ;;  %v19866_v4 = vrot.slane %v11951_v2, 2 }
 0x1d9   : > { %v1231_v20 = vpop.permute.xlu1 %1230  ;;  %4543 = vmatmul.mubr.f32.gmra.mxu0 %v3563_v41  ;;  %v19142_v9 = vrot.slane %v19864_v39, 7 }
 0x1da   : > { %8997 = vset.pattern.permute.xlu1 %v19574_v15  ;;  %v19140_v48 = vrot.slane %v12102_v51, 2  ;;  %v1310_v24 = vrot.slane %v1231_v20, 7  ;;  %v12114_v13 = vpop.f32.mrf.mxu1  ;;  %4547 = vmatprep.mubr.f32.mxu0 %v3583_v63 }
 0x1db   : > { %1257 = vperm.xlu1 %8997, %v9125_v3   ;;  %9064 = vset.pattern.permute.xlu0 %v19813_v5 }
 0x1dc   : > { %2084 = vperm.xlu0 %9064, %v11838_v21   ;;  %v12118_v49 = vsel %vm1280_vm1, %v1308_v29, %v1310_v24  ;;  %v4296_v41 = vpop.f32.mrf.mxu1  ;;  %v12125_v21 = vsel %vm2758_vm2, %v19866_v4, %v19140_v48  ;;  %v12138_v29 = vsel %vm1280_vm1, %v1310_v24, %v19142_v9  ;;  %v12168_v24 = vpop.f32.mrf.mxu0 }
 0x1dd   : > { %19865 = vst [vmem:[#allocation95_spill] sm:$0xff] %v12118_v49  ;;  %v1392_v20 = vmul.f32 %v12118_v49, %v19841_v36  ;;  %v19145_v11 = vrot.slane %v12125_v21, 7  ;;  %19868 = vst [vmem:[#allocation164_spill] sm:$0xff] %v12138_v29  ;;  %v12151_v49 = vpop.permute.xlu0 %1465  ;;  %v12163_v36 = vmul.f32 %v12138_v29, %v19842_v33 }
 0x1df   : > { %8998 = vset.pattern.permute.xlu1 %v19563_v27  ;;  %v2788_v2 = vrot.slane %v1392_v20, 2  ;;  %v19870_v20 = vrot.slane %v12038_v59, 2 }
 0x1e0   : > { %1732 = vperm.xlu1 %8998, %v9125_v3   ;;  %2090 = vperm.xlu0 %9064, %v11997_v62   ;;  %v12131_v63 = vpop.permute.xlu1 %1696  ;;  %v12133_v3 = vpop.f32.mrf.mxu1  ;;  %v19869_v62 = vrot.slane %v12003_v40, 7 }
 0x1e1   : > { %19867 = vst [vmem:[#allocation163_spill] sm:$0xff] %v12131_v63  ;;  %v12142_v41 = vmul.f32 %v12131_v63, %v19861_v42  ;;  %v12157_v9 = vsel %vm2758_vm2, %v19870_v20, %v2788_v2  ;;  %v19871_v63 = vld [vmem:[#allocation111_spill] sm:$0xff] }
 0x1e2   : > { %v4301_v4 = vpop.f32.mrf.mxu1  ;;  %v3587_v48 = vsel %vm1280_vm1, %v19869_v62, %v19145_v11  ;;  %v19150_v62 = vrot.slane %v12157_v9, 7  ;;  %19872 = vst [vmem:[#allocation111_spill] sm:$0xff] %v12168_v24 }
 0x1e3   : > { %4772 = vmatprep.mubr.f32.mxu1 %v3587_v48  ;;  %v19873_v59 = vrot.slane %v12142_v41, 1  ;;  %v19874_v48 = vrot.slane %v11960_v19, 1 }
 0x1e4   : > { %8999 = vset.pattern.permute.xlu1 %v19584_v57  ;;  %2096 = vperm.xlu0 %9064, %v12086_v45   ;;  %v12165_v40 = vpop.f32.mrf.mxu1  ;;  %v3581_v29 = vsel %vm1280_vm1, %v3562_v12, %v19150_v62  ;;  %v19878_v12 = vrot.slane %v12021_v26, 7  ;;  %v12199_v62 = vpop.permute.xlu0 %1474  ;;  %v19880_v26 = vld [vmem:[#allocation88_spill] sm:$0xff] }
 0x1e5   : > { %1871 = vperm.xlu1 %8999, %v12086_v45   ;;  %v1845_v11 = vpop.permute.xlu1 %1844  ;;  %v12175_v20 = vsel %vm894_vm0, %v19874_v48, %v19873_v59  ;;  %4548 = vmatmul.mubr.f32.gmra.mxu0 %v3581_v29  ;;  %v19876_v59 = vrot.slane %v19871_v63, 7  ;;  %v19879_v29 = vld [vmem:[#allocation83_spill] sm:$0xff] }
 0x1e6   : > { %v1922_v14 = vrot.slane %v1845_v11, 7  ;;  %v4306_v4 = vpop.f32.mrf.mxu1  ;;  %v19151_v33 = vrot.slane %v12175_v20, 7 }
 0x1e8   : > { %v12185_v19 = vsel %vm1280_vm1, %v1920_v23, %v1922_v14  ;;  %v12190_v11 = vsel %vm1280_vm1, %v1922_v14, %v19876_v59  ;;  %v12192_v4 = vpop.f32.mrf.mxu1  ;;  %v3585_v48 = vsel %vm1280_vm1, %v19878_v12, %v19151_v33  ;;  %v12204_v23 = vld [vmem:[%s18907_s1 + $0xd8] sm:$0xff]  ;;  %v12210_v14 = vld [vmem:[%s18911_s5] ss:$0 sm:$0xff]  ;;  %v12218_v33 = vpop.f32.mrf.mxu0 }
 0x1e9   : > { %9000 = vset.pattern.permute.xlu1 %v19556_v44  ;;  %19875 = vst [vmem:[#allocation165_spill] sm:$0xff] %v12185_v19  ;;  %19877 = vst [vmem:[#allocation166_spill] sm:$0xff] %v12190_v11  ;;  %2102 = vperm.xlu0 %9064, %v12204_v23   ;;  %v2003_v59 = vmul.f32 %v12185_v19, %v19879_v29  ;;  %v12216_v12 = vmul.f32 %v12190_v11, %v19880_v26  ;;  %v19882_v11 = vrot.slane %v12163_v36, 2 }
 0x1ea   : > { %1486 = vperm.xlu1 %9000, %v12086_v45   ;;  %4773 = vmatmul.mubr.f32.gmra.mxu1 %v3585_v48  ;;  %19881 = vst [vmem:[#allocation167_spill] sm:$0xff] %v12218_v33  ;;  %v4255_v46 = vadd.f32 %v12210_v14, %v11737_v50  ;;  %v12222_v43 = vpop.permute.xlu1 %1459  ;;  %v4311_v30 = vpop.f32.mrf.mxu1  ;;  %v12228_v19 = vmul.f32 %v11602_v22, %v19880_v26 }
 0x1eb   : > { %v2983_v10 = vrot.slane %v2003_v59, 2  ;;  %v19164_v56 = vrot.slane %v12222_v43, 1  ;;  %v12236_v50 = vsel %vm2758_vm2, %v2788_v2, %v19882_v11  ;;  %v19883_v59 = vrot.slane %v12025_v60, 1  ;;  %v4479_v35 = vpop.f32.mrf.mxu0  ;;  %v12257_v33 = vpop.permute.xlu0 %1483 }
 0x1ec   : > { %v12231_v48 = vpop.f32.mrf.mxu1  ;;  %v12251_v2 = vadd.f32 %v4479_v35, %v4255_v46  ;;  %v19895_v58 = vrot.slane %v12228_v19, 1 }
 0x1ed   : > { %9070 = vset.pattern.permute.xlu0 %v19843_v53  ;;  %v12245_v22 = vsel %vm894_vm0, %v19883_v59, %v19164_v56  ;;  %v4481_v59 = vpop.f32.mrf.mxu0 }
 0x1ee   : > { %9001 = vset.pattern.permute.xlu1 %v19563_v27  ;;  %19884 = vst [vmem:[#allocation168_spill] sm:$0xff] %v12245_v22  ;;  %2487 = vperm.xlu0 %9070, %v12204_v23   ;;  %v4316_v11 = vpop.f32.mrf.mxu1  ;;  %v12255_v30 = vmul.f32 %v12245_v22, %v19861_v42  ;;  %v9128_v59 = vld [vmem:[%s18907_s1 + $0xd0] sm:$0xff] }
 0x1ef   : > { %1736 = vperm.xlu1 %9001, %v12086_v45   ;;  %v19885_v45 = vrot.slane %v12102_v51, 2  ;;  %v12259_v60 = vpop.permute.xlu1 %1700  ;;  %v19889_v51 = vrot.slane %v12216_v12, 2 }
 0x1f0   : > { %19886 = vst [vmem:[#allocation169_spill] sm:$0xff] %v12259_v60  ;;  %v12266_v35 = vpop.f32.mrf.mxu1  ;;  %v19167_v11 = vrot.slane %v12255_v30, 7 }
 0x1f1   : > { %v2984_v8 = vsel %vm2758_vm2, %v19885_v45, %v2983_v10  ;;  %v1779_v45 = vmul.f32 %v12259_v60, %v19879_v29  ;;  %19887 = vst [vmem:[#allocation170_spill] sm:$0xff] %v12266_v35  ;;  %v12278_v56 = vsel %vm2758_vm2, %v2983_v10, %v19889_v51  ;;  %v12288_v35 = vld [vmem:[%s18907_s1 + $0xe8] sm:$0xff]  ;;  %v19892_v10 = vrot.slane %v12157_v9, 7 }
 0x1f2   : > { %v3604_v24 = vrot.slane %v2984_v8, 7  ;;  %v19888_v8 = vrot.slane %v12125_v21, 7  ;;  %v4321_v22 = vpop.f32.mrf.mxu1  ;;  %v19890_v21 = vrot.slane %v12078_v52, 7  ;;  %2493 = vperm.xlu0 %9070, %v12288_v35   ;;  %v19894_v52 = vrot.slane %v12142_v41, 1 }
 0x1f3   : > { %9002 = vset.pattern.permute.xlu1 %v19574_v15  ;;  %v2887_v60 = vrot.slane %v1779_v45, 1  ;;  %v19896_v41 = vrot.slane %v19864_v39, 7  ;;  %v19900_v39 = vrot.slane %v12278_v56, 7 }
 0x1f4   : > { %v3605_v46 = vsel %vm1280_vm1, %v19888_v8, %v3604_v24  ;;  %1263 = vperm.xlu1 %9002, %v9128_v59   ;;  %v3601_v8 = vsel %vm1280_vm1, %v19890_v21, %v19167_v11  ;;  %v12296_v51 = vpop.permute.xlu1 %1236  ;;  %v12298_v45 = vpop.f32.mrf.mxu1 }
 0x1f5   : > { %4777 = vmatprep.mubr.f32.mxu1 %v3605_v46  ;;  %4552 = vmatprep.mubr.f32.mxu0 %v3601_v8  ;;  %v19891_v46 = vrot.slane %v12236_v50, 7  ;;  %19893 = vst [vmem:[#allocation171_spill] sm:$0xff] %v12298_v45  ;;  %v2888_v21 = vsel %vm894_vm0, %v19894_v52, %v2887_v60  ;;  %v12307_v8 = vsel %vm894_vm0, %v2887_v60, %v19895_v58  ;;  %v19169_v9 = vrot.slane %v12296_v51, 7 }
 0x1f6   : > { %9074 = vset.pattern.permute.xlu0 %v19813_v5  ;;  %v19898_v58 = vrot.slane %v12175_v20, 7  ;;  %v4260_v20 = vadd.f32 %v12210_v14, %v11942_v6  ;;  %v19903_v6 = vrot.slane %v12222_v43, 1  ;;  %v12371_v43 = vld [vmem:[%s18907_s1 + $0xf8] sm:$0xff]  ;;  %v19914_v45 = vrot.slane %v12236_v50, 7 }
 0x1f7   : > { %v3599_v22 = vsel %vm1280_vm1, %v19892_v10, %v19891_v46  ;;  %v3602_v46 = vrot.slane %v2888_v21, 7  ;;  %v12311_v10 = vpop.permute.xlu0 %1492  ;;  %v12319_v52 = vsel %vm1280_vm1, %v19896_v41, %v19169_v9  ;;  %2108 = vperm.xlu0 %9074, %v12288_v35   ;;  %v3623_v41 = vsel %vm1280_vm1, %v3604_v24, %v19900_v39 }
 0x1f8   : > { %4553 = vmatmul.mubr.f32.gmra.mxu0 %v3599_v22  ;;  %9003 = vset.pattern.permute.xlu1 %v19556_v44  ;;  %v4326_v22 = vpop.f32.mrf.mxu1  ;;  %19897 = vst [vmem:[#allocation172_spill] sm:$0xff] %v12319_v52  ;;  %v12329_v21 = vmul.f32 %v12319_v52, %v19861_v42  ;;  %v4484_v52 = vpop.f32.mrf.mxu0 }
 0x1f9   : > { %1489 = vperm.xlu1 %9003, %v9128_v59   ;;  %v3603_v60 = vsel %vm1280_vm1, %v19898_v58, %v3602_v46  ;;  %v12341_v42 = vadd.f32 %v4484_v52, %v4260_v20 }
 0x1fa   : > { %v12331_v22 = vpop.f32.mrf.mxu1  ;;  %4778 = vmatmul.mubr.f32.gmra.mxu1 %v3603_v60  ;;  %v1463_v58 = vpop.permute.xlu1 %1462  ;;  %v19172_v9 = vrot.slane %v12329_v21, 2  ;;  %v19901_v60 = vrot.slane %v12307_v8, 7 }
 0x1fb   : > { %19899 = vst [vmem:[#allocation173_spill] sm:$0xff] %v12331_v22  ;;  %4782 = vmatprep.mubr.f32.mxu1 %v3623_v41  ;;  %v1539_v11 = vrot.slane %v1463_v58, 1  ;;  %v12346_v39 = vpop.permute.xlu0 %1501  ;;  %9076 = vset.pattern.permute.xlu0 %v19843_v53  ;;  %v4486_v20 = vpop.f32.mrf.mxu0  ;;  %v19913_v22 = vld [vmem:[#allocation90_spill] sm:$0xff] }
 0x1fc   : > { %v4331_v59 = vpop.f32.mrf.mxu1  ;;  %v3621_v24 = vsel %vm1280_vm1, %v3602_v46, %v19901_v60  ;;  %19902 = vst [vmem:[#allocation174_spill] sm:$0xff] %v12346_v39  ;;  %v19908_v46 = vrot.slane %v12163_v36, 2  ;;  %2499 = vperm.xlu0 %9076, %v12371_v43  }
 0x1fd   : > { %9004 = vset.pattern.permute.xlu1 %v19584_v57  ;;  %v12352_v41 = vsel %vm894_vm0, %v19903_v6, %v1539_v11  ;;  %v19905_v59 = vrot.slane %v12151_v49, 1 }
 0x1fe   : > { %1877 = vperm.xlu1 %9004, %v12204_v23   ;;  %19904 = vst [vmem:[#allocation175_spill] sm:$0xff] %v12352_v41  ;;  %v12359_v52 = vpop.f32.mrf.mxu1  ;;  %4783 = vmatmul.mubr.f32.gmra.mxu1 %v3621_v24  ;;  %v12366_v60 = vsel %vm2758_vm2, %v19908_v46, %v19172_v9 }
 0x1ff   : > { %v12357_v58 = vsel %vm894_vm0, %v1539_v11, %v19905_v59  ;;  %19907 = vst [vmem:[#allocation177_spill] sm:$0xff] %v12359_v52  ;;  %v1619_v11 = vmul.f32 %v12352_v41, %v19879_v29  ;;  %v3616_v59 = vrot.slane %v12366_v60, 7  ;;  %v19910_v41 = vrot.slane %v19871_v63, 7  ;;  %v12401_v9 = vpop.permute.xlu0 %1242 }
 0x200   : > { %19906 = vst [vmem:[#allocation176_spill] sm:$0xff] %v12357_v58  ;;  %v12378_v24 = vmul.f32 %v12357_v58, %v19880_v26  ;;  %v12380_v6 = vpop.permute.xlu1 %1850  ;;  %v4336_v36 = vpop.f32.mrf.mxu1  ;;  %v19179_v50 = vrot.slane %v12401_v9, 7 }
 0x201   : > { %v1926_v20 = vrot.slane %v12380_v6, 7  ;;  %v3618_v46 = vrot.slane %v1619_v11, 7  ;;  %v19912_v36 = vrot.slane %v12255_v30, 7 }
 0x202   : > { %9005 = vset.pattern.permute.xlu1 %v19574_v15  ;;  %v12387_v52 = vpop.f32.mrf.mxu1 }
 0x203   : > { %1266 = vperm.xlu1 %9005, %v12204_v23   ;;  %19909 = vst [vmem:[#allocation178_spill] sm:$0xff] %v12387_v52  ;;  %v12392_v58 = vsel %vm1280_vm1, %v19910_v41, %v1926_v20  ;;  %v3619_v60 = vsel %vm1280_vm1, %v19912_v36, %v3618_v46  ;;  %v3617_v52 = vsel %vm1280_vm1, %v19914_v45, %v3616_v59  ;;  %v19915_v41 = vrot.slane %v12378_v24, 7 }
 0x204   : > { %19911 = vst [vmem:[#allocation179_spill] sm:$0xff] %v12392_v58  ;;  %v12399_v6 = vmul.f32 %v12392_v58, %v19913_v22  ;;  %v4341_v11 = vpop.f32.mrf.mxu1  ;;  %4557 = vmatprep.mubr.f32.mxu0 %v3619_v60  ;;  %v4265_v60 = vadd.f32 %v12210_v14, %v11962_v25  ;;  %v19916_v45 = vrot.slane %v12296_v51, 7 }
 0x205   : > { %v1240_v63 = vpop.permute.xlu1 %1239  ;;  %4558 = vmatmul.mubr.f32.gmra.mxu0 %v3617_v52  ;;  %v3637_v30 = vsel %vm1280_vm1, %v3618_v46, %v19915_v41  ;;  %v4489_v11 = vpop.f32.mrf.mxu0 }
 0x206   : > { %v19177_v36 = vrot.slane %v12399_v6, 2  ;;  %v1316_v39 = vrot.slane %v1240_v63, 7  ;;  %v12411_v58 = vpop.f32.mrf.mxu1  ;;  %4562 = vmatprep.mubr.f32.mxu0 %v3637_v30  ;;  %v19918_v63 = vrot.slane %v12216_v12, 2  ;;  %v12431_v30 = vadd.f32 %v4489_v11, %v4265_v60  ;;  %v9131_v11 = vld [vmem:[%s18907_s1 + $0xe0] sm:$0xff] }
 0x207   : > { %9006 = vset.pattern.permute.xlu1 %v19563_v27  ;;  %v4491_v60 = vpop.f32.mrf.mxu0 }
 0x208   : > { %1744 = vperm.xlu1 %9006, %v12204_v23   ;;  %v12420_v52 = vsel %vm1280_vm1, %v19916_v45, %v1316_v39  ;;  %v4346_v46 = vpop.f32.mrf.mxu1  ;;  %v12427_v41 = vsel %vm2758_vm2, %v19918_v63, %v19177_v36  ;;  %v19922_v36 = vrot.slane %v12278_v56, 7  ;;  %v19925_v56 = vrot.slane %v12228_v19, 1 }
 0x209   : > { %19917 = vst [vmem:[#allocation180_spill] sm:$0xff] %v12420_v52  ;;  %v1395_v25 = vmul.f32 %v12420_v52, %v19879_v29  ;;  %v3640_v23 = vrot.slane %v12427_v41, 7  ;;  %v12441_v46 = vsel %vm1280_vm1, %v1316_v39, %v19179_v50  ;;  %v19927_v19 = vrot.slane %v11074_v54, 7 }
 0x20a   : > { %v12436_v45 = vpop.f32.mrf.mxu1  ;;  %19921 = vst [vmem:[#allocation183_spill] sm:$0xff] %v12441_v46  ;;  %v12461_v60 = vmul.f32 %v12441_v46, %v19880_v26 }
 0x20b   : > { %v12434_v51 = vpop.permute.xlu1 %1708  ;;  %19920 = vst [vmem:[#allocation182_spill] sm:$0xff] %v12436_v45  ;;  %v2794_v12 = vrot.slane %v1395_v25, 2  ;;  %v3641_v52 = vsel %vm1280_vm1, %v19922_v36, %v3640_v23  ;;  %v19923_v25 = vrot.slane %v12329_v21, 2 }
 0x20c   : > { %19919 = vst [vmem:[#allocation181_spill] sm:$0xff] %v12434_v51  ;;  %v12445_v63 = vmul.f32 %v12434_v51, %v19913_v22  ;;  %9007 = vset.pattern.permute.xlu1 %v19584_v57  ;;  %v4351_v41 = vpop.f32.mrf.mxu1  ;;  %4787 = vmatprep.mubr.f32.mxu1 %v3641_v52 }
 0x20d   : > { %1880 = vperm.xlu1 %9007, %v9131_v11   ;;  %v2795_v50 = vsel %vm2758_vm2, %v19923_v25, %v2794_v12 }
 0x20e   : > { %v19183_v39 = vrot.slane %v12445_v63, 1  ;;  %v12463_v29 = vpop.f32.mrf.mxu1  ;;  %v3634_v41 = vrot.slane %v2795_v50, 7  ;;  %v19932_v50 = vld [vmem:[#allocation97_spill] sm:$0xff] }
 0x20f   : > { %19924 = vst [vmem:[#allocation184_spill] sm:$0xff] %v12463_v29 }
 0x210   : > { %v1854_v45 = vpop.permute.xlu1 %1853  ;;  %v12470_v36 = vsel %vm894_vm0, %v19925_v56, %v19183_v39  ;;  %v4356_v52 = vpop.f32.mrf.mxu1  ;;  %v3635_v25 = vsel %vm1280_vm1, %v3616_v59, %v3634_v41  ;;  %v19930_v59 = vrot.slane %v12307_v8, 7  ;;  %v19931_v39 = vld [vmem:[#allocation96_spill] sm:$0xff] }
 0x211   : > { %v1928_v21 = vrot.slane %v1854_v45, 7  ;;  %9008 = vset.pattern.permute.xlu1 %v19556_v44  ;;  %v19185_v51 = vrot.slane %v12470_v36, 7  ;;  %4563 = vmatmul.mubr.f32.gmra.mxu0 %v3635_v25 }
 0x212   : > { %1495 = vperm.xlu1 %9008, %v9131_v11   ;;  %v12484_v45 = vpop.f32.mrf.mxu1  ;;  %v4494_v8 = vpop.f32.mrf.mxu0 }
 0x213   : > { %v12477_v46 = vsel %vm1280_vm1, %v1926_v20, %v1928_v21  ;;  %v12482_v56 = vsel %vm1280_vm1, %v1928_v21, %v19927_v19  ;;  %19929 = vst [vmem:[#allocation187_spill] sm:$0xff] %v12484_v45  ;;  %v3639_v52 = vsel %vm1280_vm1, %v19930_v59, %v19185_v51  ;;  %v4270_v21 = vadd.f32 %v12210_v14, %v11990_v16 }
 0x214   : > { %19926 = vst [vmem:[#allocation185_spill] sm:$0xff] %v12477_v46  ;;  %19928 = vst [vmem:[#allocation186_spill] sm:$0xff] %v12482_v56  ;;  %v2006_v25 = vmul.f32 %v12477_v46, %v19931_v39  ;;  %v12495_v20 = vmul.f32 %v12482_v56, %v19932_v50  ;;  %4788 = vmatmul.mubr.f32.gmra.mxu1 %v3639_v52  ;;  %v4361_v26 = vpop.f32.mrf.mxu1  ;;  %v12505_v59 = vmul.f32 %v11650_v61, %v19932_v50  ;;  %v4496_v61 = vpop.f32.mrf.mxu0 }
 0x215   : > { %v12499_v19 = vpop.permute.xlu1 %1468  ;;  %v12509_v52 = vadd.f32 %v4494_v8, %v4270_v21  ;;  %v19934_v16 = vrot.slane %v12461_v60, 2  ;;  %v19941_v26 = vrot.slane %v12378_v24, 7  ;;  %v19943_v24 = vrot.slane %v12445_v63, 1 }
 0x216   : > { %v2989_v45 = vrot.slane %v2006_v25, 2  ;;  %v19189_v29 = vrot.slane %v12499_v19, 1  ;;  %9009 = vset.pattern.permute.xlu1 %v19563_v27  ;;  %v12507_v51 = vpop.f32.mrf.mxu1  ;;  %v19935_v25 = vrot.slane %v12151_v49, 1 }
 0x217   : > { %1748 = vperm.xlu1 %9009, %v9131_v11   ;;  %19933 = vst [vmem:[#allocation96_spill] sm:$0xff] %v12507_v51  ;;  %v12514_v56 = vsel %vm2758_vm2, %v2794_v12, %v19934_v16  ;;  %v19937_v11 = vrot.slane %v12399_v6, 2 }
 0x218   : > { %v12522_v46 = vsel %vm894_vm0, %v19935_v25, %v19189_v29  ;;  %v4366_v8 = vpop.f32.mrf.mxu1 }
 0x219   : > { %19936 = vst [vmem:[#allocation97_spill] sm:$0xff] %v12522_v46  ;;  %v2990_v21 = vsel %vm2758_vm2, %v19937_v11, %v2989_v45  ;;  %v12529_v12 = vmul.f32 %v12522_v46, %v19913_v22  ;;  %v19944_v46 = vrot.slane %v12505_v59, 1 }
 0x21a   : > { %v3658_v51 = vrot.slane %v2990_v21, 7  ;;  %v12531_v16 = vpop.permute.xlu1 %1712  ;;  %v12538_v61 = vpop.f32.mrf.mxu1  ;;  %v19940_v21 = vrot.slane %v12495_v20, 2 }
 0x21b   : > { %19938 = vst [vmem:[#allocation188_spill] sm:$0xff] %v12531_v16  ;;  %v1782_v25 = vmul.f32 %v12531_v16, %v19931_v39  ;;  %9011 = vset.pattern.permute.xlu1 %v19574_v15  ;;  %19939 = vst [vmem:[#allocation189_spill] sm:$0xff] %v12538_v61  ;;  %v19191_v11 = vrot.slane %v12529_v12, 7  ;;  %v19945_v61 = vmov 0.0  }
 0x21c   : > { %v3659_v6 = vsel %vm1280_vm1, %v3640_v23, %v3658_v51  ;;  %1272 = vperm.xlu1 %9011, %v12288_v35   ;;  %v12546_v8 = vsel %vm2758_vm2, %v2989_v45, %v19940_v21  ;;  %v4371_v49 = vpop.f32.mrf.mxu1  ;;  %v732_v23 = vld [vmem:[%s18910_s4 + $0x378] sm:$0xff]  ;;  %v19942_v45 = vrot.slane %v12514_v56, 7 }
 0x21d   : > { %4792 = vmatprep.mubr.f32.mxu1 %v3659_v6  ;;  %v2893_v29 = vrot.slane %v1782_v25, 1  ;;  %v3655_v16 = vsel %vm1280_vm1, %v19941_v26, %v19191_v11  ;;  %v731_v6 = vld [vmem:[%s18910_s4 + $0x370] sm:$0xff]  ;;  %4864 = vmatpush1.msra.mxu0 %v732_v23 }
 0x21e   : > { %4567 = vmatprep.mubr.f32.mxu0 %v3655_v16  ;;  %v3653_v25 = vsel %vm1280_vm1, %v3634_v41, %v19942_v45  ;;  %v12564_v21 = vpop.f32.mrf.mxu1  ;;  %4865 = vmatprep.subr.mxu0 %v19945_v61  ;;  %v730_v41 = vld [vmem:[%s18910_s4 + $0x368] sm:$0xff] }
 0x21f   : > { %v12562_v49 = vpop.permute.xlu1 %1245  ;;  %4568 = vmatmul.mubr.f32.gmra.mxu0 %v3653_v25  ;;  %v2894_v26 = vsel %vm894_vm0, %v19943_v24, %v2893_v29  ;;  %v12573_v16 = vsel %vm894_vm0, %v2893_v29, %v19944_v46  ;;  %v729_v29 = vld [vmem:[%s18910_s4 + $0x360] sm:$0xff]  ;;  %v19946_v46 = vrot.slane %v12401_v9, 7  ;;  %v19948_v24 = vrot.slane %v12470_v36, 7  ;;  %v728_v36 = vld [vmem:[%s18910_s4 + $0x358] sm:$0xff] }
 0x220   : > { %v19193_v23 = vrot.slane %v12562_v49, 7  ;;  %9012 = vset.pattern.permute.xlu1 %v19556_v44  ;;  %v3656_v63 = vrot.slane %v2894_v26, 7  ;;  %4866 = vmatpush1.msra.mxu0 %v731_v6  ;;  %v4376_v45 = vpop.f32.mrf.mxu1  ;;  %v19949_v9 = vrot.slane %v12546_v8, 7 }
 0x221   : > { %1498 = vperm.xlu1 %9012, %v12288_v35   ;;  %4867 = vmatprep.subr.mxu0 %v19945_v61 }
 0x222   : > { %v12591_v25 = vsel %vm1280_vm1, %v19946_v46, %v19193_v23  ;;  %v3657_v6 = vsel %vm1280_vm1, %v19948_v24, %v3656_v63  ;;  %4868 = vmatpush1.msra.mxu0 %v730_v41  ;;  %v12602_v11 = vpop.f32.mrf.mxu1  ;;  %v3677_v46 = vsel %vm1280_vm1, %v3658_v51, %v19949_v9  ;;  %v4275_v41 = vadd.f32 %v12210_v14, %v12014_v37  ;;  %v4499_v35 = vpop.f32.mrf.mxu0  ;;  %v9132_v51 = vld [vmem:[%s18907_s1 + $0xf0] sm:$0xff] }
 0x223   : > { %19947 = vst [vmem:[#allocation190_spill] sm:$0xff] %v12591_v25  ;;  %v12600_v45 = vmul.f32 %v12591_v25, %v19913_v22  ;;  %4793 = vmatmul.mubr.f32.gmra.mxu1 %v3657_v6  ;;  %4869 = vmatprep.subr.mxu0 %v19945_v61  ;;  %v19950_v37 = vrot.slane %v12573_v16, 7  ;;  %v19957_v22 = vrot.slane %v12461_v60, 2 }
 0x224   : > { %v1472_v24 = vpop.permute.xlu1 %1471  ;;  %4797 = vmatprep.mubr.f32.mxu1 %v3677_v46  ;;  %4870 = vmatpush1.msra.mxu0 %v729_v29  ;;  %v4381_v6 = vpop.f32.mrf.mxu1  ;;  %v12619_v9 = vadd.f32 %v4499_v35, %v4275_v41  ;;  %v19951_v46 = vrot.slane %v12499_v19, 1  ;;  %v727_v19 = vld [vmem:[%s18910_s4 + $0x350] sm:$0xff] }
 0x225   : > { %v1545_v26 = vrot.slane %v1472_v24, 1  ;;  %9014 = vset.pattern.permute.xlu1 %v19584_v57  ;;  %4871 = vmatprep.subr.mxu0 %v19945_v61  ;;  %v3675_v29 = vsel %vm1280_vm1, %v3656_v63, %v19950_v37  ;;  %v19953_v6 = vrot.slane %v12199_v62, 1  ;;  %v4501_v35 = vpop.f32.mrf.mxu0  ;;  %v19956_v41 = vrot.slane %v12600_v45, 2 }
 0x226   : > { %1886 = vperm.xlu1 %9014, %v9132_v51   ;;  %4872 = vmatpush1.msra.mxu0 %v728_v36  ;;  %v12634_v25 = vpop.f32.mrf.mxu1 }
 0x227   : > { %v12627_v24 = vsel %vm894_vm0, %v19951_v46, %v1545_v26  ;;  %v12632_v23 = vsel %vm894_vm0, %v1545_v26, %v19953_v6  ;;  %19955 = vst [vmem:[#allocation193_spill] sm:$0xff] %v12634_v25  ;;  %4798 = vmatmul.mubr.f32.gmra.mxu1 %v3675_v29  ;;  %v12641_v63 = vsel %vm2758_vm2, %v19957_v22, %v19956_v41  ;;  %v726_v26 = vld [vmem:[%s18910_s4 + $0x348] sm:$0xff]  ;;  %v725_v46 = vld [vmem:[%s18910_s4 + $0x340] sm:$0xff] }
 0x228   : > { %19952 = vst [vmem:[#allocation191_spill] sm:$0xff] %v12627_v24  ;;  %19954 = vst [vmem:[#allocation192_spill] sm:$0xff] %v12632_v23  ;;  %4873 = vmatprep.subr.mxu0 %v19945_v61  ;;  %v1622_v36 = vmul.f32 %v12627_v24, %v19931_v39  ;;  %v12654_v37 = vmul.f32 %v12632_v23, %v19932_v50  ;;  %v4386_v60 = vpop.f32.mrf.mxu1  ;;  %v19961_v23 = vrot.slane %v12529_v12, 7  ;;  %v12683_v24 = vpop.permute.xlu0 %1251  ;;  %v724_v12 = vld [vmem:[%s18910_s4 + $0x338] sm:$0xff] }
 0x229   : > { %4874 = vmatpush1.msra.mxu0 %v727_v19  ;;  %v12656_v22 = vpop.permute.xlu1 %1859  ;;  %v19959_v60 = vrot.slane %v11074_v54, 7  ;;  %v19964_v54 = vrot.slane %v12514_v56, 7 }
 0x22a   : > { %4875 = vmatprep.subr.mxu0 %v19945_v61  ;;  %v19198_v6 = vrot.slane %v12656_v22, 7  ;;  %9015 = vset.pattern.permute.xlu1 %v19574_v15  ;;  %v3672_v35 = vrot.slane %v1622_v36, 7  ;;  %v12666_v19 = vpop.f32.mrf.mxu1  ;;  %v19962_v36 = vld [vmem:[#allocation101_spill] sm:$0xff] }
 0x22b   : > { %4876 = vmatpush1.msra.mxu0 %v726_v26  ;;  %1275 = vperm.xlu1 %9015, %v9132_v51   ;;  %19958 = vst [vmem:[#allocation194_spill] sm:$0xff] %v12666_v19  ;;  %v19963_v19 = vrot.slane %v12641_v63, 7 }
 0x22c   : > { %4877 = vmatprep.subr.mxu0 %v19945_v61  ;;  %v12674_v29 = vsel %vm1280_vm1, %v19959_v60, %v19198_v6  ;;  %v3673_v15 = vsel %vm1280_vm1, %v19961_v23, %v3672_v35  ;;  %v4391_v41 = vpop.f32.mrf.mxu1 }
 0x22d   : > { %19960 = vst [vmem:[#allocation195_spill] sm:$0xff] %v12674_v29  ;;  %4878 = vmatpush1.msra.mxu0 %v725_v46  ;;  %v12681_v26 = vmul.f32 %v12674_v29, %v19962_v36  ;;  %4572 = vmatprep.mubr.f32.mxu0 %v3673_v15  ;;  %v3671_v60 = vsel %vm1280_vm1, %v19964_v54, %v19963_v19  ;;  %v19965_v46 = vrot.slane %v12654_v37, 7  ;;  %v723_v19 = vld [vmem:[%s18910_s4 + $0x330] sm:$0xff]  ;;  %v764_v54 = vld [vmem:[%s18910_s4 + $0x478] sm:$0xff] }
 0x22e   : > { %4879 = vmatprep.subr.mxu0 %v19945_v61  ;;  %v1249_v23 = vpop.permute.xlu1 %1248  ;;  %4573 = vmatmul.mubr.f32.gmra.mxu0 %v3671_v60  ;;  %v12699_v56 = vpop.f32.mrf.mxu1  ;;  %v4280_v60 = vadd.f32 %v12210_v14, %v12040_v18  ;;  %v722_v18 = vld [vmem:[%s18910_s4 + $0x328] sm:$0xff] }
 0x22f   : > { %v3691_v41 = vsel %vm1280_vm1, %v3672_v35, %v19965_v46  ;;  %v1322_v6 = vrot.slane %v1249_v23, 7  ;;  %9017 = vset.pattern.permute.xlu1 %v19563_v27  ;;  %19966 = vst [vmem:[#allocation101_spill] sm:$0xff] %v12699_v56  ;;  %v19200_v35 = vrot.slane %v12683_v24, 7  ;;  %4880 = vmatpush1.msra.mxu0 %v724_v12  ;;  %v19967_v23 = vrot.slane %v12562_v49, 7 }
 0x230   : > { %4577 = vmatprep.mubr.f32.mxu0 %v3691_v41  ;;  %1756 = vperm.xlu1 %9017, %v9132_v51   ;;  %v4396_v41 = vpop.f32.mrf.mxu1  ;;  %v4504_v15 = vpop.f32.mrf.mxu0  ;;  %v19969_v29 = vrot.slane %v12681_v26, 2  ;;  %v19970_v56 = vrot.slane %v12495_v20, 2 }
 0x231   : > { %v12713_v46 = vsel %vm1280_vm1, %v19967_v23, %v1322_v6  ;;  %4881 = vmatprep.subr.mxu0 %v19945_v61  ;;  %8717 = vmatprep.subr.mxu1 %v764_v54  ;;  %v12730_v51 = vadd.f32 %v4504_v15, %v4280_v60  ;;  %v12744_v23 = vsel %vm1280_vm1, %v1322_v6, %v19200_v35  ;;  %v19974_v41 = vrot.slane %v12546_v8, 7  ;;  %v720_v35 = vld [vmem:[%s18910_s4 + $0x318] sm:$0xff]  ;;  %v763_v8 = vld [vmem:[%s18910_s4 + $0x470] sm:$0xff] }
 0x232   : > { %19968 = vst [vmem:[#allocation196_spill] sm:$0xff] %v12713_v46  ;;  %v12720_v25 = vsel %vm2758_vm2, %v19970_v56, %v19969_v29  ;;  %v12728_v49 = vmul.f32 %v12713_v46, %v19931_v39  ;;  %4882 = vmatpush1.msra.mxu0 %v723_v19  ;;  %8718 = vmatpush3.msra.mxu1 %v764_v54  ;;  %v12735_v29 = vpop.f32.mrf.mxu1  ;;  %v721_v56 = vld [vmem:[%s18910_s4 + $0x320] sm:$0xff]  ;;  %19973 = vst [vmem:[#allocation199_spill] sm:$0xff] %v12744_v23  ;;  %v4506_v54 = vpop.f32.mrf.mxu0 }
 0x233   : > { %v19201_v12 = vrot.slane %v12720_v25, 7  ;;  %v12733_v20 = vpop.permute.xlu1 %1720  ;;  %19972 = vst [vmem:[#allocation198_spill] sm:$0xff] %v12735_v29  ;;  %4883 = vmatprep.subr.mxu0 %v19945_v61  ;;  %8719 = vmatprep.subr.mxu1 %v763_v8 }
 0x234   : > { %19971 = vst [vmem:[#allocation197_spill] sm:$0xff] %v12733_v20  ;;  %v12749_v19 = vmul.f32 %v12733_v20, %v19962_v36  ;;  %9018 = vset.pattern.permute.xlu1 %v19584_v57  ;;  %4884 = vmatpush1.msra.mxu0 %v722_v18  ;;  %v4401_v60 = vpop.f32.mrf.mxu1  ;;  %v19975_v57 = vrot.slane %v12728_v49, 2  ;;  %v19976_v18 = vrot.slane %v12600_v45, 2 }
 0x235   : > { %1889 = vperm.xlu1 %9018, %v12371_v43   ;;  %v3695_v6 = vsel %vm1280_vm1, %v19974_v41, %v19201_v12  ;;  %4885 = vmatprep.subr.mxu0 %v19945_v61  ;;  %v19977_v60 = vld [vmem:[#allocation113_spill] sm:$0xff]  ;;  %v12776_v12 = vmul.f32 %v12744_v23, %v19932_v50  ;;  %v719_v41 = vld [vmem:[%s18910_s4 + $0x310] sm:$0xff] }
 0x236   : > { %4802 = vmatprep.mubr.f32.mxu1 %v3695_v6  ;;  %v12768_v54 = vsel %vm2758_vm2, %v19976_v18, %v19975_v57  ;;  %4886 = vmatpush1.msra.mxu0 %v721_v56  ;;  %v12778_v15 = vpop.f32.mrf.mxu1  ;;  %v19979_v56 = vrot.slane %v12749_v19, 1  ;;  %v19980_v57 = vrot.slane %v12505_v59, 1  ;;  %v762_v6 = vld [vmem:[%s18910_s4 + $0x468] sm:$0xff]  ;;  %v19982_v59 = vrot.slane %v12641_v63, 7 }
 0x237   : > { %19978 = vst [vmem:[#allocation113_spill] sm:$0xff] %v12778_v15  ;;  %4887 = vmatprep.subr.mxu0 %v19945_v61  ;;  %8720 = vmatpush3.msra.mxu1 %v763_v8  ;;  %v19981_v46 = vrot.slane %v12768_v54, 7  ;;  %v718_v8 = vld [vmem:[%s18910_s4 + $0x308] sm:$0xff]  ;;  %v19985_v63 = vrot.slane %v19977_v60, 7 }
 0x238   : > { %v1863_v45 = vpop.permute.xlu1 %1862  ;;  %v12787_v18 = vsel %vm894_vm0, %v19980_v57, %v19979_v56  ;;  %4888 = vmatpush1.msra.mxu0 %v720_v35  ;;  %v4406_v23 = vpop.f32.mrf.mxu1  ;;  %8721 = vmatprep.subr.mxu1 %v762_v6 }
 0x239   : > { %v1934_v20 = vrot.slane %v1863_v45, 7  ;;  %9019 = vset.pattern.permute.xlu1 %v19556_v44  ;;  %v3689_v56 = vsel %vm1280_vm1, %v19982_v59, %v19981_v46  ;;  %v19205_v35 = vrot.slane %v12787_v18, 7  ;;  %4889 = vmatprep.subr.mxu0 %v19945_v61  ;;  %v19983_v23 = vrot.slane %v12656_v22, 7  ;;  %v19989_v44 = vld [vmem:[#allocation104_spill] sm:$0xff] }
 0x23a   : > { %1504 = vperm.xlu1 %9019, %v12371_v43   ;;  %4578 = vmatmul.mubr.f32.gmra.mxu0 %v3689_v56  ;;  %v12818_v57 = vpop.f32.mrf.mxu1  ;;  %v19988_v59 = vrot.slane %v12573_v16, 7  ;;  %v4285_v16 = vadd.f32 %v12210_v14, %v12065_v7 }
 0x23b   : > { %v12811_v45 = vsel %vm1280_vm1, %v19983_v23, %v1934_v20  ;;  %v12816_v46 = vsel %vm1280_vm1, %v1934_v20, %v19985_v63  ;;  %19987 = vst [vmem:[#allocation202_spill] sm:$0xff] %v12818_v57  ;;  %4890 = vmatpush1.msra.mxu0 %v719_v41  ;;  %v19990_v23 = vld [vmem:[#allocation13_spill] sm:$0xff]  ;;  %v717_v20 = vld [vmem:[%s18910_s4 + $0x300] sm:$0xff]  ;;  %8722 = vmatpush3.msra.mxu1 %v762_v6 }
 0x23c   : > { %19984 = vst [vmem:[#allocation200_spill] sm:$0xff] %v12811_v45  ;;  %19986 = vst [vmem:[#allocation201_spill] sm:$0xff] %v12816_v46  ;;  %v3693_v56 = vsel %vm1280_vm1, %v19988_v59, %v19205_v35  ;;  %v2009_v22 = vmul.f32 %v12811_v45, %v19989_v44  ;;  %v12829_v15 = vmul.f32 %v12816_v46, %v19990_v23  ;;  %4891 = vmatprep.subr.mxu0 %v19945_v61  ;;  %v4411_v41 = vpop.f32.mrf.mxu1  ;;  %v761_v59 = vld [vmem:[%s18910_s4 + $0x460] sm:$0xff] }
 0x23d   : > { %4803 = vmatmul.mubr.f32.gmra.mxu1 %v3693_v56  ;;  %v12837_v63 = vpop.permute.xlu1 %1477  ;;  %4892 = vmatpush1.msra.mxu0 %v718_v8  ;;  %v12847_v7 = vmul.f32 %v11698_v28, %v19990_v23  ;;  %v19991_v41 = vrot.slane %v12776_v12, 2  ;;  %v760_v28 = vld [vmem:[%s18910_s4 + $0x458] sm:$0xff] }
 0x23e   : > { %v2995_v35 = vrot.slane %v2009_v22, 2  ;;  %9020 = vset.pattern.permute.xlu1 %v19563_v27  ;;  %4893 = vmatprep.subr.mxu0 %v19945_v61  ;;  %v4704_v6 = vpop.f32.mrf.mxu1  ;;  %v19992_v22 = vrot.slane %v12728_v49, 2  ;;  %v748_v27 = vld [vmem:[%s18910_s4 + $0x3f8] sm:$0xff] }
 0x23f   : > { %v4509_v46 = vpop.f32.mrf.mxu0  ;;  %1760 = vperm.xlu1 %9020, %v12371_v43   ;;  %4894 = vmatpush1.msra.mxu0 %v717_v20 }
 0x240   : > { %v12850_v8 = vadd.f32 %v4509_v46, %v4285_v16  ;;  %v12857_v56 = vsel %vm2758_vm2, %v19992_v22, %v19991_v41  ;;  %v19993_v46 = vrot.slane %v12837_v63, 1  ;;  %v19994_v16 = vrot.slane %v12199_v62, 1  ;;  %8723 = vmatprep.subr.mxu1 %v761_v59  ;;  %v4706_v57 = vpop.f32.mrf.mxu1  ;;  %4895 = vmatprep.subr.mxu0 %v19945_v61 }
 0x241   : > { %v12874_v41 = vadd.f32 %v4704_v6, %v12251_v2  ;;  %v4511_v20 = vpop.f32.mrf.mxu0  ;;  %v19996_v22 = vrot.slane %v12681_v26, 2  ;;  %8724 = vmatpush3.msra.mxu1 %v761_v59  ;;  %4896 = vmatpush2.msra.mxu0 %v748_v27  ;;  %v747_v26 = vld [vmem:[%s18910_s4 + $0x3f0] sm:$0xff]  ;;  %v19998_v59 = vrot.slane %v12720_v25, 7  ;;  %v19999_v25 = vrot.slane %v12829_v15, 2 }
 0x242   : > { %v12871_v49 = vsel %vm894_vm0, %v19994_v16, %v19993_v46  ;;  %v12887_v62 = vpop.permute.xlu1 %1724  ;;  %8725 = vmatprep.subr.mxu1 %v760_v28  ;;  %v4709_v6 = vpop.f32.mrf.mxu1  ;;  %4897 = vmatprep.subr.mxu0 %v19945_v61  ;;  %v759_v27 = vld [vmem:[%s18910_s4 + $0x450] sm:$0xff] }
 0x243   : > { %19995 = vst [vmem:[#allocation104_spill] sm:$0xff] %v12871_v49  ;;  %v12879_v45 = vsel %vm2758_vm2, %v19996_v22, %v2995_v35  ;;  %v12884_v29 = vmul.f32 %v12871_v49, %v19962_v36  ;;  %19997 = vst [vmem:[#allocation13_spill] sm:$0xff] %v12887_v62  ;;  %9021 = vset.pattern.permute.xlu1 %v19843_v53  ;;  %v12906_v20 = vadd.f32 %v4709_v6, %v12341_v42  ;;  %v9133_v22 = vld [vmem:[%s18907_s1 + $0x8] sm:$0xff] }
 0x244   : > { %v3712_v43 = vrot.slane %v12879_v45, 7  ;;  %v1785_v45 = vmul.f32 %v12887_v62, %v19989_v44  ;;  %2409 = vperm.xlu1 %9021, %v9133_v22   ;;  %v4711_v2 = vpop.f32.mrf.mxu1  ;;  %v20000_v62 = vrot.slane %v12654_v37, 7  ;;  %8726 = vmatpush3.msra.mxu1 %v760_v28  ;;  %v20001_v6 = vrot.slane %v12857_v56, 7  ;;  %v758_v37 = vld [vmem:[%s18910_s4 + $0x448] sm:$0xff] }
 0x245   : > { %v19212_v16 = vrot.slane %v12884_v29, 7  ;;  %4898 = vmatpush2.msra.mxu0 %v747_v26  ;;  %8727 = vmatprep.subr.mxu1 %v759_v27 }
 0x246   : > { %v3713_v46 = vsel %vm1280_vm1, %v19998_v59, %v3712_v43  ;;  %v12914_v59 = vsel %vm2758_vm2, %v2995_v35, %v19999_v25  ;;  %v2899_v57 = vrot.slane %v1785_v45, 1  ;;  %v746_v35 = vld [vmem:[%s18910_s4 + $0x3e8] sm:$0xff]  ;;  %v4714_v28 = vpop.f32.mrf.mxu1  ;;  %v20004_v45 = vrot.slane %v12847_v7, 1  ;;  %4899 = vmatprep.subr.mxu0 %v19945_v61  ;;  %8728 = vmatpush3.msra.mxu1 %v759_v27 }
 0x247   : > { %4807 = vmatprep.mubr.f32.mxu1 %v3713_v46  ;;  %v3709_v42 = vsel %vm1280_vm1, %v20000_v62, %v19212_v16  ;;  %v20002_v46 = vrot.slane %v12768_v54, 7  ;;  %v12932_v2 = vpop.permute.xlu1 %1254  ;;  %v20003_v62 = vrot.slane %v12749_v19, 1  ;;  %v19213_v54 = vrot.slane %v12914_v59, 7  ;;  %v12951_v19 = vld [vmem:[%s18907_s1 + $0x10] sm:$0xff]  ;;  %4900 = vmatpush2.msra.mxu0 %v746_v35  ;;  %v757_v35 = vld [vmem:[%s18910_s4 + $0x440] sm:$0xff]  ;;  %v744_v16 = vld [vmem:[%s18910_s4 + $0x3d8] sm:$0xff] }
 0x248   : > { %4582 = vmatprep.mubr.f32.mxu0 %v3709_v42  ;;  %v12941_v25 = vsel %vm894_vm0, %v2899_v57, %v20004_v45  ;;  %v19211_v42 = vrot.slane %v12932_v2, 7  ;;  %2412 = vperm.xlu1 %9021, %v12951_v19  }
 0x249   : > { %v3707_v49 = vsel %vm1280_vm1, %v20002_v46, %v20001_v6  ;;  %v2900_v26 = vsel %vm894_vm0, %v20003_v62, %v2899_v57  ;;  %v12946_v6 = vadd.f32 %v4714_v28, %v12431_v30  ;;  %v745_v57 = vld [vmem:[%s18910_s4 + $0x3e0] sm:$0xff]  ;;  %v4716_v46 = vpop.f32.mrf.mxu1  ;;  %8729 = vmatprep.subr.mxu1 %v758_v37  ;;  %v20005_v30 = vrot.slane %v12683_v24, 7  ;;  %4901 = vmatprep.subr.mxu0 %v19945_v61 }
 0x24a   : > { %4583 = vmatmul.mubr.f32.gmra.mxu0 %v3707_v49  ;;  %v3710_v49 = vrot.slane %v2900_v26, 7  ;;  %v20007_v62 = vrot.slane %v12787_v18, 7  ;;  %v19214_v27 = vrot.slane %v12941_v25, 7  ;;  %8730 = vmatpush3.msra.mxu1 %v758_v37  ;;  %v3731_v18 = vsel %vm1280_vm1, %v3712_v43, %v19213_v54 }
 0x24b   : > { %v12962_v28 = vsel %vm1280_vm1, %v20005_v30, %v19211_v42  ;;  %v4719_v46 = vpop.f32.mrf.mxu1  ;;  %4902 = vmatpush2.msra.mxu0 %v745_v57  ;;  %v4290_v37 = vadd.f32 %v12210_v14, %v12092_v32  ;;  %8731 = vmatprep.subr.mxu1 %v757_v35  ;;  %v756_v32 = vld [vmem:[%s18910_s4 + $0x438] sm:$0xff] }
 0x24c   : > { %20006 = vst [vmem:[#allocation203_spill] sm:$0xff] %v12962_v28  ;;  %v3711_v45 = vsel %vm1280_vm1, %v20007_v62, %v3710_v49  ;;  %v12975_v24 = vmul.f32 %v12962_v28, %v19962_v36  ;;  %v12983_v30 = vadd.f32 %v4719_v46, %v12509_v52  ;;  %v20008_v62 = vmov 7   ;;  %v1481_v42 = vpop.permute.xlu1 %1480  ;;  %4903 = vmatprep.subr.mxu0 %v19945_v61 }
 0x24d   : > { %4808 = vmatmul.mubr.f32.gmra.mxu1 %v3711_v45  ;;  %9023 = vset.pattern.permute.xlu1 %v20008_v62  ;;  %v1551_v26 = vrot.slane %v1481_v42, 1  ;;  %v4721_v43 = vpop.f32.mrf.mxu1  ;;  %v3729_v46 = vsel %vm1280_vm1, %v3710_v49, %v19214_v27  ;;  %v20011_v42 = vrot.slane %v12257_v33, 1  ;;  %v20013_v49 = vrot.slane %v12776_v12, 2  ;;  %v755_v12 = vld [vmem:[%s18910_s4 + $0x430] sm:$0xff]  ;;  %v742_v27 = vld [vmem:[%s18910_s4 + $0x3c8] sm:$0xff] }
 0x24e   : > { %4812 = vmatprep.mubr.f32.mxu1 %v3731_v18  ;;  %v19215_v45 = vrot.slane %v12975_v24, 2  ;;  %2250 = vperm.xlu1 %9023, %v9133_v22   ;;  %v20009_v18 = vrot.slane %v12837_v63, 1  ;;  %v743_v63 = vld [vmem:[%s18910_s4 + $0x3d0] sm:$0xff] }
 0x24f   : > { %v4514_v57 = vpop.f32.mrf.mxu0  ;;  %8732 = vmatpush3.msra.mxu1 %v757_v35  ;;  %v13007_v43 = vsel %vm894_vm0, %v1551_v26, %v20011_v42  ;;  %v4724_v54 = vpop.f32.mrf.mxu1  ;;  %4904 = vmatpush2.msra.mxu0 %v744_v16  ;;  %v9135_v42 = vld [vmem:[%s18907_s1] sm:$0xff] }
 0x250   : > { %v12993_v52 = vadd.f32 %v4514_v57, %v4290_v37  ;;  %v13002_v22 = vsel %vm894_vm0, %v20009_v18, %v1551_v26  ;;  %20012 = vst [vmem:[#allocation205_spill] sm:$0xff] %v13007_v43  ;;  %v13014_v57 = vsel %vm2758_vm2, %v20013_v49, %v19215_v45  ;;  %v13020_v35 = vadd.f32 %v4724_v54, %v12619_v9  ;;  %v20017_v49 = vld [vmem:[#allocation43_spill] sm:$0xff] }
 0x251   : > { %20010 = vst [vmem:[#allocation204_spill] sm:$0xff] %v13002_v22  ;;  %4813 = vmatmul.mubr.f32.gmra.mxu1 %v3729_v46  ;;  %v4516_v37 = vpop.f32.mrf.mxu0  ;;  %v1625_v26 = vmul.f32 %v13002_v22, %v19989_v44  ;;  %v13026_v46 = vmul.f32 %v13007_v43, %v19990_v23  ;;  %8733 = vmatprep.subr.mxu1 %v756_v32  ;;  %v13033_v16 = vpop.permute.xlu1 %1868 }
 0x252   : > { %4905 = vmatprep.subr.mxu0 %v19945_v61  ;;  %9024 = vset.pattern.permute.xlu1 %v19813_v5  ;;  %v4726_v9 = vpop.f32.mrf.mxu1  ;;  %v19218_v18 = vrot.slane %v13033_v16, 7  ;;  %v13062_v22 = vpop.permute.xlu0 %1260 }
 0x253   : > { %8734 = vmatpush3.msra.mxu1 %v756_v32  ;;  %2021 = vperm.xlu1 %9024, %v9135_v42   ;;  %v3726_v37 = vrot.slane %v1625_v26, 7  ;;  %v20014_v32 = vrot.slane %v19977_v60, 7  ;;  %v20018_v60 = vrot.slane %v13014_v57, 7 }
 0x254   : > { %4906 = vmatpush2.msra.mxu0 %v743_v63  ;;  %v4729_v45 = vpop.f32.mrf.mxu1  ;;  %8735 = vmatprep.subr.mxu1 %v755_v12  ;;  %v20016_v63 = vrot.slane %v12884_v29, 7  ;;  %v754_v29 = vld [vmem:[%s18910_s4 + $0x428] sm:$0xff] }
 0x255   : > { %4907 = vmatprep.subr.mxu0 %v19945_v61  ;;  %v13050_v9 = vsel %vm1280_vm1, %v20014_v32, %v19218_v18  ;;  %v13053_v26 = vadd.f32 %v4729_v45, %v12730_v51  ;;  %8736 = vmatpush3.msra.mxu1 %v755_v12  ;;  %v20019_v32 = vrot.slane %v12857_v56, 7  ;;  %v20020_v12 = vrot.slane %v13026_v46, 7 }
 0x256   : > { %20015 = vst [vmem:[#allocation206_spill] sm:$0xff] %v13050_v9  ;;  %v3727_v42 = vsel %vm1280_vm1, %v20016_v63, %v3726_v37  ;;  %v13060_v54 = vmul.f32 %v13050_v9, %v20017_v49  ;;  %v4731_v43 = vpop.f32.mrf.mxu1  ;;  %4908 = vmatpush2.msra.mxu0 %v742_v27  ;;  %v1258_v45 = vpop.permute.xlu1 %1257  ;;  %v741_v63 = vld [vmem:[%s18910_s4 + $0x3c0] sm:$0xff]  ;;  %8737 = vmatprep.subr.mxu1 %v754_v29  ;;  %v20023_v9 = vrot.slane %v12829_v15, 2  ;;  %v752_v15 = vld [vmem:[%s18910_s4 + $0x418] sm:$0xff] }
 0x257   : > { %4587 = vmatprep.mubr.f32.mxu0 %v3727_v42  ;;  %v3725_v51 = vsel %vm1280_vm1, %v20019_v32, %v20018_v60  ;;  %9026 = vset.pattern.permute.xlu1 %v20008_v62  ;;  %v3745_v43 = vsel %vm1280_vm1, %v3726_v37, %v20020_v12  ;;  %v1328_v42 = vrot.slane %v1258_v45, 7  ;;  %v753_v60 = vld [vmem:[%s18910_s4 + $0x420] sm:$0xff]  ;;  %v4295_v32 = vadd.f32 %v12210_v14, %v12114_v13  ;;  %v740_v14 = vld [vmem:[%s18910_s4 + $0x3b8] sm:$0xff] }
 0x258   : > { %4588 = vmatmul.mubr.f32.gmra.mxu0 %v3725_v51  ;;  %v19221_v56 = vrot.slane %v13060_v54, 2  ;;  %2254 = vperm.xlu1 %9026, %v12951_v19   ;;  %v4734_v27 = vpop.f32.mrf.mxu1  ;;  %v19220_v37 = vrot.slane %v13062_v22, 7  ;;  %v20021_v45 = vrot.slane %v12932_v2, 7 }
 0x259   : > { %4592 = vmatprep.mubr.f32.mxu0 %v3745_v43  ;;  %v13088_v51 = vadd.f32 %v4734_v27, %v12850_v8  ;;  %4909 = vmatprep.subr.mxu0 %v19945_v61 }
 0x25a   : > { %v13094_v12 = vsel %vm1280_vm1, %v20021_v45, %v1328_v42  ;;  %v4736_v43 = vpop.f32.mrf.mxu1  ;;  %v4519_v18 = vpop.f32.mrf.mxu0  ;;  %v13101_v13 = vsel %vm2758_vm2, %v20023_v9, %v19221_v56  ;;  %8738 = vmatpush3.msra.mxu1 %v754_v29  ;;  %4910 = vmatpush2.msra.mxu0 %v741_v63  ;;  %v13121_v63 = vsel %vm1280_vm1, %v1328_v42, %v19220_v37  ;;  %v751_v42 = vld [vmem:[%s18910_s4 + $0x410] sm:$0xff]  ;;  %v20026_v56 = vrot.slane %v12914_v59, 7 }
 0x25b   : > { %20022 = vst [vmem:[#allocation43_spill] sm:$0xff] %v13094_v12  ;;  %v13108_v8 = vmul.f32 %v13094_v12, %v19989_v44  ;;  %v4520_v2 = vadd.f32 %v4519_v18, %v4295_v32  ;;  %v19222_v27 = vrot.slane %v13101_v13, 7  ;;  %8739 = vmatprep.subr.mxu1 %v753_v60  ;;  %4911 = vmatprep.subr.mxu0 %v19945_v61  ;;  %v13116_v9 = vpop.permute.xlu1 %1732  ;;  %20025 = vst [vmem:[#allocation208_spill] sm:$0xff] %v13121_v63 }
 0x25c   : > { %9027 = vset.pattern.permute.xlu1 %v19813_v5  ;;  %20024 = vst [vmem:[#allocation207_spill] sm:$0xff] %v13116_v9  ;;  %v4739_v29 = vpop.f32.mrf.mxu1  ;;  %8740 = vmatpush3.msra.mxu1 %v753_v60  ;;  %v13126_v32 = vmul.f32 %v13116_v9, %v20017_v49  ;;  %v4521_v43 = vpop.f32.mrf.mxu0  ;;  %v739_v60 = vld [vmem:[%s18910_s4 + $0x3b0] sm:$0xff]  ;;  %v13155_v59 = vmul.f32 %v13121_v63, %v19990_v23  ;;  %v20030_v9 = vrot.slane %v13033_v16, 7  ;;  %v749_v16 = vld [vmem:[%s18910_s4 + $0x400] sm:$0xff] }
 0x25d   : > { %v19223_v18 = vrot.slane %v13108_v8, 2  ;;  %v13129_v45 = vadd.f32 %v4739_v29, %v12993_v52  ;;  %2027 = vperm.xlu1 %9027, %v12951_v19   ;;  %4912 = vmatpush2.msra.mxu0 %v740_v14  ;;  %v3749_v52 = vsel %vm1280_vm1, %v20026_v56, %v19222_v27  ;;  %v20027_v14 = vrot.slane %v12975_v24, 2 }
 0x25e   : > { %v4741_v37 = vpop.f32.mrf.mxu1  ;;  %8741 = vmatprep.subr.mxu1 %v752_v15  ;;  %4913 = vmatprep.subr.mxu0 %v19945_v61  ;;  %v19224_v19 = vrot.slane %v13126_v32, 1 }
 0x25f   : > { %4817 = vmatprep.mubr.f32.mxu1 %v3749_v52  ;;  %v13150_v29 = vsel %vm2758_vm2, %v20027_v14, %v19223_v18  ;;  %8742 = vmatpush3.msra.mxu1 %v752_v15  ;;  %v750_v52 = vld [vmem:[%s18910_s4 + $0x408] sm:$0xff]  ;;  %v20028_v14 = vrot.slane %v12847_v7, 1  ;;  %v20029_v7 = vrot.slane %v13014_v57, 7  ;;  %v20032_v57 = vrot.slane %v11189_v38, 7 }
 0x260   : > { %v4744_v56 = vpop.f32.mrf.mxu1  ;;  %v19226_v43 = vrot.slane %v13150_v29, 7  ;;  %4914 = vmatpush2.msra.mxu0 %v739_v60  ;;  %8743 = vmatprep.subr.mxu1 %v751_v42  ;;  %v1872_v15 = vpop.permute.xlu1 %1871  ;;  %v738_v60 = vld [vmem:[%s18910_s4 + $0x3a8] sm:$0xff] }
 0x261   : > { %v13161_v24 = vadd.f32 %v4744_v56, %v4520_v2  ;;  %9028 = vset.pattern.permute.xlu1 %v19843_v53  ;;  %v13169_v27 = vsel %vm894_vm0, %v20028_v14, %v19224_v19  ;;  %4915 = vmatprep.subr.mxu0 %v19945_v61  ;;  %v1940_v18 = vrot.slane %v1872_v15, 7  ;;  %v13178_v2 = vld [vmem:[%s18907_s1 + $0x20] sm:$0xff] }
 0x262   : > { %2418 = vperm.xlu1 %9028, %v13178_v2   ;;  %v4746_v56 = vpop.f32.mrf.mxu1  ;;  %v3743_v14 = vsel %vm1280_vm1, %v20029_v7, %v19226_v43  ;;  %v19227_v19 = vrot.slane %v13169_v27, 7  ;;  %8744 = vmatpush3.msra.mxu1 %v751_v42  ;;  %v737_v15 = vld [vmem:[%s18910_s4 + $0x3a0] sm:$0xff]  ;;  %v20034_v42 = vrot.slane %v12941_v25, 7 }
 0x263   : > { %4593 = vmatmul.mubr.f32.gmra.mxu0 %v3743_v14  ;;  %8745 = vmatprep.subr.mxu1 %v750_v52  ;;  %v13194_v56 = vsel %vm1280_vm1, %v20030_v9, %v1940_v18  ;;  %v13199_v7 = vsel %vm1280_vm1, %v1940_v18, %v20032_v57  ;;  %v13219_v25 = vld [vmem:[%s18911_s5] ss:$0 sm:$0xff]  ;;  %v13231_v57 = vmul.f32 %v11741_v1, %v11026_v34 }
 0x264   : > { %20031 = vst [vmem:[#allocation209_spill] sm:$0xff] %v13194_v56  ;;  %20033 = vst [vmem:[#allocation210_spill] sm:$0xff] %v13199_v7  ;;  %v3747_v14 = vsel %vm1280_vm1, %v20034_v42, %v19227_v19  ;;  %4916 = vmatpush2.msra.mxu0 %v738_v60  ;;  %8746 = vmatpush3.msra.mxu1 %v750_v52  ;;  %v2012_v9 = vmul.f32 %v13194_v56, %v11013_v55  ;;  %v736_v60 = vld [vmem:[%s18910_s4 + $0x398] sm:$0xff] }
 0x265   : > { %v13213_v43 = vmul.f32 %v13199_v7, %v11026_v34  ;;  %4818 = vmatmul.mubr.f32.gmra.mxu1 %v3747_v14  ;;  %4917 = vmatprep.subr.mxu0 %v19945_v61  ;;  %v4300_v18 = vadd.f32 %v13219_v25, %v12133_v3  ;;  %v13224_v52 = vpop.permute.xlu1 %1486  ;;  %v9138_v3 = vld [vmem:[%s18907_s1 + $0x18] sm:$0xff]  ;;  %v20036_v7 = vrot.slane %v13108_v8, 2 }
 0x266   : > { %9029 = vset.pattern.permute.xlu1 %v20008_v62  ;;  %4918 = vmatpush2.msra.mxu0 %v737_v15  ;;  %v3001_v42 = vrot.slane %v2012_v9, 2  ;;  %v4524_v19 = vpop.f32.mrf.mxu0  ;;  %v20035_v15 = vrot.slane %v13155_v59, 2  ;;  %v735_v9 = vld [vmem:[%s18910_s4 + $0x390] sm:$0xff] }
 0x267   : > { %2258 = vperm.xlu1 %9029, %v9138_v3   ;;  %8747 = vmatprep.subr.mxu1 %v749_v16  ;;  %v4525_v37 = vadd.f32 %v4524_v19, %v4300_v18  ;;  %v20037_v3 = vrot.slane %v13224_v52, 1  ;;  %v20038_v19 = vrot.slane %v12257_v33, 1  ;;  %v734_v33 = vld [vmem:[%s18910_s4 + $0x388] sm:$0xff]  ;;  %v20043_v63 = vrot.slane %v13213_v43, 2 }
 0x268   : > { %v13242_v56 = vsel %vm2758_vm2, %v20036_v7, %v20035_v15  ;;  %4919 = vmatprep.subr.mxu0 %v19945_v61  ;;  %8748 = vmatpush3.msra.mxu1 %v749_v16  ;;  %v4526_v8 = vpop.f32.mrf.mxu0  ;;  %v20040_v7 = vrot.slane %v13060_v54, 2 }
 0x269   : > { %v13254_v18 = vsel %vm894_vm0, %v20038_v19, %v20037_v3  ;;  %4920 = vmatpush2.msra.mxu0 %v736_v60  ;;  %7459 = vmatprep.subr.mxu1 %v19945_v61  ;;  %v4749_v60 = vpop.f32.mrf.mxu1  ;;  %v13285_v19 = vsel %vm2758_vm2, %v3001_v42, %v20043_v63  ;;  %v20046_v63 = vrot.slane %v13150_v29, 7 }
 0x26a   : > { %20039 = vst [vmem:[#allocation211_spill] sm:$0xff] %v13254_v18  ;;  %v3002_v15 = vsel %vm2758_vm2, %v20040_v7, %v3001_v42  ;;  %v13262_v1 = vmul.f32 %v13254_v18, %v20017_v49  ;;  %4921 = vmatprep.subr.mxu0 %v19945_v61  ;;  %v13270_v54 = vpop.permute.xlu1 %1736  ;;  %v13275_v7 = vadd.f32 %v4749_v60, %v4525_v37  ;;  %v20044_v37 = vrot.slane %v13026_v46, 7 }
 0x26b   : > { %v3766_v16 = vrot.slane %v3002_v15, 7  ;;  %2262 = vperm.xlu1 %9029, %v13178_v2   ;;  %20041 = vst [vmem:[#allocation212_spill] sm:$0xff] %v13270_v54  ;;  %4922 = vmatpush2.msra.mxu0 %v735_v9  ;;  %v1788_v8 = vmul.f32 %v13270_v54, %v11013_v55  ;;  %v20042_v15 = vrot.slane %v13101_v13, 7  ;;  %v4751_v3 = vpop.f32.mrf.mxu1  ;;  %v20045_v13 = vrot.slane %v13242_v56, 7 }
 0x26c   : > { %v3762_v18 = vrot.slane %v13262_v1, 7  ;;  %4923 = vmatprep.subr.mxu0 %v19945_v61  ;;  %v733_v1 = vld [vmem:[%s18910_s4 + $0x380] sm:$0xff] }
 0x26d   : > { %v3767_v14 = vsel %vm1280_vm1, %v20042_v15, %v3766_v16  ;;  %4924 = vmatpush2.msra.mxu0 %v734_v33  ;;  %v2905_v9 = vrot.slane %v1788_v8, 1  ;;  %v3761_v42 = vsel %vm1280_vm1, %v20046_v63, %v20045_v13  ;;  %v20047_v33 = vrot.slane %v13126_v32, 1 }
 0x26e   : > { %4822 = vmatprep.mubr.f32.mxu1 %v3767_v14  ;;  %v3763_v60 = vsel %vm1280_vm1, %v20044_v37, %v3762_v18  ;;  %4925 = vmatprep.subr.mxu0 %v19945_v61  ;;  %v4754_v14 = vpop.f32.mrf.mxu1  ;;  %v19236_v8 = vrot.slane %v13285_v19, 7  ;;  %v20048_v15 = vrot.slane %v13231_v57, 1  ;;  %v20051_v32 = vrot.slane %v13169_v27, 7  ;;  %v9139_v27 = vld [vmem:[%s18907_s1 + $0x30] sm:$0xff] }
 0x26f   : > { %9031 = vset.pattern.permute.xlu1 %v19813_v5  ;;  %4597 = vmatprep.mubr.f32.mxu0 %v3763_v60  ;;  %v1264_v46 = vpop.permute.xlu1 %1263  ;;  %v2906_v3 = vsel %vm894_vm0, %v20047_v33, %v2905_v9  ;;  %v4305_v33 = vadd.f32 %v13219_v25, %v12165_v40  ;;  %v20055_v40 = vrot.slane %v13155_v59, 2 }
 0x270   : > { %2033 = vperm.xlu1 %9031, %v13178_v2   ;;  %4598 = vmatmul.mubr.f32.gmra.mxu0 %v3761_v42  ;;  %v13308_v37 = vsel %vm894_vm0, %v2905_v9, %v20048_v15  ;;  %v1332_v60 = vrot.slane %v1264_v46, 7  ;;  %v4756_v29 = vpop.f32.mrf.mxu1  ;;  %v3764_v54 = vrot.slane %v2906_v3, 7  ;;  %v20049_v2 = vrot.slane %v13062_v22, 7 }
 0x271   : > { %4926 = vmatpush2.msra.mxu0 %v733_v1  ;;  %v19235_v42 = vrot.slane %v13308_v37, 7  ;;  %v19234_v9 = vrot.slane %v12311_v10, 1  ;;  %v3785_v22 = vsel %vm1280_vm1, %v3766_v16, %v19236_v8  ;;  %v20052_v16 = vrot.slane %v13224_v52, 1 }
 0x272   : > { %7234 = vmatprep.subr.mxu0 %v19945_v61  ;;  %v13314_v13 = vsel %vm1280_vm1, %v20049_v2, %v1332_v60  ;;  %v3765_v63 = vsel %vm1280_vm1, %v20051_v32, %v3764_v54 }
 0x273   : > { %20050 = vst [vmem:[#allocation213_spill] sm:$0xff] %v13314_v13  ;;  %v13323_v46 = vmul.f32 %v13314_v13, %v20017_v49  ;;  %4823 = vmatmul.mubr.f32.gmra.mxu1 %v3765_v63  ;;  %v3783_v2 = vsel %vm1280_vm1, %v3764_v54, %v19235_v42 }
 0x274   : > { %9032 = vset.pattern.permute.xlu1 %v19843_v53  ;;  %v1490_v1 = vpop.permute.xlu1 %1489  ;;  %4827 = vmatprep.mubr.f32.mxu1 %v3785_v22  ;;  %v4529_v29 = vpop.f32.mrf.mxu0 }
 0x275   : > { %2424 = vperm.xlu1 %9032, %v9139_v27   ;;  %v2810_v3 = vrot.slane %v13323_v46, 2  ;;  %v1557_v15 = vrot.slane %v1490_v1, 1  ;;  %v4530_v22 = vadd.f32 %v4529_v29, %v4305_v33 }
 0x276   : > { %v4531_v1 = vpop.f32.mrf.mxu0 }
 0x277   : > { %v13341_v32 = vsel %vm894_vm0, %v20052_v16, %v1557_v15  ;;  %v13346_v63 = vsel %vm894_vm0, %v1557_v15, %v19234_v9  ;;  %4828 = vmatmul.mubr.f32.gmra.mxu1 %v3783_v2  ;;  %v2811_v46 = vsel %vm2758_vm2, %v20055_v40, %v2810_v3  ;;  %v9140_v15 = vld [vmem:[%s18907_s1 + $0x28] sm:$0xff]  ;;  %v13361_v59 = vadd.f32 %v4754_v14, %v4530_v22 }
 0x278   : > { %20053 = vst [vmem:[#allocation214_spill] sm:$0xff] %v13341_v32  ;;  %20054 = vst [vmem:[#allocation215_spill] sm:$0xff] %v13346_v63  ;;  %v1628_v52 = vmul.f32 %v13341_v32, %v11013_v55  ;;  %v13356_v54 = vmul.f32 %v13346_v63, %v11026_v34  ;;  %v3778_v29 = vrot.slane %v2811_v46, 7  ;;  %v20056_v1 = vrot.slane %v11189_v38, 7 }
 0x279   : > { %9033 = vset.pattern.permute.xlu1 %v20008_v62  ;;  %v1878_v33 = vpop.permute.xlu1 %1877  ;;  %v20058_v14 = vrot.slane %v13242_v56, 7 }
 0x27a   : > { %2266 = vperm.xlu1 %9033, %v9140_v15   ;;  %v1944_v2 = vrot.slane %v1878_v33, 7  ;;  %v3780_v16 = vrot.slane %v1628_v52, 7  ;;  %v19237_v40 = vrot.slane %v13356_v54, 7  ;;  %v13380_v52 = vpop.permute.xlu0 %1269 }
 0x27b   : > { %v3779_v22 = vsel %vm1280_vm1, %v20058_v14, %v3778_v29  ;;  %v19239_v33 = vrot.slane %v13380_v52, 7 }
 0x27c   : > { %v13367_v9 = vsel %vm1280_vm1, %v20056_v1, %v1944_v2  ;;  %v3781_v42 = vsel %vm1280_vm1, %v3762_v18, %v3780_v16  ;;  %v3799_v38 = vsel %vm1280_vm1, %v3780_v16, %v19237_v40  ;;  %v20060_v1 = vrot.slane %v13213_v43, 2 }
 0x27d   : > { %20057 = vst [vmem:[#allocation216_spill] sm:$0xff] %v13367_v9  ;;  %v13372_v8 = vmul.f32 %v13367_v9, %v11094_v17  ;;  %4602 = vmatprep.mubr.f32.mxu0 %v3781_v42  ;;  %v4310_v42 = vadd.f32 %v13219_v25, %v12192_v4  ;;  %v20063_v9 = vrot.slane %v13285_v19, 7  ;;  %v9141_v19 = vld [vmem:[%s18907_s1 + $0x40] sm:$0xff] }
 0x27e   : > { %2270 = vperm.xlu1 %9033, %v9139_v27   ;;  %v1267_v46 = vpop.permute.xlu1 %1266  ;;  %4603 = vmatmul.mubr.f32.gmra.mxu0 %v3779_v22  ;;  %v4759_v40 = vpop.f32.mrf.mxu1 }
 0x27f   : > { %v3005_v18 = vrot.slane %v13372_v8, 2  ;;  %v1334_v15 = vrot.slane %v1267_v46, 7  ;;  %4607 = vmatprep.mubr.f32.mxu0 %v3799_v38  ;;  %v4534_v8 = vpop.f32.mrf.mxu0 }
 0x280   : > { %v4535_v46 = vadd.f32 %v4534_v8, %v4310_v42 }
 0x281   : > { %v13387_v56 = vsel %vm1280_vm1, %v1332_v60, %v1334_v15  ;;  %v3006_v16 = vsel %vm2758_vm2, %v20060_v1, %v3005_v18  ;;  %v13400_v4 = vsel %vm1280_vm1, %v1334_v15, %v19239_v33  ;;  %v4536_v1 = vpop.f32.mrf.mxu0  ;;  %v4761_v15 = vpop.f32.mrf.mxu1 }
 0x282   : > { %20059 = vst [vmem:[#allocation217_spill] sm:$0xff] %v13387_v56  ;;  %9034 = vset.pattern.permute.xlu1 %v19813_v5  ;;  %v1404_v14 = vmul.f32 %v13387_v56, %v11013_v55  ;;  %v3802_v22 = vrot.slane %v3006_v16, 7  ;;  %20062 = vst [vmem:[#allocation219_spill] sm:$0xff] %v13400_v4  ;;  %v13409_v16 = vadd.f32 %v4759_v40, %v4535_v46  ;;  %v20065_v46 = vrot.slane %v13231_v57, 1 }
 0x283   : > { %2039 = vperm.xlu1 %9034, %v9139_v27   ;;  %v13395_v38 = vpop.permute.xlu1 %1744  ;;  %v13417_v1 = vmul.f32 %v13400_v4, %v11026_v34  ;;  %v20069_v57 = vrot.slane %v13308_v37, 7 }
 0x284   : > { %20061 = vst [vmem:[#allocation218_spill] sm:$0xff] %v13395_v38  ;;  %v2812_v60 = vrot.slane %v1404_v14, 2  ;;  %v13404_v43 = vmul.f32 %v13395_v38, %v11094_v17  ;;  %v3803_v27 = vsel %vm1280_vm1, %v20063_v9, %v3802_v22  ;;  %20064 = vst [vmem:[#allocation220_spill] sm:$0xff] %v13409_v16  ;;  %v20067_v38 = vrot.slane %v11260_v31, 7 }
 0x285   : > { %4832 = vmatprep.mubr.f32.mxu1 %v3803_v27  ;;  %v19246_v33 = vrot.slane %v13417_v1, 2 }
 0x286   : > { %v2909_v42 = vrot.slane %v13404_v43, 1  ;;  %v2813_v14 = vsel %vm2758_vm2, %v2810_v3, %v2812_v60 }
 0x287   : > { %9035 = vset.pattern.permute.xlu1 %v19843_v53  ;;  %v3796_v9 = vrot.slane %v2813_v14, 7 }
 0x288   : > { %2430 = vperm.xlu1 %9035, %v9141_v19   ;;  %v1881_v40 = vpop.permute.xlu1 %1880  ;;  %v2910_v43 = vsel %vm894_vm0, %v20065_v46, %v2909_v42  ;;  %v4315_v46 = vadd.f32 %v13219_v25, %v12231_v48 }
 0x289   : > { %v1946_v27 = vrot.slane %v1881_v40, 7  ;;  %v3797_v3 = vsel %vm1280_vm1, %v3778_v29, %v3796_v9  ;;  %v3800_v15 = vrot.slane %v2910_v43, 7 }
 0x28a   : > { %4608 = vmatmul.mubr.f32.gmra.mxu0 %v3797_v3 }
 0x28b   : > { %v13428_v8 = vsel %vm1280_vm1, %v1944_v2, %v1946_v27  ;;  %v13433_v4 = vsel %vm1280_vm1, %v1946_v27, %v20067_v38  ;;  %v3801_v14 = vsel %vm1280_vm1, %v20069_v57, %v3800_v15  ;;  %v9142_v2 = vld [vmem:[%s18907_s1 + $0x38] sm:$0xff] }
 0x28c   : > { %20066 = vst [vmem:[#allocation221_spill] sm:$0xff] %v13428_v8  ;;  %20068 = vst [vmem:[#allocation222_spill] sm:$0xff] %v13433_v4  ;;  %9036 = vset.pattern.permute.xlu1 %v20008_v62  ;;  %v2015_v29 = vmul.f32 %v13428_v8, %v11102_v0  ;;  %v13443_v40 = vmul.f32 %v13433_v4, %v11172_v47  ;;  %4833 = vmatmul.mubr.f32.gmra.mxu1 %v3801_v14  ;;  %v20070_v27 = vld [vmem:[#allocation149_spill] sm:$0xff]  ;;  %v20071_v14 = vrot.slane %v12311_v10, 1 }
 0x28d   : > { %2274 = vperm.xlu1 %9036, %v9142_v2   ;;  %v1496_v38 = vpop.permute.xlu1 %1495  ;;  %v13452_v3 = vmul.f32 %v20070_v27, %v11172_v47  ;;  %v4539_v57 = vpop.f32.mrf.mxu0  ;;  %v13457_v4 = vsel %vm2758_vm2, %v2812_v60, %v19246_v33  ;;  %v20075_v60 = vrot.slane %v13356_v54, 7 }
 0x28e   : > { %v3007_v37 = vrot.slane %v2015_v29, 2  ;;  %v1561_v43 = vrot.slane %v1496_v38, 1  ;;  %v19248_v8 = vrot.slane %v13443_v40, 2  ;;  %v4540_v48 = vadd.f32 %v4539_v57, %v4315_v46 }
 0x28f   : > { %v4541_v38 = vpop.f32.mrf.mxu0  ;;  %v20103_v12 = vrot.slane %v13452_v3, 1 }
 0x290   : > { %v13463_v2 = vsel %vm894_vm0, %v20071_v14, %v1561_v43  ;;  %v3008_v29 = vsel %vm2758_vm2, %v3005_v18, %v3007_v37  ;;  %v4764_v14 = vpop.f32.mrf.mxu1 }
 0x291   : > { %20072 = vst [vmem:[#allocation223_spill] sm:$0xff] %v13463_v2  ;;  %2278 = vperm.xlu1 %9036, %v9141_v19   ;;  %v3820_v27 = vrot.slane %v3008_v29, 7  ;;  %v13468_v63 = vmul.f32 %v13463_v2, %v11094_v17  ;;  %v13478_v57 = vadd.f32 %v4764_v14, %v4540_v48  ;;  %v13484_v29 = vsel %vm2758_vm2, %v3007_v37, %v19248_v8 }
 0x292   : > { %v13470_v56 = vpop.permute.xlu1 %1748  ;;  %v4766_v33 = vpop.f32.mrf.mxu1  ;;  %v19250_v37 = vrot.slane %v13484_v29, 7 }
 0x293   : > { %20073 = vst [vmem:[#allocation224_spill] sm:$0xff] %v13470_v56  ;;  %v1791_v10 = vmul.f32 %v13470_v56, %v11102_v0  ;;  %v3821_v46 = vsel %vm1280_vm1, %v3802_v22, %v3820_v27  ;;  %v3816_v18 = vrot.slane %v13468_v63, 7  ;;  %20074 = vst [vmem:[#allocation225_spill] sm:$0xff] %v13478_v57  ;;  %v20076_v63 = vrot.slane %v13457_v4, 7 }
 0x294   : > { %4837 = vmatprep.mubr.f32.mxu1 %v3821_v46  ;;  %v4769_v14 = vpop.f32.mrf.mxu1 }
 0x295   : > { %9037 = vset.pattern.permute.xlu1 %v19813_v5  ;;  %v2911_v38 = vrot.slane %v1791_v10, 1  ;;  %v3817_v56 = vsel %vm1280_vm1, %v20075_v60, %v3816_v18  ;;  %v3815_v22 = vsel %vm1280_vm1, %v3796_v9, %v20076_v63  ;;  %v20078_v9 = vrot.slane %v13380_v52, 7 }
 0x296   : > { %2045 = vperm.xlu1 %9037, %v9141_v19   ;;  %4612 = vmatprep.mubr.f32.mxu0 %v3817_v56  ;;  %v20077_v19 = vrot.slane %v13452_v3, 1  ;;  %v4771_v60 = vpop.f32.mrf.mxu1  ;;  %v3839_v52 = vsel %vm1280_vm1, %v3820_v27, %v19250_v37 }
 0x297   : > { %v13492_v48 = vpop.permute.xlu1 %1272  ;;  %4613 = vmatmul.mubr.f32.gmra.mxu0 %v3815_v22  ;;  %v2912_v46 = vsel %vm894_vm0, %v2909_v42, %v2911_v38  ;;  %v9143_v42 = vld [vmem:[%s18907_s1 + $0x50] sm:$0xff]  ;;  %v20080_v22 = vld [vmem:[#allocation174_spill] sm:$0xff] }
 0x298   : > { %v13499_v33 = vsel %vm894_vm0, %v2911_v38, %v20077_v19  ;;  %v1338_v54 = vrot.slane %v13492_v48, 7  ;;  %v3818_v56 = vrot.slane %v2912_v46, 7  ;;  %v20081_v60 = vld [vmem:[#allocation170_spill] sm:$0xff]  ;;  %v20083_v27 = vrot.slane %v20080_v22, 1 }
 0x299   : > { %v19251_v38 = vrot.slane %v13499_v33, 7  ;;  %v4544_v48 = vpop.f32.mrf.mxu0 }
 0x29a   : > { %9038 = vset.pattern.permute.xlu1 %v19843_v53  ;;  %v13506_v10 = vsel %vm1280_vm1, %v20078_v9, %v1338_v54  ;;  %v3819_v63 = vsel %vm1280_vm1, %v3800_v15, %v3818_v56  ;;  %v4320_v9 = vadd.f32 %v13219_v25, %v20081_v60 }
 0x29b   : > { %20079 = vst [vmem:[#allocation226_spill] sm:$0xff] %v13506_v10  ;;  %2436 = vperm.xlu1 %9038, %v9143_v42   ;;  %v13516_v46 = vmul.f32 %v13506_v10, %v11094_v17  ;;  %4838 = vmatmul.mubr.f32.gmra.mxu1 %v3819_v63  ;;  %v3837_v10 = vsel %vm1280_vm1, %v3818_v56, %v19251_v38  ;;  %v4546_v60 = vpop.f32.mrf.mxu0 }
 0x29c   : > { %v1499_v19 = vpop.permute.xlu1 %1498  ;;  %4842 = vmatprep.mubr.f32.mxu1 %v3839_v52  ;;  %v4545_v37 = vadd.f32 %v4544_v48, %v4320_v9  ;;  %v9145_v48 = vld [vmem:[%s18909_s3] ss:$0 sm:$0xff]  ;;  %v20087_v9 = vld [vmem:[#allocation167_spill] sm:$0xff] }
 0x29d   : > { %v1563_v8 = vrot.slane %v1499_v19, 1  ;;  %v9144_v19 = vld [vmem:[%s18907_s1 + $0x48] sm:$0xff]  ;;  %v20085_v56 = vrot.slane %v13516_v46, 2 }
 0x29f   : > { %9039 = vset.pattern.permute.xlu1 %v20008_v62  ;;  %v13529_v63 = vsel %vm894_vm0, %v1561_v43, %v1563_v8  ;;  %v13534_v52 = vsel %vm894_vm0, %v1563_v8, %v20083_v27  ;;  %4843 = vmatmul.mubr.f32.gmra.mxu1 %v3837_v10  ;;  %v20086_v43 = vrot.slane %v13417_v1, 2  ;;  %v13554_v10 = vadd.f32 %v9145_v48, %v20087_v9  ;;  %v1279_v27 = vpop.permute.xlu0 %1278 }
 0x2a0   : > { %20082 = vst [vmem:[#allocation174_spill] sm:$0xff] %v13529_v63  ;;  %20084 = vst [vmem:[#allocation170_spill] sm:$0xff] %v13534_v52  ;;  %2282 = vperm.xlu1 %9039, %v9144_v19   ;;  %v1631_v15 = vmul.f32 %v13529_v63, %v11102_v0  ;;  %v13548_v8 = vmul.f32 %v13534_v52, %v11172_v47  ;;  %v13556_v63 = vadd.f32 %v4769_v14, %v4545_v37 }
 0x2a1   : > { %v2817_v38 = vsel %vm2758_vm2, %v20086_v43, %v20085_v56  ;;  %v1887_v19 = vpop.permute.xlu1 %1886  ;;  %v20089_v43 = vrot.slane %v11260_v31, 7  ;;  %v20091_v14 = vrot.slane %v13457_v4, 7 }
 0x2a2   : > { %v3832_v60 = vrot.slane %v2817_v38, 7  ;;  %20088 = vst [vmem:[#allocation167_spill] sm:$0xff] %v13556_v63  ;;  %v1950_v2 = vrot.slane %v1887_v19, 7  ;;  %v3834_v1 = vrot.slane %v1631_v15, 7  ;;  %v19256_v56 = vrot.slane %v13548_v8, 7 }
 0x2a3   : > { %v13575_v15 = vpop.permute.xlu0 %2246 }
 0x2a4   : > { %2286 = vperm.xlu1 %9039, %v9143_v42   ;;  %v13562_v52 = vsel %vm1280_vm1, %v20089_v43, %v1950_v2  ;;  %v3835_v32 = vsel %vm1280_vm1, %v3816_v18, %v3834_v1  ;;  %v3833_v37 = vsel %vm1280_vm1, %v20091_v14, %v3832_v60  ;;  %v3853_v31 = vsel %vm1280_vm1, %v3834_v1, %v19256_v56 }
 0x2a5   : > { %20090 = vst [vmem:[#allocation227_spill] sm:$0xff] %v13562_v52  ;;  %v13567_v9 = vmul.f32 %v13562_v52, %v13554_v10  ;;  %4617 = vmatprep.mubr.f32.mxu0 %v3835_v32  ;;  %20092 = vst [vmem:[#allocation228_spill] sm:$0xff] %v13575_v15  ;;  %v13579_v43 = vrot.slane %v1279_v27, 7  ;;  %v20094_v32 = vld [vmem:[#allocation171_spill] sm:$0xff]  ;;  %v20099_v52 = vrot.slane %v13484_v29, 7 }
 0x2a6   : > { %v1276_v38 = vpop.permute.xlu1 %1275  ;;  %4618 = vmatmul.mubr.f32.gmra.mxu0 %v3833_v37  ;;  %v4325_v4 = vadd.f32 %v13219_v25, %v20094_v32  ;;  %v20096_v37 = vrot.slane %v13443_v40, 2 }
 0x2a7   : > { %v3011_v19 = vrot.slane %v13567_v9, 2  ;;  %v1340_v18 = vrot.slane %v1276_v38, 7  ;;  %4622 = vmatprep.mubr.f32.mxu0 %v3853_v31  ;;  %20093 = vst [vmem:[#allocation229_spill] sm:$0xff] %v13579_v43  ;;  %v4549_v38 = vpop.f32.mrf.mxu0 }
 0x2a8   : > { %9040 = vset.pattern.permute.xlu1 %v19813_v5  ;;  %v4550_v27 = vadd.f32 %v4549_v38, %v4325_v4  ;;  %v13610_v38 = vpop.permute.xlu0 %2024 }
 0x2a9   : > { %2051 = vperm.xlu1 %9040, %v9143_v42   ;;  %v13584_v14 = vsel %vm1280_vm1, %v1338_v54, %v1340_v18  ;;  %v13589_v1 = vsel %vm2758_vm2, %v20096_v37, %v3011_v19  ;;  %v13598_v42 = vsel %vm1280_vm1, %v1340_v18, %v13579_v43  ;;  %v4551_v32 = vpop.f32.mrf.mxu0  ;;  %v9146_v18 = vld [vmem:[%s18907_s1 + $0x60] sm:$0xff] }
 0x2aa   : > { %20095 = vst [vmem:[#allocation171_spill] sm:$0xff] %v13584_v14  ;;  %v1407_v9 = vmul.f32 %v13584_v14, %v11102_v0  ;;  %v19261_v31 = vrot.slane %v13589_v1, 7  ;;  %20098 = vst [vmem:[#allocation231_spill] sm:$0xff] %v13598_v42  ;;  %v4774_v37 = vpop.f32.mrf.mxu1  ;;  %v1408_v29 = vmul.f32 %v13598_v42, %v11172_v47 }
 0x2ab   : > { %v13594_v56 = vpop.permute.xlu1 %1756  ;;  %v13612_v14 = vadd.f32 %v4774_v37, %v4550_v27 }
 0x2ac   : > { %20097 = vst [vmem:[#allocation230_spill] sm:$0xff] %v13594_v56  ;;  %v2818_v54 = vrot.slane %v1407_v9, 2  ;;  %v13602_v40 = vmul.f32 %v13594_v56, %v13554_v10  ;;  %v3857_v4 = vsel %vm1280_vm1, %v20099_v52, %v19261_v31  ;;  %v4776_v32 = vpop.f32.mrf.mxu1  ;;  %v20101_v56 = vrot.slane %v13516_v46, 2  ;;  %v20102_v31 = vld [vmem:[#allocation111_spill] sm:$0xff]  ;;  %v13641_v3 = vpop.permute.xlu0 %2030 }
 0x2ad   : > { %9041 = vset.pattern.permute.xlu1 %v19843_v53  ;;  %20100 = vst [vmem:[#allocation232_spill] sm:$0xff] %v13612_v14  ;;  %4847 = vmatprep.mubr.f32.mxu1 %v3857_v4  ;;  %v13624_v27 = vadd.f32 %v9145_v48, %v20102_v31  ;;  %v9147_v48 = vld [vmem:[%s18907_s1 + $0x58] sm:$0xff] }
 0x2ae   : > { %2442 = vperm.xlu1 %9041, %v9146_v18   ;;  %v19263_v9 = vrot.slane %v13602_v40, 1  ;;  %v2819_v13 = vsel %vm2758_vm2, %v20101_v56, %v2818_v54 }
 0x2af   : > { %v3850_v52 = vrot.slane %v2819_v13, 7  ;;  %v1409_v13 = vmul.f32 %v13579_v43, %v13554_v10 }
 0x2b0   : > { %v1890_v37 = vpop.permute.xlu1 %1889  ;;  %v13631_v4 = vsel %vm894_vm0, %v20103_v12, %v19263_v9  ;;  %v2820_v12 = vrot.slane %v1408_v29, 2 }
 0x2b1   : > { %v1952_v32 = vrot.slane %v1890_v37, 7  ;;  %v3851_v46 = vsel %vm1280_vm1, %v3832_v60, %v3850_v52  ;;  %v19267_v56 = vrot.slane %v13631_v4, 7  ;;  %v20106_v60 = vrot.slane %v13499_v33, 7 }
 0x2b2   : > { %9042 = vset.pattern.permute.xlu1 %v20008_v62  ;;  %4623 = vmatmul.mubr.f32.gmra.mxu0 %v3851_v46  ;;  %v20107_v46 = vld [vmem:[#allocation173_spill] sm:$0xff]  ;;  %v2822_v29 = vrot.slane %v1409_v13, 2  ;;  %v2821_v33 = vsel %vm2758_vm2, %v2818_v54, %v2820_v12  ;;  %v2407_v13 = vpop.permute.xlu0 %2406 }
 0x2b3   : > { %2290 = vperm.xlu1 %9042, %v9147_v48   ;;  %v13644_v31 = vsel %vm1280_vm1, %v1950_v2, %v1952_v32  ;;  %v13646_v37 = vmul.f32 0.0, %v1952_v32  ;;  %v3855_v9 = vsel %vm1280_vm1, %v20106_v60, %v19267_v56  ;;  %v4330_v42 = vadd.f32 %v13219_v25, %v20107_v46 }
 0x2b4   : > { %20104 = vst [vmem:[#allocation111_spill] sm:$0xff] %v13644_v31  ;;  %v2018_v43 = vmul.f32 %v13644_v31, %v13624_v27  ;;  %4848 = vmatmul.mubr.f32.gmra.mxu1 %v3855_v9  ;;  %v20109_v60 = vrot.slane %v20080_v22, 1  ;;  %v3868_v22 = vrot.slane %v2821_v33, 7 }
 0x2b5   : > { %20105 = vst [vmem:[#allocation233_spill] sm:$0xff] %v13646_v37  ;;  %v1505_v48 = vpop.permute.xlu1 %1504  ;;  %v20115_v33 = vrot.slane %v13646_v37, 2 }
 0x2b6   : > { %v3013_v28 = vrot.slane %v2018_v43, 2  ;;  %v13657_v2 = vrot.slane %v1505_v48, 1 }
 0x2b7   : > { %2294 = vperm.xlu1 %9042, %v9146_v18  }
 0x2b8   : > { %20108 = vst [vmem:[#allocation173_spill] sm:$0xff] %v13657_v2  ;;  %v4554_v14 = vpop.f32.mrf.mxu0  ;;  %v13665_v56 = vsel %vm894_vm0, %v20109_v60, %v13657_v2  ;;  %v1634_v9 = vmul.f32 %v13657_v2, %v13624_v27  ;;  %v3014_v43 = vsel %vm2758_vm2, %v3011_v19, %v3013_v28  ;;  %v2823_v60 = vsel %vm2758_vm2, %v2820_v12, %v2822_v29 }
 0x2b9   : > { %20110 = vst [vmem:[#allocation234_spill] sm:$0xff] %v13665_v56  ;;  %v4555_v46 = vadd.f32 %v4554_v14, %v4330_v42  ;;  %v3874_v31 = vrot.slane %v3014_v43, 7  ;;  %v1633_v32 = vmul.f32 %v13665_v56, %v13554_v10  ;;  %v20112_v19 = vrot.slane %v13589_v1, 7 }
 0x2ba   : > { %v4556_v48 = vpop.f32.mrf.mxu0  ;;  %v13673_v54 = vpop.permute.xlu1 %1760  ;;  %v13681_v2 = vrot.slane %v2407_v13, 7  ;;  %v3016_v12 = vsel %vm2758_vm2, %v3013_v28, %v20115_v33  ;;  %v3869_v1 = vsel %vm1280_vm1, %v3850_v52, %v3868_v22  ;;  %v20117_v28 = vrot.slane %v13602_v40, 1  ;;  %v9148_v52 = vld [vmem:[%s18907_s1 + $0x70] sm:$0xff] }
 0x2bb   : > { %9043 = vset.pattern.permute.xlu1 %v19813_v5  ;;  %20111 = vst [vmem:[#allocation235_spill] sm:$0xff] %v13673_v54  ;;  %v1794_v63 = vmul.f32 %v13673_v54, %v13624_v27  ;;  %v4779_v14 = vpop.f32.mrf.mxu1  ;;  %v3875_v42 = vsel %vm1280_vm1, %v20112_v19, %v3874_v31  ;;  %v3870_v43 = vrot.slane %v1633_v32, 7  ;;  %v3888_v48 = vrot.slane %v1634_v9, 7  ;;  %v13692_v32 = vpop.permute.xlu0 %2415 }
 0x2bc   : > { %2057 = vperm.xlu1 %9043, %v9146_v18   ;;  %20113 = vst [vmem:[#allocation236_spill] sm:$0xff] %v13681_v2  ;;  %v13683_v56 = vadd.f32 %v4779_v14, %v4555_v46  ;;  %4852 = vmatprep.mubr.f32.mxu1 %v3875_v42  ;;  %v20116_v18 = vrot.slane %v13548_v8, 7  ;;  %v3886_v9 = vrot.slane %v2823_v60, 7  ;;  %v20118_v8 = vld [vmem:[#allocation40_spill] sm:$0xff]  ;;  %v19274_v33 = vrot.slane %v13692_v32, 7 }
 0x2bd   : > { %v2917_v29 = vrot.slane %v1794_v63, 1  ;;  %v4781_v57 = vpop.f32.mrf.mxu1  ;;  %v3889_v14 = vsel %vm1280_vm1, %v3870_v43, %v3888_v48  ;;  %v3892_v63 = vrot.slane %v3016_v12, 7  ;;  %v20120_v12 = vrot.slane %v13631_v4, 7 }
 0x2be   : > { %20114 = vst [vmem:[#allocation237_spill] sm:$0xff] %v13683_v56  ;;  %v3871_v54 = vsel %vm1280_vm1, %v20116_v18, %v3870_v43  ;;  %v3887_v48 = vsel %vm1280_vm1, %v3868_v22, %v3886_v9  ;;  %v20122_v22 = vld [vmem:[#allocation177_spill] sm:$0xff] }
 0x2bf   : > { %4627 = vmatprep.mubr.f32.mxu0 %v3871_v54  ;;  %v2410_v46 = vpop.permute.xlu1 %2409  ;;  %v4784_v13 = vpop.f32.mrf.mxu1  ;;  %v2918_v57 = vsel %vm894_vm0, %v20117_v28, %v2917_v29  ;;  %v2597_v54 = vmul.f32 %v13681_v2, %v20118_v8  ;;  %v3890_v43 = vrot.slane %v2917_v29, 7  ;;  %v2373_v29 = vmul.f32 %v13575_v15, %v20118_v8 }
 0x2c0   : > { %9045 = vset.pattern.permute.xlu1 %v19843_v53  ;;  %4628 = vmatmul.mubr.f32.gmra.mxu0 %v3869_v1  ;;  %v2502_v19 = vrot.slane %v2410_v46, 7  ;;  %v3872_v60 = vrot.slane %v2918_v57, 7  ;;  %v20121_v1 = vld [vmem:[#allocation37_spill] sm:$0xff]  ;;  %v4335_v4 = vadd.f32 %v13219_v25, %v20122_v22 }
 0x2c1   : > { %2448 = vperm.xlu1 %9045, %v9148_v52   ;;  %4632 = vmatprep.mubr.f32.mxu0 %v3889_v14  ;;  %v4786_v42 = vpop.f32.mrf.mxu1  ;;  %v3893_v14 = vsel %vm1280_vm1, %v3874_v31, %v3892_v63  ;;  %v3145_v57 = vrot.slane %v2597_v54, 2 }
 0x2c2   : > { %v13707_v40 = vsel %vm1280_vm1, %v13681_v2, %v2502_v19  ;;  %v3873_v18 = vsel %vm1280_vm1, %v20120_v12, %v3872_v60  ;;  %v9149_v12 = vld [vmem:[%s18907_s1 + $0x68] sm:$0xff]  ;;  %v3891_v54 = vsel %vm1280_vm1, %v3872_v60, %v3890_v43 }
 0x2c3   : > { %20119 = vst [vmem:[#allocation40_spill] sm:$0xff] %v13707_v40  ;;  %v2598_v46 = vmul.f32 %v13707_v40, %v20121_v1  ;;  %v2413_v28 = vpop.permute.xlu1 %2412  ;;  %4853 = vmatmul.mubr.f32.gmra.mxu1 %v3873_v18  ;;  %v20125_v18 = vld [vmem:[#allocation44_spill] sm:$0xff] }
 0x2c4   : > { %4633 = vmatmul.mubr.f32.gmra.mxu0 %v3887_v48  ;;  %v2504_v42 = vrot.slane %v2413_v28, 7  ;;  %4857 = vmatprep.mubr.f32.mxu1 %v3893_v14 }
 0x2c5   : > { %9046 = vset.pattern.permute.xlu1 %v20008_v62  ;;  %v3146_v9 = vrot.slane %v2598_v46, 2  ;;  %v4559_v63 = vpop.f32.mrf.mxu0  ;;  %v20126_v46 = vld [vmem:[#allocation48_spill] sm:$0xff] }
 0x2c6   : > { %2298 = vperm.xlu1 %9046, %v9149_v12   ;;  %v13725_v48 = vsel %vm1280_vm1, %v2502_v19, %v2504_v42  ;;  %v13730_v31 = vsel %vm1280_vm1, %v2504_v42, %v19274_v33  ;;  %v4560_v22 = vadd.f32 %v4559_v63, %v4335_v4  ;;  %v3049_v12 = vrot.slane %v2373_v29, 1  ;;  %v13754_v29 = vpop.permute.xlu0 %2421 }
 0x2c7   : > { %20123 = vst [vmem:[#allocation37_spill] sm:$0xff] %v13725_v48  ;;  %20124 = vst [vmem:[#allocation177_spill] sm:$0xff] %v13730_v31  ;;  %v2599_v28 = vmul.f32 %v13725_v48, %v20125_v18  ;;  %v13737_v14 = vmul.f32 %v13730_v31, %v20126_v46  ;;  %4858 = vmatmul.mubr.f32.gmra.mxu1 %v3891_v54  ;;  %v3147_v19 = vsel %vm2758_vm2, %v3145_v57, %v3146_v9  ;;  %v4561_v37 = vpop.f32.mrf.mxu0 }
 0x2c8   : > { %v3339_v42 = vrot.slane %v3145_v57, 7  ;;  %v3340_v33 = vrot.slane %v3147_v19, 7  ;;  %v13745_v48 = vadd.f32 %v4784_v13, %v4560_v22  ;;  %v2117_v57 = vrot.slane %v13610_v38, 1 }
 0x2c9   : > { %v13740_v2 = vpop.permute.xlu1 %2250  ;;  %v3148_v40 = vrot.slane %v2599_v28, 2  ;;  %v19277_v60 = vrot.slane %v13737_v14, 2  ;;  %v3336_v13 = vrot.slane %v3049_v12, 7 }
 0x2ca   : > { %20127 = vst [vmem:[#allocation44_spill] sm:$0xff] %v13740_v2  ;;  %v2374_v43 = vmul.f32 %v13740_v2, %v20121_v1  ;;  %2302 = vperm.xlu1 %9046, %v9148_v52   ;;  %20128 = vst [vmem:[#allocation48_spill] sm:$0xff] %v13745_v48  ;;  %v3341_v4 = vsel %vm1280_vm1, %v3339_v42, %v3340_v33  ;;  %v20141_v2 = vld [vmem:[#allocation55_spill] sm:$0xff] }
 0x2cb   : > { %v3149_v63 = vsel %vm2758_vm2, %v3146_v9, %v3148_v40  ;;  %8749 = vmatprep.mubr.f32.mxu1 %v3341_v4  ;;  %v13752_v37 = vsel %vm2758_vm2, %v3148_v40, %v19277_v60 }
 0x2cc   : > { %v3050_v54 = vrot.slane %v2374_v43, 1  ;;  %v3358_v28 = vrot.slane %v3149_v63, 7  ;;  %v19278_v19 = vrot.slane %v13752_v37, 7  ;;  %v20131_v63 = vld [vmem:[#allocation35_spill] sm:$0xff] }
 0x2ce   : > { %9047 = vset.pattern.permute.xlu1 %v19813_v5  ;;  %v2022_v22 = vpop.permute.xlu1 %2021  ;;  %v3051_v9 = vsel %vm894_vm0, %v3049_v12, %v3050_v54  ;;  %v3359_v43 = vsel %vm1280_vm1, %v3340_v33, %v3358_v28  ;;  %v3377_v40 = vsel %vm1280_vm1, %v3358_v28, %v19278_v19  ;;  %v13777_v28 = vpop.permute.xlu0 %2427 }
 0x2cf   : > { %v13760_v42 = vrot.slane %v2022_v22, 1  ;;  %2063 = vperm.xlu1 %9047, %v9148_v52   ;;  %v3337_v4 = vrot.slane %v3051_v9, 7  ;;  %8750 = vmatmul.mubr.f32.vlgmr.msra.gmra.mxu1 %v3359_v43  ;;  %v20132_v22 = vld [vmem:[#allocation178_spill] sm:$0xff] }
 0x2d0   : > { %8752 = vmatprep.mubr.f32.mxu1 %v3377_v40  ;;  %v4340_v52 = vadd.f32 %v13219_v25, %v20132_v22 }
 0x2d1   : > { %20129 = vst [vmem:[#allocation238_spill] sm:$0xff] %v13760_v42  ;;  %v13768_v38 = vsel %vm894_vm0, %v13760_v42, %v2117_v57  ;;  %v2212_v60 = vmul.f32 %v13760_v42, %v20131_v63  ;;  %v3338_v12 = vsel %vm1280_vm1, %v3336_v13, %v3337_v4  ;;  %v4564_v19 = vpop.f32.mrf.mxu0  ;;  %v9150_v63 = vld [vmem:[%s18907_s1 + $0x80] sm:$0xff] }
 0x2d2   : > { %20130 = vst [vmem:[#allocation239_spill] sm:$0xff] %v13768_v38  ;;  %v2213_v33 = vmul.f32 %v13768_v38, %v20118_v8  ;;  %4927 = vmatprep.mubr.f32.mxu0 %v3338_v12  ;;  %v4565_v13 = vadd.f32 %v4564_v19, %v4340_v52  ;;  %v13798_v15 = vpop.permute.xlu0 %2433 }
 0x2d3   : > { %v3333_v9 = vrot.slane %v2212_v60, 7  ;;  %9048 = vset.pattern.permute.xlu1 %v19843_v53  ;;  %v13780_v43 = vpop.permute.xlu1 %2254  ;;  %v4566_v8 = vpop.f32.mrf.mxu0 }
 0x2d4   : > { %20133 = vst [vmem:[#allocation35_spill] sm:$0xff] %v13780_v43  ;;  %v3334_v31 = vrot.slane %v2213_v33, 7  ;;  %v13784_v40 = vmul.f32 %v13780_v43, %v20125_v18  ;;  %2454 = vperm.xlu1 %9048, %v9150_v63   ;;  %v4789_v12 = vpop.f32.mrf.mxu1  ;;  %v9151_v43 = vld [vmem:[%s18907_s1 + $0x78] sm:$0xff] }
 0x2d5   : > { %v13790_v22 = vadd.f32 %v4789_v12, %v4565_v13 }
 0x2d6   : > { %v3052_v60 = vrot.slane %v13784_v40, 1  ;;  %v3335_v38 = vsel %vm1280_vm1, %v3333_v9, %v3334_v31  ;;  %v4791_v42 = vpop.f32.mrf.mxu1  ;;  %v19287_v9 = vrot.slane %v13754_v29, 7 }
 0x2d7   : > { %20134 = vst [vmem:[#allocation178_spill] sm:$0xff] %v13790_v22  ;;  %4928 = vmatmul.mubr.f32.vlgmr.msra.gmra.mxu0 %v3335_v38  ;;  %v19286_v38 = vrot.slane %v13641_v3, 1 }
 0x2d8   : > { %9049 = vset.pattern.permute.xlu1 %v20008_v62  ;;  %v2028_v33 = vpop.permute.xlu1 %2027  ;;  %v3053_v19 = vsel %vm894_vm0, %v3050_v54, %v3052_v60 }
 0x2d9   : > { %v2119_v52 = vrot.slane %v2028_v33, 1  ;;  %2306 = vperm.xlu1 %9049, %v9151_v43   ;;  %v3356_v8 = vrot.slane %v3053_v19, 7  ;;  %v4345_v33 = vadd.f32 %v13219_v25, %v12411_v58  ;;  %v13810_v19 = vpop.permute.xlu0 %2439 }
 0x2db   : > { %v13801_v40 = vsel %vm894_vm0, %v2117_v57, %v2119_v52  ;;  %v3357_v42 = vsel %vm1280_vm1, %v3337_v4, %v3356_v8  ;;  %v13815_v57 = vsel %vm894_vm0, %v2119_v52, %v19286_v38  ;;  %v20137_v4 = vrot.slane %v13692_v32, 7 }
 0x2dc   : > { %20135 = vst [vmem:[#allocation240_spill] sm:$0xff] %v13801_v40  ;;  %4932 = vmatprep.mubr.f32.mxu0 %v3357_v42  ;;  %v2214_v54 = vmul.f32 %v13801_v40, %v20121_v1  ;;  %20136 = vst [vmem:[#allocation241_spill] sm:$0xff] %v13815_v57 }
 0x2dd   : > { %2310 = vperm.xlu1 %9049, %v9150_v63   ;;  %v2419_v13 = vpop.permute.xlu1 %2418 }
 0x2de   : > { %v2508_v12 = vrot.slane %v2419_v13, 7  ;;  %v3354_v43 = vrot.slane %v2214_v54, 7  ;;  %v20140_v13 = vld [vmem:[#allocation52_spill] sm:$0xff] }
 0x2df   : > { %v4569_v54 = vpop.f32.mrf.mxu0 }
 0x2e0   : > { %v13820_v42 = vsel %vm1280_vm1, %v20137_v4, %v2508_v12  ;;  %v13825_v1 = vsel %vm1280_vm1, %v2508_v12, %v19287_v9  ;;  %v3355_v58 = vsel %vm1280_vm1, %v3334_v31, %v3354_v43  ;;  %v4570_v38 = vadd.f32 %v4569_v54, %v4345_v33  ;;  %v13844_v33 = vpop.permute.xlu0 %2445 }
 0x2e1   : > { %20138 = vst [vmem:[#allocation242_spill] sm:$0xff] %v13820_v42  ;;  %20139 = vst [vmem:[#allocation243_spill] sm:$0xff] %v13825_v1  ;;  %v2601_v40 = vmul.f32 %v13820_v42, %v20140_v13  ;;  %v13832_v52 = vmul.f32 %v13825_v1, %v20141_v2  ;;  %9050 = vset.pattern.permute.xlu1 %v19813_v5  ;;  %4933 = vmatmul.mubr.f32.gmra.mxu0 %v3355_v58  ;;  %v4571_v4 = vpop.f32.mrf.mxu0 }
 0x2e2   : > { %2069 = vperm.xlu1 %9050, %v9150_v63   ;;  %v13835_v32 = vpop.permute.xlu1 %2258  ;;  %v2215_v42 = vmul.f32 %v13815_v57, %v20125_v18  ;;  %v20144_v63 = vrot.slane %v13737_v14, 2  ;;  %v9152_v14 = vld [vmem:[%s18907_s1 + $0x90] sm:$0xff] }
 0x2e3   : > { %20142 = vst [vmem:[#allocation52_spill] sm:$0xff] %v13835_v32  ;;  %v3152_v12 = vrot.slane %v2601_v40, 2  ;;  %v19290_v9 = vrot.slane %v13832_v52, 2  ;;  %v2376_v31 = vmul.f32 %v13835_v32, %v20126_v46  ;;  %v4794_v22 = vpop.f32.mrf.mxu1 }
 0x2e4   : > { %v13842_v48 = vadd.f32 %v4794_v22, %v4570_v38 }
 0x2e5   : > { %v3054_v1 = vrot.slane %v2376_v31, 1  ;;  %v3153_v54 = vsel %vm2758_vm2, %v20144_v63, %v3152_v12  ;;  %v13852_v40 = vsel %vm2758_vm2, %v3152_v12, %v19290_v9  ;;  %v4796_v18 = vpop.f32.mrf.mxu1  ;;  %v3372_v31 = vrot.slane %v2215_v42, 7  ;;  %v13877_v42 = vpop.permute.xlu0 %2036 }
 0x2e6   : > { %20143 = vst [vmem:[#allocation55_spill] sm:$0xff] %v13842_v48  ;;  %9051 = vset.pattern.permute.xlu1 %v19843_v53  ;;  %v13855_v58 = vpop.permute.xlu1 %2262  ;;  %v3394_v4 = vrot.slane %v3153_v54, 7  ;;  %v3412_v22 = vrot.slane %v13852_v40, 7  ;;  %v20146_v9 = vrot.slane %v13752_v37, 7 }
 0x2e7   : > { %20145 = vst [vmem:[#allocation244_spill] sm:$0xff] %v13855_v58  ;;  %v13860_v38 = vmul.f32 %v13855_v58, %v20140_v13  ;;  %2460 = vperm.xlu1 %9051, %v9152_v14   ;;  %v3055_v12 = vsel %vm894_vm0, %v3052_v60, %v3054_v1  ;;  %v4799_v63 = vpop.f32.mrf.mxu1  ;;  %v3373_v37 = vsel %vm1280_vm1, %v3354_v43, %v3372_v31 }
 0x2e8   : > { %v3395_v18 = vsel %vm1280_vm1, %v20146_v9, %v3394_v4  ;;  %v3413_v54 = vsel %vm1280_vm1, %v3394_v4, %v3412_v22  ;;  %v3374_v57 = vrot.slane %v3055_v12, 7  ;;  %v9153_v4 = vld [vmem:[%s18907_s1 + $0x88] sm:$0xff]  ;;  %v20148_v12 = vrot.slane %v13641_v3, 1 }
 0x2e9   : > { %v3056_v58 = vrot.slane %v13860_v38, 1  ;;  %8753 = vmatmul.mubr.f32.gmra.mxu1 %v3395_v18  ;;  %v4801_v32 = vpop.f32.mrf.mxu1  ;;  %v20147_v38 = vld [vmem:[#allocation182_spill] sm:$0xff]  ;;  %v19295_v18 = vrot.slane %v13877_v42, 1  ;;  %v13963_v16 = vpop.permute.xlu0 %2042 }
 0x2ea   : > { %8755 = vmatprep.mubr.f32.mxu1 %v3413_v54  ;;  %v3375_v48 = vsel %vm1280_vm1, %v3356_v8, %v3374_v57  ;;  %v4350_v8 = vadd.f32 %v13219_v25, %v20147_v38 }
 0x2eb   : > { %9052 = vset.pattern.permute.xlu1 %v20008_v62  ;;  %v2034_v60 = vpop.permute.xlu1 %2033  ;;  %4937 = vmatprep.mubr.f32.mxu0 %v3375_v48  ;;  %v3057_v9 = vsel %vm894_vm0, %v3054_v1, %v3056_v58  ;;  %v19294_v1 = vrot.slane %v13777_v28, 7 }
 0x2ec   : > { %v2123_v56 = vrot.slane %v2034_v60, 1  ;;  %2314 = vperm.xlu1 %9052, %v9153_v4   ;;  %4938 = vmatmul.mubr.f32.gmra.mxu0 %v3373_v37  ;;  %v3392_v32 = vrot.slane %v3057_v9, 7 }
 0x2ee   : > { %v13887_v48 = vsel %vm894_vm0, %v20148_v12, %v2123_v56  ;;  %v3393_v43 = vsel %vm1280_vm1, %v3374_v57, %v3392_v32  ;;  %v4574_v54 = vpop.f32.mrf.mxu0  ;;  %v13899_v57 = vsel %vm894_vm0, %v2123_v56, %v19295_v18  ;;  %v20152_v12 = vrot.slane %v13754_v29, 7 }
 0x2ef   : > { %20149 = vst [vmem:[#allocation182_spill] sm:$0xff] %v13887_v48  ;;  %4942 = vmatprep.mubr.f32.mxu0 %v3393_v43  ;;  %v2216_v60 = vmul.f32 %v13887_v48, %v20126_v46  ;;  %v4575_v37 = vadd.f32 %v4574_v54, %v4350_v8  ;;  %20151 = vst [vmem:[#allocation246_spill] sm:$0xff] %v13899_v57  ;;  %v20155_v54 = vld [vmem:[#allocation58_spill] sm:$0xff] }
 0x2f0   : > { %2318 = vperm.xlu1 %9052, %v9152_v14   ;;  %v2425_v9 = vpop.permute.xlu1 %2424  ;;  %v4576_v4 = vpop.f32.mrf.mxu0 }
 0x2f1   : > { %v2512_v25 = vrot.slane %v2425_v9, 7  ;;  %v3390_v3 = vrot.slane %v2216_v60, 7  ;;  %v13894_v38 = vadd.f32 %v4799_v63, %v4575_v37  ;;  %v20156_v60 = vld [vmem:[#allocation62_spill] sm:$0xff] }
 0x2f3   : > { %20150 = vst [vmem:[#allocation245_spill] sm:$0xff] %v13894_v38  ;;  %v13904_v43 = vsel %vm1280_vm1, %v20152_v12, %v2512_v25  ;;  %v13909_v46 = vsel %vm1280_vm1, %v2512_v25, %v19294_v1  ;;  %v3391_v8 = vsel %vm1280_vm1, %v3372_v31, %v3390_v3  ;;  %v2217_v31 = vmul.f32 %v13899_v57, %v20140_v13  ;;  %v13941_v13 = vld [vmem:[%s18911_s5] ss:$0 sm:$0xff] }
 0x2f4   : > { %20153 = vst [vmem:[#allocation247_spill] sm:$0xff] %v13904_v43  ;;  %20154 = vst [vmem:[#allocation248_spill] sm:$0xff] %v13909_v46  ;;  %v2603_v63 = vmul.f32 %v13904_v43, %v20155_v54  ;;  %v13916_v37 = vmul.f32 %v13909_v46, %v20156_v60  ;;  %9053 = vset.pattern.permute.xlu1 %v19813_v5  ;;  %4943 = vmatmul.mubr.f32.gmra.mxu0 %v3391_v8  ;;  %v20158_v12 = vrot.slane %v13832_v52, 2  ;;  %v20160_v52 = vld [vmem:[#allocation184_spill] sm:$0xff] }
 0x2f5   : > { %2075 = vperm.xlu1 %9053, %v9152_v14   ;;  %v13919_v56 = vpop.permute.xlu1 %2266 }
 0x2f6   : > { %20157 = vst [vmem:[#allocation58_spill] sm:$0xff] %v13919_v56  ;;  %v3156_v29 = vrot.slane %v2603_v63, 2  ;;  %v19296_v9 = vrot.slane %v13916_v37, 2  ;;  %v2378_v25 = vmul.f32 %v13919_v56, %v20141_v2 }
 0x2f8   : > { %v3058_v4 = vrot.slane %v2378_v25, 1  ;;  %v3157_v1 = vsel %vm2758_vm2, %v20158_v12, %v3156_v29  ;;  %v13932_v14 = vsel %vm2758_vm2, %v3156_v29, %v19296_v9  ;;  %v4355_v25 = vadd.f32 %v13941_v13, %v20160_v52  ;;  %v9155_v29 = vld [vmem:[%s18907_s1 + $0xa0] sm:$0xff] }
 0x2f9   : > { %9054 = vset.pattern.permute.xlu1 %v19843_v53  ;;  %v13935_v8 = vpop.permute.xlu1 %2270  ;;  %v3430_v63 = vrot.slane %v3157_v1, 7  ;;  %v3408_v9 = vrot.slane %v2217_v31, 7  ;;  %v20161_v43 = vrot.slane %v13932_v14, 7 }
 0x2fa   : > { %20159 = vst [vmem:[#allocation62_spill] sm:$0xff] %v13935_v8  ;;  %v13947_v12 = vmul.f32 %v13935_v8, %v20155_v54  ;;  %2466 = vperm.xlu1 %9054, %v9155_v29   ;;  %v3059_v1 = vsel %vm894_vm0, %v3056_v58, %v3058_v4  ;;  %v4579_v18 = vpop.f32.mrf.mxu0 }
 0x2fb   : > { %v3431_v46 = vsel %vm1280_vm1, %v3412_v22, %v3430_v63  ;;  %v3449_v52 = vsel %vm1280_vm1, %v3430_v63, %v20161_v43  ;;  %v3410_v57 = vrot.slane %v3059_v1, 7  ;;  %v4580_v56 = vadd.f32 %v4579_v18, %v4355_v25 }
 0x2fc   : > { %v3060_v8 = vrot.slane %v13947_v12, 1  ;;  %8756 = vmatmul.mubr.f32.gmra.mxu1 %v3431_v46  ;;  %v4581_v48 = vpop.f32.mrf.mxu0  ;;  %v3409_v22 = vsel %vm1280_vm1, %v3390_v3, %v3408_v9  ;;  %v20162_v46 = vrot.slane %v13877_v42, 1  ;;  %v20165_v42 = vrot.slane %v13777_v28, 7 }
 0x2fd   : > { %v4804_v38 = vpop.f32.mrf.mxu1  ;;  %8758 = vmatprep.mubr.f32.mxu1 %v3449_v52  ;;  %v3411_v58 = vsel %vm1280_vm1, %v3392_v32, %v3410_v57  ;;  %v9156_v48 = vld [vmem:[%s18907_s1 + $0x98] sm:$0xff] }
 0x2fe   : > { %v13961_v31 = vadd.f32 %v4804_v38, %v4580_v56  ;;  %9055 = vset.pattern.permute.xlu1 %v20008_v62  ;;  %v2040_v40 = vpop.permute.xlu1 %2039  ;;  %4947 = vmatprep.mubr.f32.mxu0 %v3411_v58  ;;  %v3061_v43 = vsel %vm894_vm0, %v3058_v4, %v3060_v8  ;;  %v19304_v38 = vrot.slane %v13963_v16, 1  ;;  %v19303_v4 = vrot.slane %v13798_v15, 7 }
 0x2ff   : > { %v2127_v63 = vrot.slane %v2040_v40, 1  ;;  %2322 = vperm.xlu1 %9055, %v9156_v48   ;;  %v4806_v18 = vpop.f32.mrf.mxu1  ;;  %4948 = vmatmul.mubr.f32.gmra.mxu0 %v3409_v22  ;;  %v3428_v32 = vrot.slane %v3061_v43, 7  ;;  %v20168_v22 = vld [vmem:[#allocation187_spill] sm:$0xff]  ;;  %v20169_v48 = vld [vmem:[#allocation64_spill] sm:$0xff] }
 0x300   : > { %v4360_v43 = vadd.f32 %v13941_v13, %v20168_v22 }
 0x301   : > { %v13975_v56 = vsel %vm894_vm0, %v20162_v46, %v2127_v63  ;;  %v3429_v3 = vsel %vm1280_vm1, %v3410_v57, %v3428_v32  ;;  %v13984_v58 = vsel %vm894_vm0, %v2127_v63, %v19304_v38  ;;  %v20170_v63 = vld [vmem:[#allocation66_spill] sm:$0xff]  ;;  %v20172_v38 = vrot.slane %v13916_v37, 2 }
 0x302   : > { %20163 = vst [vmem:[#allocation184_spill] sm:$0xff] %v13975_v56  ;;  %4952 = vmatprep.mubr.f32.mxu0 %v3429_v3  ;;  %v2218_v25 = vmul.f32 %v13975_v56, %v20141_v2  ;;  %20164 = vst [vmem:[#allocation249_spill] sm:$0xff] %v13984_v58 }
 0x303   : > { %2326 = vperm.xlu1 %9055, %v9155_v29   ;;  %v2431_v12 = vpop.permute.xlu1 %2430 }
 0x304   : > { %v2516_v1 = vrot.slane %v2431_v12, 7  ;;  %v3426_v52 = vrot.slane %v2218_v25, 7 }
 0x306   : > { %v13989_v40 = vsel %vm1280_vm1, %v20165_v42, %v2516_v1  ;;  %v13994_v57 = vsel %vm1280_vm1, %v2516_v1, %v19303_v4  ;;  %v3427_v2 = vsel %vm1280_vm1, %v3408_v9, %v3426_v52  ;;  %v2219_v9 = vmul.f32 %v13984_v58, %v20155_v54 }
 0x307   : > { %20166 = vst [vmem:[#allocation250_spill] sm:$0xff] %v13989_v40  ;;  %20167 = vst [vmem:[#allocation251_spill] sm:$0xff] %v13994_v57  ;;  %v2605_v18 = vmul.f32 %v13989_v40, %v20169_v48  ;;  %v14003_v46 = vmul.f32 %v13994_v57, %v20170_v63  ;;  %9057 = vset.pattern.permute.xlu1 %v19813_v5  ;;  %4953 = vmatmul.mubr.f32.gmra.mxu0 %v3427_v2 }
 0x308   : > { %2081 = vperm.xlu1 %9057, %v9155_v29   ;;  %v14006_v28 = vpop.permute.xlu1 %2274 }
 0x309   : > { %20171 = vst [vmem:[#allocation187_spill] sm:$0xff] %v14006_v28  ;;  %v3160_v25 = vrot.slane %v2605_v18, 2  ;;  %v19307_v12 = vrot.slane %v14003_v46, 2  ;;  %v2380_v1 = vmul.f32 %v14006_v28, %v20156_v60 }
 0x30a   : > { %v4584_v3 = vpop.f32.mrf.mxu0 }
 0x30b   : > { %v4585_v42 = vadd.f32 %v4584_v3, %v4360_v43  ;;  %v3062_v4 = vrot.slane %v2380_v1, 1  ;;  %v3161_v2 = vsel %vm2758_vm2, %v20172_v38, %v3160_v25  ;;  %v14019_v29 = vsel %vm2758_vm2, %v3160_v25, %v19307_v12  ;;  %v9157_v38 = vld [vmem:[%s18907_s1 + $0xb0] sm:$0xff] }
 0x30c   : > { %v4586_v22 = vpop.f32.mrf.mxu0  ;;  %9058 = vset.pattern.permute.xlu1 %v19843_v53  ;;  %v14022_v54 = vpop.permute.xlu1 %2278  ;;  %v3466_v57 = vrot.slane %v3161_v2, 7  ;;  %v19310_v40 = vrot.slane %v14019_v29, 7  ;;  %v3444_v25 = vrot.slane %v2219_v9, 7 }
 0x30d   : > { %20173 = vst [vmem:[#allocation64_spill] sm:$0xff] %v14022_v54  ;;  %v4809_v18 = vpop.f32.mrf.mxu1  ;;  %v14027_v43 = vmul.f32 %v14022_v54, %v20169_v48  ;;  %2472 = vperm.xlu1 %9058, %v9157_v38   ;;  %v3063_v3 = vsel %vm894_vm0, %v3060_v8, %v3062_v4  ;;  %v20174_v22 = vrot.slane %v13932_v14, 7 }
 0x30e   : > { %v14029_v37 = vadd.f32 %v4809_v18, %v4585_v42  ;;  %v3485_v12 = vsel %vm1280_vm1, %v3466_v57, %v19310_v40  ;;  %v3446_v58 = vrot.slane %v3063_v3, 7  ;;  %v3445_v14 = vsel %vm1280_vm1, %v3426_v52, %v3444_v25 }
 0x30f   : > { %v4811_v1 = vpop.f32.mrf.mxu1  ;;  %v3467_v2 = vsel %vm1280_vm1, %v20174_v22, %v3466_v57  ;;  %v3064_v42 = vrot.slane %v14027_v43, 1  ;;  %v9158_v57 = vld [vmem:[%s18907_s1 + $0xa8] sm:$0xff]  ;;  %v20179_v40 = vrot.slane %v13798_v15, 7 }
 0x310   : > { %8759 = vmatmul.mubr.f32.gmra.mxu1 %v3467_v2  ;;  %v3447_v54 = vsel %vm1280_vm1, %v3428_v32, %v3446_v58  ;;  %v14046_v1 = vpop.permute.xlu0 %2048  ;;  %v20175_v32 = vrot.slane %v13963_v16, 1 }
 0x311   : > { %v4814_v18 = vpop.f32.mrf.mxu1  ;;  %8761 = vmatprep.mubr.f32.mxu1 %v3485_v12  ;;  %9059 = vset.pattern.permute.xlu1 %v20008_v62  ;;  %v2046_v8 = vpop.permute.xlu1 %2045  ;;  %v3065_v9 = vsel %vm894_vm0, %v3062_v4, %v3064_v42 }
 0x312   : > { %4957 = vmatprep.mubr.f32.mxu0 %v3447_v54  ;;  %v2131_v22 = vrot.slane %v2046_v8, 1  ;;  %2330 = vperm.xlu1 %9059, %v9158_v57   ;;  %v3464_v12 = vrot.slane %v3065_v9, 7  ;;  %v19311_v54 = vrot.slane %v14046_v1, 1  ;;  %v20177_v8 = vld [vmem:[#allocation96_spill] sm:$0xff] }
 0x313   : > { %v4816_v43 = vpop.f32.mrf.mxu1  ;;  %4958 = vmatmul.mubr.f32.gmra.mxu0 %v3445_v14  ;;  %v4365_v57 = vadd.f32 %v13941_v13, %v20177_v8 }
 0x314   : > { %v14054_v3 = vsel %vm894_vm0, %v20175_v32, %v2131_v22  ;;  %v3465_v52 = vsel %vm1280_vm1, %v3446_v58, %v3464_v12  ;;  %v14066_v58 = vsel %vm894_vm0, %v2131_v22, %v19311_v54  ;;  %v14086_v15 = vpop.permute.xlu0 %2054 }
 0x315   : > { %20176 = vst [vmem:[#allocation66_spill] sm:$0xff] %v14054_v3  ;;  %v2220_v2 = vmul.f32 %v14054_v3, %v20156_v60  ;;  %4962 = vmatprep.mubr.f32.mxu0 %v3465_v52  ;;  %20178 = vst [vmem:[#allocation96_spill] sm:$0xff] %v14066_v58  ;;  %v20181_v60 = vrot.slane %v13810_v19, 7  ;;  %v20190_v3 = vld [vmem:[#allocation189_spill] sm:$0xff] }
 0x316   : > { %2334 = vperm.xlu1 %9059, %v9157_v38   ;;  %v2437_v14 = vpop.permute.xlu1 %2436 }
 0x317   : > { %v2520_v9 = vrot.slane %v2437_v14, 7  ;;  %v3462_v43 = vrot.slane %v2220_v2, 7  ;;  %v20183_v2 = vld [vmem:[#allocation68_spill] sm:$0xff] }
 0x318   : > { %v4589_v16 = vpop.f32.mrf.mxu0 }
 0x319   : > { %v4590_v32 = vadd.f32 %v4589_v16, %v4365_v57  ;;  %v14071_v4 = vsel %vm1280_vm1, %v20179_v40, %v2520_v9  ;;  %v14076_v52 = vsel %vm1280_vm1, %v2520_v9, %v20181_v60  ;;  %v3463_v14 = vsel %vm1280_vm1, %v3444_v25, %v3462_v43  ;;  %v20184_v16 = vld [vmem:[#allocation73_spill] sm:$0xff] }
 0x31a   : > { %20180 = vst [vmem:[#allocation252_spill] sm:$0xff] %v14071_v4  ;;  %20182 = vst [vmem:[#allocation253_spill] sm:$0xff] %v14076_v52  ;;  %v4591_v8 = vpop.f32.mrf.mxu0  ;;  %v2607_v57 = vmul.f32 %v14071_v4, %v20183_v2  ;;  %v14083_v22 = vmul.f32 %v14076_v52, %v20184_v16  ;;  %9060 = vset.pattern.permute.xlu1 %v19813_v5  ;;  %4963 = vmatmul.mubr.f32.gmra.mxu0 %v3463_v14  ;;  %v20187_v4 = vrot.slane %v14003_v46, 2 }
 0x31b   : > { %v14088_v40 = vadd.f32 %v4814_v18, %v4590_v32  ;;  %2087 = vperm.xlu1 %9060, %v9157_v38   ;;  %v14090_v9 = vpop.permute.xlu1 %2282  ;;  %v2221_v25 = vmul.f32 %v14066_v58, %v20169_v48  ;;  %v14105_v18 = vpop.permute.xlu0 %2060 }
 0x31c   : > { %20186 = vst [vmem:[#allocation73_spill] sm:$0xff] %v14090_v9  ;;  %v3164_v60 = vrot.slane %v2607_v57, 2  ;;  %v19315_v8 = vrot.slane %v14083_v22, 2  ;;  %v2382_v54 = vmul.f32 %v14090_v9, %v20170_v63 }
 0x31d   : > { %20185 = vst [vmem:[#allocation68_spill] sm:$0xff] %v14088_v40  ;;  %v3480_v58 = vrot.slane %v2221_v25, 7 }
 0x31e   : > { %v3066_v52 = vrot.slane %v2382_v54, 1  ;;  %v3165_v14 = vsel %vm2758_vm2, %v20187_v4, %v3164_v60  ;;  %v14103_v38 = vsel %vm2758_vm2, %v3164_v60, %v19315_v8  ;;  %v9159_v4 = vld [vmem:[%s18907_s1 + $0xc0] sm:$0xff]  ;;  %v20189_v60 = vrot.slane %v14019_v29, 7 }
 0x31f   : > { %9061 = vset.pattern.permute.xlu1 %v19843_v53  ;;  %v14108_v48 = vpop.permute.xlu1 %2286  ;;  %v3502_v32 = vrot.slane %v3165_v14, 7  ;;  %v19321_v57 = vrot.slane %v14103_v38, 7 }
 0x320   : > { %20188 = vst [vmem:[#allocation254_spill] sm:$0xff] %v14108_v48  ;;  %v14113_v46 = vmul.f32 %v14108_v48, %v20183_v2  ;;  %2478 = vperm.xlu1 %9061, %v9159_v4   ;;  %v3067_v54 = vsel %vm894_vm0, %v3064_v42, %v3066_v52  ;;  %v4370_v48 = vadd.f32 %v13941_v13, %v20190_v3  ;;  %v14136_v3 = vpop.permute.xlu0 %2066 }
 0x321   : > { %v3503_v8 = vsel %vm1280_vm1, %v20189_v60, %v3502_v32  ;;  %v3521_v14 = vsel %vm1280_vm1, %v3502_v32, %v19321_v57  ;;  %v3482_v25 = vrot.slane %v3067_v54, 7  ;;  %v3481_v60 = vsel %vm1280_vm1, %v3462_v43, %v3480_v58 }
 0x322   : > { %v19323_v9 = vrot.slane %v14113_v46, 1  ;;  %8762 = vmatmul.mubr.f32.gmra.mxu1 %v3503_v8  ;;  %v9160_v8 = vld [vmem:[%s18907_s1 + $0xb8] sm:$0xff]  ;;  %v20192_v43 = vrot.slane %v14046_v1, 1  ;;  %v19324_v57 = vrot.slane %v13844_v33, 7 }
 0x323   : > { %v4594_v56 = vpop.f32.mrf.mxu0  ;;  %8764 = vmatprep.mubr.f32.mxu1 %v3521_v14  ;;  %v3483_v28 = vsel %vm1280_vm1, %v3464_v12, %v3482_v25 }
 0x324   : > { %v4595_v42 = vadd.f32 %v4594_v56, %v4370_v48  ;;  %9062 = vset.pattern.permute.xlu1 %v20008_v62  ;;  %v2052_v29 = vpop.permute.xlu1 %2051  ;;  %4967 = vmatprep.mubr.f32.mxu0 %v3483_v28  ;;  %v14134_v32 = vsel %vm894_vm0, %v3066_v52, %v19323_v9 }
 0x325   : > { %v2135_v54 = vrot.slane %v2052_v29, 1  ;;  %2338 = vperm.xlu1 %9062, %v9160_v8   ;;  %v4596_v56 = vpop.f32.mrf.mxu0  ;;  %v4819_v12 = vpop.f32.mrf.mxu1  ;;  %4968 = vmatmul.mubr.f32.gmra.mxu0 %v3481_v60  ;;  %v19322_v28 = vrot.slane %v14134_v32, 7  ;;  %v19325_v8 = vrot.slane %v14086_v15, 1 }
 0x326   : > { %v14142_v48 = vadd.f32 %v4819_v12, %v4595_v42  ;;  %v14159_v12 = vpop.permute.xlu0 %2072 }
 0x327   : > { %v14147_v52 = vsel %vm894_vm0, %v20192_v43, %v2135_v54  ;;  %v4821_v14 = vpop.f32.mrf.mxu1  ;;  %v3501_v29 = vsel %vm1280_vm1, %v3482_v25, %v19322_v28  ;;  %v14164_v25 = vsel %vm894_vm0, %v2135_v54, %v19325_v8  ;;  %v20195_v43 = vrot.slane %v13810_v19, 7  ;;  %v20199_v28 = vld [vmem:[#allocation80_spill] sm:$0xff] }
 0x328   : > { %20191 = vst [vmem:[#allocation189_spill] sm:$0xff] %v14142_v48  ;;  %20193 = vst [vmem:[#allocation255_spill] sm:$0xff] %v14147_v52  ;;  %v14156_v60 = vmul.f32 %v14147_v52, %v20170_v63  ;;  %4972 = vmatprep.mubr.f32.mxu0 %v3501_v29  ;;  %v4375_v19 = vadd.f32 %v13941_v13, %v12564_v21  ;;  %v5359_v21 = vld [vmem:[%s18912_s6 + $0x170] sm:$0xff]  ;;  %v5357_v48 = vld [vmem:[%s18912_s6 + $0x160] sm:$0xff] }
 0x329   : > { %2342 = vperm.xlu1 %9062, %v9159_v4   ;;  %v2443_v42 = vpop.permute.xlu1 %2442  ;;  %20194 = vst [vmem:[#allocation256_spill] sm:$0xff] %v14164_v25 }
 0x32a   : > { %v3498_v1 = vrot.slane %v14156_v60, 7  ;;  %v2524_v56 = vrot.slane %v2443_v42, 7  ;;  %v20198_v60 = vld [vmem:[#allocation76_spill] sm:$0xff] }
 0x32c   : > { %v14169_v14 = vsel %vm1280_vm1, %v20195_v43, %v2524_v56  ;;  %v14174_v63 = vsel %vm1280_vm1, %v2524_v56, %v19324_v57  ;;  %v3499_v29 = vsel %vm1280_vm1, %v3480_v58, %v3498_v1  ;;  %v14190_v56 = vmul.f32 %v14164_v25, %v20183_v2  ;;  %v14209_v25 = vpop.permute.xlu0 %2078 }
 0x32d   : > { %20196 = vst [vmem:[#allocation257_spill] sm:$0xff] %v14169_v14  ;;  %20197 = vst [vmem:[#allocation258_spill] sm:$0xff] %v14174_v63  ;;  %v2609_v42 = vmul.f32 %v14169_v14, %v20198_v60  ;;  %v14181_v9 = vmul.f32 %v14174_v63, %v20199_v28  ;;  %9063 = vset.pattern.permute.xlu1 %v19813_v5  ;;  %4973 = vmatmul.mubr.f32.gmra.mxu0 %v3499_v29  ;;  %v5360_v29 = vld [vmem:[%s18912_s6 + $0x178] sm:$0xff]  ;;  %v20201_v2 = vrot.slane %v14083_v22, 2 }
 0x32e   : > { %2093 = vperm.xlu1 %9063, %v9159_v4   ;;  %v14186_v54 = vpop.permute.xlu1 %2290  ;;  %7460 = vmatpush1.msra.mxu1 %v5360_v29 }
 0x32f   : > { %20200 = vst [vmem:[#allocation76_spill] sm:$0xff] %v14186_v54  ;;  %v3168_v58 = vrot.slane %v2609_v42, 2  ;;  %v19330_v43 = vrot.slane %v14181_v9, 2  ;;  %v2384_v57 = vmul.f32 %v14186_v54, %v20184_v16  ;;  %7461 = vmatprep.subr.mxu1 %v19945_v61  ;;  %v5358_v54 = vld [vmem:[%s18912_s6 + $0x168] sm:$0xff] }
 0x330   : > { %v4599_v4 = vpop.f32.mrf.mxu0  ;;  %7462 = vmatpush1.msra.mxu1 %v5359_v21 }
 0x331   : > { %v3070_v8 = vrot.slane %v2384_v57, 1  ;;  %v4600_v63 = vadd.f32 %v4599_v4, %v4375_v19  ;;  %v3169_v42 = vsel %vm2758_vm2, %v20201_v2, %v3168_v58  ;;  %v14207_v14 = vsel %vm2758_vm2, %v3168_v58, %v19330_v43  ;;  %v14227_v2 = vld [vmem:[%s18907_s1 + $0xd0] sm:$0xff]  ;;  %7463 = vmatprep.subr.mxu1 %v19945_v61 }
 0x332   : > { %9065 = vset.pattern.permute.xlu1 %v19843_v53  ;;  %v14216_v57 = vpop.permute.xlu1 %2294  ;;  %v4601_v22 = vpop.f32.mrf.mxu0  ;;  %v3538_v19 = vrot.slane %v3169_v42, 7  ;;  %v19335_v29 = vrot.slane %v14207_v14, 7  ;;  %v3516_v58 = vrot.slane %v14190_v56, 7  ;;  %v20203_v43 = vrot.slane %v14113_v46, 1  ;;  %7464 = vmatpush1.msra.mxu1 %v5358_v54 }
 0x333   : > { %20202 = vst [vmem:[#allocation80_spill] sm:$0xff] %v14216_v57  ;;  %v14222_v4 = vmul.f32 %v14216_v57, %v20198_v60  ;;  %2484 = vperm.xlu1 %9065, %v14227_v2   ;;  %v4824_v21 = vpop.f32.mrf.mxu1  ;;  %v20204_v56 = vrot.slane %v14103_v38, 7  ;;  %7465 = vmatprep.subr.mxu1 %v19945_v61 }
 0x334   : > { %v3071_v42 = vsel %vm894_vm0, %v20203_v43, %v3070_v8  ;;  %v3557_v57 = vsel %vm1280_vm1, %v3538_v19, %v19335_v29  ;;  %v14244_v43 = vadd.f32 %v4824_v21, %v4600_v63  ;;  %7466 = vmatpush1.msra.mxu1 %v5357_v48  ;;  %v19334_v21 = vrot.slane %v14105_v18, 1  ;;  %v20213_v29 = vld [vmem:[#allocation88_spill] sm:$0xff] }
 0x335   : > { %v3539_v22 = vsel %vm1280_vm1, %v20204_v56, %v3538_v19  ;;  %v3518_v52 = vrot.slane %v3071_v42, 7  ;;  %v19338_v46 = vrot.slane %v14222_v4, 1  ;;  %v4826_v38 = vpop.f32.mrf.mxu1  ;;  %v20205_v56 = vrot.slane %v14134_v32, 7  ;;  %v9162_v32 = vld [vmem:[%s18907_s1 + $0xc8] sm:$0xff]  ;;  %7467 = vmatprep.subr.mxu1 %v19945_v61 }
 0x336   : > { %8765 = vmatmul.mubr.f32.gmra.mxu1 %v3539_v22  ;;  %v3517_v19 = vsel %vm1280_vm1, %v3498_v1, %v3516_v58  ;;  %v14264_v1 = vpop.permute.xlu0 %2451  ;;  %v20206_v22 = vrot.slane %v14086_v15, 1  ;;  %v5354_v15 = vld [vmem:[%s18912_s6 + $0x148] sm:$0xff] }
 0x337   : > { %8767 = vmatprep.mubr.f32.mxu1 %v3557_v57  ;;  %v3519_v40 = vsel %vm1280_vm1, %v20205_v56, %v3518_v52  ;;  %9066 = vset.pattern.permute.xlu1 %v20008_v62  ;;  %v2058_v54 = vpop.permute.xlu1 %2057  ;;  %v14255_v63 = vsel %vm894_vm0, %v3070_v8, %v19338_v46  ;;  %v5356_v57 = vld [vmem:[%s18912_s6 + $0x158] sm:$0xff]  ;;  %v4829_v48 = vpop.f32.mrf.mxu1  ;;  %v5355_v8 = vld [vmem:[%s18912_s6 + $0x150] sm:$0xff] }
 0x338   : > { %4977 = vmatprep.mubr.f32.mxu0 %v3519_v40  ;;  %v2139_v42 = vrot.slane %v2058_v54, 1  ;;  %2346 = vperm.xlu1 %9066, %v9162_v32   ;;  %v19333_v40 = vrot.slane %v14255_v63, 7  ;;  %v19336_v32 = vrot.slane %v14264_v1, 7 }
 0x339   : > { %4978 = vmatmul.mubr.f32.gmra.mxu0 %v3517_v19  ;;  %v4831_v56 = vpop.f32.mrf.mxu1  ;;  %7468 = vmatpush1.msra.mxu1 %v5356_v57 }
 0x33a   : > { %v14274_v38 = vsel %vm894_vm0, %v20206_v22, %v2139_v42  ;;  %v3537_v54 = vsel %vm1280_vm1, %v3518_v52, %v19333_v40  ;;  %7469 = vmatprep.subr.mxu1 %v19945_v61  ;;  %v14296_v56 = vsel %vm894_vm0, %v2139_v42, %v19334_v21 }
 0x33b   : > { %20207 = vst [vmem:[#allocation259_spill] sm:$0xff] %v14274_v38  ;;  %v14281_v19 = vmul.f32 %v14274_v38, %v20184_v16  ;;  %4982 = vmatprep.mubr.f32.mxu0 %v3537_v54  ;;  %7470 = vmatpush1.msra.mxu1 %v5355_v8  ;;  %v4380_v16 = vadd.f32 %v13941_v13, %v12602_v11  ;;  %20208 = vst [vmem:[#allocation260_spill] sm:$0xff] %v14296_v56  ;;  %v5353_v54 = vld [vmem:[%s18912_s6 + $0x140] sm:$0xff]  ;;  %v20209_v8 = vrot.slane %v13844_v33, 7 }
 0x33c   : > { %2350 = vperm.xlu1 %9066, %v14227_v2   ;;  %v2449_v22 = vpop.permute.xlu1 %2448  ;;  %7471 = vmatprep.subr.mxu1 %v19945_v61 }
 0x33d   : > { %v19337_v52 = vrot.slane %v14281_v19, 7  ;;  %v2528_v57 = vrot.slane %v2449_v22, 7  ;;  %7472 = vmatpush1.msra.mxu1 %v5354_v15  ;;  %v20212_v15 = vld [vmem:[#allocation83_spill] sm:$0xff] }
 0x33e   : > { %v4604_v11 = vpop.f32.mrf.mxu0  ;;  %7473 = vmatprep.subr.mxu1 %v19945_v61 }
 0x33f   : > { %v14304_v40 = vsel %vm1280_vm1, %v20209_v8, %v2528_v57  ;;  %v14309_v22 = vsel %vm1280_vm1, %v2528_v57, %v19336_v32  ;;  %v3535_v42 = vsel %vm1280_vm1, %v3516_v58, %v19337_v52  ;;  %v4605_v8 = vadd.f32 %v4604_v11, %v4380_v16  ;;  %v5352_v57 = vld [vmem:[%s18912_s6 + $0x138] sm:$0xff]  ;;  %7474 = vmatpush1.msra.mxu1 %v5353_v54 }
 0x340   : > { %20210 = vst [vmem:[#allocation261_spill] sm:$0xff] %v14304_v40  ;;  %20211 = vst [vmem:[#allocation262_spill] sm:$0xff] %v14309_v22  ;;  %v2611_v21 = vmul.f32 %v14304_v40, %v20212_v15  ;;  %v14319_v33 = vmul.f32 %v14309_v22, %v20213_v29  ;;  %9067 = vset.pattern.permute.xlu1 %v19813_v5  ;;  %4983 = vmatmul.mubr.f32.gmra.mxu0 %v3535_v42  ;;  %v4606_v52 = vpop.f32.mrf.mxu0  ;;  %v5351_v42 = vld [vmem:[%s18912_s6 + $0x130] sm:$0xff]  ;;  %v5350_v40 = vld [vmem:[%s18912_s6 + $0x128] sm:$0xff] }
 0x341   : > { %v14327_v58 = vmul.f32 %v14296_v56, %v20198_v60  ;;  %2099 = vperm.xlu1 %9067, %v14227_v2   ;;  %v14330_v32 = vpop.permute.xlu1 %2298  ;;  %7475 = vmatprep.subr.mxu1 %v19945_v61  ;;  %v5328_v60 = vld [vmem:[%s18912_s6 + $0x78] sm:$0xff]  ;;  %v14342_v2 = vadd.f32 %v4829_v48, %v4605_v8  ;;  %v20215_v52 = vrot.slane %v14181_v9, 2  ;;  %v5327_v48 = vld [vmem:[%s18912_s6 + $0x70] sm:$0xff] }
 0x342   : > { %20214 = vst [vmem:[#allocation83_spill] sm:$0xff] %v14330_v32  ;;  %v3172_v46 = vrot.slane %v2611_v21, 2  ;;  %v19341_v16 = vrot.slane %v14319_v33, 2  ;;  %v2386_v11 = vmul.f32 %v14330_v32, %v20199_v28  ;;  %7476 = vmatpush1.msra.mxu1 %v5352_v57  ;;  %7235 = vmatpush1.msra.mxu0 %v5328_v60  ;;  %v14372_v60 = vld [vmem:[%s18907_s1 + $0xe0] sm:$0xff] }
 0x343   : > { %7477 = vmatprep.subr.mxu1 %v19945_v61  ;;  %7236 = vmatprep.subr.mxu0 %v19945_v61  ;;  %v20576_v32 = vld [vmem:[#allocation118_spill] sm:$0xff] }
 0x344   : > { %v3074_v21 = vrot.slane %v2386_v11, 1  ;;  %v3173_v54 = vsel %vm2758_vm2, %v20215_v52, %v3172_v46  ;;  %v14350_v22 = vsel %vm2758_vm2, %v3172_v46, %v19341_v16  ;;  %7478 = vmatpush1.msra.mxu1 %v5351_v42  ;;  %v20217_v52 = vrot.slane %v14222_v4, 1  ;;  %v5349_v42 = vld [vmem:[%s18912_s6 + $0x120] sm:$0xff]  ;;  %7237 = vmatpush1.msra.mxu0 %v5327_v48 }
 0x345   : > { %9068 = vset.pattern.permute.xlu1 %v19843_v53  ;;  %v14361_v9 = vpop.permute.xlu1 %2302  ;;  %v3574_v8 = vrot.slane %v3173_v54, 7  ;;  %v19345_v46 = vrot.slane %v14350_v22, 7  ;;  %7479 = vmatprep.subr.mxu1 %v19945_v61  ;;  %v20218_v16 = vrot.slane %v14207_v14, 7  ;;  %v20220_v14 = vld [vmem:[#allocation193_spill] sm:$0xff]  ;;  %v20222_v48 = vrot.slane %v14281_v19, 7 }
 0x346   : > { %20216 = vst [vmem:[#allocation88_spill] sm:$0xff] %v14361_v9  ;;  %v14367_v11 = vmul.f32 %v14361_v9, %v20212_v15  ;;  %2490 = vperm.xlu1 %9068, %v14372_v60   ;;  %v3075_v54 = vsel %vm894_vm0, %v20217_v52, %v3074_v21  ;;  %7480 = vmatpush1.msra.mxu1 %v5350_v40  ;;  %v20219_v52 = vrot.slane %v14255_v63, 7  ;;  %v20221_v40 = vrot.slane %v14327_v58, 7  ;;  %v9164_v19 = vld [vmem:[%s18907_s1 + $0xd8] sm:$0xff] }
 0x347   : > { %v3575_v57 = vsel %vm1280_vm1, %v20218_v16, %v3574_v8  ;;  %v3593_v56 = vsel %vm1280_vm1, %v3574_v8, %v19345_v46  ;;  %v3554_v38 = vrot.slane %v3075_v54, 7  ;;  %7481 = vmatprep.subr.mxu1 %v19945_v61  ;;  %v4385_v16 = vadd.f32 %v13941_v13, %v20220_v14  ;;  %v5326_v54 = vld [vmem:[%s18912_s6 + $0x68] sm:$0xff]  ;;  %7238 = vmatprep.subr.mxu0 %v19945_v61 }
 0x348   : > { %v19347_v4 = vrot.slane %v14367_v11, 1  ;;  %8768 = vmatmul.mubr.f32.gmra.mxu1 %v3575_v57  ;;  %v3553_v57 = vsel %vm1280_vm1, %v20222_v48, %v20221_v40  ;;  %v20223_v40 = vrot.slane %v14105_v18, 1  ;;  %7239 = vmatpush1.msra.mxu0 %v5326_v54  ;;  %v19349_v18 = vrot.slane %v14136_v3, 1 }
 0x349   : > { %8770 = vmatprep.mubr.f32.mxu1 %v3593_v56  ;;  %v3555_v9 = vsel %vm1280_vm1, %v20219_v52, %v3554_v38  ;;  %7482 = vmatpush1.msra.mxu1 %v5349_v42  ;;  %v5348_v56 = vld [vmem:[%s18912_s6 + $0x118] sm:$0xff] }
 0x34a   : > { %9069 = vset.pattern.permute.xlu1 %v20008_v62  ;;  %v2064_v8 = vpop.permute.xlu1 %2063  ;;  %4987 = vmatprep.mubr.f32.mxu0 %v3555_v9  ;;  %v14404_v63 = vsel %vm894_vm0, %v3074_v21, %v19347_v4  ;;  %v4609_v42 = vpop.f32.mrf.mxu0  ;;  %v20230_v4 = vld [vmem:[#allocation90_spill] sm:$0xff] }
 0x34b   : > { %v2143_v9 = vrot.slane %v2064_v8, 1  ;;  %2354 = vperm.xlu1 %9069, %v9164_v19   ;;  %4988 = vmatmul.mubr.f32.gmra.mxu0 %v3553_v57  ;;  %v19346_v52 = vrot.slane %v14404_v63, 7  ;;  %v14416_v21 = vpop.permute.xlu0 %2457  ;;  %v4610_v14 = vadd.f32 %v4609_v42, %v4385_v16  ;;  %v5347_v16 = vld [vmem:[%s18912_s6 + $0x110] sm:$0xff]  ;;  %v5325_v19 = vld [vmem:[%s18912_s6 + $0x60] sm:$0xff] }
 0x34c   : > { %7483 = vmatprep.subr.mxu1 %v19945_v61  ;;  %v4611_v48 = vpop.f32.mrf.mxu0  ;;  %v4834_v46 = vpop.f32.mrf.mxu1  ;;  %7240 = vmatprep.subr.mxu0 %v19945_v61 }
 0x34d   : > { %v14423_v8 = vsel %vm894_vm0, %v20223_v40, %v2143_v9  ;;  %v3573_v57 = vsel %vm1280_vm1, %v3554_v38, %v19346_v52  ;;  %7484 = vmatpush1.msra.mxu1 %v5348_v56  ;;  %v14439_v40 = vadd.f32 %v4834_v46, %v4610_v14  ;;  %v19348_v38 = vrot.slane %v14416_v21, 7  ;;  %v5346_v48 = vld [vmem:[%s18912_s6 + $0x108] sm:$0xff]  ;;  %7241 = vmatpush1.msra.mxu0 %v5325_v19  ;;  %v5324_v46 = vld [vmem:[%s18912_s6 + $0x58] sm:$0xff] }
 0x34e   : > { %20224 = vst [vmem:[#allocation193_spill] sm:$0xff] %v14423_v8  ;;  %v14437_v42 = vmul.f32 %v14423_v8, %v20199_v28  ;;  %4992 = vmatprep.mubr.f32.mxu0 %v3573_v57  ;;  %7485 = vmatprep.subr.mxu1 %v19945_v61  ;;  %v4836_v54 = vpop.f32.mrf.mxu1  ;;  %v14457_v14 = vsel %vm894_vm0, %v2143_v9, %v19349_v18  ;;  %v20226_v57 = vrot.slane %v14264_v1, 7  ;;  %v20229_v19 = vrot.slane %v14327_v58, 7  ;;  %v5323_v58 = vld [vmem:[%s18912_s6 + $0x50] sm:$0xff] }
 0x34f   : > { %2358 = vperm.xlu1 %9069, %v14372_v60   ;;  %v2455_v56 = vpop.permute.xlu1 %2454  ;;  %7486 = vmatpush1.msra.mxu1 %v5347_v16  ;;  %20225 = vst [vmem:[#allocation263_spill] sm:$0xff] %v14457_v14 }
 0x350   : > { %v19350_v28 = vrot.slane %v14437_v42, 7  ;;  %v2532_v52 = vrot.slane %v2455_v56, 7  ;;  %7487 = vmatprep.subr.mxu1 %v19945_v61  ;;  %7242 = vmatprep.subr.mxu0 %v19945_v61 }
 0x351   : > { %7488 = vmatpush1.msra.mxu1 %v5346_v48  ;;  %7243 = vmatpush1.msra.mxu0 %v5324_v46  ;;  %v20232_v46 = vld [vmem:[#allocation194_spill] sm:$0xff] }
 0x352   : > { %v14462_v54 = vsel %vm1280_vm1, %v20226_v57, %v2532_v52  ;;  %v14467_v16 = vsel %vm1280_vm1, %v2532_v52, %v19348_v38  ;;  %v3571_v56 = vsel %vm1280_vm1, %v20229_v19, %v19350_v28  ;;  %v5345_v52 = vld [vmem:[%s18912_s6 + $0x100] sm:$0xff]  ;;  %v14492_v57 = vmul.f32 %v14457_v14, %v20212_v15  ;;  %7489 = vmatprep.subr.mxu1 %v19945_v61  ;;  %v5322_v15 = vld [vmem:[%s18912_s6 + $0x48] sm:$0xff] }
 0x353   : > { %20227 = vst [vmem:[#allocation264_spill] sm:$0xff] %v14462_v54  ;;  %20228 = vst [vmem:[#allocation265_spill] sm:$0xff] %v14467_v16  ;;  %v2613_v9 = vmul.f32 %v14462_v54, %v20230_v4  ;;  %v14478_v1 = vmul.f32 %v14467_v16, %v19931_v39  ;;  %9071 = vset.pattern.permute.xlu1 %v19813_v5  ;;  %4993 = vmatmul.mubr.f32.gmra.mxu0 %v3571_v56  ;;  %v20233_v28 = vrot.slane %v14319_v33, 2  ;;  %v5321_v33 = vld [vmem:[%s18912_s6 + $0x40] sm:$0xff] }
 0x354   : > { %2105 = vperm.xlu1 %9071, %v14372_v60   ;;  %v14488_v48 = vpop.permute.xlu1 %2306  ;;  %7244 = vmatprep.subr.mxu0 %v19945_v61  ;;  %v5376_v60 = vld [vmem:[%s18912_s6 + $0x1f8] sm:$0xff]  ;;  %v20237_v14 = vrot.slane %v14350_v22, 7 }
 0x355   : > { %20231 = vst [vmem:[#allocation90_spill] sm:$0xff] %v14488_v48  ;;  %v3176_v19 = vrot.slane %v2613_v9, 2  ;;  %v2388_v38 = vmul.f32 %v14488_v48, %v20213_v29  ;;  %7490 = vmatpush1.msra.mxu1 %v5345_v52  ;;  %7245 = vmatpush1.msra.mxu0 %v5323_v58  ;;  %v4390_v9 = vadd.f32 %v13941_v13, %v20232_v46  ;;  %v20234_v16 = vrot.slane %v14478_v1, 2 }
 0x356   : > { %7491 = vmatprep.subr.mxu1 %v19945_v61  ;;  %7246 = vmatprep.subr.mxu0 %v19945_v61 }
 0x357   : > { %v3078_v18 = vrot.slane %v2388_v38, 1  ;;  %v3177_v56 = vsel %vm2758_vm2, %v20233_v28, %v3176_v19  ;;  %v14513_v54 = vsel %vm2758_vm2, %v3176_v19, %v20234_v16  ;;  %v4614_v58 = vpop.f32.mrf.mxu0  ;;  %7492 = vmatpush2.msra.mxu1 %v5376_v60  ;;  %7247 = vmatpush1.msra.mxu0 %v5322_v15  ;;  %v5375_v28 = vld [vmem:[%s18912_s6 + $0x1f0] sm:$0xff] }
 0x358   : > { %9072 = vset.pattern.permute.xlu1 %v19843_v53  ;;  %v14518_v52 = vpop.permute.xlu1 %2310  ;;  %v3610_v46 = vrot.slane %v3177_v56, 7  ;;  %v4615_v19 = vadd.f32 %v4614_v58, %v4390_v9  ;;  %v14532_v53 = vld [vmem:[%s18907_s1 + $0xf0] sm:$0xff]  ;;  %v20236_v56 = vrot.slane %v14367_v11, 1  ;;  %v20238_v58 = vrot.slane %v14513_v54, 7  ;;  %7493 = vmatprep.subr.mxu1 %v19945_v61 }
 0x359   : > { %20235 = vst [vmem:[#allocation194_spill] sm:$0xff] %v14518_v52  ;;  %v14527_v16 = vmul.f32 %v14518_v52, %v20230_v4  ;;  %2496 = vperm.xlu1 %9072, %v14532_v53   ;;  %v4616_v38 = vpop.f32.mrf.mxu0  ;;  %7248 = vmatprep.subr.mxu0 %v19945_v61 }
 0x35a   : > { %v3079_v60 = vsel %vm894_vm0, %v20236_v56, %v3078_v18  ;;  %v3611_v9 = vsel %vm1280_vm1, %v20237_v14, %v3610_v46  ;;  %v3629_v52 = vsel %vm1280_vm1, %v3610_v46, %v20238_v58  ;;  %7249 = vmatpush1.msra.mxu0 %v5321_v33  ;;  %v20239_v38 = vrot.slane %v14404_v63, 7  ;;  %7494 = vmatpush2.msra.mxu1 %v5375_v28  ;;  %v5374_v63 = vld [vmem:[%s18912_s6 + $0x1e8] sm:$0xff]  ;;  %v5320_v33 = vld [vmem:[%s18912_s6 + $0x38] sm:$0xff] }
 0x35b   : > { %v3590_v48 = vrot.slane %v3079_v60, 7  ;;  %v19360_v11 = vrot.slane %v14527_v16, 1  ;;  %8771 = vmatmul.mubr.f32.gmra.mxu1 %v3611_v9  ;;  %v4839_v15 = vpop.f32.mrf.mxu1  ;;  %v20240_v56 = vrot.slane %v14492_v57, 7  ;;  %v20241_v60 = vrot.slane %v14437_v42, 7  ;;  %v9166_v42 = vld [vmem:[%s18907_s1 + $0xe8] sm:$0xff]  ;;  %7495 = vmatprep.subr.mxu1 %v19945_v61 }
 0x35c   : > { %8773 = vmatprep.mubr.f32.mxu1 %v3629_v52  ;;  %v14553_v14 = vadd.f32 %v4839_v15, %v4615_v19  ;;  %7250 = vmatprep.subr.mxu0 %v19945_v61  ;;  %v19357_v15 = vrot.slane %v14159_v12, 1 }
 0x35d   : > { %v3591_v22 = vsel %vm1280_vm1, %v20239_v38, %v3590_v48  ;;  %9073 = vset.pattern.permute.xlu1 %v20008_v62  ;;  %v2070_v46 = vpop.permute.xlu1 %2069  ;;  %v3589_v9 = vsel %vm1280_vm1, %v20241_v60, %v20240_v56  ;;  %v14564_v52 = vsel %vm894_vm0, %v3078_v18, %v19360_v11  ;;  %v4841_v19 = vpop.f32.mrf.mxu1  ;;  %v20242_v38 = vrot.slane %v14136_v3, 1  ;;  %7496 = vmatpush2.msra.mxu1 %v5374_v63  ;;  %v5373_v60 = vld [vmem:[%s18912_s6 + $0x1e0] sm:$0xff] }
 0x35e   : > { %4997 = vmatprep.mubr.f32.mxu0 %v3591_v22  ;;  %v2147_v28 = vrot.slane %v2070_v46, 1  ;;  %2362 = vperm.xlu1 %9073, %v9166_v42   ;;  %v19356_v58 = vrot.slane %v14564_v52, 7  ;;  %v14576_v18 = vpop.permute.xlu0 %2463  ;;  %v20251_v11 = vrot.slane %v14478_v1, 2 }
 0x35f   : > { %4998 = vmatmul.mubr.f32.gmra.mxu0 %v3589_v9  ;;  %v4844_v46 = vpop.f32.mrf.mxu1  ;;  %v5319_v9 = vld [vmem:[%s18912_s6 + $0x30] sm:$0xff]  ;;  %v19358_v42 = vrot.slane %v14576_v18, 7  ;;  %7497 = vmatprep.subr.mxu1 %v19945_v61 }
 0x360   : > { %v14584_v22 = vsel %vm894_vm0, %v20242_v38, %v2147_v28  ;;  %v3609_v56 = vsel %vm1280_vm1, %v3590_v48, %v19356_v58  ;;  %7251 = vmatpush1.msra.mxu0 %v5320_v33  ;;  %v5372_v33 = vld [vmem:[%s18912_s6 + $0x1d8] sm:$0xff]  ;;  %7498 = vmatpush2.msra.mxu1 %v5373_v60 }
 0x361   : > { %20243 = vst [vmem:[#allocation266_spill] sm:$0xff] %v14584_v22  ;;  %v14597_v3 = vmul.f32 %v14584_v22, %v20213_v29  ;;  %5002 = vmatprep.mubr.f32.mxu0 %v3609_v56  ;;  %v4846_v63 = vpop.f32.mrf.mxu1  ;;  %7252 = vmatprep.subr.mxu0 %v19945_v61  ;;  %v14610_v29 = vsel %vm894_vm0, %v2147_v28, %v19357_v15  ;;  %v5318_v56 = vld [vmem:[%s18912_s6 + $0x28] sm:$0xff]  ;;  %v20248_v28 = vrot.slane %v14492_v57, 7  ;;  %v5371_v57 = vld [vmem:[%s18912_s6 + $0x1d0] sm:$0xff] }
 0x362   : > { %2366 = vperm.xlu1 %9073, %v14532_v53   ;;  %v2461_v48 = vpop.permute.xlu1 %2460  ;;  %7253 = vmatpush1.msra.mxu0 %v5319_v9  ;;  %20244 = vst [vmem:[#allocation267_spill] sm:$0xff] %v14610_v29  ;;  %v20245_v63 = vrot.slane %v14416_v21, 7 }
 0x363   : > { %v19359_v19 = vrot.slane %v14597_v3, 7  ;;  %v2536_v38 = vrot.slane %v2461_v48, 7  ;;  %7499 = vmatprep.subr.mxu1 %v19945_v61  ;;  %7254 = vmatprep.subr.mxu0 %v19945_v61  ;;  %v20249_v48 = vld [vmem:[#allocation101_spill] sm:$0xff] }
 0x364   : > { %7500 = vmatpush2.msra.mxu1 %v5372_v33  ;;  %v4395_v15 = vadd.f32 %v13941_v13, %v20249_v48  ;;  %v5317_v33 = vld [vmem:[%s18912_s6 + $0x20] sm:$0xff]  ;;  %v14649_v13 = vmul.f32 %v14610_v29, %v20230_v4  ;;  %7255 = vmatpush1.msra.mxu0 %v5318_v56  ;;  %v5370_v4 = vld [vmem:[%s18912_s6 + $0x1c8] sm:$0xff]  ;;  %v5316_v56 = vld [vmem:[%s18912_s6 + $0x18] sm:$0xff] }
 0x365   : > { %v14620_v58 = vsel %vm1280_vm1, %v20245_v63, %v2536_v38  ;;  %v14625_v60 = vsel %vm1280_vm1, %v2536_v38, %v19358_v42  ;;  %v3607_v9 = vsel %vm1280_vm1, %v20248_v28, %v19359_v19  ;;  %7501 = vmatprep.subr.mxu1 %v19945_v61  ;;  %7256 = vmatprep.subr.mxu0 %v19945_v61 }
 0x366   : > { %20246 = vst [vmem:[#allocation268_spill] sm:$0xff] %v14620_v58  ;;  %20247 = vst [vmem:[#allocation269_spill] sm:$0xff] %v14625_v60  ;;  %v2615_v21 = vmul.f32 %v14620_v58, %v19932_v50  ;;  %v14638_v63 = vmul.f32 %v14625_v60, %v19962_v36  ;;  %9075 = vset.pattern.permute.xlu1 %v19813_v5  ;;  %5003 = vmatmul.mubr.f32.gmra.mxu0 %v3607_v9  ;;  %v4619_v28 = vpop.f32.mrf.mxu0 }
 0x367   : > { %2111 = vperm.xlu1 %9075, %v14532_v53   ;;  %v14652_v38 = vpop.permute.xlu1 %2314  ;;  %v4620_v19 = vadd.f32 %v4619_v28, %v4395_v15  ;;  %7502 = vmatpush2.msra.mxu1 %v5371_v57 }
 0x368   : > { %20250 = vst [vmem:[#allocation101_spill] sm:$0xff] %v14652_v38  ;;  %v3180_v48 = vrot.slane %v2615_v21, 2  ;;  %v19361_v9 = vrot.slane %v14638_v63, 2  ;;  %v2390_v42 = vmul.f32 %v14652_v38, %v19931_v39  ;;  %v4621_v53 = vpop.f32.mrf.mxu0  ;;  %7257 = vmatpush1.msra.mxu0 %v5317_v33  ;;  %7503 = vmatprep.subr.mxu1 %v19945_v61 }
 0x369   : > { %7258 = vmatprep.subr.mxu0 %v19945_v61  ;;  %v14675_v57 = vadd.f32 %v4844_v46, %v4620_v19  ;;  %7504 = vmatpush2.msra.mxu1 %v5370_v4  ;;  %v20253_v46 = vrot.slane %v14527_v16, 1  ;;  %v5369_v4 = vld [vmem:[%s18912_s6 + $0x1c0] sm:$0xff] }
 0x36a   : > { %v3082_v21 = vrot.slane %v2390_v42, 1  ;;  %v3181_v15 = vsel %vm2758_vm2, %v20251_v11, %v3180_v48  ;;  %v14671_v28 = vsel %vm2758_vm2, %v3180_v48, %v19361_v9  ;;  %v5315_v11 = vld [vmem:[%s18912_s6 + $0x10] sm:$0xff]  ;;  %7259 = vmatpush1.msra.mxu0 %v5316_v56  ;;  %7505 = vmatprep.subr.mxu1 %v19945_v61  ;;  %v20255_v56 = vrot.slane %v14564_v52, 7  ;;  %v5368_v52 = vld [vmem:[%s18912_s6 + $0x1b8] sm:$0xff] }
 0x36b   : > { %9077 = vset.pattern.permute.xlu1 %v20008_v62  ;;  %v14678_v33 = vpop.permute.xlu1 %2318  ;;  %v3646_v42 = vrot.slane %v3181_v15, 7  ;;  %v19363_v1 = vrot.slane %v14671_v28, 7  ;;  %v9167_v62 = vld [vmem:[%s18907_s1 + $0xf8] sm:$0xff]  ;;  %v20254_v15 = vrot.slane %v14513_v54, 7  ;;  %7260 = vmatprep.subr.mxu0 %v19945_v61 }
 0x36c   : > { %20252 = vst [vmem:[#allocation270_spill] sm:$0xff] %v14678_v33  ;;  %v14687_v53 = vmul.f32 %v14678_v33, %v19932_v50  ;;  %2370 = vperm.xlu1 %9077, %v9167_v62   ;;  %v3083_v19 = vsel %vm894_vm0, %v20253_v46, %v3082_v21  ;;  %7261 = vmatpush1.msra.mxu0 %v5315_v11 }
 0x36d   : > { %v3647_v9 = vsel %vm1280_vm1, %v20254_v15, %v3646_v42  ;;  %v3665_v48 = vsel %vm1280_vm1, %v3646_v42, %v19363_v1  ;;  %v3626_v60 = vrot.slane %v3083_v19, 7  ;;  %7506 = vmatpush2.msra.mxu1 %v5369_v4  ;;  %v20256_v42 = vrot.slane %v14649_v13, 7  ;;  %v20258_v4 = vld [vmem:[#allocation198_spill] sm:$0xff]  ;;  %7262 = vmatprep.subr.mxu0 %v19945_v61 }
 0x36e   : > { %v19365_v16 = vrot.slane %v14687_v53, 1  ;;  %8774 = vmatmul.mubr.f32.gmra.mxu1 %v3647_v9  ;;  %v20257_v19 = vrot.slane %v14597_v3, 7  ;;  %7507 = vmatprep.subr.mxu1 %v19945_v61 }
 0x36f   : > { %8776 = vmatprep.mubr.f32.mxu1 %v3665_v48  ;;  %v3627_v54 = vsel %vm1280_vm1, %v20255_v56, %v3626_v60  ;;  %v14728_v48 = vpop.permute.xlu0 %2469  ;;  %7508 = vmatpush2.msra.mxu1 %v5368_v52 }
 0x370   : > { %9078 = vset.pattern.permute.xlu1 %v19813_v5  ;;  %v2076_v46 = vpop.permute.xlu1 %2075  ;;  %5007 = vmatprep.mubr.f32.mxu0 %v3627_v54  ;;  %v3625_v15 = vsel %vm1280_vm1, %v20257_v19, %v20256_v42  ;;  %v14719_v9 = vsel %vm894_vm0, %v3082_v21, %v19365_v16  ;;  %v5314_v5 = vld [vmem:[%s18912_s6 + $0x8] sm:$0xff]  ;;  %v14733_v21 = vld [vmem:[%s18911_s5] ss:$0 sm:$0xff]  ;;  %v20259_v54 = vrot.slane %v14159_v12, 1 }
 0x371   : > { %v2151_v11 = vrot.slane %v2076_v46, 1  ;;  %2114 = vperm.xlu1 %9078, %v9167_v62   ;;  %5008 = vmatmul.mubr.f32.gmra.mxu0 %v3625_v15  ;;  %v19364_v3 = vrot.slane %v14719_v9, 7  ;;  %v4400_v56 = vadd.f32 %v14733_v21, %v20258_v4  ;;  %v5367_v62 = vld [vmem:[%s18912_s6 + $0x1b0] sm:$0xff]  ;;  %v5313_v15 = vld [vmem:[%s18912_s6] sm:$0xff]  ;;  %v19368_v4 = vrot.slane %v14209_v25, 1 }
 0x372   : > { %v4624_v42 = vpop.f32.mrf.mxu0  ;;  %7263 = vmatpush1.msra.mxu0 %v5314_v5  ;;  %7509 = vmatprep.subr.mxu1 %v19945_v61 }
 0x373   : > { %v14745_v46 = vsel %vm894_vm0, %v20259_v54, %v2151_v11  ;;  %v3645_v19 = vsel %vm1280_vm1, %v3626_v60, %v19364_v3  ;;  %v4625_v12 = vadd.f32 %v4624_v42, %v4400_v56  ;;  %v19367_v54 = vrot.slane %v14728_v48, 7  ;;  %v5366_v60 = vld [vmem:[%s18912_s6 + $0x1a8] sm:$0xff]  ;;  %7264 = vmatprep.subr.mxu0 %v19945_v61  ;;  %7510 = vmatpush2.msra.mxu1 %v5367_v62  ;;  %v14771_v16 = vpop.permute.xlu0 %2475  ;;  %v5365_v62 = vld [vmem:[%s18912_s6 + $0x1a0] sm:$0xff] }
 0x374   : > { %20260 = vst [vmem:[#allocation198_spill] sm:$0xff] %v14745_v46  ;;  %v14756_v1 = vmul.f32 %v14745_v46, %v19931_v39  ;;  %5012 = vmatprep.mubr.f32.mxu0 %v3645_v19  ;;  %v4626_v5 = vpop.f32.mrf.mxu0  ;;  %v5344_v39 = vld [vmem:[%s18912_s6 + $0xf8] sm:$0xff]  ;;  %v4849_v19 = vpop.f32.mrf.mxu1  ;;  %7265 = vmatpush1.msra.mxu0 %v5313_v15  ;;  %v20262_v15 = vrot.slane %v14576_v18, 7  ;;  %v5343_v18 = vld [vmem:[%s18912_s6 + $0xf0] sm:$0xff]  ;;  %v20271_v46 = vrot.slane %v14671_v28, 7 }
 0x375   : > { %v2467_v52 = vpop.permute.xlu1 %2466  ;;  %7511 = vmatprep.subr.mxu1 %v19945_v61  ;;  %v14769_v3 = vadd.f32 %v4849_v19, %v4625_v12  ;;  %7266 = vmatprep.subr.mxu0 %v19945_v61  ;;  %v14780_v5 = vsel %vm894_vm0, %v2151_v11, %v19368_v4  ;;  %v20265_v19 = vrot.slane %v14649_v13, 7  ;;  %v5364_v13 = vld [vmem:[%s18912_s6 + $0x198] sm:$0xff] }
 0x376   : > { %v19369_v56 = vrot.slane %v14756_v1, 7  ;;  %v2540_v42 = vrot.slane %v2467_v52, 7  ;;  %7512 = vmatpush2.msra.mxu1 %v5366_v60  ;;  %20261 = vst [vmem:[#allocation271_spill] sm:$0xff] %v14780_v5  ;;  %v4851_v60 = vpop.f32.mrf.mxu1  ;;  %7267 = vmatpush2.msra.mxu0 %v5344_v39  ;;  %v5342_v39 = vld [vmem:[%s18912_s6 + $0xe8] sm:$0xff] }
 0x377   : > { %7513 = vmatprep.subr.mxu1 %v19945_v61  ;;  %7268 = vmatprep.subr.mxu0 %v19945_v61  ;;  %v14818_v60 = vmul.f32 %v14780_v5, %v19932_v50  ;;  %v5341_v50 = vld [vmem:[%s18912_s6 + $0xe0] sm:$0xff]  ;;  %v14831_v4 = vpop.permute.xlu0 %2481 }
 0x378   : > { %v14785_v52 = vsel %vm1280_vm1, %v20262_v15, %v2540_v42  ;;  %v14790_v12 = vsel %vm1280_vm1, %v2540_v42, %v19367_v54  ;;  %v3643_v58 = vsel %vm1280_vm1, %v20265_v19, %v19369_v56  ;;  %7514 = vmatpush2.msra.mxu1 %v5365_v62  ;;  %7269 = vmatpush2.msra.mxu0 %v5343_v18  ;;  %v5363_v62 = vld [vmem:[%s18912_s6 + $0x190] sm:$0xff]  ;;  %v20267_v56 = vrot.slane %v14638_v63, 2  ;;  %v5340_v63 = vld [vmem:[%s18912_s6 + $0xd8] sm:$0xff] }
 0x379   : > { %20263 = vst [vmem:[#allocation272_spill] sm:$0xff] %v14785_v52  ;;  %20264 = vst [vmem:[#allocation273_spill] sm:$0xff] %v14790_v12  ;;  %v2617_v11 = vmul.f32 %v14785_v52, %v19989_v44  ;;  %v14804_v15 = vmul.f32 %v14790_v12, %v19990_v23  ;;  %5013 = vmatmul.mubr.f32.gmra.mxu0 %v3643_v58  ;;  %7515 = vmatprep.subr.mxu1 %v19945_v61 }
 0x37a   : > { %v14810_v42 = vpop.permute.xlu1 %2322  ;;  %7270 = vmatprep.subr.mxu0 %v19945_v61  ;;  %7516 = vmatpush2.msra.mxu1 %v5364_v13  ;;  %v5362_v13 = vld [vmem:[%s18912_s6 + $0x188] sm:$0xff] }
 0x37b   : > { %20266 = vst [vmem:[#allocation274_spill] sm:$0xff] %v14810_v42  ;;  %v3184_v58 = vrot.slane %v2617_v11, 2  ;;  %v19373_v19 = vrot.slane %v14804_v15, 2  ;;  %v2392_v54 = vmul.f32 %v14810_v42, %v19962_v36  ;;  %7271 = vmatpush2.msra.mxu0 %v5342_v39  ;;  %7517 = vmatprep.subr.mxu1 %v19945_v61 }
 0x37c   : > { %7272 = vmatprep.subr.mxu0 %v19945_v61  ;;  %7518 = vmatpush2.msra.mxu1 %v5363_v62 }
 0x37d   : > { %v3086_v11 = vrot.slane %v2392_v54, 1  ;;  %v3185_v18 = vsel %vm2758_vm2, %v20267_v56, %v3184_v58  ;;  %v14839_v12 = vsel %vm2758_vm2, %v3184_v58, %v19373_v19  ;;  %v20269_v56 = vld [vmem:[#allocation113_spill] sm:$0xff]  ;;  %7273 = vmatpush2.msra.mxu0 %v5341_v50  ;;  %7519 = vmatprep.subr.mxu1 %v19945_v61  ;;  %v5361_v50 = vld [vmem:[%s18912_s6 + $0x180] sm:$0xff] }
 0x37e   : > { %v14845_v52 = vpop.permute.xlu1 %2326  ;;  %v3682_v54 = vrot.slane %v3185_v18, 7  ;;  %v4405_v39 = vadd.f32 %v14733_v21, %v20269_v56  ;;  %v20270_v18 = vrot.slane %v14687_v53, 1  ;;  %v20272_v56 = vrot.slane %v14839_v12, 7  ;;  %7274 = vmatprep.subr.mxu0 %v19945_v61  ;;  %7520 = vmatpush2.msra.mxu1 %v5362_v13  ;;  %v20274_v13 = vld [vmem:[#allocation202_spill] sm:$0xff] }
 0x37f   : > { %20268 = vst [vmem:[#allocation275_spill] sm:$0xff] %v14845_v52  ;;  %v14857_v19 = vmul.f32 %v14845_v52, %v19989_v44  ;;  %7275 = vmatpush2.msra.mxu0 %v5340_v63  ;;  %7521 = vmatprep.subr.mxu1 %v19945_v61 }
 0x380   : > { %v3087_v5 = vsel %vm894_vm0, %v20270_v18, %v3086_v11  ;;  %v4629_v62 = vpop.f32.mrf.mxu0  ;;  %v3683_v42 = vsel %vm1280_vm1, %v20271_v46, %v3682_v54  ;;  %v3701_v58 = vsel %vm1280_vm1, %v3682_v54, %v20272_v56  ;;  %v20273_v46 = vrot.slane %v14719_v9, 7  ;;  %v14883_v54 = vpop.permute.xlu0 %2084  ;;  %7276 = vmatprep.subr.mxu0 %v19945_v61  ;;  %7522 = vmatpush2.msra.mxu1 %v5361_v50 }
 0x381   : > { %v3662_v33 = vrot.slane %v3087_v5, 7  ;;  %v3088_v53 = vrot.slane %v14857_v19, 1  ;;  %v4630_v52 = vadd.f32 %v4629_v62, %v4405_v39  ;;  %8777 = vmatmul.mubr.f32.gmra.mxu1 %v3683_v42  ;;  %v5339_v5 = vld [vmem:[%s18912_s6 + $0xd0] sm:$0xff]  ;;  %v4410_v42 = vadd.f32 %v14733_v21, %v20274_v13  ;;  %7909 = vmatprep.subr.mxu1 %v19945_v61 }
 0x382   : > { %v4631_v28 = vpop.f32.mrf.mxu0  ;;  %8779 = vmatprep.mubr.f32.mxu1 %v3701_v58  ;;  %v20275_v39 = vrot.slane %v14818_v60, 7  ;;  %v20276_v58 = vrot.slane %v14756_v1, 7  ;;  %v5338_v1 = vld [vmem:[%s18912_s6 + $0xc8] sm:$0xff]  ;;  %7277 = vmatpush2.msra.mxu0 %v5339_v5  ;;  %v19378_v5 = vrot.slane %v14771_v16, 7 }
 0x383   : > { %v3663_v18 = vsel %vm1280_vm1, %v20273_v46, %v3662_v33  ;;  %v2082_v63 = vpop.permute.xlu1 %2081  ;;  %v14893_v62 = vsel %vm894_vm0, %v3086_v11, %v3088_v53  ;;  %v4854_v21 = vpop.f32.mrf.mxu1  ;;  %v20277_v11 = vrot.slane %v14209_v25, 1  ;;  %7278 = vmatprep.subr.mxu0 %v19945_v61 }
 0x384   : > { %5017 = vmatprep.mubr.f32.mxu0 %v3663_v18  ;;  %v3661_v9 = vsel %vm1280_vm1, %v20276_v58, %v20275_v39  ;;  %v2155_v56 = vrot.slane %v2082_v63, 1  ;;  %v4634_v28 = vpop.f32.mrf.mxu0  ;;  %v19380_v46 = vrot.slane %v14893_v62, 7  ;;  %v14900_v13 = vadd.f32 %v4854_v21, %v4630_v52  ;;  %v5337_v52 = vld [vmem:[%s18912_s6 + $0xc0] sm:$0xff]  ;;  %7279 = vmatpush2.msra.mxu0 %v5338_v1 }
 0x385   : > { %5018 = vmatmul.mubr.f32.gmra.mxu0 %v3661_v9  ;;  %v4635_v18 = vadd.f32 %v4634_v28, %v4410_v42  ;;  %v4856_v58 = vpop.f32.mrf.mxu1  ;;  %v19379_v42 = vrot.slane %v14883_v54, 1  ;;  %7280 = vmatprep.subr.mxu0 %v19945_v61 }
 0x386   : > { %v14906_v63 = vsel %vm894_vm0, %v20277_v11, %v2155_v56  ;;  %v4636_v39 = vpop.f32.mrf.mxu0  ;;  %v3681_v50 = vsel %vm1280_vm1, %v3662_v33, %v19380_v46  ;;  %v5336_v33 = vld [vmem:[%s18912_s6 + $0xb8] sm:$0xff]  ;;  %7281 = vmatpush2.msra.mxu0 %v5337_v52  ;;  %v20283_v52 = vrot.slane %v14818_v60, 7 }
 0x387   : > { %20278 = vst [vmem:[#allocation113_spill] sm:$0xff] %v14906_v63  ;;  %v2232_v25 = vmul.f32 %v14906_v63, %v19962_v36  ;;  %5022 = vmatprep.mubr.f32.mxu0 %v3681_v50  ;;  %v4859_v28 = vpop.f32.mrf.mxu1  ;;  %7282 = vmatprep.subr.mxu0 %v19945_v61  ;;  %v5335_v36 = vld [vmem:[%s18912_s6 + $0xb0] sm:$0xff]  ;;  %v14932_v1 = vsel %vm894_vm0, %v2155_v56, %v19379_v42  ;;  %v20280_v50 = vrot.slane %v14728_v48, 7  ;;  %v5334_v48 = vld [vmem:[%s18912_s6 + $0xa8] sm:$0xff] }
 0x388   : > { %v2473_v9 = vpop.permute.xlu1 %2472  ;;  %v14923_v39 = vadd.f32 %v4859_v28, %v4635_v18  ;;  %20279 = vst [vmem:[#allocation202_spill] sm:$0xff] %v14932_v1  ;;  %7283 = vmatpush2.msra.mxu0 %v5336_v33  ;;  %v14961_v60 = vmul.f32 %v14932_v1, %v19989_v44 }
 0x389   : > { %v3678_v21 = vrot.slane %v2232_v25, 7  ;;  %v2544_v11 = vrot.slane %v2473_v9, 7  ;;  %v4861_v58 = vpop.f32.mrf.mxu1  ;;  %7284 = vmatprep.subr.mxu0 %v19945_v61 }
 0x38a   : > { %7285 = vmatpush2.msra.mxu0 %v5335_v36  ;;  %v20285_v36 = vrot.slane %v14804_v15, 2  ;;  %v3696_v15 = vrot.slane %v14961_v60, 7 }
 0x38b   : > { %v14937_v25 = vsel %vm1280_vm1, %v20280_v50, %v2544_v11  ;;  %v14942_v18 = vsel %vm1280_vm1, %v2544_v11, %v19378_v5  ;;  %v3679_v9 = vsel %vm1280_vm1, %v20283_v52, %v3678_v21  ;;  %7286 = vmatprep.subr.mxu0 %v19945_v61  ;;  %v5333_v52 = vld [vmem:[%s18912_s6 + $0xa0] sm:$0xff] }
 0x38c   : > { %20281 = vst [vmem:[#allocation276_spill] sm:$0xff] %v14937_v25  ;;  %20282 = vst [vmem:[#allocation277_spill] sm:$0xff] %v14942_v18  ;;  %v2619_v28 = vmul.f32 %v14937_v25, %v20017_v49  ;;  %v14951_v56 = vmul.f32 %v14942_v18, %v11013_v55  ;;  %5023 = vmatmul.mubr.f32.gmra.mxu0 %v3679_v9 }
 0x38d   : > { %v14957_v11 = vpop.permute.xlu1 %2330  ;;  %7287 = vmatpush2.msra.mxu0 %v5334_v48 }
 0x38e   : > { %20284 = vst [vmem:[#allocation278_spill] sm:$0xff] %v14957_v11  ;;  %v3188_v33 = vrot.slane %v2619_v28, 2  ;;  %v19381_v58 = vrot.slane %v14951_v56, 2  ;;  %v2394_v50 = vmul.f32 %v14957_v11, %v19990_v23  ;;  %7288 = vmatprep.subr.mxu0 %v19945_v61  ;;  %v5332_v28 = vld [vmem:[%s18912_s6 + $0x98] sm:$0xff] }
 0x38f   : > { %7289 = vmatpush2.msra.mxu0 %v5333_v52 }
 0x390   : > { %v3090_v9 = vrot.slane %v2394_v50, 1  ;;  %v3189_v5 = vsel %vm2758_vm2, %v20285_v36, %v3188_v33  ;;  %v14976_v44 = vsel %vm2758_vm2, %v3188_v33, %v19381_v58  ;;  %7290 = vmatprep.subr.mxu0 %v19945_v61  ;;  %v5331_v36 = vld [vmem:[%s18912_s6 + $0x90] sm:$0xff] }
 0x391   : > { %v14982_v42 = vpop.permute.xlu1 %2334  ;;  %v3718_v46 = vrot.slane %v3189_v5, 7  ;;  %v19383_v48 = vrot.slane %v14976_v44, 7  ;;  %v20287_v5 = vrot.slane %v14839_v12, 7  ;;  %7291 = vmatpush2.msra.mxu0 %v5332_v28  ;;  %v5330_v12 = vld [vmem:[%s18912_s6 + $0x88] sm:$0xff] }
 0x392   : > { %20286 = vst [vmem:[#allocation279_spill] sm:$0xff] %v14982_v42  ;;  %v14988_v50 = vmul.f32 %v14982_v42, %v20017_v49  ;;  %v3091_v33 = vsel %vm894_vm0, %v3088_v53, %v3090_v9  ;;  %7292 = vmatprep.subr.mxu0 %v19945_v61  ;;  %v20288_v53 = vrot.slane %v14893_v62, 7 }
 0x393   : > { %v3719_v52 = vsel %vm1280_vm1, %v20287_v5, %v3718_v46  ;;  %v3737_v60 = vsel %vm1280_vm1, %v3718_v46, %v19383_v48  ;;  %v3698_v58 = vrot.slane %v3091_v33, 7  ;;  %7293 = vmatpush2.msra.mxu0 %v5331_v36  ;;  %v3697_v46 = vsel %vm1280_vm1, %v3678_v21, %v3696_v15  ;;  %v5329_v36 = vld [vmem:[%s18912_s6 + $0x80] sm:$0xff] }
 0x394   : > { %v3092_v19 = vrot.slane %v14988_v50, 1  ;;  %8780 = vmatmul.mubr.f32.gmra.mxu1 %v3719_v52  ;;  %7294 = vmatprep.subr.mxu0 %v19945_v61  ;;  %v15014_v50 = vpop.permute.xlu0 %2090  ;;  %v20289_v21 = vrot.slane %v14883_v54, 1  ;;  %v20296_v48 = vrot.slane %v14951_v56, 2 }
 0x395   : > { %8782 = vmatprep.mubr.f32.mxu1 %v3737_v60  ;;  %v3699_v25 = vsel %vm1280_vm1, %v20288_v53, %v3698_v58  ;;  %7295 = vmatpush2.msra.mxu0 %v5330_v12 }
 0x396   : > { %v2088_v5 = vpop.permute.xlu1 %2087  ;;  %5027 = vmatprep.mubr.f32.mxu0 %v3699_v25  ;;  %v3093_v28 = vsel %vm894_vm0, %v3090_v9, %v3092_v19  ;;  %7296 = vmatprep.subr.mxu0 %v19945_v61 }
 0x397   : > { %v2159_v33 = vrot.slane %v2088_v5, 1  ;;  %v4929_v52 = vpop.f32.mrf.mxu0  ;;  %5028 = vmatmul.mubr.f32.gmra.mxu0 %v3697_v46  ;;  %v3716_v62 = vrot.slane %v3093_v28, 7  ;;  %v2550_v5 = vrot.slane %v14831_v4, 7  ;;  %v2161_v46 = vrot.slane %v15014_v50, 1 }
 0x398   : > { %v15020_v60 = vadd.f32 %v4929_v52, %v12874_v41  ;;  %7297 = vmatpush2.msra.mxu0 %v5329_v36  ;;  %v15046_v50 = vpop.permute.xlu0 %2096 }
 0x399   : > { %v15025_v25 = vsel %vm894_vm0, %v20289_v21, %v2159_v33  ;;  %v4931_v9 = vpop.f32.mrf.mxu0  ;;  %v3717_v53 = vsel %vm1280_vm1, %v3698_v58, %v3716_v62  ;;  %7684 = vmatprep.subr.mxu0 %v19945_v61  ;;  %v15035_v52 = vsel %vm894_vm0, %v2159_v33, %v2161_v46  ;;  %v20292_v58 = vrot.slane %v14771_v16, 7 }
 0x39a   : > { %20290 = vst [vmem:[#allocation280_spill] sm:$0xff] %v15025_v25  ;;  %v2234_v28 = vmul.f32 %v15025_v25, %v19990_v23  ;;  %5032 = vmatprep.mubr.f32.mxu0 %v3717_v53  ;;  %20291 = vst [vmem:[#allocation281_spill] sm:$0xff] %v15035_v52  ;;  %v2235_v16 = vmul.f32 %v15035_v52, %v20017_v49 }
 0x39b   : > { %v2479_v41 = vpop.permute.xlu1 %2478 }
 0x39c   : > { %v3714_v54 = vrot.slane %v2234_v28, 7  ;;  %v2548_v12 = vrot.slane %v2479_v41, 7  ;;  %v15066_v49 = vpop.permute.xlu0 %2102 }
 0x39e   : > { %v15040_v21 = vsel %vm1280_vm1, %v20292_v58, %v2548_v12  ;;  %v15043_v4 = vsel %vm1280_vm1, %v2548_v12, %v2550_v5  ;;  %v3715_v23 = vsel %vm1280_vm1, %v3696_v15, %v3714_v54 }
 0x39f   : > { %20293 = vst [vmem:[#allocation282_spill] sm:$0xff] %v15040_v21  ;;  %20294 = vst [vmem:[#allocation283_spill] sm:$0xff] %v15043_v4  ;;  %v2621_v36 = vmul.f32 %v15040_v21, %v11026_v34  ;;  %v2622_v9 = vmul.f32 %v15043_v4, %v11094_v17  ;;  %5033 = vmatmul.mubr.f32.gmra.mxu0 %v3715_v23 }
 0x3a0   : > { %v15052_v33 = vpop.permute.xlu1 %2338 }
 0x3a1   : > { %20295 = vst [vmem:[#allocation284_spill] sm:$0xff] %v15052_v33  ;;  %v3192_v53 = vrot.slane %v2621_v36, 2  ;;  %v3194_v28 = vrot.slane %v2622_v9, 2  ;;  %v2396_v41 = vmul.f32 %v15052_v33, %v11013_v55  ;;  %v15058_v15 = vpop.f32.mrf.mxu0  ;;  %v3732_v36 = vrot.slane %v2235_v16, 7 }
 0x3a3   : > { %v3094_v12 = vrot.slane %v2396_v41, 1  ;;  %v4936_v58 = vpop.f32.mrf.mxu0  ;;  %v3193_v21 = vsel %vm2758_vm2, %v20296_v48, %v3192_v53  ;;  %v3195_v23 = vsel %vm2758_vm2, %v3192_v53, %v3194_v28  ;;  %v20298_v41 = vrot.slane %v14976_v44, 7  ;;  %v15078_v44 = vpop.permute.xlu0 %2487 }
 0x3a4   : > { %v15064_v18 = vpop.permute.xlu1 %2342  ;;  %v3754_v4 = vrot.slane %v3193_v21, 7  ;;  %v3772_v25 = vrot.slane %v3195_v23, 7  ;;  %v3733_v16 = vsel %vm1280_vm1, %v3714_v54, %v3732_v36  ;;  %v2554_v54 = vrot.slane %v15078_v44, 7 }
 0x3a5   : > { %20297 = vst [vmem:[#allocation285_spill] sm:$0xff] %v15064_v18  ;;  %v2397_v9 = vmul.f32 %v15064_v18, %v11026_v34  ;;  %v3095_v52 = vsel %vm894_vm0, %v3092_v19, %v3094_v12 }
 0x3a6   : > { %v3755_v56 = vsel %vm1280_vm1, %v20298_v41, %v3754_v4  ;;  %v3773_v48 = vsel %vm1280_vm1, %v3754_v4, %v3772_v25  ;;  %v3734_v58 = vrot.slane %v3095_v52, 7 }
 0x3a7   : > { %v3096_v53 = vrot.slane %v2397_v9, 1  ;;  %8783 = vmatmul.mubr.f32.gmra.mxu1 %v3755_v56 }
 0x3a8   : > { %8785 = vmatprep.mubr.f32.mxu1 %v3773_v48  ;;  %v3735_v21 = vsel %vm1280_vm1, %v3716_v62, %v3734_v58  ;;  %v2165_v62 = vrot.slane %v15046_v50, 1 }
 0x3a9   : > { %v2094_v23 = vpop.permute.xlu1 %2093  ;;  %5037 = vmatprep.mubr.f32.mxu0 %v3735_v21  ;;  %v3097_v18 = vsel %vm894_vm0, %v3094_v12, %v3096_v53 }
 0x3aa   : > { %v2163_v33 = vrot.slane %v2094_v23, 1  ;;  %5038 = vmatmul.mubr.f32.gmra.mxu0 %v3733_v16  ;;  %v3752_v19 = vrot.slane %v3097_v18, 7 }
 0x3ac   : > { %v15081_v41 = vsel %vm894_vm0, %v2161_v46, %v2163_v33  ;;  %v15083_v52 = vpop.f32.mrf.mxu0  ;;  %v3753_v4 = vsel %vm1280_vm1, %v3734_v58, %v3752_v19  ;;  %v15091_v21 = vsel %vm894_vm0, %v2163_v33, %v2165_v62 }
 0x3ad   : > { %20299 = vst [vmem:[#allocation286_spill] sm:$0xff] %v15081_v41  ;;  %v2236_v9 = vmul.f32 %v15081_v41, %v11013_v55  ;;  %5042 = vmatprep.mubr.f32.mxu0 %v3753_v4  ;;  %20300 = vst [vmem:[#allocation287_spill] sm:$0xff] %v15091_v21  ;;  %v2237_v33 = vmul.f32 %v15091_v21, %v11026_v34 }
 0x3ae   : > { %v2485_v12 = vpop.permute.xlu1 %2484  ;;  %v4941_v56 = vpop.f32.mrf.mxu0 }
 0x3af   : > { %v3750_v18 = vrot.slane %v2236_v9, 7  ;;  %v2552_v48 = vrot.slane %v2485_v12, 7  ;;  %v3768_v41 = vrot.slane %v2237_v33, 7 }
 0x3b1   : > { %v15094_v46 = vsel %vm1280_vm1, %v2550_v5, %v2552_v48  ;;  %v15097_v58 = vsel %vm1280_vm1, %v2552_v48, %v2554_v54  ;;  %v3751_v50 = vsel %vm1280_vm1, %v3732_v36, %v3750_v18 }
 0x3b2   : > { %20301 = vst [vmem:[#allocation288_spill] sm:$0xff] %v15094_v46  ;;  %20302 = vst [vmem:[#allocation289_spill] sm:$0xff] %v15097_v58  ;;  %v2623_v55 = vmul.f32 %v15094_v46, %v11102_v0  ;;  %v2624_v23 = vmul.f32 %v15097_v58, %v11172_v47  ;;  %5043 = vmatmul.mubr.f32.gmra.mxu0 %v3751_v50 }
 0x3b3   : > { %v15104_v16 = vpop.permute.xlu1 %2346 }
 0x3b4   : > { %20303 = vst [vmem:[#allocation290_spill] sm:$0xff] %v15104_v16  ;;  %v3196_v44 = vrot.slane %v2623_v55, 2  ;;  %v3198_v5 = vrot.slane %v2624_v23, 2  ;;  %v2398_v4 = vmul.f32 %v15104_v16, %v11094_v17  ;;  %v15110_v9 = vpop.f32.mrf.mxu0 }
 0x3b6   : > { %v3098_v36 = vrot.slane %v2398_v4, 1  ;;  %v4946_v12 = vpop.f32.mrf.mxu0  ;;  %v3197_v56 = vsel %vm2758_vm2, %v3194_v28, %v3196_v44  ;;  %v3199_v48 = vsel %vm2758_vm2, %v3196_v44, %v3198_v5 }
 0x3b7   : > { %v15114_v58 = vpop.permute.xlu1 %2350  ;;  %v3790_v50 = vrot.slane %v3197_v56, 7  ;;  %v3808_v46 = vrot.slane %v3199_v48, 7  ;;  %v3769_v56 = vsel %vm1280_vm1, %v3750_v18, %v3768_v41 }
 0x3b8   : > { %20304 = vst [vmem:[#allocation291_spill] sm:$0xff] %v15114_v58  ;;  %v2399_v34 = vmul.f32 %v15114_v58, %v11102_v0  ;;  %v3099_v55 = vsel %vm894_vm0, %v3096_v53, %v3098_v36  ;;  %v15124_v53 = vpop.permute.xlu0 %2493 }
 0x3b9   : > { %v3791_v23 = vsel %vm1280_vm1, %v3772_v25, %v3790_v50  ;;  %v3809_v21 = vsel %vm1280_vm1, %v3790_v50, %v3808_v46  ;;  %v3770_v4 = vrot.slane %v3099_v55, 7  ;;  %v19396_v18 = vrot.slane %v15124_v53, 7 }
 0x3ba   : > { %v3100_v12 = vrot.slane %v2399_v34, 1  ;;  %8786 = vmatmul.mubr.f32.gmra.mxu1 %v3791_v23 }
 0x3bb   : > { %8788 = vmatprep.mubr.f32.mxu1 %v3809_v21  ;;  %v3771_v28 = vsel %vm1280_vm1, %v3752_v19, %v3770_v4  ;;  %v2169_v19 = vrot.slane %v15066_v49, 1 }
 0x3bc   : > { %v2100_v44 = vpop.permute.xlu1 %2099  ;;  %5047 = vmatprep.mubr.f32.mxu0 %v3771_v28  ;;  %v3101_v33 = vsel %vm894_vm0, %v3098_v36, %v3100_v12 }
 0x3bd   : > { %v2167_v48 = vrot.slane %v2100_v44, 1  ;;  %5048 = vmatmul.mubr.f32.gmra.mxu0 %v3769_v56  ;;  %v3788_v58 = vrot.slane %v3101_v33, 7 }
 0x3bf   : > { %v15127_v25 = vsel %vm894_vm0, %v2165_v62, %v2167_v48  ;;  %v15129_v50 = vpop.f32.mrf.mxu0  ;;  %v3789_v21 = vsel %vm1280_vm1, %v3770_v4, %v3788_v58  ;;  %v15137_v44 = vsel %vm894_vm0, %v2167_v48, %v2169_v19 }
 0x3c0   : > { %20305 = vst [vmem:[#allocation292_spill] sm:$0xff] %v15127_v25  ;;  %v2238_v34 = vmul.f32 %v15127_v25, %v11094_v17  ;;  %5052 = vmatprep.mubr.f32.mxu0 %v3789_v21  ;;  %20306 = vst [vmem:[#allocation293_spill] sm:$0xff] %v15137_v44  ;;  %v8751_v25 = vpop.f32.mrf.mxu1 }
 0x3c1   : > { %v2491_v36 = vpop.permute.xlu1 %2490  ;;  %v4951_v55 = vpop.f32.mrf.mxu0 }
 0x3c2   : > { %v3786_v23 = vrot.slane %v2238_v34, 7  ;;  %v2556_v28 = vrot.slane %v2491_v36, 7  ;;  %v15163_v36 = vpop.permute.xlu0 %2108 }
 0x3c4   : > { %v15140_v62 = vsel %vm1280_vm1, %v2554_v54, %v2556_v28  ;;  %v15145_v49 = vsel %vm1280_vm1, %v2556_v28, %v19396_v18  ;;  %v3787_v17 = vsel %vm1280_vm1, %v3768_v41, %v3786_v23  ;;  %v2239_v54 = vmul.f32 %v15137_v44, %v11102_v0 }
 0x3c5   : > { %20307 = vst [vmem:[#allocation294_spill] sm:$0xff] %v15140_v62  ;;  %20308 = vst [vmem:[#allocation295_spill] sm:$0xff] %v15145_v49  ;;  %v2625_v4 = vmul.f32 %v15140_v62, %v13554_v10  ;;  %v15152_v56 = vmul.f32 %v15145_v49, %v13624_v27  ;;  %5053 = vmatmul.mubr.f32.gmra.mxu0 %v3787_v17 }
 0x3c6   : > { %v15154_v33 = vpop.permute.xlu1 %2354  ;;  %v3804_v62 = vrot.slane %v2239_v54, 7 }
 0x3c7   : > { %20309 = vst [vmem:[#allocation296_spill] sm:$0xff] %v15154_v33  ;;  %v3200_v48 = vrot.slane %v2625_v4, 2  ;;  %v19400_v21 = vrot.slane %v15152_v56, 2  ;;  %v2400_v34 = vmul.f32 %v15154_v33, %v11172_v47  ;;  %v15161_v41 = vpop.f32.mrf.mxu0 }
 0x3c9   : > { %v3102_v55 = vrot.slane %v2400_v34, 1  ;;  %v4956_v28 = vpop.f32.mrf.mxu0  ;;  %v3201_v18 = vsel %vm2758_vm2, %v3198_v5, %v3200_v48  ;;  %v15169_v17 = vsel %vm2758_vm2, %v3200_v48, %v19400_v21 }
 0x3ca   : > { %v15171_v0 = vpop.permute.xlu1 %2358  ;;  %v3826_v4 = vrot.slane %v3201_v18, 7  ;;  %v19404_v49 = vrot.slane %v15169_v17, 7  ;;  %v2500_v18 = vpop.permute.xlu0 %2499 }
 0x3cb   : > { %20310 = vst [vmem:[#allocation297_spill] sm:$0xff] %v15171_v0  ;;  %v15176_v44 = vmul.f32 %v15171_v0, %v13554_v10  ;;  %v3103_v34 = vsel %vm894_vm0, %v3100_v12, %v3102_v55  ;;  %v3805_v0 = vsel %vm1280_vm1, %v3786_v23, %v3804_v62  ;;  %v19407_v23 = vrot.slane %v15163_v36, 1 }
 0x3cc   : > { %v3827_v28 = vsel %vm1280_vm1, %v3808_v46, %v3826_v4  ;;  %v3845_v5 = vsel %vm1280_vm1, %v3826_v4, %v19404_v49  ;;  %v3806_v48 = vrot.slane %v3103_v34, 7  ;;  %v2562_v34 = vrot.slane %v2500_v18, 7 }
 0x3cd   : > { %v3104_v21 = vrot.slane %v15176_v44, 1  ;;  %8789 = vmatmul.mubr.f32.gmra.mxu1 %v3827_v28 }
 0x3ce   : > { %8791 = vmatprep.mubr.f32.mxu1 %v3845_v5  ;;  %v3807_v54 = vsel %vm1280_vm1, %v3788_v58, %v3806_v48  ;;  %v5154_v5 = vpop.f32.mrf.mxu1 }
 0x3cf   : > { %v2106_v33 = vpop.permute.xlu1 %2105  ;;  %5057 = vmatprep.mubr.f32.mxu0 %v3807_v54  ;;  %v15187_v12 = vsel %vm894_vm0, %v3102_v55, %v3104_v21  ;;  %v15207_v16 = vadd.f32 %v5154_v5, %v15020_v60 }
 0x3d0   : > { %v2171_v46 = vrot.slane %v2106_v33, 1  ;;  %5058 = vmatmul.mubr.f32.gmra.mxu0 %v3805_v0  ;;  %v19406_v4 = vrot.slane %v15187_v12, 7  ;;  %v2629_v33 = vmul.f32 0.0, %v2562_v34 }
 0x3d1   : > { %20312 = vst [vmem:[#allocation299_spill] sm:$0xff] %v15207_v16 }
 0x3d2   : > { %v15191_v44 = vsel %vm894_vm0, %v2169_v19, %v2171_v46  ;;  %v3825_v58 = vsel %vm1280_vm1, %v3806_v48, %v19406_v4  ;;  %v4935_v19 = vadd.f32 %v15058_v15, %v12906_v20  ;;  %v8754_v48 = vpop.f32.mrf.mxu1  ;;  %v4940_v4 = vadd.f32 %v15083_v52, %v12946_v6 }
 0x3d3   : > { %20311 = vst [vmem:[#allocation298_spill] sm:$0xff] %v15191_v44  ;;  %v15193_v28 = vpop.f32.mrf.mxu0  ;;  %v15201_v55 = vmul.f32 %v15191_v44, %v11172_v47  ;;  %5062 = vmatprep.mubr.f32.mxu0 %v3825_v58  ;;  %v15214_v47 = vsel %vm894_vm0, %v2171_v46, %v19407_v23  ;;  %v20314_v58 = vrot.slane %v15124_v53, 7  ;;  %v20324_v44 = vld [vmem:[#allocation11_spill] sm:$0xff] }
 0x3d4   : > { %v2497_v0 = vpop.permute.xlu1 %2496  ;;  %20313 = vst [vmem:[#allocation300_spill] sm:$0xff] %v15214_v47  ;;  %v5164_v52 = vpop.f32.mrf.mxu1  ;;  %v15227_v46 = vmul.f32 %v15214_v47, %v13554_v10  ;;  %v20321_v10 = vrot.slane %v15152_v56, 2 }
 0x3d5   : > { %v4961_v18 = vpop.f32.mrf.mxu0  ;;  %v3822_v54 = vrot.slane %v15201_v55, 7  ;;  %v2560_v49 = vrot.slane %v2497_v0, 7  ;;  %v3208_v55 = vrot.slane %v2629_v33, 2  ;;  %v15221_v0 = vadd.f32 %v8751_v25, %v4935_v19  ;;  %v20319_v33 = vld [vmem:[#allocation74_spill] sm:$0xff]  ;;  %v20320_v19 = vld [vmem:[#allocation89_spill] sm:$0xff] }
 0x3d6   : > { %v5549_v25 = vmul.f32 %v15207_v16, %v20319_v33 }
 0x3d7   : > { %v2561_v18 = vsel %vm1280_vm1, %v20314_v58, %v2560_v49  ;;  %v2563_v20 = vsel %vm1280_vm1, %v2560_v49, %v2562_v34  ;;  %v3823_v15 = vsel %vm1280_vm1, %v3804_v62, %v3822_v54  ;;  %20315 = vst [vmem:[#allocation301_spill] sm:$0xff] %v15221_v0  ;;  %v15235_v34 = vadd.f32 %v5164_v52, %v4940_v4 }
 0x3d8   : > { %v2627_v60 = vmul.f32 0.0, %v2561_v18  ;;  %v2628_v5 = vmul.f32 0.0, %v2563_v20  ;;  %5063 = vmatmul.mubr.f32.gmra.mxu0 %v3823_v15  ;;  %v5518_v18 = vmul.f32 %v15207_v16, %v20320_v19  ;;  %v4945_v4 = vadd.f32 %v15110_v9, %v12983_v30  ;;  %v20323_v19 = vld [vmem:[#allocation92_spill] sm:$0xff] }
 0x3d9   : > { %v15223_v6 = vpop.permute.xlu1 %2362  ;;  %20318 = vst [vmem:[#allocation304_spill] sm:$0xff] %v15235_v34  ;;  %v6389_v56 = vrot.slane %v5549_v25, 7 }
 0x3da   : > { %20316 = vst [vmem:[#allocation302_spill] sm:$0xff] %v15223_v6  ;;  %v15229_v53 = vrot.slane %v2627_v60, 2  ;;  %v3206_v58 = vrot.slane %v2628_v5, 2  ;;  %v2402_v49 = vmul.f32 %v15223_v6, %v13624_v27  ;;  %v15233_v62 = vpop.f32.mrf.mxu0  ;;  %v20327_v6 = vld [vmem:[#allocation103_spill] sm:$0xff] }
 0x3dc   : > { %20317 = vst [vmem:[#allocation303_spill] sm:$0xff] %v15229_v53  ;;  %v3106_v20 = vrot.slane %v2402_v49, 1  ;;  %v4966_v15 = vpop.f32.mrf.mxu0  ;;  %v3205_v60 = vsel %vm2758_vm2, %v20321_v10, %v15229_v53  ;;  %v3207_v5 = vsel %vm2758_vm2, %v15229_v53, %v3206_v58  ;;  %v3209_v23 = vsel %vm2758_vm2, %v3206_v58, %v3208_v55 }
 0x3dd   : > { %v2367_v52 = vpop.permute.xlu1 %2366  ;;  %v3862_v33 = vrot.slane %v3205_v60, 7  ;;  %v15250_v47 = vrot.slane %v3207_v5, 7  ;;  %v15254_v49 = vmul.f32 %v15221_v0, %v20323_v19  ;;  %v5519_v53 = vmul.f32 %v15221_v0, %v20324_v44  ;;  %v8757_v5 = vpop.f32.mrf.mxu1 }
 0x3de   : > { %v2403_v15 = vmul.f32 0.0, %v2367_v52  ;;  %v3107_v10 = vsel %vm894_vm0, %v3104_v21, %v3106_v20  ;;  %v20325_v55 = vrot.slane %v15169_v17, 7  ;;  %v3898_v60 = vrot.slane %v3209_v23, 7 }
 0x3df   : > { %20322 = vst [vmem:[#allocation74_spill] sm:$0xff] %v15250_v47  ;;  %v3881_v9 = vsel %vm1280_vm1, %v3862_v33, %v15250_v47  ;;  %v3842_v58 = vrot.slane %v3107_v10, 7  ;;  %v5857_v52 = vrot.slane %v5518_v18, 2  ;;  %v15269_v21 = vmul.f32 %v15235_v34, %v20327_v6  ;;  %v20332_v10 = vld [vmem:[#allocation75_spill] sm:$0xff] }
 0x3e0   : > { %v3863_v30 = vsel %vm1280_vm1, %v20325_v55, %v3862_v33  ;;  %v15265_v19 = vrot.slane %v2403_v15, 1  ;;  %v15271_v44 = vadd.f32 %v8754_v48, %v4945_v4  ;;  %v4950_v17 = vadd.f32 %v15129_v50, %v13020_v35 }
 0x3e1   : > { %8792 = vmatmul.mubr.f32.gmra.mxu1 %v3863_v30  ;;  %v20329_v33 = vrot.slane %v15187_v12, 7  ;;  %v20330_v6 = vrot.slane %v15227_v46, 7  ;;  %v5859_v18 = vrot.slane %v5519_v53, 2  ;;  %v15291_v50 = vsel %vm1280_vm1, %v15250_v47, %v3898_v60 }
 0x3e2   : > { %20326 = vst [vmem:[#allocation89_spill] sm:$0xff] %v15265_v19  ;;  %20328 = vst [vmem:[#allocation92_spill] sm:$0xff] %v15271_v44  ;;  %8794 = vmatprep.mubr.f32.mxu1 %v3881_v9  ;;  %v15280_v15 = vsel %vm894_vm0, %v3106_v20, %v15265_v19  ;;  %v15282_v25 = vpop.permute.xlu1 %2111  ;;  %v6410_v12 = vrot.slane %v15254_v49, 7  ;;  %v5174_v20 = vpop.f32.mrf.mxu1  ;;  %v20333_v55 = vrot.slane %v20332_v10, 7  ;;  %v20335_v9 = vld [vmem:[#allocation93_spill] sm:$0xff]  ;;  %v20337_v49 = vrot.slane %v15163_v36, 1 }
 0x3e3   : > { %v3843_v23 = vsel %vm1280_vm1, %v20329_v33, %v3842_v58  ;;  %v3841_v48 = vsel %vm1280_vm1, %v3822_v54, %v20330_v6  ;;  %v19412_v4 = vrot.slane %v15280_v15, 7  ;;  %v19413_v35 = vrot.slane %v15282_v25, 1  ;;  %20331 = vst [vmem:[#allocation11_spill] sm:$0xff] %v15291_v50  ;;  %v20334_v54 = vld [vmem:[#allocation82_spill] sm:$0xff] }
 0x3e4   : > { %5067 = vmatprep.mubr.f32.mxu0 %v3843_v23  ;;  %v6390_v30 = vsel %vm1280_vm1, %v20333_v55, %v6389_v56  ;;  %v5858_v53 = vsel %vm2758_vm2, %v20334_v54, %v5857_v52  ;;  %v15302_v33 = vmul.f32 %v15235_v34, %v20335_v9  ;;  %v5861_v23 = vrot.slane %v15269_v21, 2  ;;  %v20339_v55 = vld [vmem:[#allocation56_spill] sm:$0xff] }
 0x3e5   : > { %5068 = vmatmul.mubr.f32.gmra.mxu0 %v3841_v48  ;;  %8795 = vmatmul.mubr.f32.gmra.mxu1 %v15291_v50  ;;  %v15305_v60 = vadd.f32 %v5174_v20, %v4950_v17  ;;  %v15312_v6 = vsel %vm894_vm0, %v20337_v49, %v19413_v35  ;;  %v15314_v48 = vpop.f32.mrf.mxu0  ;;  %v3861_v10 = vsel %vm1280_vm1, %v3842_v58, %v19412_v4  ;;  %v5424_v20 = vld [vmem:[%s18912_s6 + $0x378] sm:$0xff]  ;;  %v6408_v49 = vrot.slane %v5858_v53, 7  ;;  %v5423_v4 = vld [vmem:[%s18912_s6 + $0x370] sm:$0xff]  ;;  %v20342_v53 = vld [vmem:[#allocation114_spill] sm:$0xff] }
 0x3e6   : > { %20338 = vst [vmem:[#allocation75_spill] sm:$0xff] %v15312_v6  ;;  %7523 = vmatprep.mubr.f32.mxu1 %v6390_v30  ;;  %v15321_v54 = vmul.f32 %v15271_v44, %v20339_v55  ;;  %v4955_v21 = vadd.f32 %v15161_v41, %v13053_v26  ;;  %v15327_v36 = vmul.f32 %v15312_v6, %v13624_v27  ;;  %v20340_v41 = vld [vmem:[#allocation85_spill] sm:$0xff]  ;;  %v6428_v27 = vrot.slane %v15302_v33, 7  ;;  %v20345_v50 = vld [vmem:[#allocation120_spill] sm:$0xff]  ;;  %v20353_v6 = vld [vmem:[#allocation122_spill] sm:$0xff] }
 0x3e7   : > { %20336 = vst [vmem:[#allocation103_spill] sm:$0xff] %v15305_v60  ;;  %5072 = vmatprep.mubr.f32.mxu0 %v3861_v10  ;;  %v15330_v17 = vsel %vm2758_vm2, %v5857_v52, %v5859_v18  ;;  %v2371_v58 = vpop.permute.xlu1 %2370  ;;  %v4971_v30 = vpop.f32.mrf.mxu0  ;;  %v6411_v9 = vsel %vm1280_vm1, %v6389_v56, %v6410_v12  ;;  %v20341_v10 = vld [vmem:[#allocation109_spill] sm:$0xff]  ;;  %v15348_v56 = vsel %vm2758_vm2, %v5859_v18, %v5861_v23 }
 0x3e8   : > { %v19415_v55 = vrot.slane %v15327_v36, 7  ;;  %v2404_v26 = vmul.f32 0.0, %v2371_v58  ;;  %v15341_v52 = vmul.f32 %v15271_v44, %v20341_v10  ;;  %v6426_v30 = vrot.slane %v15330_v17, 7  ;;  %v8760_v10 = vpop.f32.mrf.mxu1 }
 0x3e9   : > { %7524 = vmatmul.mubr.f32.vlgmr.msra.gmra.mxu1 %v20340_v41  ;;  %v15352_v58 = vmul.f32 %v15305_v60, %v20342_v53  ;;  %v5863_v33 = vrot.slane %v15321_v54, 2  ;;  %v15355_v41 = vadd.f32 %v8757_v5, %v4955_v21  ;;  %v15364_v18 = vmul.f32 %v15305_v60, %v20345_v50  ;;  %v5422_v54 = vld [vmem:[%s18912_s6 + $0x368] sm:$0xff]  ;;  %v20346_v21 = vld [vmem:[#allocation84_spill] sm:$0xff] }
 0x3ea   : > { %7528 = vmatprep.mubr.f32.mxu1 %v6411_v9  ;;  %7910 = vmatpush1.msra.mxu1 %v5424_v20  ;;  %v3110_v35 = vrot.slane %v2404_v26, 1  ;;  %v20344_v9 = vrot.slane %v15227_v46, 7  ;;  %v4960_v5 = vadd.f32 %v15193_v28, %v13088_v51  ;;  %v6409_v20 = vsel %vm1280_vm1, %v20346_v21, %v6408_v49 }
 0x3eb   : > { %20343 = vst [vmem:[#allocation82_spill] sm:$0xff] %v15355_v41  ;;  %7911 = vmatprep.subr.mxu1 %v19945_v61  ;;  %v6429_v50 = vsel %vm1280_vm1, %v6410_v12, %v6428_v27  ;;  %v6446_v53 = vrot.slane %v15341_v52, 7  ;;  %v6444_v21 = vrot.slane %v15348_v56, 7  ;;  %v5421_v12 = vld [vmem:[%s18912_s6 + $0x360] sm:$0xff]  ;;  %v5184_v52 = vpop.f32.mrf.mxu1  ;;  %v20351_v56 = vrot.slane %v15282_v25, 1 }
 0x3ec   : > { %v3859_v17 = vsel %vm1280_vm1, %v20344_v9, %v19415_v55  ;;  %7912 = vmatpush1.msra.mxu1 %v5423_v4  ;;  %v3111_v46 = vsel %vm894_vm0, %v15265_v19, %v3110_v35  ;;  %v2115_v26 = vpop.permute.xlu1 %2114  ;;  %v20347_v9 = vld [vmem:[#allocation22_spill] sm:$0xff]  ;;  %v6427_v4 = vsel %vm1280_vm1, %v6408_v49, %v6426_v30  ;;  %v15400_v49 = vadd.f32 %v5184_v52, %v4960_v5 }
 0x3ed   : > { %5073 = vmatmul.mubr.f32.gmra.mxu0 %v3859_v17  ;;  %7529 = vmatmul.mubr.f32.gmra.mxu1 %v6409_v20  ;;  %v15380_v55 = vmul.f32 %v15207_v16, %v20347_v9  ;;  %v15383_v51 = vrot.slane %v3111_v46, 7  ;;  %v2177_v28 = vrot.slane %v2115_v26, 1  ;;  %v4974_v17 = vpop.f32.mrf.mxu0  ;;  %v6464_v20 = vrot.slane %v15352_v58, 7  ;;  %v20349_v46 = vld [vmem:[#allocation115_spill] sm:$0xff]  ;;  %v8763_v19 = vpop.f32.mrf.mxu1 }
 0x3ee   : > { %7913 = vmatprep.subr.mxu1 %v19945_v61  ;;  %7533 = vmatprep.mubr.f32.mxu1 %v6429_v50  ;;  %v15392_v9 = vsel %vm2758_vm2, %v5861_v23, %v5863_v33  ;;  %v15396_v26 = vmul.f32 %v15355_v41, %v20349_v46  ;;  %v5865_v50 = vrot.slane %v15364_v18, 2  ;;  %20350 = vst [vmem:[#allocation56_spill] sm:$0xff] %v15400_v49  ;;  %v20352_v58 = vrot.slane %v15280_v15, 7  ;;  %v5420_v18 = vld [vmem:[%s18912_s6 + $0x358] sm:$0xff] }
 0x3ef   : > { %20348 = vst [vmem:[#allocation93_spill] sm:$0xff] %v15383_v51  ;;  %7914 = vmatpush1.msra.mxu1 %v5422_v54  ;;  %v2178_v54 = vsel %vm894_vm0, %v20351_v56, %v2177_v28  ;;  %v4976_v47 = vpop.f32.mrf.mxu0  ;;  %v15411_v46 = vmul.f32 %v15355_v41, %v20353_v6  ;;  %v4965_v25 = vadd.f32 %v15233_v62, %v13129_v45  ;;  %v2244_v52 = vmul.f32 0.0, %v2177_v28 }
 0x3f0   : > { %7915 = vmatprep.subr.mxu1 %v19945_v61  ;;  %v3879_v23 = vsel %vm1280_vm1, %v20352_v58, %v15383_v51  ;;  %v2243_v5 = vmul.f32 0.0, %v2178_v54  ;;  %v6447_v47 = vsel %vm1280_vm1, %v6428_v27, %v6446_v53  ;;  %v3896_v15 = vrot.slane %v3110_v35, 7 }
 0x3f1   : > { %7916 = vmatpush1.msra.mxu1 %v5421_v12  ;;  %5077 = vmatprep.mubr.f32.mxu0 %v3879_v23  ;;  %v6445_v56 = vsel %vm1280_vm1, %v6426_v30, %v6444_v21  ;;  %v5766_v6 = vrot.slane %v15380_v55, 1  ;;  %v20354_v12 = vld [vmem:[#allocation24_spill] sm:$0xff]  ;;  %v6465_v62 = vsel %vm1280_vm1, %v6446_v53, %v6464_v20  ;;  %v6462_v28 = vrot.slane %v15392_v9, 7 }
 0x3f2   : > { %7534 = vmatmul.mubr.f32.gmra.mxu1 %v6427_v4  ;;  %v15423_v58 = vmul.f32 %v15221_v0, %v20354_v12  ;;  %7917 = vmatprep.subr.mxu1 %v19945_v61  ;;  %v15426_v45 = vrot.slane %v2243_v5, 7  ;;  %v6482_v35 = vrot.slane %v15396_v26, 7  ;;  %v4970_v27 = vadd.f32 %v15314_v48, %v13161_v24  ;;  %v20356_v4 = vld [vmem:[#allocation135_spill] sm:$0xff]  ;;  %v20358_v48 = vld [vmem:[#allocation129_spill] sm:$0xff]  ;;  %v5419_v5 = vld [vmem:[%s18912_s6 + $0x350] sm:$0xff] }
 0x3f3   : > { %7538 = vmatprep.mubr.f32.mxu1 %v6447_v47  ;;  %7918 = vmatpush1.msra.mxu1 %v5420_v18  ;;  %v15434_v55 = vsel %vm2758_vm2, %v5863_v33, %v5865_v50  ;;  %v5867_v30 = vrot.slane %v15411_v46, 2  ;;  %v15439_v54 = vmul.f32 %v15400_v49, %v20356_v4  ;;  %v15442_v53 = vadd.f32 %v8760_v10, %v4965_v25  ;;  %v20360_v46 = vld [vmem:[#allocation21_spill] sm:$0xff]  ;;  %v20361_v25 = vld [vmem:[#allocation39_spill] sm:$0xff]  ;;  %v20362_v12 = vld [vmem:[#allocation2_spill] sm:$0xff] }
 0x3f4   : > { %20355 = vst [vmem:[#allocation85_spill] sm:$0xff] %v15426_v45  ;;  %7919 = vmatprep.subr.mxu1 %v19945_v61  ;;  %v3894_v9 = vrot.slane %v2244_v52, 7  ;;  %v20357_v26 = vrot.slane %v15327_v36, 7  ;;  %v15450_v33 = vmul.f32 %v15400_v49, %v20358_v48  ;;  %v15454_v23 = vsel %vm1280_vm1, %v15383_v51, %v3896_v15  ;;  %v5194_v52 = vpop.f32.mrf.mxu1  ;;  %v20365_v48 = vld [vmem:[#allocation137_spill] sm:$0xff] }
 0x3f5   : > { %20359 = vst [vmem:[#allocation109_spill] sm:$0xff] %v15454_v23  ;;  %v15458_v10 = vsel %vm894_vm0, %v20360_v46, %v5766_v6  ;;  %v5768_v18 = vrot.slane %v15423_v58, 1  ;;  %v15463_v36 = vmul.f32 %v15207_v16, %v20361_v25  ;;  %v6463_v47 = vsel %vm1280_vm1, %v6444_v21, %v6462_v28  ;;  %7920 = vmatpush1.msra.mxu1 %v5419_v5  ;;  %v20367_v46 = vld [vmem:[#allocation45_spill] sm:$0xff] }
 0x3f6   : > { %7539 = vmatmul.mubr.f32.gmra.mxu1 %v6445_v56  ;;  %v3877_v24 = vsel %vm1280_vm1, %v20357_v26, %v15426_v45  ;;  %v6483_v15 = vsel %vm1280_vm1, %v6464_v20, %v6482_v35  ;;  %v6480_v56 = vrot.slane %v15434_v55, 7  ;;  %v15474_v58 = vmul.f32 %v15235_v34, %v20362_v12  ;;  %7921 = vmatprep.subr.mxu1 %v19945_v61  ;;  %v15510_v5 = vpop.f32.mrf.mxu1 }
 0x3f7   : > { %5078 = vmatmul.mubr.f32.gmra.mxu0 %v3877_v24  ;;  %7543 = vmatprep.mubr.f32.mxu1 %v6465_v62  ;;  %v15476_v62 = vadd.f32 %v5194_v52, %v4970_v27  ;;  %v4975_v4 = vadd.f32 %v4974_v17, %v13275_v7  ;;  %v15480_v26 = vsel %vm2758_vm2, %v5865_v50, %v5867_v30  ;;  %v5869_v24 = vrot.slane %v15439_v54, 2  ;;  %v20366_v7 = vld [vmem:[#allocation141_spill] sm:$0xff]  ;;  %v5418_v50 = vld [vmem:[%s18912_s6 + $0x348] sm:$0xff] }
 0x3f8   : > { %5082 = vmatprep.mubr.f32.mxu0 %v15454_v23  ;;  %v15486_v20 = vsel %vm1280_vm1, %v15426_v45, %v3894_v9  ;;  %v6500_v55 = vrot.slane %v15450_v33, 7  ;;  %v15491_v27 = vmul.f32 %v15442_v53, %v20365_v48  ;;  %v15495_v17 = vmul.f32 %v15442_v53, %v20366_v7  ;;  %v20369_v48 = vld [vmem:[#allocation26_spill] sm:$0xff]  ;;  %7922 = vmatpush1.msra.mxu1 %v5418_v50  ;;  %v20378_v23 = vld [vmem:[#allocation105_spill] sm:$0xff] }
 0x3f9   : > { %20363 = vst [vmem:[#allocation114_spill] sm:$0xff] %v15476_v62  ;;  %v4979_v21 = vpop.f32.mrf.mxu0  ;;  %20364 = vst [vmem:[#allocation120_spill] sm:$0xff] %v15486_v20  ;;  %v6406_v54 = vrot.slane %v15458_v10, 7  ;;  %v15503_v9 = vsel %vm894_vm0, %v5766_v6, %v5768_v18  ;;  %v15508_v25 = vmul.f32 %v15221_v0, %v20367_v46  ;;  %v6481_v12 = vsel %vm1280_vm1, %v6462_v28, %v6480_v56  ;;  %v5392_v28 = vld [vmem:[%s18912_s6 + $0x278] sm:$0xff] }
 0x3fa   : > { %7544 = vmatmul.mubr.f32.gmra.mxu1 %v6463_v47  ;;  %v20368_v47 = vld [vmem:[#allocation25_spill] sm:$0xff]  ;;  %v5770_v10 = vrot.slane %v15474_v58, 1  ;;  %v15518_v6 = vmul.f32 %v15271_v44, %v20369_v48  ;;  %v15520_v7 = vadd.f32 %v8763_v19, %v4975_v4  ;;  %v4980_v46 = vadd.f32 %v4979_v21, %v13361_v59  ;;  %7923 = vmatprep.subr.mxu1 %v19945_v61  ;;  %v20371_v4 = vld [vmem:[#allocation144_spill] sm:$0xff]  ;;  %v20373_v21 = vld [vmem:[#allocation23_spill] sm:$0xff] }
 0x3fb   : > { %5083 = vmatmul.mubr.f32.gmra.mxu0 %v15486_v20  ;;  %7548 = vmatprep.mubr.f32.mxu1 %v6483_v15  ;;  %v4981_v52 = vpop.f32.mrf.mxu0  ;;  %v6498_v15 = vrot.slane %v15480_v26, 7  ;;  %v15524_v33 = vsel %vm2758_vm2, %v5867_v30, %v5869_v24  ;;  %v6501_v58 = vsel %vm1280_vm1, %v6482_v35, %v6500_v55  ;;  %v6518_v19 = vrot.slane %v15491_v27, 7  ;;  %v20372_v26 = vld [vmem:[#allocation27_spill] sm:$0xff] }
 0x3fc   : > { %7298 = vmatprep.mubr.f32.mxu0 %v20368_v47  ;;  %v20370_v52 = vld [vmem:[#allocation138_spill] sm:$0xff]  ;;  %v5871_v59 = vrot.slane %v15495_v17, 2  ;;  %v15539_v30 = vmul.f32 %v15476_v62, %v20371_v4  ;;  %v6407_v50 = vsel %vm1280_vm1, %v20373_v21, %v6406_v54  ;;  %v6424_v48 = vrot.slane %v15503_v9, 7  ;;  %v5391_v17 = vld [vmem:[%s18912_s6 + $0x270] sm:$0xff]  ;;  %v5204_v4 = vpop.f32.mrf.mxu1  ;;  %v20376_v21 = vld [vmem:[#allocation3_spill] sm:$0xff] }
 0x3fd   : > { %v15528_v47 = vmul.f32 %v15476_v62, %v20370_v52  ;;  %v20375_v52 = vld [vmem:[#allocation42_spill] sm:$0xff]  ;;  %v5772_v9 = vrot.slane %v15518_v6, 1  ;;  %v15560_v20 = vmul.f32 %v15305_v60, %v20376_v21  ;;  %v20381_v21 = vld [vmem:[#allocation47_spill] sm:$0xff] }
 0x3fe   : > { %7549 = vmatmul.mubr.f32.gmra.mxu1 %v6481_v12  ;;  %v20374_v12 = vrot.slane %v15463_v36, 7  ;;  %v15573_v6 = vsel %vm2758_vm2, %v5869_v24, %v5871_v59  ;;  %v6425_v24 = vsel %vm1280_vm1, %v6406_v54, %v6424_v48 }
 0x3ff   : > { %7299 = vmatmul.mubr.f32.vlgmr.msra.gmra.mxu0 %v20372_v26  ;;  %7553 = vmatprep.mubr.f32.mxu1 %v6501_v58  ;;  %v6516_v58 = vrot.slane %v15524_v33, 7  ;;  %v15555_v26 = vsel %vm894_vm0, %v5768_v18, %v5770_v10  ;;  %v6536_v27 = vrot.slane %v15528_v47, 7  ;;  %v6519_v33 = vsel %vm1280_vm1, %v6500_v55, %v6518_v19  ;;  %v5417_v47 = vld [vmem:[%s18912_s6 + $0x340] sm:$0xff] }
 0x400   : > { %v6423_v35 = vsel %vm1280_vm1, %v20375_v52, %v20374_v12  ;;  %7303 = vmatprep.mubr.f32.mxu0 %v6407_v50  ;;  %7685 = vmatpush1.msra.mxu0 %v5392_v28  ;;  %v15562_v12 = vadd.f32 %v5204_v4, %v4980_v46  ;;  %v6499_v52 = vsel %vm1280_vm1, %v6480_v56, %v6498_v15  ;;  %v4984_v18 = vpop.f32.mrf.mxu0  ;;  %v5873_v46 = vrot.slane %v15539_v30, 2  ;;  %v20379_v28 = vld [vmem:[#allocation150_spill] sm:$0xff]  ;;  %v20380_v4 = vld [vmem:[#allocation220_spill] sm:$0xff] }
 0x401   : > { %v15568_v50 = vmul.f32 %v15520_v7, %v20378_v23  ;;  %7686 = vmatprep.subr.mxu0 %v19945_v61  ;;  %v15578_v56 = vmul.f32 %v15520_v7, %v20379_v28  ;;  %v5390_v23 = vld [vmem:[%s18912_s6 + $0x268] sm:$0xff]  ;;  %v4985_v55 = vadd.f32 %v4984_v18, %v20380_v4  ;;  %v6442_v30 = vrot.slane %v15555_v26, 7  ;;  %v20383_v4 = vld [vmem:[#allocation28_spill] sm:$0xff]  ;;  %7924 = vmatpush1.msra.mxu1 %v5417_v47 }
 0x402   : > { %20377 = vst [vmem:[#allocation84_spill] sm:$0xff] %v15562_v12  ;;  %7554 = vmatmul.mubr.f32.gmra.mxu1 %v6499_v52  ;;  %7687 = vmatpush1.msra.mxu0 %v5391_v17  ;;  %v20382_v52 = vld [vmem:[#allocation50_spill] sm:$0xff]  ;;  %v4986_v28 = vpop.f32.mrf.mxu0  ;;  %v6517_v45 = vsel %vm1280_vm1, %v6498_v15, %v6516_v58  ;;  %v15596_v51 = vsel %vm894_vm0, %v5770_v10, %v5772_v9  ;;  %v5774_v18 = vrot.slane %v15560_v20, 1  ;;  %v6534_v26 = vrot.slane %v15573_v6, 7 }
 0x403   : > { %7304 = vmatmul.mubr.f32.gmra.mxu0 %v20381_v21  ;;  %7558 = vmatprep.mubr.f32.mxu1 %v6519_v33  ;;  %v15592_v17 = vmul.f32 %v15235_v34, %v20382_v52  ;;  %v15601_v33 = vmul.f32 %v15355_v41, %v20383_v4  ;;  %v6537_v54 = vsel %vm1280_vm1, %v6518_v19, %v6536_v27  ;;  %v6554_v21 = vrot.slane %v15568_v50, 7  ;;  %v5389_v20 = vld [vmem:[%s18912_s6 + $0x260] sm:$0xff]  ;;  %v20385_v50 = vld [vmem:[#allocation91_spill] sm:$0xff]  ;;  %v20388_v28 = vld [vmem:[#allocation57_spill] sm:$0xff] }
 0x404   : > { %7308 = vmatprep.mubr.f32.mxu0 %v6425_v24  ;;  %7688 = vmatprep.subr.mxu0 %v19945_v61  ;;  %v20384_v24 = vld [vmem:[#allocation151_spill] sm:$0xff]  ;;  %v15615_v10 = vadd.f32 %v15510_v5, %v4985_v55  ;;  %v15618_v19 = vsel %vm2758_vm2, %v5871_v59, %v5873_v46  ;;  %v5875_v6 = vrot.slane %v15578_v56, 2  ;;  %v15623_v52 = vmul.f32 %v15562_v12, %v20385_v50  ;;  %v5388_v55 = vld [vmem:[%s18912_s6 + $0x258] sm:$0xff]  ;;  %v20389_v4 = vld [vmem:[#allocation4_spill] sm:$0xff] }
 0x405   : > { %v15609_v15 = vmul.f32 %v15562_v12, %v20384_v24  ;;  %7689 = vmatpush1.msra.mxu0 %v5390_v23  ;;  %v6443_v23 = vsel %vm1280_vm1, %v6424_v48, %v6442_v30  ;;  %v20386_v47 = vrot.slane %v15508_v25, 7  ;;  %v20387_v5 = vrot.slane %v15463_v36, 7  ;;  %7925 = vmatprep.subr.mxu1 %v19945_v61  ;;  %v20390_v50 = vld [vmem:[#allocation152_spill] sm:$0xff] }
 0x406   : > { %7559 = vmatmul.mubr.f32.gmra.mxu1 %v6517_v45  ;;  %7690 = vmatprep.subr.mxu0 %v19945_v61  ;;  %v6460_v59 = vrot.slane %v15596_v51, 7  ;;  %v6458_v56 = vrot.slane %v15592_v17, 7  ;;  %v15642_v48 = vmul.f32 %v15271_v44, %v20388_v28  ;;  %v5776_v36 = vrot.slane %v15601_v33, 1 }
 0x407   : > { %7309 = vmatmul.mubr.f32.gmra.mxu0 %v6423_v35  ;;  %7563 = vmatprep.mubr.f32.mxu1 %v6537_v54  ;;  %v6441_v45 = vsel %vm1280_vm1, %v20387_v5, %v20386_v47  ;;  %v15638_v35 = vsel %vm894_vm0, %v5772_v9, %v5774_v18  ;;  %v15647_v54 = vmul.f32 %v15400_v49, %v20389_v4  ;;  %v6552_v24 = vrot.slane %v15618_v19, 7 }
 0x408   : > { %7313 = vmatprep.mubr.f32.mxu0 %v6443_v23  ;;  %7691 = vmatpush1.msra.mxu0 %v5389_v20  ;;  %v6535_v51 = vsel %vm1280_vm1, %v6516_v58, %v6534_v26  ;;  %v6555_v17 = vsel %vm1280_vm1, %v6536_v27, %v6554_v21  ;;  %v6572_v9 = vrot.slane %v15609_v15, 7  ;;  %v15656_v33 = vsel %vm2758_vm2, %v5873_v46, %v5875_v6  ;;  %v20391_v20 = vld [vmem:[#allocation155_spill] sm:$0xff]  ;;  %v5387_v15 = vld [vmem:[%s18912_s6 + $0x250] sm:$0xff]  ;;  %v5416_v46 = vld [vmem:[%s18912_s6 + $0x338] sm:$0xff]  ;;  %v15673_v19 = vpop.f32.mrf.mxu1 }
 0x409   : > { %7692 = vmatprep.subr.mxu0 %v19945_v61  ;;  %v15660_v23 = vmul.f32 %v15615_v10, %v20390_v50  ;;  %v5877_v58 = vrot.slane %v15623_v52, 2  ;;  %v15665_v27 = vmul.f32 %v15615_v10, %v20391_v20  ;;  %v6461_v47 = vsel %vm1280_vm1, %v6442_v30, %v6460_v59  ;;  %v20393_v50 = vld [vmem:[#allocation29_spill] sm:$0xff]  ;;  %v20394_v20 = vld [vmem:[#allocation59_spill] sm:$0xff]  ;;  %7926 = vmatpush1.msra.mxu1 %v5416_v46 }
 0x40a   : > { %7564 = vmatmul.mubr.f32.gmra.mxu1 %v6535_v51  ;;  %7693 = vmatpush1.msra.mxu0 %v5388_v55  ;;  %v20392_v52 = vrot.slane %v15508_v25, 7  ;;  %v6478_v55 = vrot.slane %v15638_v35, 7  ;;  %v6476_v28 = vrot.slane %v15642_v48, 7  ;;  %v15682_v4 = vsel %vm894_vm0, %v5774_v18, %v5776_v36  ;;  %v5386_v18 = vld [vmem:[%s18912_s6 + $0x248] sm:$0xff] }
 0x40b   : > { %7314 = vmatmul.mubr.f32.gmra.mxu0 %v6441_v45  ;;  %7568 = vmatprep.mubr.f32.mxu1 %v6555_v17  ;;  %v5778_v51 = vrot.slane %v15647_v54, 1  ;;  %v15687_v45 = vmul.f32 %v15442_v53, %v20393_v50  ;;  %v4989_v30 = vpop.f32.mrf.mxu0  ;;  %v6553_v25 = vsel %vm1280_vm1, %v6534_v26, %v6552_v24  ;;  %v6573_v17 = vsel %vm1280_vm1, %v6554_v21, %v6572_v9  ;;  %v20395_v54 = vld [vmem:[#allocation225_spill] sm:$0xff] }
 0x40c   : > { %v6459_v5 = vsel %vm1280_vm1, %v20392_v52, %v6458_v56  ;;  %7318 = vmatprep.mubr.f32.mxu0 %v6461_v47  ;;  %7694 = vmatprep.subr.mxu0 %v19945_v61  ;;  %v6570_v35 = vrot.slane %v15656_v33, 7  ;;  %v15695_v48 = vmul.f32 %v15305_v60, %v20394_v20  ;;  %v4990_v47 = vadd.f32 %v4989_v30, %v20395_v54  ;;  %v5214_v33 = vpop.f32.mrf.mxu1  ;;  %v20396_v20 = vld [vmem:[#allocation5_spill] sm:$0xff] }
 0x40d   : > { %7695 = vmatpush1.msra.mxu0 %v5387_v15  ;;  %v6590_v52 = vrot.slane %v15660_v23, 7  ;;  %v15703_v26 = vsel %vm2758_vm2, %v5875_v6, %v5877_v58  ;;  %v5879_v21 = vrot.slane %v15665_v27, 2  ;;  %v4991_v50 = vpop.f32.mrf.mxu0  ;;  %v6479_v15 = vsel %vm1280_vm1, %v6460_v59, %v6478_v55  ;;  %7927 = vmatprep.subr.mxu1 %v19945_v61 }
 0x40e   : > { %7569 = vmatmul.mubr.f32.gmra.mxu1 %v6553_v25  ;;  %7696 = vmatprep.subr.mxu0 %v19945_v61  ;;  %v6496_v46 = vrot.slane %v15682_v4, 7  ;;  %v15711_v30 = vmul.f32 %v15476_v62, %v20396_v20  ;;  %v15713_v23 = vadd.f32 %v5214_v33, %v4990_v47  ;;  %v6477_v6 = vsel %vm1280_vm1, %v6458_v56, %v6476_v28  ;;  %v5385_v56 = vld [vmem:[%s18912_s6 + $0x240] sm:$0xff] }
 0x40f   : > { %7319 = vmatmul.mubr.f32.gmra.mxu0 %v6459_v5  ;;  %7573 = vmatprep.mubr.f32.mxu1 %v6573_v17  ;;  %v15717_v27 = vsel %vm894_vm0, %v5776_v36, %v5778_v51  ;;  %v5780_v25 = vrot.slane %v15687_v45, 1  ;;  %v6571_v5 = vsel %vm1280_vm1, %v6552_v24, %v6570_v35  ;;  %v6588_v59 = vrot.slane %v15703_v26, 7  ;;  %v20398_v17 = vld [vmem:[#allocation63_spill] sm:$0xff]  ;;  %v20399_v24 = vld [vmem:[#allocation157_spill] sm:$0xff]  ;;  %v5415_v26 = vld [vmem:[%s18912_s6 + $0x330] sm:$0xff] }
 0x410   : > { %20397 = vst [vmem:[#allocation22_spill] sm:$0xff] %v15713_v23  ;;  %7323 = vmatprep.mubr.f32.mxu0 %v6479_v15  ;;  %7697 = vmatpush1.msra.mxu0 %v5386_v18  ;;  %v6494_v4 = vrot.slane %v15695_v48, 7  ;;  %v15725_v54 = vmul.f32 %v15355_v41, %v20398_v17  ;;  %v6591_v36 = vsel %vm1280_vm1, %v6572_v9, %v6590_v52  ;;  %v20400_v18 = vld [vmem:[#allocation159_spill] sm:$0xff]  ;;  %v6514_v9 = vrot.slane %v15717_v27, 7 }
 0x411   : > { %7698 = vmatprep.subr.mxu0 %v19945_v61  ;;  %v15735_v45 = vmul.f32 %v15713_v23, %v20399_v24  ;;  %v15738_v48 = vsel %vm2758_vm2, %v5877_v58, %v5879_v21  ;;  %v15742_v47 = vmul.f32 %v15713_v23, %v20400_v18  ;;  %v6497_v33 = vsel %vm1280_vm1, %v6478_v55, %v6496_v46  ;;  %v20403_v18 = vld [vmem:[#allocation65_spill] sm:$0xff] }
 0x412   : > { %7574 = vmatmul.mubr.f32.gmra.mxu1 %v6571_v5  ;;  %v5782_v50 = vrot.slane %v15711_v30, 1  ;;  %v15752_v15 = vsel %vm894_vm0, %v5778_v51, %v5780_v25  ;;  %v20401_v5 = vld [vmem:[#allocation30_spill] sm:$0xff]  ;;  %7699 = vmatpush1.msra.mxu0 %v5385_v56  ;;  %v6589_v55 = vsel %vm1280_vm1, %v6570_v35, %v6588_v59  ;;  %v6495_v27 = vsel %vm1280_vm1, %v6476_v28, %v6494_v4  ;;  %v5384_v51 = vld [vmem:[%s18912_s6 + $0x238] sm:$0xff] }
 0x413   : > { %7324 = vmatmul.mubr.f32.gmra.mxu0 %v6477_v6  ;;  %7578 = vmatprep.mubr.f32.mxu1 %v6591_v36  ;;  %v6608_v58 = vrot.slane %v15735_v45, 7  ;;  %v5881_v20 = vrot.slane %v15742_v47, 2  ;;  %v15757_v17 = vmul.f32 %v15520_v7, %v20401_v5  ;;  %v4994_v6 = vpop.f32.mrf.mxu0  ;;  %v6606_v30 = vrot.slane %v15738_v48, 7  ;;  %v20402_v36 = vld [vmem:[#allocation167_spill] sm:$0xff]  ;;  %v20415_v47 = vld [vmem:[#allocation32_spill] sm:$0xff] }
 0x414   : > { %7328 = vmatprep.mubr.f32.mxu0 %v6497_v33  ;;  %7700 = vmatprep.subr.mxu0 %v19945_v61  ;;  %v4995_v24 = vadd.f32 %v4994_v6, %v20402_v36  ;;  %v6512_v56 = vrot.slane %v15725_v54, 7  ;;  %v15771_v35 = vmul.f32 %v15400_v49, %v20403_v18  ;;  %v6515_v48 = vsel %vm1280_vm1, %v6496_v46, %v6514_v9  ;;  %v20405_v6 = vld [vmem:[#allocation6_spill] sm:$0xff]  ;;  %v5414_v46 = vld [vmem:[%s18912_s6 + $0x328] sm:$0xff] }
 0x415   : > { %7928 = vmatpush1.msra.mxu1 %v5415_v26  ;;  %v6609_v45 = vsel %vm1280_vm1, %v6590_v52, %v6608_v58  ;;  %v4996_v28 = vpop.f32.mrf.mxu0  ;;  %v6532_v33 = vrot.slane %v15752_v15, 7  ;;  %v15776_v26 = vsel %vm894_vm0, %v5780_v25, %v5782_v50  ;;  %v15784_v52 = vsel %vm2758_vm2, %v5879_v21, %v5881_v20  ;;  %7701 = vmatpush1.msra.mxu0 %v5384_v51  ;;  %v5383_v21 = vld [vmem:[%s18912_s6 + $0x230] sm:$0xff]  ;;  %v20407_v51 = vld [vmem:[#allocation67_spill] sm:$0xff] }
 0x416   : > { %7579 = vmatmul.mubr.f32.gmra.mxu1 %v6589_v55  ;;  %v15779_v5 = vadd.f32 %v15673_v19, %v4995_v24  ;;  %v5784_v54 = vrot.slane %v15757_v17, 1  ;;  %v15789_v55 = vmul.f32 %v15562_v12, %v20405_v6  ;;  %v6607_v19 = vsel %vm1280_vm1, %v6588_v59, %v6606_v30  ;;  %7702 = vmatprep.subr.mxu0 %v19945_v61  ;;  %v20406_v17 = vld [vmem:[#allocation160_spill] sm:$0xff]  ;;  %v20408_v18 = vld [vmem:[#allocation95_spill] sm:$0xff] }
 0x417   : > { %7329 = vmatmul.mubr.f32.gmra.mxu0 %v6495_v27  ;;  %7583 = vmatprep.mubr.f32.mxu1 %v6609_v45  ;;  %v6513_v25 = vsel %vm1280_vm1, %v6494_v4, %v6512_v56  ;;  %v6530_v15 = vrot.slane %v15771_v35, 7  ;;  %v15808_v59 = vmul.f32 %v15442_v53, %v20407_v51  ;;  %v6533_v36 = vsel %vm1280_vm1, %v6514_v9, %v6532_v33  ;;  %v5382_v35 = vld [vmem:[%s18912_s6 + $0x228] sm:$0xff] }
 0x418   : > { %20404 = vst [vmem:[#allocation115_spill] sm:$0xff] %v15779_v5  ;;  %7333 = vmatprep.mubr.f32.mxu0 %v6515_v48  ;;  %7929 = vmatprep.subr.mxu1 %v19945_v61  ;;  %v15804_v27 = vmul.f32 %v15779_v5, %v20406_v17  ;;  %v6550_v24 = vrot.slane %v15776_v26, 7  ;;  %v19423_v45 = vrot.slane %v15784_v52, 7  ;;  %v15815_v4 = vmul.f32 %v15779_v5, %v20408_v18  ;;  %v20409_v26 = vld [vmem:[#allocation31_spill] sm:$0xff] }
 0x419   : > { %7930 = vmatpush1.msra.mxu1 %v5414_v46  ;;  %v15822_v48 = vsel %vm894_vm0, %v5782_v50, %v5784_v54  ;;  %v5786_v9 = vrot.slane %v15789_v55, 1  ;;  %v15827_v6 = vmul.f32 %v15615_v10, %v20409_v26  ;;  %7703 = vmatpush1.msra.mxu0 %v5383_v21  ;;  %v6531_v46 = vsel %vm1280_vm1, %v6512_v56, %v6530_v15  ;;  %v20410_v55 = vld [vmem:[#allocation69_spill] sm:$0xff]  ;;  %v5413_v21 = vld [vmem:[%s18912_s6 + $0x320] sm:$0xff]  ;;  %v20411_v26 = vld [vmem:[#allocation7_spill] sm:$0xff] }
 0x41a   : > { %7584 = vmatmul.mubr.f32.gmra.mxu1 %v6607_v19  ;;  %v6626_v28 = vrot.slane %v15804_v27, 7  ;;  %7704 = vmatprep.subr.mxu0 %v19945_v61  ;;  %v15840_v17 = vmul.f32 %v15476_v62, %v20410_v55  ;;  %v6551_v51 = vsel %vm1280_vm1, %v6532_v33, %v6550_v24  ;;  %v6625_v56 = vsel %vm1280_vm1, %v6606_v30, %v19423_v45  ;;  %v20412_v30 = vld [vmem:[#allocation232_spill] sm:$0xff]  ;;  %v5408_v27 = vld [vmem:[%s18912_s6 + $0x2f8] sm:$0xff] }
 0x41b   : > { %7334 = vmatmul.mubr.f32.gmra.mxu0 %v6513_v25  ;;  %7931 = vmatprep.subr.mxu1 %v19945_v61  ;;  %v15831_v19 = vpop.f32.mrf.mxu1  ;;  %v6548_v25 = vrot.slane %v15808_v59, 7  ;;  %v19424_v59 = vrot.slane %v15815_v4, 2  ;;  %v5788_v33 = vrot.slane %v15827_v6, 1  ;;  %v20413_v6 = vld [vmem:[#allocation71_spill] sm:$0xff] }
 0x41c   : > { %7338 = vmatprep.mubr.f32.mxu0 %v6533_v36  ;;  %v6627_v50 = vsel %vm1280_vm1, %v6608_v58, %v6626_v28  ;;  %7705 = vmatpush1.msra.mxu0 %v5382_v35  ;;  %v6568_v58 = vrot.slane %v15822_v48, 7  ;;  %v5381_v36 = vld [vmem:[%s18912_s6 + $0x220] sm:$0xff]  ;;  %v15855_v35 = vsel %vm894_vm0, %v5784_v54, %v5786_v9  ;;  %v15871_v45 = vmul.f32 %v15520_v7, %v20413_v6 }
 0x41d   : > { %7588 = vmatprep.mubr.f32.mxu1 %v6627_v50  ;;  %7706 = vmatprep.subr.mxu0 %v19945_v61  ;;  %v5380_v50 = vld [vmem:[%s18912_s6 + $0x218] sm:$0xff]  ;;  %v5224_v55 = vpop.f32.mrf.mxu1  ;;  %v6549_v54 = vsel %vm1280_vm1, %v6530_v15, %v6548_v25  ;;  %v15883_v15 = vsel %vm2758_vm2, %v5881_v20, %v19424_v59  ;;  %v15898_v20 = vmul.f32 %v15779_v5, %v20415_v47 }
 0x41e   : > { %7589 = vmatmul.mubr.f32.gmra.mxu1 %v6625_v56  ;;  %v6566_v56 = vrot.slane %v15840_v17, 7  ;;  %7707 = vmatpush1.msra.mxu0 %v5381_v36  ;;  %v5379_v17 = vld [vmem:[%s18912_s6 + $0x210] sm:$0xff]  ;;  %v5412_v36 = vld [vmem:[%s18912_s6 + $0x318] sm:$0xff] }
 0x41f   : > { %7339 = vmatmul.mubr.f32.gmra.mxu0 %v6531_v46  ;;  %v4999_v18 = vpop.f32.mrf.mxu0  ;;  %v15860_v46 = vmul.f32 %v15713_v23, %v20411_v26  ;;  %7932 = vmatpush1.msra.mxu1 %v5413_v21  ;;  %v6569_v26 = vsel %vm1280_vm1, %v6550_v24, %v6568_v58  ;;  %v6586_v21 = vrot.slane %v15855_v35, 7  ;;  %v15893_v24 = vsel %vm894_vm0, %v5786_v9, %v5788_v33  ;;  %v5378_v9 = vld [vmem:[%s18912_s6 + $0x208] sm:$0xff] }
 0x420   : > { %7343 = vmatprep.mubr.f32.mxu0 %v6551_v51  ;;  %v5000_v48 = vadd.f32 %v4999_v18, %v20412_v30  ;;  %7933 = vmatprep.subr.mxu1 %v19945_v61  ;;  %v20416_v30 = vld [vmem:[#allocation161_spill] sm:$0xff] }
 0x421   : > { %v5001_v51 = vpop.f32.mrf.mxu0  ;;  %7708 = vmatprep.subr.mxu0 %v19945_v61  ;;  %v5790_v35 = vrot.slane %v15860_v46, 1  ;;  %v6567_v46 = vsel %vm1280_vm1, %v6548_v25, %v6566_v56  ;;  %7934 = vmatpush1.msra.mxu1 %v5412_v36  ;;  %v6587_v47 = vsel %vm1280_vm1, %v6568_v58, %v6586_v21  ;;  %v5377_v25 = vld [vmem:[%s18912_s6 + $0x200] sm:$0xff]  ;;  %v5792_v36 = vrot.slane %v15898_v20, 1  ;;  %v20419_v58 = vld [vmem:[#allocation8_spill] sm:$0xff] }
 0x422   : > { %v15874_v18 = vadd.f32 %v5224_v55, %v5000_v48  ;;  %7709 = vmatpush1.msra.mxu0 %v5380_v50  ;;  %v20417_v55 = vld [vmem:[#allocation72_spill] sm:$0xff]  ;;  %v6584_v50 = vrot.slane %v15871_v45, 7  ;;  %v20421_v20 = vrot.slane %v15784_v52, 7  ;;  %7935 = vmatprep.subr.mxu1 %v19945_v61 }
 0x423   : > { %7344 = vmatmul.mubr.f32.gmra.mxu0 %v6549_v54  ;;  %v15906_v51 = vmul.f32 %v15562_v12, %v20417_v55  ;;  %v20418_v54 = vld [vmem:[#allocation164_spill] sm:$0xff]  ;;  %7710 = vmatprep.subr.mxu0 %v19945_v61  ;;  %v6604_v55 = vrot.slane %v15893_v24, 7  ;;  %v20420_v24 = vld [vmem:[#allocation237_spill] sm:$0xff] }
 0x424   : > { %20414 = vst [vmem:[#allocation122_spill] sm:$0xff] %v15874_v18  ;;  %7348 = vmatprep.mubr.f32.mxu0 %v6569_v26  ;;  %v15902_v48 = vmul.f32 %v15874_v18, %v20416_v30  ;;  %v15910_v6 = vmul.f32 %v15874_v18, %v20418_v54  ;;  %v6642_v26 = vrot.slane %v15883_v15, 7  ;;  %7711 = vmatpush1.msra.mxu0 %v5379_v17  ;;  %v5410_v15 = vld [vmem:[%s18912_s6 + $0x308] sm:$0xff] }
 0x425   : > { %7712 = vmatprep.subr.mxu0 %v19945_v61  ;;  %v15928_v17 = vsel %vm894_vm0, %v5788_v33, %v5790_v35  ;;  %v6602_v54 = vrot.slane %v15906_v51, 7  ;;  %v6585_v33 = vsel %vm1280_vm1, %v6566_v56, %v6584_v50  ;;  %v20425_v51 = vrot.slane %v15815_v4, 2  ;;  %v20427_v4 = vld [vmem:[#allocation33_spill] sm:$0xff] }
 0x426   : > { %v6644_v30 = vrot.slane %v15902_v48, 7  ;;  %v5004_v45 = vpop.f32.mrf.mxu0  ;;  %v15933_v48 = vmul.f32 %v15874_v18, %v20419_v58  ;;  %7713 = vmatpush1.msra.mxu0 %v5378_v9  ;;  %v6643_v9 = vsel %vm1280_vm1, %v20421_v20, %v6642_v26  ;;  %v20422_v58 = vld [vmem:[#allocation78_spill] sm:$0xff]  ;;  %v6622_v52 = vrot.slane %v15928_v17, 7  ;;  %v20426_v17 = vld [vmem:[#allocation168_spill] sm:$0xff] }
 0x427   : > { %7349 = vmatmul.mubr.f32.gmra.mxu0 %v6567_v46  ;;  %v5005_v46 = vadd.f32 %v5004_v45, %v20420_v24  ;;  %7714 = vmatprep.subr.mxu0 %v19945_v61  ;;  %v15949_v45 = vmul.f32 %v15615_v10, %v20422_v58  ;;  %v20424_v56 = vrot.slane %v15910_v6, 2  ;;  %v20429_v58 = vld [vmem:[#allocation172_spill] sm:$0xff] }
 0x428   : > { %7353 = vmatprep.mubr.f32.mxu0 %v6587_v47  ;;  %v6645_v59 = vsel %vm1280_vm1, %v6626_v28, %v6644_v30  ;;  %v5006_v47 = vpop.f32.mrf.mxu0  ;;  %7715 = vmatpush1.msra.mxu0 %v5377_v25  ;;  %v5793_v25 = vsel %vm894_vm0, %v5790_v35, %v5792_v36  ;;  %v5407_v35 = vld [vmem:[%s18912_s6 + $0x2f0] sm:$0xff] }
 0x429   : > { %7593 = vmatprep.mubr.f32.mxu1 %v6645_v59  ;;  %v15955_v28 = vadd.f32 %v15831_v19, %v5005_v46  ;;  %v6605_v59 = vsel %vm1280_vm1, %v6586_v21, %v6604_v55  ;;  %v15964_v24 = vsel %vm2758_vm2, %v20425_v51, %v20424_v56  ;;  %v5794_v47 = vrot.slane %v15933_v48, 1  ;;  %7716 = vmatprep.subr.mxu0 %v19945_v61  ;;  %v5411_v19 = vld [vmem:[%s18912_s6 + $0x310] sm:$0xff] }
 0x42a   : > { %7594 = vmatmul.mubr.f32.gmra.mxu1 %v6643_v9  ;;  %v6603_v21 = vsel %vm1280_vm1, %v6584_v50, %v6602_v54  ;;  %7717 = vmatpush2.msra.mxu0 %v5408_v27  ;;  %v6620_v48 = vrot.slane %v15949_v45, 7  ;;  %v19425_v20 = vrot.slane %v15964_v24, 7  ;;  %v20428_v9 = vld [vmem:[#allocation79_spill] sm:$0xff]  ;;  %v6623_v27 = vsel %vm1280_vm1, %v6604_v55, %v6622_v52 }
 0x42b   : > { %20423 = vst [vmem:[#allocation24_spill] sm:$0xff] %v15955_v28  ;;  %7354 = vmatmul.mubr.f32.gmra.mxu0 %v6585_v33  ;;  %v15975_v46 = vmul.f32 %v15955_v28, %v20426_v17  ;;  %v15979_v33 = vmul.f32 %v15955_v28, %v20427_v4  ;;  %v5470_v50 = vmul.f32 %v15713_v23, %v20428_v9  ;;  %v6640_v51 = vrot.slane %v5793_v25, 7  ;;  %v5406_v45 = vld [vmem:[%s18912_s6 + $0x2e8] sm:$0xff] }
 0x42c   : > { %7358 = vmatprep.mubr.f32.mxu0 %v6605_v59  ;;  %v15990_v59 = vmul.f32 %v15955_v28, %v20429_v58  ;;  %7718 = vmatprep.subr.mxu0 %v19945_v61  ;;  %v5795_v17 = vsel %vm894_vm0, %v5792_v36, %v5794_v47  ;;  %v6661_v36 = vsel %vm1280_vm1, %v6642_v26, %v19425_v20 }
 0x42d   : > { %v6662_v56 = vrot.slane %v15975_v46, 7  ;;  %7936 = vmatpush1.msra.mxu1 %v5411_v19  ;;  %v5796_v4 = vrot.slane %v15979_v33, 1  ;;  %7719 = vmatpush2.msra.mxu0 %v5407_v35  ;;  %v6621_v19 = vsel %vm1280_vm1, %v6602_v54, %v6620_v48  ;;  %v6638_v35 = vrot.slane %v5470_v50, 7 }
 0x42e   : > { %v16001_v9 = vpop.f32.mrf.mxu1  ;;  %7720 = vmatprep.subr.mxu0 %v19945_v61  ;;  %v19426_v58 = vrot.slane %v15990_v59, 2  ;;  %v6658_v54 = vrot.slane %v5795_v17, 7  ;;  %7937 = vmatprep.subr.mxu1 %v19945_v61 }
 0x42f   : > { %7359 = vmatmul.mubr.f32.gmra.mxu0 %v6603_v21  ;;  %v6663_v55 = vsel %vm1280_vm1, %v6644_v30, %v6662_v56  ;;  %v20430_v21 = vld [vmem:[#allocation86_spill] sm:$0xff]  ;;  %v5797_v50 = vsel %vm894_vm0, %v5794_v47, %v5796_v4  ;;  %v20434_v47 = vrot.slane %v15910_v6, 2  ;;  %7938 = vmatpush1.msra.mxu1 %v5410_v15  ;;  %v20435_v6 = vld [vmem:[#allocation175_spill] sm:$0xff] }
 0x430   : > { %7363 = vmatprep.mubr.f32.mxu0 %v6623_v27  ;;  %v16008_v25 = vmul.f32 %v15779_v5, %v20430_v21  ;;  %7598 = vmatprep.mubr.f32.mxu1 %v6663_v55  ;;  %v5405_v30 = vld [vmem:[%s18912_s6 + $0x2e0] sm:$0xff]  ;;  %v6641_v55 = vsel %vm1280_vm1, %v6622_v52, %v6640_v51  ;;  %v20431_v21 = vld [vmem:[#allocation48_spill] sm:$0xff] }
 0x431   : > { %7721 = vmatpush2.msra.mxu0 %v5406_v45  ;;  %v5009_v27 = vpop.f32.mrf.mxu0  ;;  %7599 = vmatmul.mubr.f32.gmra.mxu1 %v6661_v36  ;;  %v5234_v45 = vpop.f32.mrf.mxu1  ;;  %v20432_v36 = vld [vmem:[#allocation87_spill] sm:$0xff] }
 0x432   : > { %v5010_v26 = vadd.f32 %v5009_v27, %v20431_v21  ;;  %7722 = vmatprep.subr.mxu0 %v19945_v61  ;;  %v16033_v52 = vmul.f32 %v15874_v18, %v20432_v36  ;;  %v6639_v27 = vsel %vm1280_vm1, %v6620_v48, %v6638_v35  ;;  %v6659_v48 = vsel %vm1280_vm1, %v6640_v51, %v6658_v54  ;;  %v20437_v36 = vld [vmem:[#allocation180_spill] sm:$0xff] }
 0x433   : > { %7364 = vmatmul.mubr.f32.gmra.mxu0 %v6621_v19  ;;  %v5011_v20 = vpop.f32.mrf.mxu0  ;;  %v6656_v19 = vrot.slane %v16008_v25, 7  ;;  %v5409_v25 = vld [vmem:[%s18912_s6 + $0x300] sm:$0xff]  ;;  %7939 = vmatprep.subr.mxu1 %v19945_v61 }
 0x434   : > { %7368 = vmatprep.mubr.f32.mxu0 %v6641_v55  ;;  %7723 = vmatpush2.msra.mxu0 %v5405_v30  ;;  %v16036_v17 = vadd.f32 %v5234_v45, %v5010_v26  ;;  %v16044_v55 = vsel %vm2758_vm2, %v20434_v47, %v19426_v58  ;;  %v5404_v20 = vld [vmem:[%s18912_s6 + $0x2d8] sm:$0xff]  ;;  %v6676_v30 = vrot.slane %v5797_v50, 7  ;;  %v6674_v47 = vrot.slane %v16033_v52, 7  ;;  %v20438_v58 = vld [vmem:[#allocation94_spill] sm:$0xff] }
 0x435   : > { %7724 = vmatprep.subr.mxu0 %v19945_v61  ;;  %v20436_v26 = vld [vmem:[#allocation9_spill] sm:$0xff]  ;;  %v6657_v51 = vsel %vm1280_vm1, %v6638_v35, %v6656_v19  ;;  %v6678_v50 = vrot.slane %v16044_v55, 7  ;;  %7940 = vmatpush1.msra.mxu1 %v5409_v25  ;;  %v5403_v35 = vld [vmem:[%s18912_s6 + $0x2d0] sm:$0xff] }
 0x436   : > { %20433 = vst [vmem:[#allocation135_spill] sm:$0xff] %v16036_v17  ;;  %v5565_v21 = vmul.f32 %v16036_v17, %v20435_v6  ;;  %v5504_v45 = vmul.f32 %v16036_v17, %v20436_v26  ;;  %v16061_v15 = vmul.f32 %v16036_v17, %v20437_v36  ;;  %7725 = vmatpush2.msra.mxu0 %v5404_v20  ;;  %v20439_v20 = vld [vmem:[#allocation178_spill] sm:$0xff]  ;;  %v20440_v36 = vrot.slane %v15964_v24, 7  ;;  %v5402_v24 = vld [vmem:[%s18912_s6 + $0x2c8] sm:$0xff] }
 0x437   : > { %7369 = vmatmul.mubr.f32.gmra.mxu0 %v6639_v27  ;;  %v5440_v27 = vld [vmem:[%s18912_s6 + $0x3f8] sm:$0xff]  ;;  %v16071_v26 = vmul.f32 %v15955_v28, %v20438_v58  ;;  %7726 = vmatprep.subr.mxu0 %v19945_v61  ;;  %v6677_v52 = vsel %vm1280_vm1, %v6658_v54, %v6676_v30  ;;  %v6675_v46 = vsel %vm1280_vm1, %v6656_v19, %v6674_v47 }
 0x438   : > { %7373 = vmatprep.mubr.f32.mxu0 %v6659_v48  ;;  %v6680_v48 = vrot.slane %v5565_v21, 7  ;;  %v5798_v6 = vrot.slane %v5504_v45, 1  ;;  %7941 = vmatprep.subr.mxu1 %v19945_v61  ;;  %v20442_v33 = vrot.slane %v16061_v15, 2 }
 0x439   : > { %v5014_v55 = vpop.f32.mrf.mxu0  ;;  %7942 = vmatpush2.msra.mxu1 %v5440_v27  ;;  %7727 = vmatpush2.msra.mxu0 %v5403_v35 }
 0x43a   : > { %v5015_v25 = vadd.f32 %v5014_v55, %v20439_v20  ;;  %v6681_v58 = vsel %vm1280_vm1, %v6662_v56, %v6680_v48  ;;  %v5799_v21 = vsel %vm894_vm0, %v5796_v4, %v5798_v6  ;;  %v6692_v56 = vrot.slane %v16071_v26, 7  ;;  %7728 = vmatprep.subr.mxu0 %v19945_v61  ;;  %7943 = vmatprep.subr.mxu1 %v19945_v61  ;;  %v20446_v55 = vld [vmem:[#allocation98_spill] sm:$0xff]  ;;  %v5438_v20 = vld [vmem:[%s18912_s6 + $0x3e8] sm:$0xff] }
 0x43b   : > { %7374 = vmatmul.mubr.f32.gmra.mxu0 %v6657_v51  ;;  %v5016_v45 = vpop.f32.mrf.mxu0  ;;  %7603 = vmatprep.mubr.f32.mxu1 %v6681_v58  ;;  %v6679_v51 = vsel %vm1280_vm1, %v20440_v36, %v6678_v50  ;;  %v6694_v42 = vrot.slane %v5799_v21, 7  ;;  %v20443_v4 = vrot.slane %v15990_v59, 2  ;;  %v20444_v59 = vld [vmem:[#allocation176_spill] sm:$0xff]  ;;  %v20445_v36 = vld [vmem:[#allocation34_spill] sm:$0xff] }
 0x43c   : > { %7378 = vmatprep.mubr.f32.mxu0 %v6677_v52  ;;  %v16091_v54 = vadd.f32 %v16001_v9, %v5015_v25  ;;  %7604 = vmatmul.mubr.f32.gmra.mxu1 %v6679_v51  ;;  %v5439_v9 = vld [vmem:[%s18912_s6 + $0x3f0] sm:$0xff]  ;;  %v16121_v52 = vmul.f32 %v16036_v17, %v20446_v55  ;;  %v20447_v25 = vld [vmem:[#allocation183_spill] sm:$0xff]  ;;  %v5401_v21 = vld [vmem:[%s18912_s6 + $0x2c0] sm:$0xff]  ;;  %v6693_v45 = vsel %vm1280_vm1, %v6674_v47, %v6692_v56 }
 0x43d   : > { %v16100_v27 = vsel %vm2758_vm2, %v20443_v4, %v20442_v33  ;;  %v6695_v19 = vsel %vm1280_vm1, %v6676_v30, %v6694_v42  ;;  %7729 = vmatpush2.msra.mxu0 %v5402_v24  ;;  %7944 = vmatpush2.msra.mxu1 %v5439_v9  ;;  %v5400_v33 = vld [vmem:[%s18912_s6 + $0x2b8] sm:$0xff] }
 0x43e   : > { %20441 = vst [vmem:[#allocation129_spill] sm:$0xff] %v16091_v54  ;;  %v16113_v26 = vmul.f32 %v16091_v54, %v20444_v59  ;;  %v16117_v35 = vmul.f32 %v16091_v54, %v20445_v36  ;;  %v6696_v30 = vrot.slane %v16100_v27, 7  ;;  %v16129_v58 = vmul.f32 %v16091_v54, %v20447_v25  ;;  %7730 = vmatprep.subr.mxu0 %v19945_v61  ;;  %v20448_v36 = vld [vmem:[#allocation55_spill] sm:$0xff]  ;;  %v5433_v27 = vld [vmem:[%s18912_s6 + $0x3c0] sm:$0xff] }
 0x43f   : > { %7379 = vmatmul.mubr.f32.gmra.mxu0 %v6675_v46  ;;  %7945 = vmatprep.subr.mxu1 %v19945_v61  ;;  %v6710_v9 = vrot.slane %v16121_v52, 7 }
 0x440   : > { %7383 = vmatprep.mubr.f32.mxu0 %v6695_v19  ;;  %v6698_v51 = vrot.slane %v16113_v26, 7  ;;  %v5800_v46 = vrot.slane %v16117_v35, 1  ;;  %7946 = vmatpush2.msra.mxu1 %v5438_v20  ;;  %v6697_v19 = vsel %vm1280_vm1, %v6678_v50, %v6696_v30  ;;  %v5891_v26 = vrot.slane %v16129_v58, 2  ;;  %v5398_v50 = vld [vmem:[%s18912_s6 + $0x2a8] sm:$0xff]  ;;  %v5437_v20 = vld [vmem:[%s18912_s6 + $0x3e0] sm:$0xff] }
 0x441   : > { %v16142_v4 = vpop.f32.mrf.mxu1  ;;  %7731 = vmatpush2.msra.mxu0 %v5401_v21  ;;  %7947 = vmatprep.subr.mxu1 %v19945_v61  ;;  %v6711_v21 = vsel %vm1280_vm1, %v6692_v56, %v6710_v9  ;;  %v5436_v56 = vld [vmem:[%s18912_s6 + $0x3d8] sm:$0xff] }
 0x442   : > { %v6699_v24 = vsel %vm1280_vm1, %v6680_v48, %v6698_v51  ;;  %v16146_v47 = vsel %vm894_vm0, %v5798_v6, %v5800_v46  ;;  %7732 = vmatprep.subr.mxu0 %v19945_v61  ;;  %v5399_v48 = vld [vmem:[%s18912_s6 + $0x2b0] sm:$0xff]  ;;  %7948 = vmatpush2.msra.mxu1 %v5437_v20 }
 0x443   : > { %7384 = vmatmul.mubr.f32.gmra.mxu0 %v6693_v45  ;;  %7608 = vmatprep.mubr.f32.mxu1 %v6699_v24  ;;  %v6712_v59 = vrot.slane %v16146_v47, 7  ;;  %v5244_v25 = vpop.f32.mrf.mxu1  ;;  %v20450_v45 = vrot.slane %v16061_v15, 2  ;;  %v5397_v24 = vld [vmem:[%s18912_s6 + $0x2a0] sm:$0xff]  ;;  %v20451_v47 = vld [vmem:[#allocation97_spill] sm:$0xff] }
 0x444   : > { %7609 = vmatmul.mubr.f32.gmra.mxu1 %v6697_v19  ;;  %7733 = vmatpush2.msra.mxu0 %v5400_v33 }
 0x445   : > { %v5019_v6 = vpop.f32.mrf.mxu0  ;;  %v6713_v55 = vsel %vm1280_vm1, %v6694_v42, %v6712_v59  ;;  %7734 = vmatprep.subr.mxu0 %v19945_v61  ;;  %v16176_v33 = vsel %vm2758_vm2, %v20450_v45, %v5891_v26  ;;  %7949 = vmatprep.subr.mxu1 %v19945_v61 }
 0x446   : > { %v5020_v35 = vadd.f32 %v5019_v6, %v20448_v36  ;;  %7388 = vmatprep.mubr.f32.mxu0 %v6713_v55  ;;  %7735 = vmatpush2.msra.mxu0 %v5399_v48  ;;  %v20452_v48 = vld [vmem:[#allocation10_spill] sm:$0xff]  ;;  %v20453_v6 = vld [vmem:[#allocation99_spill] sm:$0xff]  ;;  %v6714_v20 = vrot.slane %v16176_v33, 7 }
 0x447   : > { %v5021_v58 = vpop.f32.mrf.mxu0  ;;  %7389 = vmatmul.mubr.f32.gmra.mxu0 %v6711_v21  ;;  %7736 = vmatprep.subr.mxu0 %v19945_v61  ;;  %v16191_v36 = vmul.f32 %v16091_v54, %v20453_v6 }
 0x448   : > { %v16171_v42 = vadd.f32 %v5244_v25, %v5020_v35  ;;  %7737 = vmatpush2.msra.mxu0 %v5398_v50  ;;  %v20454_v35 = vld [vmem:[#allocation190_spill] sm:$0xff]  ;;  %v5396_v50 = vld [vmem:[%s18912_s6 + $0x298] sm:$0xff]  ;;  %v5435_v25 = vld [vmem:[%s18912_s6 + $0x3d0] sm:$0xff]  ;;  %7950 = vmatpush2.msra.mxu1 %v5436_v56 }
 0x449   : > { %7738 = vmatprep.subr.mxu0 %v19945_v61  ;;  %7951 = vmatprep.subr.mxu1 %v19945_v61  ;;  %v5434_v56 = vld [vmem:[%s18912_s6 + $0x3c8] sm:$0xff] }
 0x44a   : > { %20449 = vst [vmem:[#allocation21_spill] sm:$0xff] %v16171_v42  ;;  %v5567_v19 = vmul.f32 %v16171_v42, %v20451_v47  ;;  %v5506_v15 = vmul.f32 %v16171_v42, %v20452_v48  ;;  %v16195_v55 = vmul.f32 %v16171_v42, %v20454_v35  ;;  %7739 = vmatpush2.msra.mxu0 %v5397_v24  ;;  %v20455_v48 = vld [vmem:[#allocation245_spill] sm:$0xff]  ;;  %v6728_v35 = vrot.slane %v16191_v36, 7 }
 0x44b   : > { %7740 = vmatprep.subr.mxu0 %v19945_v61  ;;  %7952 = vmatpush2.msra.mxu1 %v5435_v25 }
 0x44c   : > { %v6716_v58 = vrot.slane %v5567_v19, 7  ;;  %v5802_v21 = vrot.slane %v5506_v15, 1  ;;  %v5893_v45 = vrot.slane %v16195_v55, 2  ;;  %v5024_v47 = vpop.f32.mrf.mxu0  ;;  %7741 = vmatpush2.msra.mxu0 %v5396_v50  ;;  %v5395_v19 = vld [vmem:[%s18912_s6 + $0x290] sm:$0xff]  ;;  %v6715_v50 = vsel %vm1280_vm1, %v6696_v30, %v6714_v20  ;;  %7953 = vmatprep.subr.mxu1 %v19945_v61 }
 0x44d   : > { %v5025_v33 = vadd.f32 %v5024_v47, %v20455_v48  ;;  %7742 = vmatprep.subr.mxu0 %v19945_v61  ;;  %7954 = vmatpush2.msra.mxu1 %v5434_v56  ;;  %v6729_v30 = vsel %vm1280_vm1, %v6710_v9, %v6728_v35  ;;  %v20460_v9 = vld [vmem:[#allocation196_spill] sm:$0xff] }
 0x44e   : > { %v6717_v24 = vsel %vm1280_vm1, %v6698_v51, %v6716_v58  ;;  %v5803_v6 = vsel %vm894_vm0, %v5800_v46, %v5802_v21  ;;  %v5026_v15 = vpop.f32.mrf.mxu0  ;;  %v16229_v36 = vsel %vm2758_vm2, %v5891_v26, %v5893_v45  ;;  %7743 = vmatpush2.msra.mxu0 %v5395_v19  ;;  %v20458_v26 = vld [vmem:[#allocation36_spill] sm:$0xff]  ;;  %7955 = vmatprep.subr.mxu1 %v19945_v61  ;;  %v5432_v19 = vld [vmem:[%s18912_s6 + $0x3b8] sm:$0xff] }
 0x44f   : > { %7613 = vmatprep.mubr.f32.mxu1 %v6717_v24  ;;  %v6730_v51 = vrot.slane %v5803_v6, 7  ;;  %v16224_v46 = vadd.f32 %v16142_v4, %v5025_v33  ;;  %v20457_v4 = vld [vmem:[#allocation191_spill] sm:$0xff]  ;;  %v19429_v52 = vrot.slane %v16229_v36, 7  ;;  %7956 = vmatpush2.msra.mxu1 %v5433_v27  ;;  %v5393_v27 = vld [vmem:[%s18912_s6 + $0x280] sm:$0xff] }
 0x450   : > { %7614 = vmatmul.mubr.f32.gmra.mxu1 %v6715_v50  ;;  %v5394_v24 = vld [vmem:[%s18912_s6 + $0x288] sm:$0xff]  ;;  %7744 = vmatprep.subr.mxu0 %v19945_v61 }
 0x451   : > { %20456 = vst [vmem:[#allocation39_spill] sm:$0xff] %v16224_v46  ;;  %v6731_v25 = vsel %vm1280_vm1, %v6712_v59, %v6730_v51  ;;  %v16241_v47 = vmul.f32 %v16224_v46, %v20457_v4  ;;  %v16245_v48 = vmul.f32 %v16224_v46, %v20458_v26  ;;  %v20459_v59 = vld [vmem:[#allocation100_spill] sm:$0xff]  ;;  %v16257_v6 = vmul.f32 %v16224_v46, %v20460_v9 }
 0x452   : > { %7393 = vmatprep.mubr.f32.mxu0 %v6731_v25  ;;  %v16249_v33 = vmul.f32 %v16171_v42, %v20459_v59  ;;  %7957 = vmatprep.subr.mxu1 %v19945_v61  ;;  %v6733_v26 = vsel %vm1280_vm1, %v6714_v20, %v19429_v52  ;;  %v5430_v59 = vld [vmem:[%s18912_s6 + $0x3a8] sm:$0xff]  ;;  %v16290_v20 = vld [vmem:[%s18912_s6 + $0x478] sm:$0xff] }
 0x453   : > { %7394 = vmatmul.mubr.f32.gmra.mxu0 %v6729_v30  ;;  %v6734_v56 = vrot.slane %v16241_v47, 7  ;;  %v5804_v15 = vrot.slane %v16245_v48, 1  ;;  %7958 = vmatpush2.msra.mxu1 %v5432_v19  ;;  %v5431_v47 = vld [vmem:[%s18912_s6 + $0x3b0] sm:$0xff] }
 0x454   : > { %7745 = vmatpush2.msra.mxu0 %v5394_v24  ;;  %v8781_v50 = vpop.f32.mrf.mxu1  ;;  %v19428_v4 = vrot.slane %v16249_v33, 7  ;;  %7959 = vmatprep.subr.mxu1 %v19945_v61 }
 0x455   : > { %v6735_v25 = vsel %vm1280_vm1, %v6716_v58, %v6734_v56  ;;  %v5805_v30 = vsel %vm894_vm0, %v5802_v21, %v5804_v15  ;;  %v5895_v58 = vrot.slane %v16257_v6, 2  ;;  %7746 = vmatprep.subr.mxu0 %v19945_v61  ;;  %7960 = vmatpush2.msra.mxu1 %v5431_v47  ;;  %v20462_v47 = vld [vmem:[#allocation192_spill] sm:$0xff] }
 0x456   : > { %7618 = vmatprep.mubr.f32.mxu1 %v6735_v25  ;;  %v6748_v48 = vrot.slane %v5805_v30, 7  ;;  %7747 = vmatpush2.msra.mxu0 %v5393_v27  ;;  %v5254_v6 = vpop.f32.mrf.mxu1  ;;  %v6747_v25 = vsel %vm1280_vm1, %v6728_v35, %v19428_v4  ;;  %v5428_v35 = vld [vmem:[%s18912_s6 + $0x398] sm:$0xff] }
 0x457   : > { %v5029_v21 = vpop.f32.mrf.mxu0  ;;  %7619 = vmatmul.mubr.f32.gmra.mxu1 %v6733_v26  ;;  %7961 = vmatprep.subr.mxu1 %v19945_v61  ;;  %v5896_v30 = vsel %vm2758_vm2, %v5893_v45, %v5895_v58  ;;  %v20463_v26 = vld [vmem:[#allocation12_spill] sm:$0xff] }
 0x458   : > { %v5030_v24 = vadd.f32 %v5029_v21, %v13961_v31  ;;  %v6749_v9 = vsel %vm1280_vm1, %v6730_v51, %v6748_v48  ;;  %v5429_v31 = vld [vmem:[%s18912_s6 + $0x3a0] sm:$0xff]  ;;  %7962 = vmatpush2.msra.mxu1 %v5430_v59  ;;  %8797 = vmatprep.subr.mxu0 %v16290_v20  ;;  %v6750_v59 = vrot.slane %v5896_v30, 7 }
 0x459   : > { %v5031_v19 = vpop.f32.mrf.mxu0  ;;  %7398 = vmatprep.mubr.f32.mxu0 %v6749_v9  ;;  %7963 = vmatprep.subr.mxu1 %v19945_v61  ;;  %v20465_v9 = vld [vmem:[#allocation199_spill] sm:$0xff] }
 0x45a   : > { %v16299_v51 = vadd.f32 %v5254_v6, %v5030_v24  ;;  %7399 = vmatmul.mubr.f32.gmra.mxu0 %v6747_v25  ;;  %v20464_v24 = vld [vmem:[#allocation106_spill] sm:$0xff]  ;;  %7964 = vmatpush2.msra.mxu1 %v5429_v31  ;;  %v5427_v6 = vld [vmem:[%s18912_s6 + $0x390] sm:$0xff] }
 0x45b   : > { %v5477_v55 = vmul.f32 %v16224_v46, %v20464_v24  ;;  %7965 = vmatprep.subr.mxu1 %v19945_v61 }
 0x45c   : > { %20461 = vst [vmem:[#allocation2_spill] sm:$0xff] %v16299_v51  ;;  %v5569_v27 = vmul.f32 %v16299_v51, %v20462_v47  ;;  %v5508_v21 = vmul.f32 %v16299_v51, %v20463_v26  ;;  %v5538_v45 = vmul.f32 %v16299_v51, %v20465_v9  ;;  %7966 = vmatpush2.msra.mxu1 %v5428_v35  ;;  %v5426_v9 = vld [vmem:[%s18912_s6 + $0x388] sm:$0xff] }
 0x45d   : > { %7967 = vmatprep.subr.mxu1 %v19945_v61  ;;  %v6764_v30 = vrot.slane %v5477_v55, 7  ;;  %v20469_v55 = vld [vmem:[#allocation104_spill] sm:$0xff] }
 0x45e   : > { %v6752_v19 = vrot.slane %v5569_v27, 7  ;;  %v5806_v25 = vrot.slane %v5508_v21, 1  ;;  %v5897_v47 = vrot.slane %v5538_v45, 2  ;;  %7968 = vmatpush2.msra.mxu1 %v5427_v6  ;;  %v20466_v27 = vrot.slane %v16229_v36, 7 }
 0x45f   : > { %v5034_v4 = vpop.f32.mrf.mxu0  ;;  %7969 = vmatprep.subr.mxu1 %v19945_v61  ;;  %v20468_v36 = vrot.slane %v16249_v33, 7 }
 0x460   : > { %v5035_v26 = vadd.f32 %v5034_v4, %v14029_v37  ;;  %v6753_v24 = vsel %vm1280_vm1, %v6734_v56, %v6752_v19  ;;  %v5807_v31 = vsel %vm894_vm0, %v5804_v15, %v5806_v25  ;;  %v6751_v35 = vsel %vm1280_vm1, %v20466_v27, %v6750_v59  ;;  %7970 = vmatpush2.msra.mxu1 %v5426_v9 }
 0x461   : > { %v5036_v52 = vpop.f32.mrf.mxu0  ;;  %7623 = vmatprep.mubr.f32.mxu1 %v6753_v24  ;;  %v6766_v21 = vrot.slane %v5807_v31, 7  ;;  %v5898_v56 = vsel %vm2758_vm2, %v5895_v58, %v5897_v47  ;;  %v6765_v4 = vsel %vm1280_vm1, %v20468_v36, %v6764_v30  ;;  %v20472_v24 = vld [vmem:[#allocation203_spill] sm:$0xff]  ;;  %7971 = vmatprep.subr.mxu1 %v19945_v61 }
 0x462   : > { %v16332_v37 = vadd.f32 %v8781_v50, %v5035_v26  ;;  %7624 = vmatmul.mubr.f32.gmra.mxu1 %v6751_v35  ;;  %v5425_v52 = vld [vmem:[%s18912_s6 + $0x380] sm:$0xff]  ;;  %v20470_v50 = vld [vmem:[#allocation41_spill] sm:$0xff]  ;;  %v20471_v26 = vld [vmem:[#allocation107_spill] sm:$0xff] }
 0x463   : > { %v6767_v15 = vsel %vm1280_vm1, %v6748_v48, %v6766_v21  ;;  %v5478_v58 = vmul.f32 %v16299_v51, %v20471_v26  ;;  %v6768_v48 = vrot.slane %v5898_v56, 7  ;;  %7972 = vmatpush2.msra.mxu1 %v5425_v52  ;;  %v20473_v26 = vld [vmem:[#allocation68_spill] sm:$0xff] }
 0x464   : > { %20467 = vst [vmem:[#allocation137_spill] sm:$0xff] %v16332_v37  ;;  %7403 = vmatprep.mubr.f32.mxu0 %v6767_v15  ;;  %v5570_v45 = vmul.f32 %v16332_v37, %v20469_v55  ;;  %v5509_v6 = vmul.f32 %v16332_v37, %v20470_v50  ;;  %v5539_v31 = vmul.f32 %v16332_v37, %v20472_v24 }
 0x465   : > { %7404 = vmatmul.mubr.f32.gmra.mxu0 %v6765_v4  ;;  %8877 = vmatprep.subr.mxu1 %v16290_v20  ;;  %v6782_v36 = vrot.slane %v5478_v58, 7  ;;  %v6769_v4 = vsel %vm1280_vm1, %v6750_v59, %v6768_v48  ;;  %v20475_v58 = vld [vmem:[#allocation204_spill] sm:$0xff] }
 0x466   : > { %v6770_v9 = vrot.slane %v5570_v45, 7  ;;  %v5808_v33 = vrot.slane %v5509_v6, 1  ;;  %v5899_v55 = vrot.slane %v5539_v31, 2  ;;  %v20476_v31 = vld [vmem:[#allocation14_spill] sm:$0xff] }
 0x467   : > { %v8784_v27 = vpop.f32.mrf.mxu1  ;;  %v6783_v24 = vsel %vm1280_vm1, %v6764_v30, %v6782_v36 }
 0x468   : > { %v6771_v35 = vsel %vm1280_vm1, %v6752_v19, %v6770_v9  ;;  %v5809_v15 = vsel %vm894_vm0, %v5806_v25, %v5808_v33  ;;  %v5900_v25 = vsel %vm2758_vm2, %v5897_v47, %v5899_v55 }
 0x469   : > { %7628 = vmatprep.mubr.f32.mxu1 %v6771_v35  ;;  %v6784_v56 = vrot.slane %v5809_v15, 7  ;;  %v5264_v52 = vpop.f32.mrf.mxu1  ;;  %v20477_v15 = vld [vmem:[#allocation15_spill] sm:$0xff] }
 0x46a   : > { %v5039_v50 = vpop.f32.mrf.mxu0  ;;  %7629 = vmatmul.mubr.f32.gmra.mxu1 %v6769_v4  ;;  %v5479_v4 = vmul.f32 %v16332_v37, %v20477_v15 }
 0x46b   : > { %v5040_v61 = vadd.f32 %v5039_v50, %v20473_v26  ;;  %v6785_v45 = vsel %vm1280_vm1, %v6766_v21, %v6784_v56  ;;  %v20478_v21 = vld [vmem:[#allocation43_spill] sm:$0xff]  ;;  %v6786_v26 = vrot.slane %v5900_v25, 7 }
 0x46c   : > { %v5041_v6 = vpop.f32.mrf.mxu0  ;;  %7408 = vmatprep.mubr.f32.mxu0 %v6785_v45  ;;  %v6800_v1 = vrot.slane %v5479_v4, 7  ;;  %v20482_v4 = vld [vmem:[#allocation46_spill] sm:$0xff] }
 0x46d   : > { %v16358_v19 = vadd.f32 %v5264_v52, %v5040_v61  ;;  %7409 = vmatmul.mubr.f32.gmra.mxu0 %v6783_v24  ;;  %v20479_v6 = vld [vmem:[#allocation189_spill] sm:$0xff] }
 0x46f   : > { %20474 = vst [vmem:[#allocation141_spill] sm:$0xff] %v16358_v19  ;;  %v5571_v59 = vmul.f32 %v16358_v19, %v20475_v58  ;;  %v5510_v35 = vmul.f32 %v16358_v19, %v20476_v31  ;;  %v5540_v50 = vmul.f32 %v16358_v19, %v20478_v21  ;;  %v6787_v31 = vsel %vm1280_vm1, %v6768_v48, %v6786_v26  ;;  %v20483_v21 = vld [vmem:[#allocation110_spill] sm:$0xff] }
 0x470   : > { %v16386_v48 = vmul.f32 %v16358_v19, %v20483_v21  ;;  %v20487_v19 = vld [vmem:[#allocation77_spill] sm:$0xff] }
 0x471   : > { %v6788_v45 = vrot.slane %v5571_v59, 7  ;;  %v5810_v30 = vrot.slane %v5510_v35, 1  ;;  %v5901_v61 = vrot.slane %v5540_v50, 2  ;;  %v6801_v35 = vsel %vm1280_vm1, %v6782_v36, %v6800_v1 }
 0x472   : > { %v5044_v52 = vpop.f32.mrf.mxu0 }
 0x473   : > { %v5045_v24 = vadd.f32 %v5044_v52, %v20479_v6  ;;  %v6789_v47 = vsel %vm1280_vm1, %v6770_v9, %v6788_v45  ;;  %v5811_v58 = vsel %vm894_vm0, %v5808_v33, %v5810_v30  ;;  %v16376_v25 = vsel %vm2758_vm2, %v5899_v55, %v5901_v61  ;;  %v20481_v9 = vld [vmem:[#allocation205_spill] sm:$0xff]  ;;  %v20484_v55 = vld [vmem:[#allocation208_spill] sm:$0xff] }
 0x474   : > { %v5046_v63 = vpop.f32.mrf.mxu0  ;;  %7633 = vmatprep.mubr.f32.mxu1 %v6789_v47  ;;  %v6802_v15 = vrot.slane %v5811_v58, 7  ;;  %v20485_v6 = vld [vmem:[#allocation116_spill] sm:$0xff] }
 0x475   : > { %v16373_v11 = vadd.f32 %v8784_v27, %v5045_v24  ;;  %7634 = vmatmul.mubr.f32.gmra.mxu1 %v6787_v31  ;;  %v6804_v27 = vrot.slane %v16376_v25, 7  ;;  %v5614_v36 = vmul.f32 %v15221_v0, %v20485_v6  ;;  %v6818_v31 = vrot.slane %v16386_v48, 7 }
 0x476   : > { %v6803_v59 = vsel %vm1280_vm1, %v6784_v56, %v6802_v15 }
 0x477   : > { %20480 = vst [vmem:[#allocation45_spill] sm:$0xff] %v16373_v11  ;;  %7413 = vmatprep.mubr.f32.mxu0 %v6803_v59  ;;  %v5572_v33 = vmul.f32 %v16373_v11, %v20481_v9  ;;  %v5511_v63 = vmul.f32 %v16373_v11, %v20482_v4  ;;  %v5541_v50 = vmul.f32 %v16373_v11, %v20484_v55  ;;  %v20486_v59 = vld [vmem:[#allocation112_spill] sm:$0xff] }
 0x478   : > { %7414 = vmatmul.mubr.f32.gmra.mxu0 %v6801_v35  ;;  %v5613_v35 = vmul.f32 %v15207_v16, %v20486_v59  ;;  %v6805_v25 = vsel %vm1280_vm1, %v6786_v26, %v6804_v27  ;;  %v20488_v59 = vld [vmem:[#allocation81_spill] sm:$0xff] }
 0x479   : > { %v6806_v56 = vrot.slane %v5572_v33, 7  ;;  %v5812_v52 = vrot.slane %v5511_v63, 1  ;;  %v5903_v4 = vrot.slane %v5541_v50, 2  ;;  %v6047_v63 = vrot.slane %v5614_v36, 2 }
 0x47a   : > { %v8787_v24 = vpop.f32.mrf.mxu1  ;;  %v6046_v48 = vrot.slane %v5613_v35, 2  ;;  %v5582_v26 = vmul.f32 %v15221_v0, %v20488_v59 }
 0x47b   : > { %v6807_v47 = vsel %vm1280_vm1, %v6788_v45, %v6806_v56  ;;  %v5813_v58 = vsel %vm894_vm0, %v5810_v30, %v5812_v52  ;;  %v6819_v30 = vsel %vm1280_vm1, %v6800_v1, %v6818_v31  ;;  %v16409_v36 = vsel %vm2758_vm2, %v5901_v61, %v5903_v4  ;;  %v20491_v1 = vld [vmem:[#allocation211_spill] sm:$0xff] }
 0x47c   : > { %7638 = vmatprep.mubr.f32.mxu1 %v6807_v47  ;;  %v6820_v9 = vrot.slane %v5813_v58, 7  ;;  %v5274_v45 = vpop.f32.mrf.mxu1  ;;  %v5581_v47 = vmul.f32 %v15207_v16, %v20487_v19  ;;  %v20492_v19 = vld [vmem:[#allocation16_spill] sm:$0xff]  ;;  %v6394_v51 = vrot.slane %v6046_v48, 7 }
 0x47d   : > { %v5049_v33 = vpop.f32.mrf.mxu0  ;;  %7639 = vmatmul.mubr.f32.gmra.mxu1 %v6805_v25 }
 0x47e   : > { %v5050_v21 = vadd.f32 %v5049_v33, %v14244_v43  ;;  %v6821_v55 = vsel %vm1280_vm1, %v6802_v15, %v6820_v9  ;;  %v16412_v43 = vsel %vm2758_vm2, %v6046_v48, %v6047_v63  ;;  %v20490_v15 = vld [vmem:[#allocation123_spill] sm:$0xff]  ;;  %v20493_v33 = vld [vmem:[#allocation53_spill] sm:$0xff] }
 0x47f   : > { %v5051_v6 = vpop.f32.mrf.mxu0  ;;  %7418 = vmatprep.mubr.f32.mxu0 %v6821_v55  ;;  %v16416_v58 = vmul.f32 %v15235_v34, %v20490_v15  ;;  %v20494_v55 = vld [vmem:[#allocation213_spill] sm:$0xff] }
 0x480   : > { %v16406_v50 = vadd.f32 %v5274_v45, %v5050_v21  ;;  %7419 = vmatmul.mubr.f32.gmra.mxu0 %v6819_v30  ;;  %v16424_v21 = vmul.f32 %v16373_v11, %v20493_v33  ;;  %v6822_v45 = vrot.slane %v16409_v36, 7  ;;  %v5951_v6 = vrot.slane %v5581_v47, 1 }
 0x481   : > { %v5952_v30 = vrot.slane %v5582_v26, 1  ;;  %v6049_v11 = vrot.slane %v16416_v58, 2  ;;  %v20497_v58 = vld [vmem:[#allocation228_spill] sm:$0xff] }
 0x482   : > { %20489 = vst [vmem:[#allocation25_spill] sm:$0xff] %v16406_v50  ;;  %v5573_v35 = vmul.f32 %v16406_v50, %v20491_v1  ;;  %v5512_v25 = vmul.f32 %v16406_v50, %v20492_v19  ;;  %v16428_v61 = vmul.f32 %v16406_v50, %v20494_v55  ;;  %v20495_v1 = vld [vmem:[#allocation125_spill] sm:$0xff]  ;;  %v20496_v55 = vld [vmem:[#allocation44_spill] sm:$0xff]  ;;  %v6823_v48 = vsel %vm1280_vm1, %v6804_v27, %v6822_v45 }
 0x483   : > { %v16434_v37 = vmul.f32 %v15235_v34, %v20495_v1  ;;  %v16440_v29 = vmul.f32 %v15271_v44, %v20496_v55  ;;  %v5953_v33 = vsel %vm894_vm0, %v5951_v6, %v5952_v30  ;;  %v5676_v16 = vmul.f32 %v15235_v34, %v20497_v58 }
 0x484   : > { %v6824_v59 = vrot.slane %v5573_v35, 7  ;;  %v5814_v15 = vrot.slane %v5512_v25, 1  ;;  %v6836_v35 = vrot.slane %v16424_v21, 7  ;;  %v16460_v27 = vsel %vm2758_vm2, %v6047_v63, %v6049_v11 }
 0x485   : > { %v5054_v19 = vpop.f32.mrf.mxu0  ;;  %v6392_v21 = vrot.slane %v5953_v33, 7  ;;  %v6414_v58 = vrot.slane %v16460_v27, 7 }
 0x486   : > { %v5055_v47 = vadd.f32 %v5054_v19, %v14342_v2  ;;  %v6825_v26 = vsel %vm1280_vm1, %v6806_v56, %v6824_v59  ;;  %v5815_v36 = vsel %vm894_vm0, %v5812_v52, %v5814_v15  ;;  %v20499_v2 = vrot.slane %v16428_v61, 2 }
 0x487   : > { %v5056_v25 = vpop.f32.mrf.mxu0  ;;  %7643 = vmatprep.mubr.f32.mxu1 %v6825_v26  ;;  %v6838_v1 = vrot.slane %v5815_v36, 7  ;;  %v6391_v52 = vrot.slane %v5951_v6, 7  ;;  %v20500_v36 = vld [vmem:[#allocation124_spill] sm:$0xff]  ;;  %v20502_v6 = vld [vmem:[#allocation51_spill] sm:$0xff] }
 0x488   : > { %v16450_v55 = vadd.f32 %v8787_v24, %v5055_v47  ;;  %7644 = vmatmul.mubr.f32.gmra.mxu1 %v6823_v48  ;;  %v16455_v56 = vsel %vm2758_vm2, %v5903_v4, %v20499_v2  ;;  %v16465_v24 = vmul.f32 %v15271_v44, %v20500_v36  ;;  %v6837_v47 = vsel %vm1280_vm1, %v6818_v31, %v6836_v35  ;;  %v20501_v25 = vld [vmem:[#allocation214_spill] sm:$0xff]  ;;  %v20504_v2 = vld [vmem:[#allocation217_spill] sm:$0xff] }
 0x489   : > { %v6839_v19 = vsel %vm1280_vm1, %v6820_v9, %v6838_v1  ;;  %v20503_v9 = vld [vmem:[#allocation17_spill] sm:$0xff]  ;;  %v20505_v31 = vrot.slane %v16412_v43, 7 }
 0x48a   : > { %20498 = vst [vmem:[#allocation26_spill] sm:$0xff] %v16450_v55  ;;  %7423 = vmatprep.mubr.f32.mxu0 %v6839_v19  ;;  %v16470_v4 = vmul.f32 %v16450_v55, %v20501_v25  ;;  %v16474_v48 = vmul.f32 %v16450_v55, %v20502_v6  ;;  %v16478_v63 = vmul.f32 %v16406_v50, %v20503_v9  ;;  %v6140_v25 = vrot.slane %v5676_v16, 1  ;;  %v20508_v16 = vld [vmem:[#allocation102_spill] sm:$0xff] }
 0x48b   : > { %7424 = vmatmul.mubr.f32.gmra.mxu0 %v6837_v47  ;;  %v16483_v19 = vmul.f32 %v16450_v55, %v20504_v2  ;;  %v16488_v36 = vsel %vm1280_vm1, %v6394_v51, %v20505_v31  ;;  %v20506_v9 = vrot.slane %v16434_v37, 1  ;;  %v20507_v2 = vrot.slane %v16440_v29, 1 }
 0x48c   : > { %v19448_v6 = vrot.slane %v16470_v4, 7  ;;  %v16506_v31 = vmul.f32 %v15271_v44, %v20508_v16  ;;  %v20509_v33 = vrot.slane %v16474_v48, 1  ;;  %v20511_v16 = vrot.slane %v16455_v56, 7 }
 0x48d   : > { %v16495_v47 = vsel %vm894_vm0, %v5952_v30, %v20506_v9  ;;  %v16501_v50 = vsel %vm894_vm0, %v6140_v25, %v20507_v2  ;;  %v16508_v26 = vpop.f32.mrf.mxu1  ;;  %v20510_v2 = vld [vmem:[#allocation35_spill] sm:$0xff] }
 0x48e   : > { %v6843_v30 = vsel %vm1280_vm1, %v6824_v59, %v19448_v6  ;;  %v16516_v27 = vsel %vm894_vm0, %v5814_v15, %v20509_v33  ;;  %v16521_v51 = vmul.f32 %v15305_v60, %v20510_v2  ;;  %v6841_v46 = vsel %vm1280_vm1, %v6822_v45, %v20511_v16  ;;  %v20512_v2 = vld [vmem:[#allocation238_spill] sm:$0xff]  ;;  %v20513_v9 = vld [vmem:[#allocation239_spill] sm:$0xff] }
 0x48f   : > { %7648 = vmatprep.mubr.f32.mxu1 %v6843_v30  ;;  %v6856_v38 = vrot.slane %v16516_v27, 7  ;;  %v5907_v59 = vrot.slane %v16483_v19, 2  ;;  %v16530_v15 = vsel %vm1280_vm1, %v6391_v52, %v6392_v21  ;;  %v5645_v30 = vmul.f32 %v15221_v0, %v20512_v2  ;;  %v5284_v52 = vpop.f32.mrf.mxu1 }
 0x490   : > { %v5059_v22 = vpop.f32.mrf.mxu0  ;;  %7649 = vmatmul.mubr.f32.gmra.mxu1 %v6841_v46  ;;  %v16537_v42 = vmul.f32 %v15235_v34, %v20513_v9  ;;  %v6400_v27 = vrot.slane %v6140_v25, 7  ;;  %v20514_v16 = vrot.slane %v16465_v24, 2  ;;  %v20515_v33 = vrot.slane %v16478_v63, 7 }
 0x491   : > { %v5060_v45 = vadd.f32 %v5059_v22, %v14439_v40  ;;  %v6857_v19 = vsel %vm1280_vm1, %v6838_v1, %v6856_v38  ;;  %v5956_v9 = vrot.slane %v16506_v31, 1  ;;  %v20516_v40 = vld [vmem:[#allocation126_spill] sm:$0xff]  ;;  %v20520_v31 = vrot.slane %v16495_v47, 7 }
 0x492   : > { %v16544_v46 = vsel %vm2758_vm2, %v6049_v11, %v20514_v16  ;;  %v5061_v6 = vpop.f32.mrf.mxu0  ;;  %7428 = vmatprep.mubr.f32.mxu0 %v6857_v19  ;;  %v6855_v2 = vsel %vm1280_vm1, %v6836_v35, %v20515_v33  ;;  %v16553_v22 = vmul.f32 %v15305_v60, %v20516_v40  ;;  %v20518_v11 = vrot.slane %v16428_v61, 2  ;;  %v20523_v40 = vld [vmem:[#allocation18_spill] sm:$0xff] }
 0x493   : > { %v16555_v1 = vadd.f32 %v5284_v52, %v5060_v45  ;;  %7429 = vmatmul.mubr.f32.gmra.mxu0 %v6855_v2  ;;  %v20519_v6 = vrot.slane %v16412_v43, 7  ;;  %v16570_v33 = vsel %vm1280_vm1, %v6392_v21, %v20520_v31  ;;  %v20521_v19 = vrot.slane %v16501_v50, 7  ;;  %v20522_v2 = vld [vmem:[#allocation215_spill] sm:$0xff] }
 0x494   : > { %v16560_v25 = vsel %vm2758_vm2, %v20518_v11, %v5907_v59  ;;  %v6397_v16 = vrot.slane %v5645_v30, 7  ;;  %v20525_v31 = vld [vmem:[#allocation219_spill] sm:$0xff]  ;;  %v20526_v30 = vrot.slane %v16434_v37, 1  ;;  %v20528_v52 = vrot.slane %v16440_v29, 1 }
 0x495   : > { %20517 = vst [vmem:[#allocation138_spill] sm:$0xff] %v16555_v1  ;;  %v16565_v35 = vsel %vm1280_vm1, %v20519_v6, %v6414_v58  ;;  %v16575_v45 = vsel %vm1280_vm1, %v6400_v27, %v20521_v19  ;;  %v5575_v43 = vmul.f32 %v16555_v1, %v20522_v2  ;;  %v5514_v11 = vmul.f32 %v16555_v1, %v20523_v40  ;;  %v20524_v6 = vld [vmem:[#allocation19_spill] sm:$0xff] }
 0x496   : > { %v16585_v21 = vmul.f32 %v16450_v55, %v20524_v6  ;;  %v16589_v0 = vmul.f32 %v16555_v1, %v20525_v31  ;;  %v6858_v27 = vrot.slane %v16560_v25, 7  ;;  %v16595_v19 = vsel %vm894_vm0, %v20526_v30, %v5956_v9  ;;  %v20529_v55 = vld [vmem:[#allocation49_spill] sm:$0xff] }
 0x497   : > { %v20527_v2 = vrot.slane %v16521_v51, 1  ;;  %v6860_v61 = vrot.slane %v5575_v43, 7  ;;  %v5818_v34 = vrot.slane %v5514_v11, 1  ;;  %v16608_v25 = vmul.f32 %v15305_v60, %v20529_v55  ;;  %v20533_v11 = vld [vmem:[#allocation52_spill] sm:$0xff] }
 0x498   : > { %v5064_v37 = vpop.f32.mrf.mxu0  ;;  %v20530_v30 = vrot.slane %v16544_v46, 7  ;;  %v20531_v29 = vrot.slane %v16537_v42, 7  ;;  %v16626_v6 = vmul.f32 %v15355_v41, %v20533_v11  ;;  %v20534_v31 = vrot.slane %v16470_v4, 7 }
 0x499   : > { %v16602_v40 = vsel %vm894_vm0, %v20528_v52, %v20527_v2  ;;  %v20532_v2 = vld [vmem:[#allocation240_spill] sm:$0xff]  ;;  %v5065_v55 = vadd.f32 %v5064_v37, %v14553_v14  ;;  %v6430_v17 = vrot.slane %v16595_v19, 7  ;;  %v20548_v14 = vld [vmem:[#allocation241_spill] sm:$0xff] }
 0x49a   : > { %v16613_v54 = vsel %vm1280_vm1, %v6414_v58, %v20530_v30  ;;  %v16618_v52 = vsel %vm1280_vm1, %v6397_v16, %v20531_v29  ;;  %v16622_v43 = vmul.f32 %v15271_v44, %v20532_v2  ;;  %v6861_v58 = vsel %vm1280_vm1, %v20534_v31, %v6860_v61  ;;  %v5066_v29 = vpop.f32.mrf.mxu0 }
 0x49b   : > { %v20535_v30 = vrot.slane %v16474_v48, 1  ;;  %v6872_v16 = vrot.slane %v16585_v21, 7  ;;  %7653 = vmatprep.mubr.f32.mxu1 %v6861_v58  ;;  %v20536_v2 = vrot.slane %v16455_v56, 7  ;;  %v16642_v4 = vadd.f32 %v16508_v26, %v5065_v55  ;;  %v20541_v55 = vld [vmem:[#allocation127_spill] sm:$0xff]  ;;  %v20542_v58 = vld [vmem:[#allocation128_spill] sm:$0xff] }
 0x49c   : > { %v20538_v48 = vrot.slane %v16589_v0, 2  ;;  %v20539_v21 = vrot.slane %v16553_v22, 2  ;;  %v20540_v56 = vrot.slane %v16465_v24, 2  ;;  %v19468_v26 = vrot.slane %v16626_v6, 1  ;;  %v20544_v29 = vld [vmem:[#allocation223_spill] sm:$0xff] }
 0x49d   : > { %v5819_v8 = vsel %vm894_vm0, %v20535_v30, %v5818_v34  ;;  %v6859_v44 = vsel %vm1280_vm1, %v20536_v2, %v6858_v27  ;;  %20537 = vst [vmem:[#allocation144_spill] sm:$0xff] %v16642_v4  ;;  %v20543_v24 = vrot.slane %v16478_v63, 7 }
 0x49e   : > { %v6874_v11 = vrot.slane %v5819_v8, 7  ;;  %7654 = vmatmul.mubr.f32.gmra.mxu1 %v6859_v44  ;;  %v16647_v31 = vsel %vm2758_vm2, %v5907_v59, %v20538_v48  ;;  %v16654_v37 = vsel %vm2758_vm2, %v20540_v56, %v20539_v21  ;;  %v5958_v8 = vrot.slane %v16608_v25, 1  ;;  %v20546_v48 = vld [vmem:[#allocation117_spill] sm:$0xff] }
 0x49f   : > { %v16661_v44 = vmul.f32 %v15355_v41, %v20541_v55  ;;  %v16665_v59 = vmul.f32 %v15355_v41, %v20542_v58  ;;  %v6873_v30 = vsel %vm1280_vm1, %v20543_v24, %v6872_v16  ;;  %v16672_v25 = vmul.f32 %v16642_v4, %v20544_v29 }
 0x4a0   : > { %v6875_v19 = vsel %vm1280_vm1, %v6856_v38, %v6874_v11  ;;  %v20545_v38 = vld [vmem:[#allocation54_spill] sm:$0xff]  ;;  %v16680_v21 = vmul.f32 %v16555_v1, %v20546_v48  ;;  %v6416_v58 = vrot.slane %v16622_v43, 7  ;;  %v16694_v48 = vmul.f32 %v15305_v60, %v20548_v14  ;;  %v20552_v1 = vld [vmem:[#allocation244_spill] sm:$0xff] }
 0x4a1   : > { %7433 = vmatprep.mubr.f32.mxu0 %v6875_v19  ;;  %v16676_v2 = vmul.f32 %v16642_v4, %v20545_v38  ;;  %v20547_v19 = vld [vmem:[#allocation226_spill] sm:$0xff]  ;;  %v19469_v24 = vrot.slane %v16672_v25, 7  ;;  %v5959_v38 = vsel %vm894_vm0, %v5956_v9, %v5958_v8  ;;  %v20549_v56 = vrot.slane %v16495_v47, 7 }
 0x4a2   : > { %7434 = vmatmul.mubr.f32.gmra.mxu0 %v6873_v30  ;;  %v16685_v63 = vmul.f32 %v16642_v4, %v20547_v19  ;;  %v16696_v30 = vpop.f32.mrf.mxu1  ;;  %v20550_v43 = vrot.slane %v16521_v51, 1  ;;  %v16723_v51 = vmul.f32 %v15400_v49, %v20552_v1  ;;  %v20557_v60 = vrot.slane %v16544_v46, 7 }
 0x4a3   : > { %v16701_v19 = vsel %vm1280_vm1, %v20549_v56, %v6430_v17  ;;  %v6879_v14 = vsel %vm1280_vm1, %v6860_v61, %v19469_v24  ;;  %v20551_v47 = vrot.slane %v16676_v2, 1  ;;  %v6448_v24 = vrot.slane %v5959_v38, 7 }
 0x4a4   : > { %v16708_v55 = vsel %vm894_vm0, %v20550_v43, %v19468_v26  ;;  %v5294_v43 = vpop.f32.mrf.mxu1  ;;  %7658 = vmatprep.mubr.f32.mxu1 %v6879_v14  ;;  %v20553_v26 = vrot.slane %v16647_v31, 7  ;;  %v20556_v14 = vrot.slane %v16654_v37, 7 }
 0x4a5   : > { %v16718_v56 = vsel %vm894_vm0, %v5818_v34, %v20551_v47  ;;  %v5069_v28 = vpop.f32.mrf.mxu0  ;;  %v20554_v34 = vrot.slane %v16602_v40, 7  ;;  %v20555_v47 = vrot.slane %v16501_v50, 7 }
 0x4a6   : > { %v6877_v29 = vsel %vm1280_vm1, %v6858_v27, %v20553_v26  ;;  %v19472_v9 = vrot.slane %v16718_v56, 7  ;;  %v16742_v27 = vsel %vm1280_vm1, %v20557_v60, %v20556_v14  ;;  %v16747_v61 = vpop.f32.mrf.mxu1  ;;  %v20560_v60 = vrot.slane %v16665_v59, 1 }
 0x4a7   : > { %7659 = vmatmul.mubr.f32.gmra.mxu1 %v6877_v29  ;;  %v16735_v1 = vsel %vm1280_vm1, %v20555_v47, %v20554_v34  ;;  %v5070_v29 = vadd.f32 %v5069_v28, %v14675_v57  ;;  %v20558_v34 = vrot.slane %v16661_v44, 2  ;;  %v20559_v47 = vrot.slane %v16553_v22, 2  ;;  %v5071_v38 = vpop.f32.mrf.mxu0  ;;  %v20575_v22 = vld [vmem:[#allocation20_spill] sm:$0xff] }
 0x4a8   : > { %v6893_v50 = vsel %vm1280_vm1, %v6874_v11, %v19472_v9  ;;  %v16762_v14 = vsel %vm894_vm0, %v5958_v8, %v20560_v60  ;;  %v20561_v57 = vrot.slane %v16680_v21, 7  ;;  %v20562_v11 = vrot.slane %v16537_v42, 7  ;;  %v16779_v8 = vpop.f32.mrf.mxu1  ;;  %v20567_v60 = vld [vmem:[#allocation121_spill] sm:$0xff] }
 0x4a9   : > { %v16757_v46 = vsel %vm2758_vm2, %v20559_v47, %v20558_v34  ;;  %7438 = vmatprep.mubr.f32.mxu0 %v6893_v50  ;;  %v20563_v34 = vld [vmem:[#allocation130_spill] sm:$0xff]  ;;  %v16777_v26 = vadd.f32 %v5294_v43, %v5070_v29  ;;  %v20565_v38 = vrot.slane %v16685_v63, 2  ;;  %v16789_v50 = vsel %vm1280_vm1, %v6430_v17, %v6448_v24 }
 0x4aa   : > { %v6891_v28 = vsel %vm1280_vm1, %v6872_v16, %v20561_v57  ;;  %v16770_v9 = vsel %vm1280_vm1, %v20562_v11, %v6416_v58  ;;  %v16775_v47 = vmul.f32 %v15400_v49, %v20563_v34  ;;  %v20566_v16 = vrot.slane %v16589_v0, 2 }
 0x4ab   : > { %20564 = vst [vmem:[#allocation27_spill] sm:$0xff] %v16777_v26  ;;  %7439 = vmatmul.mubr.f32.gmra.mxu0 %v6891_v28  ;;  %v16793_v57 = vmul.f32 %v15400_v49, %v20567_v60  ;;  %v20568_v43 = vrot.slane %v16708_v55, 7  ;;  %v20569_v29 = vrot.slane %v16602_v40, 7  ;;  %v20571_v0 = vrot.slane %v16694_v48, 7 }
 0x4ac   : > { %v16786_v42 = vsel %vm2758_vm2, %v20566_v16, %v20565_v38  ;;  %v16809_v38 = vpop.f32.mrf.mxu1  ;;  %v20574_v16 = vld [vmem:[#allocation174_spill] sm:$0xff]  ;;  %v5516_v40 = vmul.f32 %v16777_v26, %v20575_v22  ;;  %v20579_v17 = vrot.slane %v16626_v6, 1  ;;  %v20582_v6 = vrot.slane %v16654_v37, 7 }
 0x4ad   : > { %v16800_v28 = vsel %vm1280_vm1, %v20569_v29, %v20568_v43  ;;  %v16806_v34 = vsel %vm1280_vm1, %v6416_v58, %v20571_v0  ;;  %20573 = vst [vmem:[#allocation3_spill] sm:$0xff] %v16809_v38  ;;  %v5577_v60 = vmul.f32 %v16777_v26, %v20574_v16  ;;  %v16817_v43 = vmul.f32 %v16642_v4, %v20576_v32  ;;  %v20577_v29 = vld [vmem:[#allocation171_spill] sm:$0xff]  ;;  %v20580_v22 = vld [vmem:[#allocation182_spill] sm:$0xff]  ;;  %v5074_v5 = vpop.f32.mrf.mxu0 }
 0x4ae   : > { %20570 = vst [vmem:[#allocation23_spill] sm:$0xff] %v16800_v28  ;;  %20572 = vst [vmem:[#allocation42_spill] sm:$0xff] %v16806_v34  ;;  %v16821_v11 = vmul.f32 %v16777_v26, %v20577_v29  ;;  %v20578_v0 = vrot.slane %v16723_v51, 1  ;;  %v6057_v16 = vrot.slane %v16775_v47, 2  ;;  %v16834_v18 = vmul.f32 %v15355_v41, %v20580_v22  ;;  %v7527_v32 = vpop.f32.mrf.mxu1  ;;  %v20584_v22 = vld [vmem:[#allocation58_spill] sm:$0xff] }
 0x4af   : > { %v6896_v4 = vrot.slane %v5577_v60, 7  ;;  %v5822_v34 = vrot.slane %v5516_v40, 1  ;;  %v20581_v28 = vrot.slane %v16757_v46, 7  ;;  %v20583_v47 = vrot.slane %v16762_v14, 7  ;;  %v20585_v40 = vld [vmem:[#allocation134_spill] sm:$0xff] }
 0x4b0   : > { %v16829_v38 = vsel %vm894_vm0, %v20579_v17, %v20578_v0  ;;  %v16852_v60 = vmul.f32 %v15442_v53, %v20584_v22  ;;  %v16856_v32 = vmul.f32 %v15442_v53, %v20585_v40  ;;  %v5075_v58 = vadd.f32 %v5074_v5, %v14769_v3  ;;  %v16859_v29 = vpop.f32.mrf.mxu1  ;;  %v5076_v22 = vpop.f32.mrf.mxu0 }
 0x4b1   : > { %v16843_v17 = vsel %vm1280_vm1, %v20582_v6, %v20581_v28  ;;  %v16848_v0 = vsel %vm1280_vm1, %v6448_v24, %v20583_v47  ;;  %20586 = vst [vmem:[#allocation105_spill] sm:$0xff] %v16859_v29  ;;  %v20587_v37 = vrot.slane %v16672_v25, 7  ;;  %v20588_v6 = vrot.slane %v16676_v2, 1 }
 0x4b2   : > { %v19482_v47 = vrot.slane %v16817_v43, 7  ;;  %v20589_v41 = vrot.slane %v16786_v42, 7  ;;  %v20590_v40 = vrot.slane %v16647_v31, 7  ;;  %v19483_v29 = vrot.slane %v16829_v38, 7  ;;  %v7532_v2 = vpop.f32.mrf.mxu1 }
 0x4b3   : > { %v6897_v28 = vsel %vm1280_vm1, %v20587_v37, %v6896_v4  ;;  %v5823_v24 = vsel %vm894_vm0, %v20588_v6, %v5822_v34  ;;  %v19484_v25 = vrot.slane %v16834_v18, 7  ;;  %v16876_v37 = vadd.f32 %v16696_v30, %v5075_v58 }
 0x4b4   : > { %7663 = vmatprep.mubr.f32.mxu1 %v6897_v28  ;;  %v6895_v3 = vsel %vm1280_vm1, %v20590_v40, %v20589_v41  ;;  %v6910_v5 = vrot.slane %v5823_v24, 7  ;;  %v20591_v6 = vrot.slane %v16821_v11, 2  ;;  %v20592_v28 = vrot.slane %v16685_v63, 2  ;;  %v20597_v63 = vld [vmem:[#allocation119_spill] sm:$0xff] }
 0x4b5   : > { %7664 = vmatmul.mubr.f32.gmra.mxu1 %v6895_v3  ;;  %v20593_v31 = vrot.slane %v16661_v44, 2  ;;  %v20594_v24 = vrot.slane %v16793_v57, 1  ;;  %v20595_v40 = vrot.slane %v16665_v59, 1  ;;  %v20596_v58 = vrot.slane %v16718_v56, 7  ;;  %v20600_v56 = vld [vmem:[#allocation170_spill] sm:$0xff] }
 0x4b6   : > { %v16883_v22 = vsel %vm2758_vm2, %v20592_v28, %v20591_v6  ;;  %v16902_v2 = vmul.f32 %v16777_v26, %v20597_v63  ;;  %v16906_v28 = vpop.f32.mrf.mxu1  ;;  %v20599_v59 = vrot.slane %v16680_v21, 7  ;;  %v20602_v63 = vld [vmem:[#allocation231_spill] sm:$0xff]  ;;  %v20603_v21 = vrot.slane %v16708_v55, 7  ;;  %v20612_v6 = vld [vmem:[#allocation61_spill] sm:$0xff] }
 0x4b7   : > { %v16888_v41 = vsel %vm2758_vm2, %v20593_v31, %v6057_v16  ;;  %v16895_v30 = vsel %vm894_vm0, %v20595_v40, %v20594_v24  ;;  %v6911_v3 = vsel %vm1280_vm1, %v20596_v58, %v6910_v5  ;;  %20598 = vst [vmem:[#allocation150_spill] sm:$0xff] %v16906_v28  ;;  %v16915_v24 = vmul.f32 %v16876_v37, %v20600_v56  ;;  %v20601_v40 = vld [vmem:[#allocation60_spill] sm:$0xff]  ;;  %v20606_v28 = vld [vmem:[#allocation246_spill] sm:$0xff] }
 0x4b8   : > { %7443 = vmatprep.mubr.f32.mxu0 %v6911_v3  ;;  %v6909_v31 = vsel %vm1280_vm1, %v20599_v59, %v19482_v47  ;;  %v5517_v58 = vmul.f32 %v16876_v37, %v20601_v40  ;;  %v16921_v44 = vmul.f32 %v16876_v37, %v20602_v63  ;;  %v16929_v59 = vsel %vm1280_vm1, %v20603_v21, %v19483_v29  ;;  %v7537_v63 = vpop.f32.mrf.mxu1 }
 0x4b9   : > { %7444 = vmatmul.mubr.f32.gmra.mxu0 %v6909_v31  ;;  %v20604_v40 = vrot.slane %v16694_v48, 7  ;;  %v19489_v31 = vrot.slane %v16915_v24, 7  ;;  %v16943_v55 = vmul.f32 %v15400_v49, %v20606_v28  ;;  %v6926_v21 = vrot.slane %v16902_v2, 7  ;;  %v5079_v49 = vpop.f32.mrf.mxu0 }
 0x4ba   : > { %v5824_v3 = vrot.slane %v5517_v58, 1  ;;  %v20607_v29 = vrot.slane %v16852_v60, 1  ;;  %v20608_v56 = vrot.slane %v16723_v51, 1  ;;  %v20610_v58 = vld [vmem:[#allocation131_spill] sm:$0xff]  ;;  %v16962_v28 = vpop.f32.mrf.mxu1 }
 0x4bb   : > { %v16937_v47 = vsel %vm1280_vm1, %v20604_v40, %v19484_v25  ;;  %v20609_v40 = vrot.slane %v16856_v32, 2  ;;  %v16960_v25 = vmul.f32 %v15442_v53, %v20610_v58  ;;  %20611 = vst [vmem:[#allocation47_spill] sm:$0xff] %v16962_v28  ;;  %v6915_v2 = vsel %vm1280_vm1, %v6896_v4, %v19489_v31 }
 0x4bc   : > { %20605 = vst [vmem:[#allocation220_spill] sm:$0xff] %v16937_v47  ;;  %v16951_v48 = vsel %vm894_vm0, %v20608_v56, %v20607_v29  ;;  %v5825_v51 = vsel %vm894_vm0, %v5822_v34, %v5824_v3  ;;  %v5487_v29 = vmul.f32 %v16876_v37, %v20612_v6  ;;  %v5915_v56 = vrot.slane %v16921_v44, 2  ;;  %7668 = vmatprep.mubr.f32.mxu1 %v6915_v2  ;;  %v7542_v44 = vpop.f32.mrf.mxu1 }
 0x4bd   : > { %v16956_v63 = vsel %vm2758_vm2, %v6057_v16, %v20609_v40  ;;  %v20613_v16 = vrot.slane %v16883_v22, 7  ;;  %v20614_v40 = vrot.slane %v16786_v42, 7  ;;  %v6928_v28 = vrot.slane %v5825_v51, 7 }
 0x4be   : > { %v6943_v26 = vrot.slane %v5824_v3, 7  ;;  %v20615_v47 = vrot.slane %v16888_v41, 7  ;;  %v20616_v4 = vrot.slane %v16757_v46, 7  ;;  %v5080_v6 = vadd.f32 %v5079_v49, %v14900_v13  ;;  %v20619_v49 = vld [vmem:[#allocation62_spill] sm:$0xff] }
 0x4bf   : > { %v6913_v58 = vsel %vm1280_vm1, %v20614_v40, %v20613_v16  ;;  %v20617_v2 = vrot.slane %v16895_v30, 7  ;;  %v20618_v31 = vrot.slane %v16762_v14, 7  ;;  %v5081_v16 = vpop.f32.mrf.mxu0  ;;  %v6929_v46 = vsel %vm1280_vm1, %v6910_v5, %v6928_v28  ;;  %v17001_v14 = vpop.f32.mrf.mxu1 }
 0x4c0   : > { %v16981_v34 = vsel %vm1280_vm1, %v20616_v4, %v20615_v47  ;;  %7669 = vmatmul.mubr.f32.gmra.mxu1 %v6913_v58  ;;  %v5964_v13 = vrot.slane %v16960_v25, 1  ;;  %v5682_v40 = vmul.f32 %v15476_v62, %v20619_v49  ;;  %v16999_v58 = vadd.f32 %v16779_v8, %v5080_v6  ;;  %7448 = vmatprep.mubr.f32.mxu0 %v6929_v46  ;;  %v20624_v49 = vld [vmem:[#allocation70_spill] sm:$0xff]  ;;  %v20625_v6 = vld [vmem:[#allocation132_spill] sm:$0xff]  ;;  %v20628_v47 = vld [vmem:[#allocation229_spill] sm:$0xff] }
 0x4c1   : > { %v16989_v42 = vsel %vm1280_vm1, %v20618_v31, %v20617_v2  ;;  %20621 = vst [vmem:[#allocation28_spill] sm:$0xff] %v17001_v14  ;;  %v20622_v31 = vrot.slane %v16817_v43, 7  ;;  %v6941_v44 = vrot.slane %v5487_v29, 7  ;;  %v20623_v5 = vrot.slane %v16821_v11, 2  ;;  %v5084_v25 = vpop.f32.mrf.mxu0  ;;  %v20626_v43 = vld [vmem:[#allocation187_spill] sm:$0xff]  ;;  %v7547_v29 = vpop.f32.mrf.mxu1 }
 0x4c2   : > { %20620 = vst [vmem:[#allocation50_spill] sm:$0xff] %v16999_v58  ;;  %v6944_v16 = vsel %vm1280_vm1, %v6928_v28, %v6943_v26  ;;  %v5621_v8 = vmul.f32 %v15476_v62, %v20624_v49  ;;  %v17016_v46 = vmul.f32 %v15476_v62, %v20625_v6  ;;  %v5085_v11 = vadd.f32 %v5084_v25, %v14923_v39  ;;  %v20629_v28 = vld [vmem:[#allocation140_spill] sm:$0xff]  ;;  %v20634_v14 = vld [vmem:[#allocation143_spill] sm:$0xff] }
 0x4c3   : > { %v6927_v4 = vsel %vm1280_vm1, %v20622_v31, %v6926_v21  ;;  %v17009_v2 = vsel %vm2758_vm2, %v20623_v5, %v5915_v56  ;;  %v17020_v31 = vmul.f32 %v15520_v7, %v20626_v43  ;;  %v20627_v5 = vld [vmem:[#allocation234_spill] sm:$0xff]  ;;  %v5548_v26 = vmul.f32 %v16999_v58, %v20628_v47  ;;  %v5086_v6 = vpop.f32.mrf.mxu0  ;;  %v20631_v25 = vld [vmem:[#allocation184_spill] sm:$0xff]  ;;  %v17044_v47 = vpop.f32.mrf.mxu1 }
 0x4c4   : > { %7449 = vmatmul.mubr.f32.gmra.mxu0 %v6927_v4  ;;  %v5579_v4 = vmul.f32 %v16999_v58, %v20627_v5  ;;  %v17029_v49 = vmul.f32 %v15520_v7, %v20629_v28  ;;  %v6930_v51 = vrot.slane %v17009_v2, 7  ;;  %v20630_v43 = vrot.slane %v16793_v57, 1  ;;  %20632 = vst [vmem:[#allocation151_spill] sm:$0xff] %v17044_v47 }
 0x4c5   : > { %7453 = vmatprep.mubr.f32.mxu0 %v6944_v16  ;;  %v6151_v39 = vrot.slane %v5682_v40, 1  ;;  %v17039_v16 = vmul.f32 %v15442_v53, %v20631_v25  ;;  %v17042_v29 = vadd.f32 %v16747_v61, %v5085_v11  ;;  %v6942_v5 = vsel %vm1280_vm1, %v6926_v21, %v6941_v44  ;;  %v17047_v2 = vpop.f32.mrf.mxu0  ;;  %v7552_v61 = vpop.f32.mrf.mxu1  ;;  %v20636_v44 = vld [vmem:[#allocation173_spill] sm:$0xff] }
 0x4c6   : > { %v17035_v3 = vsel %vm894_vm0, %v20630_v43, %v5964_v13  ;;  %v6932_v28 = vrot.slane %v5579_v4, 7  ;;  %v5917_v6 = vrot.slane %v5548_v26, 2  ;;  %20633 = vst [vmem:[#allocation91_spill] sm:$0xff] %v17047_v2  ;;  %v6061_v57 = vrot.slane %v5621_v8, 2 }
 0x4c7   : > { %v5966_v43 = vrot.slane %v17016_v46, 1  ;;  %v19492_v40 = vrot.slane %v17020_v31, 1  ;;  %v17053_v25 = vmul.f32 %v15520_v7, %v20634_v14  ;;  %v20635_v11 = vrot.slane %v16915_v24, 7  ;;  %v7302_v26 = vpop.f32.mrf.mxu0 }
 0x4c8   : > { %7454 = vmatmul.mubr.f32.gmra.mxu0 %v6942_v5  ;;  %v5580_v4 = vmul.f32 %v17042_v29, %v20636_v44  ;;  %v5918_v8 = vsel %vm2758_vm2, %v5915_v56, %v5917_v6  ;;  %v19490_v46 = vrot.slane %v17029_v49, 2  ;;  %v20637_v5 = vrot.slane %v16883_v22, 7 }
 0x4c9   : > { %7748 = vmatprep.mubr.f32.mxu0 %v16488_v36  ;;  %v6933_v21 = vsel %vm1280_vm1, %v20635_v11, %v6932_v28  ;;  %v6945_v61 = vrot.slane %v5918_v8, 7  ;;  %v20638_v36 = vrot.slane %v16951_v48, 7  ;;  %v20639_v24 = vrot.slane %v16829_v38, 7  ;;  %v17085_v8 = vld [vmem:[%s18912_s6 + $0x470] sm:$0xff] }
 0x4ca   : > { %7673 = vmatprep.mubr.f32.mxu1 %v6933_v21  ;;  %v6931_v14 = vsel %vm1280_vm1, %v20637_v5, %v6930_v51  ;;  %v20640_v44 = vrot.slane %v16943_v55, 7  ;;  %v20641_v56 = vrot.slane %v16834_v18, 7  ;;  %v17080_v21 = vpop.f32.mrf.mxu1  ;;  %v6947_v22 = vrot.slane %v5580_v4, 7  ;;  %v17100_v4 = vpop.f32.mrf.mxu0 }
 0x4cb   : > { %v17071_v11 = vsel %vm1280_vm1, %v20639_v24, %v20638_v36  ;;  %20642 = vst [vmem:[#allocation57_spill] sm:$0xff] %v17080_v21  ;;  %7674 = vmatmul.mubr.f32.gmra.mxu1 %v6931_v14  ;;  %v20643_v38 = vrot.slane %v16956_v63, 7  ;;  %v20644_v26 = vrot.slane %v16888_v41, 7  ;;  %v6502_v18 = vrot.slane %v17035_v3, 7  ;;  %20646 = vst [vmem:[#allocation4_spill] sm:$0xff] %v17100_v4  ;;  %v20722_v4 = vld [vmem:[#allocation165_spill] sm:$0xff] }
 0x4cc   : > { %v17078_v6 = vsel %vm1280_vm1, %v20641_v56, %v20640_v44  ;;  %v20645_v36 = vrot.slane %v16852_v60, 1  ;;  %7749 = vmatmul.mubr.f32.vlgmr.msra.gmra.mxu0 %v16530_v15  ;;  %v20647_v14 = vrot.slane %v16856_v32, 2  ;;  %v17109_v41 = vsel %vm894_vm0, %v5964_v13, %v5966_v43 }
 0x4cd   : > { %v17092_v5 = vsel %vm1280_vm1, %v20644_v26, %v20643_v38  ;;  %v17114_v56 = vsel %vm894_vm0, %v6151_v39, %v19492_v40  ;;  %v19491_v60 = vrot.slane %v17053_v25, 1  ;;  %8798 = vmatpush3.msra.mxu0 %v16290_v20  ;;  %v7557_v38 = vpop.f32.mrf.mxu1  ;;  %7753 = vmatprep.mubr.f32.mxu0 %v16565_v35  ;;  %v6948_v15 = vsel %vm1280_vm1, %v6932_v28, %v6947_v22  ;;  %v20648_v26 = vld [vmem:[#allocation64_spill] sm:$0xff]  ;;  %v17135_v35 = vld [vmem:[%s18912_s6 + $0x468] sm:$0xff]  ;;  %v20649_v22 = vld [vmem:[#allocation145_spill] sm:$0xff] }
 0x4ce   : > { %v17098_v24 = vsel %vm894_vm0, %v20645_v36, %v6151_v39  ;;  %v17106_v44 = vsel %vm2758_vm2, %v20647_v14, %v6061_v57  ;;  %v19493_v32 = vrot.slane %v17039_v16, 7  ;;  %v17124_v13 = vsel %vm2758_vm2, %v6061_v57, %v19490_v46  ;;  %v7307_v36 = vpop.f32.mrf.mxu0  ;;  %7678 = vmatprep.mubr.f32.mxu1 %v6948_v15  ;;  %8799 = vmatprep.subr.mxu0 %v17085_v8  ;;  %v20650_v14 = vld [vmem:[#allocation148_spill] sm:$0xff] }
 0x4cf   : > { %v17128_v39 = vmul.f32 %v15562_v12, %v20648_v26  ;;  %v6946_v20 = vsel %vm1280_vm1, %v6930_v51, %v6945_v61  ;;  %v6490_v28 = vrot.slane %v17098_v24, 7  ;;  %v17140_v57 = vmul.f32 %v15562_v12, %v20649_v22  ;;  %v17146_v15 = vpop.f32.mrf.mxu1  ;;  %8800 = vmatpush3.msra.mxu0 %v17085_v8  ;;  %v20653_v24 = vld [vmem:[#allocation249_spill] sm:$0xff] }
 0x4d0   : > { %v17144_v38 = vmul.f32 %v15562_v12, %v20650_v14  ;;  %20651 = vst [vmem:[#allocation152_spill] sm:$0xff] %v17146_v15  ;;  %7679 = vmatmul.mubr.f32.gmra.mxu1 %v6946_v20  ;;  %v20652_v51 = vrot.slane %v16895_v30, 7  ;;  %v17158_v26 = vmul.f32 %v15476_v62, %v20653_v24  ;;  %v20654_v36 = vld [vmem:[#allocation73_spill] sm:$0xff]  ;;  %v17164_v14 = vpop.f32.mrf.mxu0  ;;  %7754 = vmatmul.mubr.f32.gmra.mxu0 %v16570_v33  ;;  %v17171_v30 = vld [vmem:[%s18912_s6 + $0x460] sm:$0xff]  ;;  %v6522_v20 = vrot.slane %v17106_v44, 7 }
 0x4d1   : > { %v17162_v22 = vmul.f32 %v15615_v10, %v20654_v36  ;;  %20655 = vst [vmem:[#allocation155_spill] sm:$0xff] %v17164_v14  ;;  %7973 = vmatprep.mubr.f32.mxu1 %v16575_v45  ;;  %v17178_v24 = vsel %vm894_vm0, %v5966_v43, %v19491_v60  ;;  %v20656_v36 = vld [vmem:[#allocation146_spill] sm:$0xff]  ;;  %v7562_v33 = vpop.f32.mrf.mxu1  ;;  %7758 = vmatprep.mubr.f32.mxu0 %v16613_v54  ;;  %v20657_v45 = vrot.slane %v16943_v55, 7  ;;  %v6155_v60 = vrot.slane %v17128_v39, 1 }
 0x4d2   : > { %v17154_v61 = vsel %vm1280_vm1, %v20652_v51, %v6502_v18  ;;  %v6520_v51 = vrot.slane %v17109_v41, 7  ;;  %v17182_v46 = vmul.f32 %v15615_v10, %v20656_v36  ;;  %8801 = vmatprep.subr.mxu0 %v17135_v35  ;;  %v7312_v36 = vpop.f32.mrf.mxu0  ;;  %v20658_v54 = vrot.slane %v16951_v48, 7  ;;  %v17216_v48 = vld [vmem:[%s18912_s6 + $0x458] sm:$0xff] }
 0x4d3   : > { %v17191_v44 = vsel %vm1280_vm1, %v20657_v45, %v19493_v32  ;;  %8802 = vmatpush3.msra.mxu0 %v17135_v35  ;;  %v6065_v40 = vrot.slane %v17140_v57, 2  ;;  %v5970_v55 = vrot.slane %v17144_v38, 1  ;;  %v20659_v45 = vld [vmem:[#allocation133_spill] sm:$0xff]  ;;  %v17208_v41 = vpop.f32.mrf.mxu1  ;;  %v6157_v38 = vrot.slane %v17162_v22, 1  ;;  %v20661_v36 = vld [vmem:[#allocation254_spill] sm:$0xff] }
 0x4d4   : > { %v17200_v33 = vsel %vm1280_vm1, %v20658_v54, %v6490_v28  ;;  %v17206_v32 = vmul.f32 %v15615_v10, %v20659_v45  ;;  %20660 = vst [vmem:[#allocation29_spill] sm:$0xff] %v17208_v41  ;;  %7974 = vmatmul.mubr.f32.vlgmr.msra.gmra.mxu1 %v16618_v52  ;;  %8803 = vmatprep.subr.mxu0 %v17171_v30  ;;  %v17224_v45 = vpop.f32.mrf.mxu0  ;;  %v20663_v52 = vrot.slane %v16956_v63, 7  ;;  %v20664_v22 = vld [vmem:[#allocation66_spill] sm:$0xff]  ;;  %v19494_v43 = vrot.slane %v17182_v46, 2 }
 0x4d5   : > { %v17222_v54 = vmul.f32 %v15713_v23, %v20661_v36  ;;  %20662 = vst [vmem:[#allocation59_spill] sm:$0xff] %v17224_v45  ;;  %7759 = vmatmul.mubr.f32.gmra.mxu0 %v16701_v19  ;;  %7978 = vmatprep.mubr.f32.mxu1 %v16735_v1  ;;  %v17236_v57 = vsel %vm1280_vm1, %v6502_v18, %v6520_v51  ;;  %v7567_v41 = vpop.f32.mrf.mxu1  ;;  %v20665_v19 = vrot.slane %v17114_v56, 7  ;;  %v20666_v63 = vrot.slane %v17124_v13, 7  ;;  %v20691_v45 = vld [vmem:[#allocation122_spill] sm:$0xff] }
 0x4d6   : > { %v17231_v39 = vsel %vm1280_vm1, %v20663_v52, %v6522_v20  ;;  %v17240_v36 = vmul.f32 %v15520_v7, %v20664_v22  ;;  %7763 = vmatprep.mubr.f32.mxu0 %v16742_v27  ;;  %8804 = vmatpush3.msra.mxu0 %v17171_v30  ;;  %v20667_v18 = vrot.slane %v17020_v31, 1  ;;  %v7317_v41 = vpop.f32.mrf.mxu0  ;;  %v9169_v27 = vld [vmem:[%s18912_s6 + $0x478] sm:$0xff] }
 0x4d7   : > { %v17248_v1 = vsel %vm1280_vm1, %v6490_v28, %v20665_v19  ;;  %v17253_v3 = vsel %vm1280_vm1, %v6522_v20, %v20666_v63  ;;  %8805 = vmatprep.subr.mxu0 %v17216_v48  ;;  %8893 = vmatpush3.msra.mxu1 %v9169_v27  ;;  %v20668_v28 = vrot.slane %v17029_v49, 2  ;;  %v20669_v20 = vrot.slane %v17053_v25, 1  ;;  %v20670_v63 = vld [vmem:[#allocation153_spill] sm:$0xff]  ;;  %v17279_v41 = vpop.f32.mrf.mxu1 }
 0x4d8   : > { %v17258_v52 = vsel %vm894_vm0, %v20667_v18, %v6155_v60  ;;  %v17277_v18 = vmul.f32 %v15713_v23, %v20670_v63  ;;  %20671 = vst [vmem:[#allocation225_spill] sm:$0xff] %v17279_v41  ;;  %7979 = vmatmul.mubr.f32.gmra.mxu1 %v16770_v9  ;;  %v20672_v49 = vrot.slane %v17158_v26, 7  ;;  %v20673_v27 = vrot.slane %v17039_v16, 7  ;;  %8806 = vmatpush3.msra.mxu0 %v17216_v48  ;;  %v17301_v9 = vld [vmem:[%s18912_s6 + $0x450] sm:$0xff]  ;;  %v17304_v19 = vpop.f32.mrf.mxu0  ;;  %v20678_v41 = vld [vmem:[#allocation154_spill] sm:$0xff] }
 0x4d9   : > { %v17267_v22 = vsel %vm2758_vm2, %v20668_v28, %v6065_v40  ;;  %v17272_v31 = vsel %vm894_vm0, %v20669_v20, %v5970_v55  ;;  %v20674_v25 = vrot.slane %v17178_v24, 7  ;;  %v17296_v63 = vsel %vm894_vm0, %v6155_v60, %v6157_v38  ;;  %20675 = vst [vmem:[#allocation5_spill] sm:$0xff] %v17304_v19  ;;  %7764 = vmatmul.mubr.f32.gmra.mxu0 %v16789_v50  ;;  %v7572_v15 = vpop.f32.mrf.mxu1 }
 0x4da   : > { %v17287_v28 = vsel %vm1280_vm1, %v20673_v27, %v20672_v49  ;;  %v20676_v49 = vld [vmem:[#allocation23_spill] sm:$0xff]  ;;  %v17312_v60 = vsel %vm2758_vm2, %v6065_v40, %v19494_v43  ;;  %v20677_v27 = vld [vmem:[#allocation96_spill] sm:$0xff]  ;;  %v17320_v16 = vmul.f32 %v15713_v23, %v20678_v41  ;;  %7768 = vmatprep.mubr.f32.mxu0 %v16843_v17  ;;  %v6526_v50 = vrot.slane %v17258_v52, 7  ;;  %8878 = vmatprep.subr.mxu1 %v17085_v8 }
 0x4db   : > { %v17292_v20 = vsel %vm1280_vm1, %v6520_v51, %v20674_v25  ;;  %7983 = vmatprep.mubr.f32.mxu1 %v20676_v49  ;;  %v6524_v51 = vrot.slane %v17240_v36, 7  ;;  %v17316_v25 = vmul.f32 %v15562_v12, %v20677_v27  ;;  %v6558_v36 = vrot.slane %v17267_v22, 7  ;;  %v20679_v40 = vld [vmem:[#allocation255_spill] sm:$0xff]  ;;  %v7322_v27 = vpop.f32.mrf.mxu0  ;;  %8807 = vmatprep.subr.mxu0 %v17301_v9  ;;  %v20681_v22 = vld [vmem:[#allocation76_spill] sm:$0xff] }
 0x4dc   : > { %v6556_v49 = vrot.slane %v17272_v31, 7  ;;  %v17329_v43 = vmul.f32 %v15615_v10, %v20679_v40  ;;  %v6544_v21 = vrot.slane %v17296_v63, 7  ;;  %v20680_v15 = vrot.slane %v17206_v32, 1  ;;  %8894 = vmatpush3.msra.mxu1 %v17085_v8  ;;  %v20682_v31 = vld [vmem:[#allocation115_spill] sm:$0xff]  ;;  %v17344_v40 = vpop.f32.mrf.mxu1  ;;  %v20684_v27 = vld [vmem:[#allocation42_spill] sm:$0xff]  ;;  %8808 = vmatpush3.msra.mxu0 %v17301_v9  ;;  %v20686_v8 = vld [vmem:[#allocation108_spill] sm:$0xff] }
 0x4dd   : > { %v17342_v41 = vmul.f32 %v20682_v31, %v20681_v22  ;;  %20683 = vst [vmem:[#allocation63_spill] sm:$0xff] %v17344_v40  ;;  %7984 = vmatmul.mubr.f32.gmra.mxu1 %v20684_v27  ;;  %v20685_v47 = vrot.slane %v17222_v54, 1  ;;  %v20687_v22 = vld [vmem:[#allocation158_spill] sm:$0xff]  ;;  %v17367_v63 = vpop.f32.mrf.mxu0  ;;  %7769 = vmatmul.mubr.f32.gmra.mxu0 %v16848_v0  ;;  %v5974_v52 = vrot.slane %v17320_v16, 1  ;;  %v20690_v40 = vld [vmem:[#allocation80_spill] sm:$0xff]  ;;  %v20692_v0 = vrot.slane %v17114_v56, 7 }
 0x4de   : > { %v17336_v17 = vsel %vm894_vm0, %v5970_v55, %v20680_v15  ;;  %v17356_v55 = vmul.f32 %v20682_v31, %v20686_v8  ;;  %v17361_v15 = vld [vmem:[%s18912_s6 + $0x448] sm:$0xff]  ;;  %v17365_v27 = vmul.f32 %v20682_v31, %v20687_v22  ;;  %20688 = vst [vmem:[#allocation157_spill] sm:$0xff] %v17367_v63  ;;  %7988 = vmatprep.mubr.f32.mxu1 %v16929_v59  ;;  %v6542_v8 = vrot.slane %v17316_v25, 7  ;;  %v7577_v22 = vpop.f32.mrf.mxu1 }
 0x4df   : > { %v17351_v19 = vsel %vm894_vm0, %v6157_v38, %v20685_v47  ;;  %v20689_v47 = vrot.slane %v17158_v26, 7  ;;  %v17380_v14 = vmul.f32 %v20691_v45, %v20690_v40  ;;  %7773 = vmatprep.mubr.f32.mxu0 %v16981_v34  ;;  %v17386_v59 = vsel %vm1280_vm1, %v20692_v0, %v6526_v50  ;;  %8879 = vmatprep.subr.mxu1 %v17135_v35  ;;  %v7327_v40 = vpop.f32.mrf.mxu0  ;;  %v20721_v63 = vld [vmem:[#allocation135_spill] sm:$0xff] }
 0x4e0   : > { %v20693_v26 = vrot.slane %v17124_v13, 7  ;;  %v20694_v22 = vrot.slane %v17178_v24, 7  ;;  %v20695_v0 = vrot.slane %v17277_v18, 2  ;;  %v20696_v13 = vrot.slane %v17182_v46, 2  ;;  %8809 = vmatprep.subr.mxu0 %v17361_v15  ;;  %8895 = vmatpush3.msra.mxu1 %v17135_v35  ;;  %v17412_v40 = vpop.f32.mrf.mxu1  ;;  %v20698_v24 = vld [vmem:[#allocation220_spill] sm:$0xff]  ;;  %v17429_v35 = vld [vmem:[%s18912_s6 + $0x440] sm:$0xff] }
 0x4e1   : > { %v17374_v38 = vsel %vm1280_vm1, %v20689_v47, %v6524_v51  ;;  %v6161_v25 = vrot.slane %v17342_v41, 1  ;;  %20697 = vst [vmem:[#allocation159_spill] sm:$0xff] %v17412_v40  ;;  %7989 = vmatmul.mubr.f32.gmra.mxu1 %v20698_v24  ;;  %v20699_v56 = vrot.slane %v17312_v60, 7  ;;  %8810 = vmatpush3.msra.mxu0 %v17361_v15  ;;  %v20702_v24 = vld [vmem:[#allocation256_spill] sm:$0xff] }
 0x4e2   : > { %v17391_v47 = vsel %vm1280_vm1, %v20693_v26, %v6558_v36  ;;  %v17399_v34 = vsel %vm1280_vm1, %v20694_v22, %v6556_v49  ;;  %v17407_v26 = vsel %vm2758_vm2, %v20696_v13, %v20695_v0  ;;  %v17416_v22 = vsel %vm1280_vm1, %v6526_v50, %v6544_v21  ;;  %v17431_v13 = vpop.f32.mrf.mxu0  ;;  %7774 = vmatmul.mubr.f32.gmra.mxu0 %v16989_v42  ;;  %v7582_v16 = vpop.f32.mrf.mxu1  ;;  %v20705_v40 = vld [vmem:[#allocation156_spill] sm:$0xff] }
 0x4e3   : > { %v17421_v46 = vsel %vm1280_vm1, %v6558_v36, %v20699_v56  ;;  %20700 = vst [vmem:[#allocation30_spill] sm:$0xff] %v17431_v13  ;;  %7993 = vmatprep.mubr.f32.mxu1 %v17071_v11  ;;  %v17436_v50 = vsel %vm1280_vm1, %v6524_v51, %v6542_v8  ;;  %v20701_v36 = vrot.slane %v17206_v32, 1  ;;  %v17445_v41 = vmul.f32 %v15713_v23, %v20702_v24 }
 0x4e4   : > { %7778 = vmatprep.mubr.f32.mxu0 %v17092_v5  ;;  %v20703_v42 = vrot.slane %v17336_v17, 7  ;;  %v6594_v51 = vrot.slane %v17407_v26, 7  ;;  %v20704_v32 = vrot.slane %v17329_v43, 7  ;;  %v17462_v24 = vmul.f32 %v20691_v45, %v20705_v40  ;;  %8880 = vmatprep.subr.mxu1 %v17171_v30  ;;  %v7332_v16 = vpop.f32.mrf.mxu0  ;;  %v17481_v40 = vpop.f32.mrf.mxu1 }
 0x4e5   : > { %v17441_v56 = vsel %vm894_vm0, %v20701_v36, %v5974_v52  ;;  %v20706_v5 = vrot.slane %v17351_v19, 7  ;;  %8811 = vmatprep.subr.mxu0 %v17429_v35  ;;  %8896 = vmatpush3.msra.mxu1 %v17171_v30  ;;  %20709 = vst [vmem:[#allocation167_spill] sm:$0xff] %v17481_v40  ;;  %v20714_v30 = vld [vmem:[#allocation24_spill] sm:$0xff] }
 0x4e6   : > { %v17452_v11 = vsel %vm1280_vm1, %v6556_v49, %v20703_v42  ;;  %v17458_v36 = vsel %vm1280_vm1, %v6542_v8, %v20704_v32  ;;  %v20707_v49 = vrot.slane %v17222_v54, 1  ;;  %v20708_v42 = vld [vmem:[#allocation136_spill] sm:$0xff]  ;;  %7994 = vmatmul.mubr.f32.gmra.mxu1 %v17078_v6  ;;  %v20710_v32 = vrot.slane %v17356_v55, 2  ;;  %8812 = vmatpush3.msra.mxu0 %v17429_v35  ;;  %v17505_v6 = vld [vmem:[%s18912_s6 + $0x438] sm:$0xff] }
 0x4e7   : > { %v17468_v0 = vsel %vm1280_vm1, %v6544_v21, %v20706_v5  ;;  %v17477_v8 = vmul.f32 %v20691_v45, %v20708_v42  ;;  %v6592_v21 = vrot.slane %v17441_v56, 7  ;;  %v20711_v54 = vrot.slane %v17277_v18, 2  ;;  %v20713_v42 = vld [vmem:[#allocation83_spill] sm:$0xff]  ;;  %v17507_v18 = vpop.f32.mrf.mxu0  ;;  %7779 = vmatmul.mubr.f32.gmra.mxu0 %v17154_v61  ;;  %7998 = vmatprep.mubr.f32.mxu1 %v17200_v33 }
 0x4e8   : > { %v17473_v26 = vsel %vm894_vm0, %v20707_v49, %v6161_v25  ;;  %v20712_v5 = vrot.slane %v17365_v27, 1  ;;  %v17499_v13 = vmul.f32 %v20714_v30, %v20713_v42  ;;  %20715 = vst [vmem:[#allocation65_spill] sm:$0xff] %v17507_v18  ;;  %v20716_v56 = vrot.slane %v17380_v14, 1  ;;  %v20718_v42 = vld [vmem:[#allocation163_spill] sm:$0xff]  ;;  %v7587_v18 = vpop.f32.mrf.mxu1  ;;  %7783 = vmatprep.mubr.f32.mxu0 %v17231_v39  ;;  %8881 = vmatprep.subr.mxu1 %v17216_v48 }
 0x4e9   : > { %v17490_v16 = vsel %vm2758_vm2, %v20711_v54, %v20710_v32  ;;  %v20717_v54 = vld [vmem:[#allocation162_spill] sm:$0xff]  ;;  %v17523_v40 = vmul.f32 %v20714_v30, %v20718_v42  ;;  %v20719_v61 = vrot.slane %v17312_v60, 7  ;;  %v7337_v42 = vpop.f32.mrf.mxu0  ;;  %v5978_v39 = vrot.slane %v17477_v8, 1  ;;  %8813 = vmatprep.subr.mxu0 %v17505_v6  ;;  %8897 = vmatpush3.msra.mxu1 %v17216_v48 }
 0x4ea   : > { %v17495_v49 = vsel %vm894_vm0, %v5974_v52, %v20712_v5  ;;  %v17515_v32 = vsel %vm894_vm0, %v6161_v25, %v20716_v56  ;;  %v17519_v5 = vmul.f32 %v20714_v30, %v20717_v54  ;;  %v6580_v52 = vrot.slane %v17473_v26, 7  ;;  %v20720_v56 = vld [vmem:[#allocation88_spill] sm:$0xff]  ;;  %7999 = vmatmul.mubr.f32.gmra.mxu1 %v17191_v44  ;;  %v20724_v42 = vld [vmem:[#allocation259_spill] sm:$0xff]  ;;  %8814 = vmatpush3.msra.mxu0 %v17505_v6  ;;  %v17582_v2 = vpop.f32.mrf.mxu1 }
 0x4eb   : > { %v17529_v33 = vsel %vm1280_vm1, %v20719_v61, %v6594_v51  ;;  %v6073_v25 = vrot.slane %v17462_v24, 2  ;;  %v17535_v54 = vmul.f32 %v20721_v63, %v20720_v56  ;;  %v17542_v60 = vmul.f32 %v20721_v63, %v20722_v4  ;;  %v20723_v61 = vld [vmem:[#allocation169_spill] sm:$0xff]  ;;  %v17564_v48 = vpop.f32.mrf.mxu0  ;;  %7784 = vmatmul.mubr.f32.gmra.mxu0 %v17236_v57  ;;  %8003 = vmatprep.mubr.f32.mxu1 %v17248_v1 }
 0x4ec   : > { %v17546_v26 = vmul.f32 %v20721_v63, %v20723_v61  ;;  %v17555_v8 = vmul.f32 %v20682_v31, %v20724_v42  ;;  %v6165_v4 = vrot.slane %v17499_v13, 1  ;;  %v17562_v61 = vld [vmem:[%s18912_s6 + $0x430] sm:$0xff]  ;;  %20725 = vst [vmem:[#allocation6_spill] sm:$0xff] %v17564_v48  ;;  %v20726_v44 = vrot.slane %v17336_v17, 7  ;;  %20729 = vst [vmem:[#allocation160_spill] sm:$0xff] %v17582_v2  ;;  %7788 = vmatprep.mubr.f32.mxu0 %v17253_v3  ;;  %v20747_v2 = vld [vmem:[#allocation21_spill] sm:$0xff] }
 0x4ed   : > { %v20727_v13 = vrot.slane %v17445_v41, 7  ;;  %v20728_v56 = vrot.slane %v17329_v43, 7  ;;  %v6075_v18 = vrot.slane %v17519_v5, 2  ;;  %v5980_v48 = vrot.slane %v17523_v40, 1  ;;  %8882 = vmatprep.subr.mxu1 %v17301_v9  ;;  %v7342_v5 = vpop.f32.mrf.mxu0  ;;  %8815 = vmatprep.subr.mxu0 %v17562_v61 }
 0x4ee   : > { %v17571_v42 = vsel %vm1280_vm1, %v20726_v44, %v6592_v21  ;;  %v20730_v57 = vrot.slane %v17351_v19, 7  ;;  %v20731_v17 = vrot.slane %v17356_v55, 2  ;;  %v19495_v40 = vrot.slane %v17535_v54, 1  ;;  %8898 = vmatpush3.msra.mxu1 %v17301_v9  ;;  %8816 = vmatpush3.msra.mxu0 %v17562_v61 }
 0x4ef   : > { %v17578_v24 = vsel %vm1280_vm1, %v20728_v56, %v20727_v13  ;;  %v20732_v56 = vld [vmem:[#allocation260_spill] sm:$0xff]  ;;  %v20733_v3 = vrot.slane %v17490_v16, 7  ;;  %v20734_v13 = vrot.slane %v17365_v27, 1  ;;  %8004 = vmatmul.mubr.f32.gmra.mxu1 %v17287_v28  ;;  %v20735_v5 = vrot.slane %v17495_v49, 7  ;;  %v17636_v28 = vld [vmem:[%s18912_s6 + $0x428] sm:$0xff]  ;;  %v17638_v9 = vpop.f32.mrf.mxu0  ;;  %7789 = vmatmul.mubr.f32.gmra.mxu0 %v17292_v20 }
 0x4f0   : > { %v17588_v1 = vsel %vm1280_vm1, %v20730_v57, %v6580_v52  ;;  %v17593_v43 = vsel %vm2758_vm2, %v20731_v17, %v6073_v25  ;;  %v17597_v44 = vmul.f32 %v20691_v45, %v20732_v56  ;;  %v7592_v56 = vpop.f32.mrf.mxu1  ;;  %v20736_v27 = vrot.slane %v17515_v32, 7  ;;  %20738 = vst [vmem:[#allocation67_spill] sm:$0xff] %v17638_v9  ;;  %8008 = vmatprep.mubr.f32.mxu1 %v17386_v59  ;;  %v20740_v59 = vld [vmem:[#allocation90_spill] sm:$0xff] }
 0x4f1   : > { %v17604_v19 = vsel %vm1280_vm1, %v6594_v51, %v20733_v3  ;;  %v17609_v55 = vsel %vm894_vm0, %v20734_v13, %v5978_v39  ;;  %v17619_v51 = vsel %vm1280_vm1, %v6592_v21, %v20735_v5  ;;  %v6596_v13 = vrot.slane %v17555_v8, 7  ;;  %v20739_v8 = vld [vmem:[#allocation193_spill] sm:$0xff]  ;;  %7793 = vmatprep.mubr.f32.mxu0 %v17391_v47  ;;  %8883 = vmatprep.subr.mxu1 %v17361_v15  ;;  %v20777_v9 = vld [vmem:[#allocation142_spill] sm:$0xff] }
 0x4f2   : > { %v17624_v3 = vsel %vm1280_vm1, %v6580_v52, %v20736_v27  ;;  %v20737_v17 = vrot.slane %v17380_v14, 1  ;;  %v6630_v21 = vrot.slane %v17593_v43, 7  ;;  %v6076_v14 = vsel %vm2758_vm2, %v6073_v25, %v6075_v18  ;;  %v20741_v43 = vld [vmem:[#allocation129_spill] sm:$0xff]  ;;  %8817 = vmatprep.subr.mxu0 %v17636_v28  ;;  %8899 = vmatpush3.msra.mxu1 %v17361_v15 }
 0x4f3   : > { %v5981_v52 = vsel %vm894_vm0, %v5978_v39, %v5980_v48  ;;  %v6628_v56 = vrot.slane %v17609_v55, 7  ;;  %v6614_v5 = vrot.slane %v17597_v44, 7  ;;  %v17655_v20 = vsel %vm894_vm0, %v6165_v4, %v19495_v40  ;;  %v7347_v39 = vpop.f32.mrf.mxu0  ;;  %8009 = vmatmul.mubr.f32.gmra.mxu1 %v17374_v38  ;;  %8818 = vmatpush3.msra.mxu0 %v17636_v28 }
 0x4f4   : > { %v17630_v57 = vsel %vm894_vm0, %v20737_v17, %v6165_v4  ;;  %v17647_v17 = vmul.f32 %v20714_v30, %v20739_v8  ;;  %v17659_v25 = vmul.f32 %v20741_v43, %v20740_v59  ;;  %v20742_v47 = vrot.slane %v17542_v60, 2  ;;  %v20744_v4 = vld [vmem:[#allocation166_spill] sm:$0xff]  ;;  %v20745_v39 = vld [vmem:[#allocation139_spill] sm:$0xff]  ;;  %7794 = vmatmul.mubr.f32.gmra.mxu0 %v17399_v34  ;;  %8013 = vmatprep.mubr.f32.mxu1 %v17416_v22 }
 0x4f5   : > { %v6616_v27 = vrot.slane %v17630_v57, 7  ;;  %v20743_v44 = vrot.slane %v17546_v26, 1  ;;  %v17675_v40 = vmul.f32 %v20741_v43, %v20744_v4  ;;  %v6648_v57 = vrot.slane %v6076_v14, 7  ;;  %v17694_v15 = vpop.f32.mrf.mxu0  ;;  %7798 = vmatprep.mubr.f32.mxu0 %v17421_v46  ;;  %8884 = vmatprep.subr.mxu1 %v17429_v35 }
 0x4f6   : > { %v17666_v55 = vsel %vm2758_vm2, %v6075_v18, %v20742_v47  ;;  %v6646_v59 = vrot.slane %v5981_v52, 7  ;;  %v17682_v18 = vmul.f32 %v20741_v43, %v20745_v39  ;;  %v20746_v47 = vld [vmem:[#allocation194_spill] sm:$0xff]  ;;  %20748 = vst [vmem:[#allocation95_spill] sm:$0xff] %v17694_v15  ;;  %v20749_v38 = vrot.slane %v17445_v41, 7  ;;  %v20750_v39 = vld [vmem:[#allocation179_spill] sm:$0xff]  ;;  %8900 = vmatpush3.msra.mxu1 %v17429_v35 }
 0x4f7   : > { %v17671_v8 = vsel %vm894_vm0, %v5980_v48, %v20743_v44  ;;  %v17686_v48 = vmul.f32 %v20747_v2, %v20746_v47  ;;  %v17692_v44 = vld [vmem:[%s18912_s6 + $0x420] sm:$0xff]  ;;  %v17707_v47 = vmul.f32 %v20747_v2, %v20750_v39  ;;  %v20751_v15 = vrot.slane %v17490_v16, 7  ;;  %v7352_v4 = vpop.f32.mrf.mxu0  ;;  %8014 = vmatmul.mubr.f32.gmra.mxu1 %v17436_v50  ;;  %v17752_v50 = vpop.f32.mrf.mxu1  ;;  %8885 = vmatprep.subr.mxu1 %v17505_v6 }
 0x4f8   : > { %v17701_v14 = vsel %vm1280_vm1, %v20749_v38, %v6596_v13  ;;  %v19496_v22 = vrot.slane %v17666_v55, 7  ;;  %v6169_v38 = vrot.slane %v17659_v25, 1  ;;  %v20752_v52 = vrot.slane %v17495_v49, 7  ;;  %8819 = vmatprep.subr.mxu0 %v17692_v44  ;;  %20755 = vst [vmem:[#allocation69_spill] sm:$0xff] %v17752_v50  ;;  %7799 = vmatmul.mubr.f32.gmra.mxu0 %v17452_v11  ;;  %v20763_v50 = vld [vmem:[#allocation181_spill] sm:$0xff] }
 0x4f9   : > { %v17713_v34 = vsel %vm1280_vm1, %v20751_v15, %v6630_v21  ;;  %v20753_v46 = vrot.slane %v17515_v32, 7  ;;  %v17730_v15 = vsel %vm1280_vm1, %v6596_v13, %v6614_v5  ;;  %v6079_v41 = vrot.slane %v17675_v40, 2  ;;  %8820 = vmatpush3.msra.mxu0 %v17692_v44  ;;  %v17748_v40 = vld [vmem:[%s18912_s6 + $0x418] sm:$0xff]  ;;  %v17750_v35 = vpop.f32.mrf.mxu0  ;;  %8018 = vmatprep.mubr.f32.mxu1 %v17468_v0 }
 0x4fa   : > { %v17722_v39 = vsel %vm1280_vm1, %v20752_v52, %v6628_v56  ;;  %v17737_v49 = vsel %vm1280_vm1, %v6630_v21, %v6648_v57  ;;  %v17740_v25 = vsel %vm1280_vm1, %v6628_v56, %v6646_v59  ;;  %20754 = vst [vmem:[#allocation31_spill] sm:$0xff] %v17750_v35  ;;  %v20756_v13 = vrot.slane %v17655_v20, 7  ;;  %7803 = vmatprep.mubr.f32.mxu0 %v17529_v33  ;;  %v20774_v35 = vld [vmem:[#allocation270_spill] sm:$0xff] }
 0x4fb   : > { %v17727_v16 = vsel %vm1280_vm1, %v20753_v46, %v6616_v27  ;;  %v20757_v56 = vrot.slane %v17647_v17, 7  ;;  %v20758_v46 = vld [vmem:[#allocation263_spill] sm:$0xff]  ;;  %v17775_v0 = vsel %vm1280_vm1, %v6648_v57, %v19496_v22  ;;  %v20759_v11 = vrot.slane %v17671_v8, 7  ;;  %v20762_v57 = vld [vmem:[#allocation266_spill] sm:$0xff]  ;;  %8821 = vmatprep.subr.mxu0 %v17748_v40  ;;  %8901 = vmatpush3.msra.mxu1 %v17505_v6 }
 0x4fc   : > { %v17759_v21 = vsel %vm1280_vm1, %v6616_v27, %v20756_v13  ;;  %v17768_v52 = vmul.f32 %v20721_v63, %v20758_v46  ;;  %v7597_v46 = vpop.f32.mrf.mxu1  ;;  %v20761_v33 = vrot.slane %v17542_v60, 2  ;;  %v17793_v22 = vmul.f32 %v20741_v43, %v20762_v57  ;;  %8019 = vmatmul.mubr.f32.gmra.mxu1 %v17458_v36  ;;  %8822 = vmatpush3.msra.mxu0 %v17748_v40  ;;  %v17822_v36 = vld [vmem:[%s18912_s6 + $0x410] sm:$0xff] }
 0x4fd   : > { %v17764_v4 = vsel %vm1280_vm1, %v6614_v5, %v20757_v56  ;;  %v17780_v27 = vsel %vm1280_vm1, %v6646_v59, %v20759_v11  ;;  %v20760_v5 = vrot.slane %v17535_v54, 1  ;;  %v7357_v56 = vpop.f32.mrf.mxu0  ;;  %v17797_v59 = vmul.f32 %v20747_v2, %v20763_v50  ;;  %v20767_v50 = vld [vmem:[#allocation101_spill] sm:$0xff]  ;;  %v20768_v46 = vld [vmem:[#allocation39_spill] sm:$0xff]  ;;  %7804 = vmatmul.mubr.f32.gmra.mxu0 %v17571_v42  ;;  %8023 = vmatprep.mubr.f32.mxu1 %v17588_v1 }
 0x4fe   : > { %v17789_v32 = vsel %vm2758_vm2, %v20761_v33, %v6079_v41  ;;  %v20764_v54 = vrot.slane %v17682_v18, 1  ;;  %v20765_v60 = vrot.slane %v17546_v26, 1  ;;  %v17816_v33 = vmul.f32 %v20768_v46, %v20767_v50  ;;  %7808 = vmatprep.mubr.f32.mxu0 %v17604_v19  ;;  %8886 = vmatprep.subr.mxu1 %v17562_v61 }
 0x4ff   : > { %v6170_v13 = vsel %vm894_vm0, %v20760_v5, %v6169_v38  ;;  %v20766_v5 = vrot.slane %v17686_v48, 1  ;;  %v17824_v6 = vpop.f32.mrf.mxu0  ;;  %v6650_v26 = vrot.slane %v17768_v52, 7  ;;  %v6684_v1 = vrot.slane %v17789_v32, 7  ;;  %8823 = vmatprep.subr.mxu0 %v17822_v36  ;;  %8902 = vmatpush3.msra.mxu1 %v17562_v61 }
 0x500   : > { %v17807_v11 = vsel %vm894_vm0, %v20765_v60, %v20764_v54  ;;  %20769 = vst [vmem:[#allocation7_spill] sm:$0xff] %v17824_v6  ;;  %v20771_v54 = vld [vmem:[#allocation185_spill] sm:$0xff]  ;;  %v6652_v42 = vrot.slane %v6170_v13, 7  ;;  %v20773_v6 = vld [vmem:[#allocation188_spill] sm:$0xff]  ;;  %v5986_v19 = vrot.slane %v17797_v59, 1  ;;  %v20776_v13 = vld [vmem:[#allocation186_spill] sm:$0xff]  ;;  %8024 = vmatmul.mubr.f32.gmra.mxu1 %v17578_v24  ;;  %8824 = vmatpush3.msra.mxu0 %v17822_v36  ;;  %v17878_v24 = vpop.f32.mrf.mxu1 }
 0x501   : > { %v17812_v56 = vsel %vm894_vm0, %v6169_v38, %v20766_v5  ;;  %v20770_v38 = vrot.slane %v17707_v47, 2  ;;  %v17836_v60 = vmul.f32 %v20768_v46, %v20771_v54  ;;  %v20772_v5 = vld [vmem:[#allocation267_spill] sm:$0xff]  ;;  %v17846_v52 = vmul.f32 %v20768_v46, %v20773_v6  ;;  %v7362_v54 = vpop.f32.mrf.mxu0  ;;  %20779 = vst [vmem:[#allocation71_spill] sm:$0xff] %v17878_v24  ;;  %7809 = vmatmul.mubr.f32.gmra.mxu0 %v17619_v51 }
 0x502   : > { %v17840_v50 = vmul.f32 %v20747_v2, %v20772_v5  ;;  %v6668_v6 = vrot.slane %v17793_v22, 7  ;;  %v6173_v54 = vrot.slane %v17816_v33, 1  ;;  %v17874_v59 = vld [vmem:[%s18912_s6 + $0x408] sm:$0xff]  ;;  %8028 = vmatprep.mubr.f32.mxu1 %v17624_v3  ;;  %v20780_v22 = vrot.slane %v17647_v17, 7  ;;  %v20782_v2 = vld [vmem:[#allocation137_spill] sm:$0xff]  ;;  %7813 = vmatprep.mubr.f32.mxu0 %v17713_v34 }
 0x503   : > { %v17832_v57 = vsel %vm2758_vm2, %v6079_v41, %v20770_v38  ;;  %v20775_v41 = vld [vmem:[#allocation2_spill] sm:$0xff]  ;;  %v17876_v61 = vpop.f32.mrf.mxu0  ;;  %v6083_v33 = vrot.slane %v17836_v60, 2  ;;  %v20783_v24 = vrot.slane %v17655_v20, 7  ;;  %v20784_v3 = vrot.slane %v17666_v55, 7  ;;  %8887 = vmatprep.subr.mxu1 %v17636_v28  ;;  %8825 = vmatprep.subr.mxu0 %v17874_v59 }
 0x504   : > { %v17850_v38 = vmul.f32 %v20775_v41, %v20774_v35  ;;  %v17858_v32 = vmul.f32 %v20775_v41, %v20776_v13  ;;  %v17868_v5 = vmul.f32 %v20775_v41, %v20777_v9  ;;  %20778 = vst [vmem:[#allocation232_spill] sm:$0xff] %v17876_v61  ;;  %v17885_v9 = vsel %vm1280_vm1, %v20780_v22, %v6650_v26  ;;  %v20781_v35 = vld [vmem:[#allocation274_spill] sm:$0xff]  ;;  %v7602_v13 = vpop.f32.mrf.mxu1 }
 0x505   : > { %v17891_v43 = vmul.f32 %v20782_v2, %v20781_v35  ;;  %v17897_v51 = vsel %vm1280_vm1, %v20783_v24, %v6652_v42  ;;  %v17902_v17 = vsel %vm1280_vm1, %v20784_v3, %v6684_v1  ;;  %v5988_v60 = vrot.slane %v17846_v52, 1  ;;  %v7367_v35 = vpop.f32.mrf.mxu0  ;;  %8903 = vmatpush3.msra.mxu1 %v17636_v28  ;;  %8826 = vmatpush3.msra.mxu0 %v17874_v59  ;;  %v17946_v28 = vld [vmem:[%s18912_s6 + $0x400] sm:$0xff] }
 0x506   : > { %v6175_v22 = vrot.slane %v17850_v38, 1  ;;  %v20785_v34 = vrot.slane %v17807_v11, 7  ;;  %v20786_v20 = vrot.slane %v17671_v8, 7  ;;  %v20787_v55 = vrot.slane %v17812_v56, 7  ;;  %8029 = vmatmul.mubr.f32.gmra.mxu1 %v17701_v14  ;;  %7814 = vmatmul.mubr.f32.gmra.mxu0 %v17722_v39 }
 0x507   : > { %v20788_v52 = vrot.slane %v17682_v18, 1  ;;  %v19499_v35 = vrot.slane %v17858_v32, 2  ;;  %v20789_v8 = vrot.slane %v17832_v57, 7  ;;  %v20790_v18 = vrot.slane %v17686_v48, 1  ;;  %v17948_v14 = vpop.f32.mrf.mxu0  ;;  %8033 = vmatprep.mubr.f32.mxu1 %v17727_v16  ;;  %7818 = vmatprep.mubr.f32.mxu0 %v17737_v49 }
 0x508   : > { %v17912_v24 = vsel %vm1280_vm1, %v20786_v20, %v20785_v34  ;;  %v17917_v3 = vsel %vm1280_vm1, %v6652_v42, %v20787_v55  ;;  %v17934_v42 = vsel %vm1280_vm1, %v6650_v26, %v6668_v6  ;;  %20791 = vst [vmem:[#allocation32_spill] sm:$0xff] %v17948_v14  ;;  %v20792_v48 = vrot.slane %v17707_v47, 2  ;;  %8888 = vmatprep.subr.mxu1 %v17692_v44 }
 0x509   : > { %v17922_v38 = vsel %vm894_vm0, %v20788_v52, %v5986_v19  ;;  %v17931_v13 = vsel %vm1280_vm1, %v6684_v1, %v20789_v8  ;;  %v17939_v34 = vsel %vm894_vm0, %v20790_v18, %v6173_v54  ;;  %v20793_v1 = vrot.slane %v17840_v50, 7  ;;  %v20794_v52 = vld [vmem:[#allocation198_spill] sm:$0xff]  ;;  %8827 = vmatprep.subr.mxu0 %v17946_v28  ;;  %8904 = vmatpush3.msra.mxu1 %v17692_v44  ;;  %v20801_v18 = vld [vmem:[#allocation200_spill] sm:$0xff] }
 0x50a   : > { %v6084_v26 = vsel %vm2758_vm2, %v20792_v48, %v6083_v33  ;;  %v17962_v8 = vmul.f32 %v20768_v46, %v20794_v52  ;;  %v6700_v39 = vrot.slane %v17922_v38, 7  ;;  %v5989_v16 = vsel %vm894_vm0, %v5986_v19, %v5988_v60  ;;  %v20795_v48 = vld [vmem:[#allocation195_spill] sm:$0xff]  ;;  %8034 = vmatmul.mubr.f32.gmra.mxu1 %v17730_v15  ;;  %8828 = vmatpush3.msra.mxu0 %v17946_v28 }
 0x50b   : > { %v17958_v55 = vsel %vm1280_vm1, %v6668_v6, %v20793_v1  ;;  %v17969_v47 = vsel %vm894_vm0, %v6173_v54, %v6175_v22  ;;  %v17973_v20 = vmul.f32 %v20782_v2, %v20795_v48  ;;  %v7372_v6 = vpop.f32.mrf.mxu0  ;;  %v6688_v1 = vrot.slane %v17939_v34, 7  ;;  %v20796_v38 = vld [vmem:[#allocation271_spill] sm:$0xff]  ;;  %v20797_v54 = vld [vmem:[#allocation197_spill] sm:$0xff]  ;;  %7819 = vmatmul.mubr.f32.gmra.mxu0 %v17740_v25  ;;  %8038 = vmatprep.mubr.f32.mxu1 %v17759_v21 }
 0x50c   : > { %v17980_v49 = vsel %vm2758_vm2, %v6083_v33, %v19499_v35  ;;  %v17984_v19 = vmul.f32 %v20775_v41, %v20796_v38  ;;  %v17988_v52 = vmul.f32 %v20782_v2, %v20797_v54  ;;  %v6720_v34 = vrot.slane %v6084_v26, 7  ;;  %v20799_v6 = vld [vmem:[#allocation275_spill] sm:$0xff]  ;;  %v20800_v35 = vld [vmem:[#allocation141_spill] sm:$0xff]  ;;  %7823 = vmatprep.mubr.f32.mxu0 %v17775_v0  ;;  %8889 = vmatprep.subr.mxu1 %v17748_v40 }
 0x50d   : > { %v20798_v48 = vrot.slane %v17868_v5, 1  ;;  %v18000_v38 = vmul.f32 %v20800_v35, %v20799_v6  ;;  %v18004_v54 = vmul.f32 %v20800_v35, %v20801_v18  ;;  %v18007_v14 = vpop.f32.mrf.mxu0  ;;  %v6718_v44 = vrot.slane %v5989_v16, 7  ;;  %8905 = vmatpush3.msra.mxu1 %v17748_v40 }
 0x50e   : > { %20802 = vst [vmem:[#allocation161_spill] sm:$0xff] %v18007_v14  ;;  %v6704_v15 = vrot.slane %v17962_v8, 7  ;;  %v20805_v6 = vrot.slane %v17807_v11, 7  ;;  %v6706_v21 = vrot.slane %v17969_v47, 7  ;;  %v19501_v8 = vrot.slane %v17980_v49, 7  ;;  %v20806_v14 = vld [vmem:[#allocation278_spill] sm:$0xff]  ;;  %v18039_v47 = vpop.f32.mrf.mxu1  ;;  %8039 = vmatmul.mubr.f32.gmra.mxu1 %v17764_v4  ;;  %8890 = vmatprep.subr.mxu1 %v17822_v36 }
 0x50f   : > { %v17996_v33 = vsel %vm894_vm0, %v5988_v60, %v20798_v48  ;;  %v20803_v60 = vrot.slane %v17891_v43, 1  ;;  %v20804_v48 = vld [vmem:[#allocation13_spill] sm:$0xff]  ;;  %v6087_v16 = vrot.slane %v17973_v20, 2  ;;  %v5992_v0 = vrot.slane %v17988_v52, 1  ;;  %20808 = vst [vmem:[#allocation72_spill] sm:$0xff] %v18039_v47  ;;  %7824 = vmatmul.mubr.f32.gmra.mxu0 %v17780_v27  ;;  %8043 = vmatprep.mubr.f32.mxu1 %v17897_v51  ;;  %v20826_v47 = vld [vmem:[#allocation206_spill] sm:$0xff] }
 0x510   : > { %v18019_v18 = vmul.f32 %v20800_v35, %v20804_v48  ;;  %v18025_v25 = vsel %vm1280_vm1, %v20805_v6, %v6700_v39  ;;  %v20807_v11 = vld [vmem:[#allocation45_spill] sm:$0xff]  ;;  %v20809_v20 = vrot.slane %v17812_v56, 7  ;;  %v6179_v48 = vrot.slane %v18000_v38, 1  ;;  %7828 = vmatprep.mubr.f32.mxu0 %v17902_v17  ;;  %8906 = vmatpush3.msra.mxu1 %v17822_v36 }
 0x511   : > { %v18015_v26 = vsel %vm894_vm0, %v6175_v22, %v20803_v60  ;;  %v7377_v22 = vpop.f32.mrf.mxu0  ;;  %v19500_v60 = vrot.slane %v17996_v33, 7  ;;  %v18036_v61 = vmul.f32 %v20807_v11, %v20806_v14  ;;  %v20811_v40 = vrot.slane %v17832_v57, 7  ;;  %8891 = vmatprep.subr.mxu1 %v17874_v59 }
 0x512   : > { %v6689_v6 = vsel %vm1280_vm1, %v20809_v20, %v6688_v1  ;;  %v18057_v56 = vsel %vm1280_vm1, %v6700_v39, %v6718_v44  ;;  %v20812_v20 = vrot.slane %v17840_v50, 7  ;;  %v19502_v52 = vrot.slane %v18019_v18, 1  ;;  %v7607_v22 = vpop.f32.mrf.mxu1  ;;  %8044 = vmatmul.mubr.f32.gmra.mxu1 %v17885_v9  ;;  %v18112_v9 = vld [vmem:[%s18913_s7] ss:$0 sm:$0xff] }
 0x513   : > { %v18049_v14 = vpop.f32.mrf.mxu0  ;;  %v6721_v4 = vsel %vm1280_vm1, %v20811_v40, %v6720_v34  ;;  %v18067_v27 = vsel %vm1280_vm1, %v6688_v1, %v6706_v21  ;;  %v18072_v57 = vsel %vm1280_vm1, %v6720_v34, %v19501_v8  ;;  %v20813_v51 = vrot.slane %v17858_v32, 2  ;;  %7829 = vmatmul.mubr.f32.gmra.mxu0 %v17912_v24  ;;  %8048 = vmatprep.mubr.f32.mxu1 %v17917_v3  ;;  %v20822_v24 = vld [vmem:[#allocation38_spill] sm:$0xff]  ;;  %v20824_v8 = vld [vmem:[#allocation25_spill] sm:$0xff] }
 0x514   : > { %20810 = vst [vmem:[#allocation164_spill] sm:$0xff] %v18049_v14  ;;  %v18062_v38 = vsel %vm1280_vm1, %v20812_v20, %v6704_v15  ;;  %v18081_v22 = vsel %vm1280_vm1, %v6718_v44, %v19500_v60  ;;  %v20814_v17 = vrot.slane %v17984_v19, 7  ;;  %v20815_v34 = vrot.slane %v17868_v5, 1  ;;  %7833 = vmatprep.mubr.f32.mxu0 %v17931_v13  ;;  %v20823_v60 = vld [vmem:[#allocation279_spill] sm:$0xff]  ;;  %8907 = vmatpush3.msra.mxu1 %v17874_v59 }
 0x515   : > { %v6088_v50 = vsel %vm2758_vm2, %v20813_v51, %v6087_v16  ;;  %v7382_v39 = vpop.f32.mrf.mxu0  ;;  %v20816_v36 = vrot.slane %v18015_v26, 7  ;;  %v20817_v20 = vrot.slane %v17891_v43, 1  ;;  %v20818_v51 = vrot.slane %v18004_v54, 2  ;;  %v20827_v13 = vld [vmem:[#allocation207_spill] sm:$0xff]  ;;  %8892 = vmatprep.subr.mxu1 %v17946_v28 }
 0x516   : > { %v18086_v1 = vsel %vm1280_vm1, %v6704_v15, %v20814_v17  ;;  %v5993_v40 = vsel %vm894_vm0, %v20815_v34, %v5992_v0  ;;  %v20819_v39 = vld [vmem:[#allocation113_spill] sm:$0xff]  ;;  %v18119_v43 = vsel %vm894_vm0, %v5992_v0, %v19502_v52  ;;  %v5604_v3 = vmul.f32 %v20807_v11, %v20822_v24  ;;  %8049 = vmatmul.mubr.f32.gmra.mxu1 %v17934_v42 }
 0x517   : > { %v18097_v44 = vsel %vm1280_vm1, %v6706_v21, %v20816_v36  ;;  %v6180_v15 = vsel %vm894_vm0, %v20817_v20, %v6179_v48  ;;  %v18105_v5 = vsel %vm2758_vm2, %v6087_v16, %v20818_v51  ;;  %v5665_v17 = vmul.f32 %v20782_v2, %v20819_v39  ;;  %v7385_v34 = vpop.f32.mrf.mxu0  ;;  %v20820_v21 = vld [vmem:[#allocation201_spill] sm:$0xff]  ;;  %v20821_v36 = vld [vmem:[#allocation202_spill] sm:$0xff]  ;;  %7834 = vmatmul.mubr.f32.gmra.mxu0 %v18025_v25 }
 0x518   : > { %v5636_v16 = vmul.f32 %v20807_v11, %v20820_v21  ;;  %v18125_v20 = vmul.f32 %v20800_v35, %v20821_v36  ;;  %v7386_v51 = vadd.f32 %v18112_v9, %v7385_v34  ;;  %v6756_v39 = vrot.slane %v6088_v50, 7  ;;  %8053 = vmatprep.mubr.f32.mxu1 %v6689_v6  ;;  %7838 = vmatprep.mubr.f32.mxu0 %v6721_v4  ;;  %v20832_v4 = vld [vmem:[#allocation209_spill] sm:$0xff] }
 0x519   : > { %v5698_v32 = vmul.f32 %v20824_v8, %v20823_v60  ;;  %v7387_v0 = vpop.f32.mrf.mxu0  ;;  %v6754_v52 = vrot.slane %v5993_v40, 7  ;;  %v20825_v21 = vrot.slane %v18036_v61, 1  ;;  %v18141_v34 = vmul.f32 %v20824_v8, %v20826_v47  ;;  %v7610_v60 = vpop.f32.mrf.mxu1  ;;  %8908 = vmatpush3.msra.mxu1 %v17946_v28 }
 0x51a   : > { %v18145_v50 = vmul.f32 %v20824_v8, %v20827_v13  ;;  %v6742_v59 = vrot.slane %v6180_v15, 7  ;;  %v6740_v24 = vrot.slane %v5665_v17, 7  ;;  %v20828_v0 = vld [vmem:[#allocation284_spill] sm:$0xff]  ;;  %v18154_v14 = vadd.f32 %v7610_v60, %v7386_v51  ;;  %8054 = vmatmul.mubr.f32.gmra.mxu1 %v17958_v55 }
 0x51b   : > { %v18137_v36 = vsel %vm894_vm0, %v6179_v48, %v20825_v21  ;;  %v20829_v48 = vld [vmem:[#allocation26_spill] sm:$0xff]  ;;  %v6772_v47 = vrot.slane %v18119_v43, 7  ;;  %v6091_v13 = vrot.slane %v5636_v16, 2  ;;  %v19507_v35 = vrot.slane %v18125_v20, 7  ;;  %v7612_v2 = vpop.f32.mrf.mxu1  ;;  %v7390_v51 = vpop.f32.mrf.mxu0  ;;  %7839 = vmatmul.mubr.f32.gmra.mxu0 %v18057_v56  ;;  %8058 = vmatprep.mubr.f32.mxu1 %v18067_v27 }
 0x51c   : > { %v18152_v21 = vmul.f32 %v20829_v48, %v20828_v0  ;;  %v20830_v42 = vrot.slane %v17980_v49, 7  ;;  %v19508_v17 = vrot.slane %v18137_v36, 7  ;;  %v5996_v0 = vrot.slane %v5604_v3, 1  ;;  %7843 = vmatprep.mubr.f32.mxu0 %v18072_v57 }
 0x51d   : > { %v6183_v40 = vrot.slane %v5698_v32, 1  ;;  %v20831_v25 = vrot.slane %v17996_v33, 7  ;;  %v6093_v16 = vrot.slane %v18141_v34, 2  ;;  %v19505_v2 = vrot.slane %v18145_v50, 1 }
 0x51e   : > { %v6757_v15 = vsel %vm1280_vm1, %v20830_v42, %v6756_v39  ;;  %v18171_v49 = vmul.f32 %v20829_v48, %v20832_v4  ;;  %v20833_v3 = vrot.slane %v18015_v26, 7  ;;  %v20834_v28 = vrot.slane %v18105_v5, 7  ;;  %8059 = vmatmul.mubr.f32.gmra.mxu1 %v18062_v38 }
 0x51f   : > { %v6755_v6 = vsel %vm1280_vm1, %v20831_v25, %v6754_v52  ;;  %v20835_v60 = vrot.slane %v17984_v19, 7  ;;  %v19506_v42 = vrot.slane %v18152_v21, 1  ;;  %v7392_v25 = vpop.f32.mrf.mxu0  ;;  %v6773_v55 = vsel %vm1280_vm1, %v6754_v52, %v6772_v47  ;;  %7844 = vmatmul.mubr.f32.gmra.mxu0 %v18081_v22  ;;  %8063 = vmatprep.mubr.f32.mxu1 %v18097_v44 }
 0x520   : > { %v6743_v32 = vsel %vm1280_vm1, %v20833_v3, %v6742_v59  ;;  %v6775_v33 = vsel %vm1280_vm1, %v6756_v39, %v20834_v28  ;;  %v20836_v26 = vrot.slane %v18004_v54, 2  ;;  %v18195_v19 = vsel %vm1280_vm1, %v6740_v24, %v19507_v35  ;;  %v20839_v3 = vld [vmem:[#allocation280_spill] sm:$0xff]  ;;  %7848 = vmatprep.mubr.f32.mxu0 %v6757_v15  ;;  %v7615_v35 = vpop.f32.mrf.mxu1 }
 0x521   : > { %v6741_v34 = vsel %vm1280_vm1, %v20835_v60, %v6740_v24  ;;  %v6761_v56 = vsel %vm1280_vm1, %v6742_v59, %v19508_v17  ;;  %v20837_v27 = vrot.slane %v18019_v18, 1  ;;  %v20838_v52 = vrot.slane %v18036_v61, 1  ;;  %v20840_v18 = vld [vmem:[#allocation281_spill] sm:$0xff] }
 0x522   : > { %v6092_v4 = vsel %vm2758_vm2, %v20836_v26, %v6091_v13  ;;  %v5667_v28 = vmul.f32 %v20807_v11, %v20839_v3  ;;  %v18210_v24 = vsel %vm2758_vm2, %v6091_v13, %v6093_v16  ;;  %v18215_v57 = vsel %vm894_vm0, %v5996_v0, %v19505_v2  ;;  %v20841_v13 = vld [vmem:[#allocation212_spill] sm:$0xff]  ;;  %v20842_v26 = vld [vmem:[#allocation285_spill] sm:$0xff]  ;;  %v20845_v2 = vld [vmem:[#allocation147_spill] sm:$0xff]  ;;  %8064 = vmatmul.mubr.f32.gmra.mxu1 %v18086_v1 }
 0x523   : > { %v5997_v39 = vsel %vm894_vm0, %v20837_v27, %v5996_v0  ;;  %v6184_v54 = vsel %vm894_vm0, %v20838_v52, %v6183_v40  ;;  %v6095_v59 = vrot.slane %v18171_v49, 2  ;;  %v18220_v60 = vmul.f32 %v20824_v8, %v20840_v18  ;;  %v20843_v27 = vld [vmem:[#allocation138_spill] sm:$0xff]  ;;  %7849 = vmatmul.mubr.f32.gmra.mxu0 %v6755_v6  ;;  %8068 = vmatprep.mubr.f32.mxu1 %v6743_v32 }
 0x524   : > { %v18226_v61 = vsel %vm894_vm0, %v6183_v40, %v19506_v42  ;;  %v5606_v25 = vmul.f32 %v20829_v48, %v20841_v13  ;;  %v5700_v0 = vmul.f32 %v20843_v27, %v20842_v26  ;;  %v20844_v52 = vld [vmem:[#allocation210_spill] sm:$0xff]  ;;  %v6792_v38 = vrot.slane %v6092_v4, 7  ;;  %7853 = vmatprep.mubr.f32.mxu0 %v6775_v33 }
 0x525   : > { %v18234_v49 = vmul.f32 %v20843_v27, %v20844_v52  ;;  %v6790_v3 = vrot.slane %v5997_v39, 7  ;;  %v6778_v18 = vrot.slane %v6184_v54, 7  ;;  %v18240_v40 = vmul.f32 %v20843_v27, %v20845_v2  ;;  %v20846_v39 = vld [vmem:[#allocation290_spill] sm:$0xff]  ;;  %v20847_v54 = vld [vmem:[#allocation144_spill] sm:$0xff] }
 0x526   : > { %v7391_v13 = vadd.f32 %v18112_v9, %v7390_v51  ;;  %v6810_v26 = vrot.slane %v18210_v24, 7  ;;  %v6776_v42 = vrot.slane %v5667_v28, 7  ;;  %v6808_v52 = vrot.slane %v18215_v57, 7  ;;  %v7617_v24 = vpop.f32.mrf.mxu1  ;;  %8069 = vmatmul.mubr.f32.gmra.mxu1 %v6741_v34 }
 0x527   : > { %v18247_v44 = vsel %vm2758_vm2, %v6093_v16, %v6095_v59  ;;  %v6794_v4 = vrot.slane %v18220_v60, 7  ;;  %v18252_v2 = vmul.f32 %v20847_v54, %v20846_v39  ;;  %v6000_v15 = vrot.slane %v5606_v25, 1  ;;  %v7395_v25 = vpop.f32.mrf.mxu0  ;;  %7854 = vmatmul.mubr.f32.gmra.mxu0 %v6773_v55  ;;  %8073 = vmatprep.mubr.f32.mxu1 %v6761_v56 }
 0x528   : > { %v18254_v17 = vadd.f32 %v7615_v35, %v7391_v13  ;;  %v6187_v51 = vrot.slane %v5700_v0, 1  ;;  %v6097_v28 = vrot.slane %v18234_v49, 2  ;;  %v20848_v16 = vrot.slane %v18105_v5, 7  ;;  %v20849_v13 = vld [vmem:[#allocation216_spill] sm:$0xff]  ;;  %v20851_v49 = vld [vmem:[#allocation286_spill] sm:$0xff] }
 0x529   : > { %v6791_v60 = vsel %vm1280_vm1, %v6772_v47, %v6790_v3  ;;  %v19509_v35 = vrot.slane %v18240_v40, 1  ;;  %v18267_v1 = vmul.f32 %v20847_v54, %v20849_v13  ;;  %v20850_v0 = vrot.slane %v18137_v36, 7 }
 0x52a   : > { %v6793_v22 = vsel %vm1280_vm1, %v20848_v16, %v6792_v38  ;;  %v6811_v5 = vsel %vm1280_vm1, %v6792_v38, %v6810_v26  ;;  %v6828_v32 = vrot.slane %v18247_v44, 7  ;;  %v18276_v43 = vmul.f32 %v20829_v48, %v20851_v49  ;;  %v7397_v16 = vpop.f32.mrf.mxu0  ;;  %8074 = vmatmul.mubr.f32.gmra.mxu1 %v18195_v19 }
 0x52b   : > { %v6779_v6 = vsel %vm1280_vm1, %v20850_v0, %v6778_v18  ;;  %v20852_v47 = vrot.slane %v18125_v20, 7  ;;  %v6809_v33 = vsel %vm1280_vm1, %v6790_v3, %v6808_v52  ;;  %v20853_v36 = vrot.slane %v18226_v61, 7  ;;  %7858 = vmatprep.mubr.f32.mxu0 %v6793_v22  ;;  %v7620_v16 = vpop.f32.mrf.mxu1 }
 0x52c   : > { %v6189_v38 = vrot.slane %v18252_v2, 1  ;;  %v18289_v44 = vsel %vm1280_vm1, %v6776_v42, %v6794_v4  ;;  %v20854_v13 = vrot.slane %v18145_v50, 1  ;;  %v20855_v0 = vrot.slane %v18152_v21, 1  ;;  %v20857_v2 = vld [vmem:[#allocation291_spill] sm:$0xff]  ;;  %7859 = vmatmul.mubr.f32.gmra.mxu0 %v6791_v60  ;;  %8078 = vmatprep.mubr.f32.mxu1 %v6779_v6  ;;  %v20863_v60 = vld [vmem:[#allocation292_spill] sm:$0xff] }
 0x52d   : > { %v6777_v39 = vsel %vm1280_vm1, %v20852_v47, %v6776_v42  ;;  %v6797_v24 = vsel %vm1280_vm1, %v6778_v18, %v20853_v36  ;;  %v18298_v3 = vsel %vm2758_vm2, %v6095_v59, %v6097_v28  ;;  %v18303_v34 = vsel %vm894_vm0, %v6000_v15, %v19509_v35  ;;  %v20856_v18 = vld [vmem:[#allocation218_spill] sm:$0xff]  ;;  %v20858_v47 = vld [vmem:[#allocation27_spill] sm:$0xff]  ;;  %7863 = vmatprep.mubr.f32.mxu0 %v6811_v5 }
 0x52e   : > { %v6001_v20 = vsel %vm894_vm0, %v20854_v13, %v6000_v15  ;;  %v6188_v49 = vsel %vm894_vm0, %v20855_v0, %v6187_v51  ;;  %v6099_v42 = vrot.slane %v18267_v1, 2  ;;  %v5608_v50 = vmul.f32 %v20847_v54, %v20856_v18  ;;  %v20859_v59 = vld [vmem:[#allocation287_spill] sm:$0xff]  ;;  %v20860_v0 = vld [vmem:[#allocation221_spill] sm:$0xff]  ;;  %8079 = vmatmul.mubr.f32.gmra.mxu1 %v6777_v39 }
 0x52f   : > { %v18310_v21 = vmul.f32 %v20858_v47, %v20857_v2  ;;  %v7396_v36 = vadd.f32 %v18112_v9, %v7395_v25  ;;  %v6829_v55 = vsel %vm1280_vm1, %v6810_v26, %v6828_v32  ;;  %v6812_v56 = vrot.slane %v18276_v43, 7  ;;  %v20861_v2 = vld [vmem:[#allocation224_spill] sm:$0xff]  ;;  %8083 = vmatprep.mubr.f32.mxu1 %v6797_v24  ;;  %v20868_v24 = vld [vmem:[#allocation297_spill] sm:$0xff] }
 0x530   : > { %v18317_v15 = vmul.f32 %v20843_v27, %v20859_v59  ;;  %v6826_v1 = vrot.slane %v6001_v20, 7  ;;  %v18320_v13 = vsel %vm894_vm0, %v6187_v51, %v6189_v38  ;;  %v18324_v18 = vmul.f32 %v20858_v47, %v20860_v0  ;;  %v7622_v59 = vpop.f32.mrf.mxu1  ;;  %7864 = vmatmul.mubr.f32.gmra.mxu0 %v6809_v33 }
 0x531   : > { %v18328_v22 = vmul.f32 %v20858_v47, %v20861_v2  ;;  %v18330_v26 = vadd.f32 %v7620_v16, %v7396_v36  ;;  %v6814_v25 = vrot.slane %v6188_v49, 7  ;;  %v6846_v43 = vrot.slane %v18298_v3, 7  ;;  %v20862_v2 = vld [vmem:[#allocation296_spill] sm:$0xff]  ;;  %v7400_v16 = vpop.f32.mrf.mxu0  ;;  %v20864_v59 = vld [vmem:[#allocation222_spill] sm:$0xff]  ;;  %7868 = vmatprep.mubr.f32.mxu0 %v6829_v55 }
 0x532   : > { %v6844_v20 = vrot.slane %v18303_v34, 7  ;;  %v18336_v51 = vsel %vm2758_vm2, %v6097_v28, %v6099_v42  ;;  %v6004_v0 = vrot.slane %v5608_v50, 1  ;;  %v6191_v35 = vrot.slane %v18310_v21, 1  ;;  %8084 = vmatmul.mubr.f32.gmra.mxu1 %v18289_v44 }
 0x533   : > { %v18341_v36 = vmul.f32 %v16876_v37, %v20862_v2  ;;  %v6813_v19 = vsel %vm1280_vm1, %v6794_v4, %v6812_v56  ;;  %v6832_v49 = vrot.slane %v18320_v13, 7  ;;  %v6830_v3 = vrot.slane %v18317_v15, 7  ;;  %v7402_v4 = vpop.f32.mrf.mxu0 }
 0x534   : > { %v18348_v6 = vmul.f32 %v20847_v54, %v20863_v60  ;;  %v6827_v28 = vsel %vm1280_vm1, %v6808_v52, %v6826_v1  ;;  %v6101_v50 = vrot.slane %v18324_v18, 2  ;;  %v6006_v21 = vrot.slane %v18328_v22, 1  ;;  %v20867_v60 = vld [vmem:[#allocation149_spill] sm:$0xff]  ;;  %v20869_v4 = vld [vmem:[#allocation227_spill] sm:$0xff] }
 0x535   : > { %v18357_v5 = vmul.f32 %v16876_v37, %v20864_v59  ;;  %v20865_v15 = vrot.slane %v18226_v61, 7  ;;  %v6847_v2 = vsel %vm1280_vm1, %v6828_v32, %v6846_v43  ;;  %v6845_v57 = vsel %vm1280_vm1, %v6826_v1, %v6844_v20  ;;  %7869 = vmatmul.mubr.f32.gmra.mxu0 %v6827_v28 }
 0x536   : > { %v6864_v52 = vrot.slane %v18336_v51, 7  ;;  %v20866_v18 = vrot.slane %v18240_v40, 1  ;;  %v6192_v39 = vsel %vm894_vm0, %v6189_v38, %v6191_v35  ;;  %v6193_v61 = vrot.slane %v18341_v36, 1  ;;  %7873 = vmatprep.mubr.f32.mxu0 %v6847_v2 }
 0x537   : > { %v6815_v13 = vsel %vm1280_vm1, %v20865_v15, %v6814_v25  ;;  %v18374_v59 = vmul.f32 %v16876_v37, %v20867_v60  ;;  %v6833_v32 = vsel %vm1280_vm1, %v6814_v25, %v6832_v49  ;;  %v6831_v1 = vsel %vm1280_vm1, %v6812_v56, %v6830_v3  ;;  %v20870_v15 = vld [vmem:[#allocation293_spill] sm:$0xff]  ;;  %v20871_v60 = vld [vmem:[#allocation230_spill] sm:$0xff] }
 0x538   : > { %v6005_v22 = vsel %vm894_vm0, %v20866_v18, %v6004_v0  ;;  %v6848_v33 = vrot.slane %v18348_v6, 7  ;;  %v18381_v40 = vmul.f32 %v16999_v58, %v20868_v24  ;;  %v18384_v51 = vsel %vm2758_vm2, %v6099_v42, %v6101_v50  ;;  %8088 = vmatprep.mubr.f32.mxu1 %v6815_v13 }
 0x539   : > { %v18387_v38 = vsel %vm894_vm0, %v6004_v0, %v6006_v21  ;;  %v6103_v36 = vrot.slane %v18357_v5, 2  ;;  %v18392_v55 = vmul.f32 %v16999_v58, %v20869_v4  ;;  %v6865_v56 = vsel %vm1280_vm1, %v6846_v43, %v6864_v52  ;;  %v7625_v43 = vpop.f32.mrf.mxu1  ;;  %v20873_v4 = vld [vmem:[#allocation111_spill] sm:$0xff]  ;;  %8089 = vmatmul.mubr.f32.gmra.mxu1 %v6813_v19  ;;  %7874 = vmatmul.mubr.f32.gmra.mxu0 %v6845_v57 }
 0x53a   : > { %v6862_v25 = vrot.slane %v6005_v22, 7  ;;  %v6850_v6 = vrot.slane %v6192_v39, 7  ;;  %v18398_v18 = vmul.f32 %v20858_v47, %v20870_v15  ;;  %v7401_v42 = vadd.f32 %v18112_v9, %v7400_v16  ;;  %v20872_v16 = vld [vmem:[#allocation302_spill] sm:$0xff]  ;;  %8093 = vmatprep.mubr.f32.mxu1 %v6833_v32  ;;  %v20874_v19 = vld [vmem:[#allocation235_spill] sm:$0xff]  ;;  %7878 = vmatprep.mubr.f32.mxu0 %v6865_v56 }
 0x53b   : > { %v18402_v0 = vsel %vm894_vm0, %v6191_v35, %v6193_v61  ;;  %v6008_v5 = vrot.slane %v18374_v59, 1  ;;  %v18407_v44 = vmul.f32 %v16999_v58, %v20871_v60  ;;  %v6882_v22 = vrot.slane %v18384_v51, 7  ;;  %v7627_v2 = vpop.f32.mrf.mxu1  ;;  %v7405_v60 = vpop.f32.mrf.mxu0 }
 0x53c   : > { %v6880_v39 = vrot.slane %v18387_v38, 7  ;;  %v6195_v24 = vrot.slane %v18381_v40, 1  ;;  %v5705_v28 = vmul.f32 %v17042_v29, %v20872_v16  ;;  %v18414_v13 = vadd.f32 %v7625_v43, %v7401_v42  ;;  %v20876_v2 = vld [vmem:[#allocation300_spill] sm:$0xff] }
 0x53d   : > { %v18417_v35 = vsel %vm2758_vm2, %v6101_v50, %v6103_v36  ;;  %v6105_v59 = vrot.slane %v18392_v55, 2  ;;  %v5644_v15 = vmul.f32 %v17042_v29, %v20873_v4  ;;  %v6863_v51 = vsel %vm1280_vm1, %v6844_v20, %v6862_v25  ;;  %v7407_v32 = vpop.f32.mrf.mxu0  ;;  %8094 = vmatmul.mubr.f32.gmra.mxu1 %v6831_v1 }
 0x53e   : > { %v6849_v40 = vsel %vm1280_vm1, %v6830_v3, %v6848_v33  ;;  %v6868_v38 = vrot.slane %v18402_v0, 7  ;;  %v6866_v42 = vrot.slane %v18398_v18, 7  ;;  %v6851_v50 = vsel %vm1280_vm1, %v6832_v49, %v6850_v6  ;;  %v20875_v0 = vld [vmem:[#allocation298_spill] sm:$0xff]  ;;  %7879 = vmatmul.mubr.f32.gmra.mxu0 %v6863_v51 }
 0x53f   : > { %v6009_v55 = vsel %vm894_vm0, %v6006_v21, %v6008_v5  ;;  %v6010_v43 = vrot.slane %v18407_v44, 1  ;;  %v18433_v34 = vmul.f32 %v17042_v29, %v20874_v19  ;;  %v6900_v20 = vrot.slane %v18417_v35, 7  ;;  %8098 = vmatprep.mubr.f32.mxu1 %v6851_v50  ;;  %v20878_v50 = vld [vmem:[#allocation40_spill] sm:$0xff] }
 0x540   : > { %v6196_v3 = vsel %vm894_vm0, %v6193_v61, %v6195_v24  ;;  %v5673_v18 = vmul.f32 %v16876_v37, %v20875_v0  ;;  %v6197_v57 = vrot.slane %v5705_v28, 1  ;;  %v6883_v49 = vsel %vm1280_vm1, %v6864_v52, %v6882_v22 }
 0x541   : > { %v6881_v21 = vsel %vm1280_vm1, %v6862_v25, %v6880_v39  ;;  %v6106_v44 = vsel %vm2758_vm2, %v6103_v36, %v6105_v59  ;;  %v6107_v16 = vrot.slane %v5644_v15, 2  ;;  %v6869_v4 = vsel %vm1280_vm1, %v6850_v6, %v6868_v38  ;;  %v7630_v15 = vpop.f32.mrf.mxu1  ;;  %7883 = vmatprep.mubr.f32.mxu0 %v6883_v49  ;;  %8099 = vmatmul.mubr.f32.gmra.mxu1 %v6849_v40 }
 0x542   : > { %v6867_v56 = vsel %vm1280_vm1, %v6848_v33, %v6866_v42  ;;  %v6898_v35 = vrot.slane %v6009_v55, 7  ;;  %v18446_v61 = vmul.f32 %v16999_v58, %v20876_v2  ;;  %v7406_v28 = vadd.f32 %v18112_v9, %v7405_v60  ;;  %v20877_v60 = vld [vmem:[#allocation89_spill] sm:$0xff]  ;;  %v7410_v2 = vpop.f32.mrf.mxu0  ;;  %7884 = vmatmul.mubr.f32.gmra.mxu0 %v6881_v21  ;;  %8103 = vmatprep.mubr.f32.mxu1 %v6869_v4 }
 0x543   : > { %v6886_v52 = vrot.slane %v6196_v3, 7  ;;  %v6011_v25 = vsel %vm894_vm0, %v6008_v5, %v6010_v43  ;;  %v6012_v36 = vrot.slane %v18433_v34, 1  ;;  %v6901_v1 = vsel %vm1280_vm1, %v6882_v22, %v6900_v20  ;;  %v20879_v3 = vld [vmem:[#allocation92_spill] sm:$0xff]  ;;  %v7632_v32 = vpop.f32.mrf.mxu1 }
 0x544   : > { %v6918_v6 = vrot.slane %v6106_v44, 7  ;;  %v6884_v33 = vrot.slane %v5673_v18, 7  ;;  %v6198_v55 = vsel %vm894_vm0, %v6195_v24, %v6197_v57  ;;  %v18453_v19 = vadd.f32 %v7630_v15, %v7406_v28  ;;  %v20880_v18 = vld [vmem:[#allocation233_spill] sm:$0xff]  ;;  %v20882_v15 = vld [vmem:[#allocation236_spill] sm:$0xff]  ;;  %7888 = vmatprep.mubr.f32.mxu0 %v6901_v1  ;;  %v20885_v32 = vld [vmem:[#allocation103_spill] sm:$0xff]  ;;  %v7412_v21 = vpop.f32.mrf.mxu0 }
 0x545   : > { %v6108_v0 = vsel %vm2758_vm2, %v6105_v59, %v6107_v16  ;;  %v6199_v51 = vsel %vm894_vm0, %v6197_v57, %v20877_v60  ;;  %v5707_v5 = vmul.f32 %v20879_v3, %v20878_v50  ;;  %v6899_v34 = vsel %vm1280_vm1, %v6880_v39, %v6898_v35  ;;  %v20883_v60 = vld [vmem:[#allocation304_spill] sm:$0xff]  ;;  %v20884_v50 = vld [vmem:[#allocation37_spill] sm:$0xff]  ;;  %v20887_v3 = vld [vmem:[#allocation82_spill] sm:$0xff]  ;;  %8104 = vmatmul.mubr.f32.gmra.mxu1 %v6867_v56 }
 0x546   : > { %v6916_v49 = vrot.slane %v6011_v25, 7  ;;  %v20881_v44 = vrot.slane %v20880_v18, 2  ;;  %v6887_v59 = vsel %vm1280_vm1, %v6868_v38, %v6886_v52  ;;  %v6904_v57 = vrot.slane %v6198_v55, 7  ;;  %v20886_v18 = vld [vmem:[#allocation177_spill] sm:$0xff]  ;;  %7889 = vmatmul.mubr.f32.gmra.mxu0 %v6899_v34 }
 0x547   : > { %v6013_v28 = vsel %vm894_vm0, %v6010_v43, %v6012_v36  ;;  %v5706_v40 = vmul.f32 %v20883_v60, %v20882_v15  ;;  %v6936_v39 = vrot.slane %v6108_v0, 7  ;;  %v6922_v25 = vrot.slane %v6199_v51, 7  ;;  %v20889_v15 = vld [vmem:[#allocation75_spill] sm:$0xff]  ;;  %8108 = vmatprep.mubr.f32.mxu1 %v6887_v59 }
 0x548   : > { %v6109_v24 = vsel %vm2758_vm2, %v6107_v16, %v20881_v44  ;;  %v5708_v22 = vmul.f32 %v20885_v32, %v20884_v50  ;;  %v18473_v16 = vmul.f32 %v20887_v3, %v20886_v18  ;;  %v6919_v4 = vsel %vm1280_vm1, %v6900_v20, %v6918_v6 }
 0x549   : > { %v6885_v38 = vsel %vm1280_vm1, %v6866_v42, %v6884_v33  ;;  %v6951_v55 = vrot.slane %v6109_v24, 7  ;;  %v6231_v43 = vrot.slane %v5707_v5, 2  ;;  %v6917_v44 = vsel %vm1280_vm1, %v6898_v35, %v6916_v49  ;;  %v20890_v42 = vld [vmem:[#allocation242_spill] sm:$0xff]  ;;  %v20891_v24 = vld [vmem:[#allocation56_spill] sm:$0xff]  ;;  %7893 = vmatprep.mubr.f32.mxu0 %v6919_v4  ;;  %v7635_v4 = vpop.f32.mrf.mxu1 }
 0x54a   : > { %v20888_v1 = vrot.slane %v18446_v61, 7  ;;  %v6934_v51 = vrot.slane %v6013_v28, 7  ;;  %v5675_v50 = vmul.f32 %v17042_v29, %v20889_v15  ;;  %v6905_v18 = vsel %vm1280_vm1, %v6886_v52, %v6904_v57  ;;  %8109 = vmatmul.mubr.f32.gmra.mxu1 %v6885_v38  ;;  %7894 = vmatmul.mubr.f32.gmra.mxu0 %v6917_v44 }
 0x54b   : > { %v6949_v20 = vrot.slane %v6012_v36, 7  ;;  %v6230_v21 = vrot.slane %v5706_v40, 2  ;;  %v5710_v5 = vmul.f32 %v20891_v24, %v20890_v42  ;;  %v6937_v56 = vsel %vm1280_vm1, %v6918_v6, %v6936_v39  ;;  %v20893_v36 = vld [vmem:[#allocation283_spill] sm:$0xff]  ;;  %8113 = vmatprep.mubr.f32.mxu1 %v6905_v18  ;;  %v20896_v42 = vld [vmem:[#allocation282_spill] sm:$0xff]  ;;  %v7637_v44 = vpop.f32.mrf.mxu1  ;;  %v20897_v18 = vld [vmem:[#allocation288_spill] sm:$0xff] }
 0x54c   : > { %v6903_v0 = vsel %vm1280_vm1, %v6884_v33, %v20888_v1  ;;  %v6923_v35 = vsel %vm1280_vm1, %v6904_v57, %v6922_v25  ;;  %v6233_v32 = vrot.slane %v5708_v22, 2  ;;  %v6235_v33 = vrot.slane %v18473_v16, 2  ;;  %v20892_v1 = vld [vmem:[#allocation93_spill] sm:$0xff]  ;;  %v20894_v22 = vld [vmem:[#allocation243_spill] sm:$0xff]  ;;  %7898 = vmatprep.mubr.f32.mxu0 %v6937_v56  ;;  %v7415_v56 = vpop.f32.mrf.mxu0 }
 0x54d   : > { %v6952_v28 = vsel %vm1280_vm1, %v6936_v39, %v6951_v55  ;;  %v6939_v34 = vsel %vm1280_vm1, %v6922_v25, %v20892_v1  ;;  %v6232_v52 = vsel %vm2758_vm2, %v6230_v21, %v6231_v43  ;;  %v18495_v59 = vmul.f32 %v20847_v54, %v20893_v36  ;;  %v20895_v55 = vld [vmem:[#allocation277_spill] sm:$0xff] }
 0x54e   : > { %v7411_v40 = vadd.f32 %v18112_v9, %v7410_v2  ;;  %v6935_v6 = vsel %vm1280_vm1, %v6916_v49, %v6934_v51  ;;  %v6920_v57 = vrot.slane %v5675_v50, 7  ;;  %v5711_v16 = vmul.f32 %v15442_v53, %v20894_v22  ;;  %v20899_v22 = vld [vmem:[#allocation289_spill] sm:$0xff]  ;;  %8114 = vmatmul.mubr.f32.gmra.mxu1 %v6903_v0  ;;  %v7417_v0 = vpop.f32.mrf.mxu0 }
 0x54f   : > { %v6950_v39 = vsel %vm1280_vm1, %v6934_v51, %v6949_v20  ;;  %v6237_v25 = vrot.slane %v5710_v5, 2  ;;  %v18504_v15 = vmul.f32 %v20829_v48, %v20895_v55  ;;  %v5730_v2 = vmul.f32 %v20843_v27, %v20896_v42  ;;  %v20898_v5 = vld [vmem:[#allocation247_spill] sm:$0xff]  ;;  %v20901_v55 = vld [vmem:[#allocation248_spill] sm:$0xff]  ;;  %7899 = vmatmul.mubr.f32.gmra.mxu0 %v6935_v6  ;;  %8118 = vmatprep.mubr.f32.mxu1 %v6923_v35  ;;  %v20902_v42 = vld [vmem:[#allocation85_spill] sm:$0xff] }
 0x550   : > { %v18508_v38 = vadd.f32 %v7635_v4, %v7411_v40  ;;  %v6404_v49 = vrot.slane %v6232_v52, 7  ;;  %v6234_v50 = vsel %vm2758_vm2, %v6231_v43, %v6233_v32  ;;  %v18512_v1 = vsel %vm2758_vm2, %v6233_v32, %v6235_v33  ;;  %7903 = vmatprep.mubr.f32.mxu0 %v6952_v28 }
 0x551   : > { %v6279_v51 = vrot.slane %v18495_v59, 2  ;;  %v5732_v20 = vmul.f32 %v20858_v47, %v20897_v18  ;;  %v5712_v36 = vmul.f32 %v15476_v62, %v20898_v5  ;;  %v18521_v40 = vmul.f32 %v16876_v37, %v20899_v22 }
 0x552   : > { %v20900_v43 = vrot.slane %v18446_v61, 7  ;;  %v6403_v52 = vrot.slane %v6230_v21, 7  ;;  %v6239_v4 = vrot.slane %v5711_v16, 2  ;;  %v18528_v59 = vmul.f32 %v15520_v7, %v20901_v55 }
 0x553   : > { %v6938_v44 = vsel %vm1280_vm1, %v6920_v57, %v20902_v42  ;;  %v6420_v18 = vrot.slane %v6234_v50, 7  ;;  %v19511_v5 = vrot.slane %v18504_v15, 2  ;;  %v6277_v22 = vrot.slane %v5730_v2, 2  ;;  %7904 = vmatmul.mubr.f32.gmra.mxu0 %v6950_v39 }
 0x554   : > { %v6921_v32 = vsel %vm1280_vm1, %v20900_v43, %v6920_v57  ;;  %v6405_v61 = vsel %vm1280_vm1, %v6403_v52, %v6404_v49  ;;  %v6438_v21 = vrot.slane %v18512_v1, 7  ;;  %v6238_v16 = vsel %vm2758_vm2, %v6235_v33, %v6237_v25  ;;  %v20903_v43 = vld [vmem:[#allocation294_spill] sm:$0xff]  ;;  %v7640_v33 = vpop.f32.mrf.mxu1 }
 0x555   : > { %v5734_v55 = vmul.f32 %v16999_v58, %v20903_v43  ;;  %v6280_v35 = vsel %vm2758_vm2, %v6277_v22, %v6279_v51  ;;  %v6281_v6 = vrot.slane %v5732_v20, 2  ;;  %v6241_v62 = vrot.slane %v5712_v36, 2  ;;  %8119 = vmatmul.mubr.f32.gmra.mxu1 %v6921_v32  ;;  %v20904_v52 = vld [vmem:[#allocation250_spill] sm:$0xff]  ;;  %v20905_v20 = vld [vmem:[#allocation295_spill] sm:$0xff]  ;;  %8829 = vmatprep.mubr.f32.mxu0 %v6405_v61 }
 0x556   : > { %v6283_v57 = vrot.slane %v18521_v40, 2  ;;  %v7416_v50 = vadd.f32 %v18112_v9, %v7415_v56  ;;  %v6240_v28 = vsel %vm2758_vm2, %v6237_v25, %v6239_v4  ;;  %v6243_v2 = vrot.slane %v18528_v59, 2  ;;  %8123 = vmatprep.mubr.f32.mxu1 %v6939_v34  ;;  %v20906_v40 = vld [vmem:[#allocation251_spill] sm:$0xff]  ;;  %v7642_v34 = vpop.f32.mrf.mxu1 }
 0x557   : > { %v5714_v1 = vmul.f32 %v15562_v12, %v20904_v52  ;;  %v6421_v42 = vsel %vm1280_vm1, %v6404_v49, %v6420_v18  ;;  %v6456_v0 = vrot.slane %v6238_v16, 7  ;;  %v5735_v36 = vmul.f32 %v17042_v29, %v20905_v20  ;;  %v7420_v20 = vpop.f32.mrf.mxu0  ;;  %v20962_v12 = vld [vmem:[#allocation164_spill] sm:$0xff] }
 0x558   : > { %v5715_v56 = vmul.f32 %v15615_v10, %v20906_v40  ;;  %v18550_v32 = vadd.f32 %v7640_v33, %v7416_v50  ;;  %v18555_v25 = vsel %vm2758_vm2, %v19511_v5, %v6277_v22  ;;  %v6834_v59 = vrot.slane %v6280_v35, 7  ;;  %v20907_v33 = vld [vmem:[#allocation252_spill] sm:$0xff]  ;;  %v20908_v22 = vld [vmem:[#allocation253_spill] sm:$0xff]  ;;  %8830 = vmatmul.mubr.f32.vlgmr.msra.gmra.mxu0 %v6421_v42 }
 0x559   : > { %v6285_v39 = vrot.slane %v5734_v55, 2  ;;  %v6474_v43 = vrot.slane %v6240_v28, 7  ;;  %v6282_v49 = vsel %vm2758_vm2, %v6279_v51, %v6281_v6  ;;  %v6242_v16 = vsel %vm2758_vm2, %v6239_v4, %v6241_v62  ;;  %8124 = vmatmul.mubr.f32.gmra.mxu1 %v6938_v44  ;;  %v20909_v55 = vld [vmem:[#allocation109_spill] sm:$0xff]  ;;  %v7422_v44 = vpop.f32.mrf.mxu0  ;;  %v20910_v5 = vld [vmem:[#allocation120_spill] sm:$0xff] }
 0x55a   : > { %v6284_v52 = vsel %vm2758_vm2, %v6281_v6, %v6283_v57  ;;  %v6244_v50 = vsel %vm2758_vm2, %v6241_v62, %v6243_v2  ;;  %v6245_v61 = vrot.slane %v5714_v1, 2  ;;  %v5716_v40 = vmul.f32 %v15713_v23, %v20907_v33  ;;  %8128 = vmatprep.mubr.f32.mxu1 %v20909_v55  ;;  %v20957_v23 = vld [vmem:[#allocation32_spill] sm:$0xff] }
 0x55b   : > { %v18565_v35 = vmul.f32 %v20682_v31, %v20908_v22  ;;  %v6439_v51 = vsel %vm1280_vm1, %v6420_v18, %v6438_v21  ;;  %v6816_v4 = vrot.slane %v18555_v25, 7  ;;  %v6287_v6 = vrot.slane %v5735_v36, 2  ;;  %v20959_v31 = vld [vmem:[#allocation161_spill] sm:$0xff] }
 0x55c   : > { %v6247_v28 = vrot.slane %v5715_v56, 2  ;;  %8832 = vmatprep.mubr.f32.mxu0 %v6439_v51  ;;  %v6457_v62 = vsel %vm1280_vm1, %v6438_v21, %v6456_v0  ;;  %v6852_v1 = vrot.slane %v6282_v49, 7  ;;  %v6492_v34 = vrot.slane %v6242_v16, 7  ;;  %v20911_v21 = vld [vmem:[#allocation257_spill] sm:$0xff] }
 0x55d   : > { %v6870_v33 = vrot.slane %v6284_v52, 7  ;;  %v6835_v22 = vsel %vm1280_vm1, %v6816_v4, %v6834_v59  ;;  %v6475_v55 = vsel %vm1280_vm1, %v6456_v0, %v6474_v43  ;;  %v6510_v42 = vrot.slane %v6244_v50, 7  ;;  %8129 = vmatmul.mubr.f32.gmra.mxu1 %v20910_v5  ;;  %8833 = vmatmul.mubr.f32.gmra.mxu0 %v6457_v62  ;;  %v20912_v0 = vld [vmem:[#allocation258_spill] sm:$0xff] }
 0x55e   : > { %v6286_v18 = vsel %vm2758_vm2, %v6283_v57, %v6285_v39  ;;  %v6246_v36 = vsel %vm2758_vm2, %v6243_v2, %v6245_v61  ;;  %v6249_v56 = vrot.slane %v5716_v40, 2  ;;  %v6251_v51 = vrot.slane %v18565_v35, 2  ;;  %8865 = vmatprep.mubr.f32.mxu1 %v6835_v22  ;;  %8835 = vmatprep.mubr.f32.mxu0 %v6475_v55  ;;  %v20913_v22 = vld [vmem:[#allocation303_spill] sm:$0xff] }
 0x55f   : > { %v5718_v49 = vmul.f32 %v20691_v45, %v20911_v21  ;;  %v6288_v16 = vsel %vm2758_vm2, %v6285_v39, %v6287_v6  ;;  %v6248_v52 = vsel %vm2758_vm2, %v6245_v61, %v6247_v28  ;;  %v5719_v50 = vmul.f32 %v20714_v30, %v20912_v0  ;;  %v7645_v61 = vpop.f32.mrf.mxu1  ;;  %v20953_v45 = vld [vmem:[#allocation7_spill] sm:$0xff]  ;;  %v20955_v30 = vld [vmem:[#allocation232_spill] sm:$0xff] }
 0x560   : > { %v6853_v5 = vsel %vm1280_vm1, %v6834_v59, %v6852_v1  ;;  %v6493_v57 = vsel %vm1280_vm1, %v6474_v43, %v6492_v34  ;;  %v6871_v2 = vsel %vm1280_vm1, %v6852_v1, %v6870_v33  ;;  %v6888_v40 = vrot.slane %v6286_v18, 7  ;;  %v20914_v18 = vld [vmem:[#allocation261_spill] sm:$0xff] }
 0x561   : > { %v7421_v35 = vadd.f32 %v18112_v9, %v7420_v20  ;;  %v6511_v44 = vsel %vm1280_vm1, %v6492_v34, %v6510_v42  ;;  %v6528_v62 = vrot.slane %v6246_v36, 7  ;;  %v6289_v39 = vsel %vm2758_vm2, %v6287_v6, %v20913_v22  ;;  %8866 = vmatmul.mubr.f32.vlgmr.msra.gmra.mxu1 %v6853_v5  ;;  %8836 = vmatmul.mubr.f32.gmra.mxu0 %v6493_v57  ;;  %v7647_v36 = vpop.f32.mrf.mxu1  ;;  %v20915_v6 = vld [vmem:[#allocation262_spill] sm:$0xff]  ;;  %v20916_v22 = vld [vmem:[#allocation129_spill] sm:$0xff] }
 0x562   : > { %v6906_v21 = vrot.slane %v6288_v16, 7  ;;  %v6546_v0 = vrot.slane %v6248_v52, 7  ;;  %v6250_v55 = vsel %vm2758_vm2, %v6247_v28, %v6249_v56  ;;  %v6252_v59 = vsel %vm2758_vm2, %v6249_v56, %v6251_v51  ;;  %8868 = vmatprep.mubr.f32.mxu1 %v6871_v2  ;;  %8838 = vmatprep.mubr.f32.mxu0 %v6511_v44  ;;  %v7425_v16 = vpop.f32.mrf.mxu0  ;;  %v20917_v2 = vld [vmem:[#allocation264_spill] sm:$0xff] }
 0x563   : > { %v18594_v43 = vadd.f32 %v7645_v61, %v7421_v35  ;;  %v6253_v1 = vrot.slane %v5718_v49, 2  ;;  %v6255_v20 = vrot.slane %v5719_v50, 2  ;;  %v5720_v34 = vmul.f32 %v20721_v63, %v20914_v18  ;;  %v20918_v61 = vld [vmem:[#allocation21_spill] sm:$0xff]  ;;  %v20949_v63 = vld [vmem:[#allocation95_spill] sm:$0xff] }
 0x564   : > { %v5721_v5 = vmul.f32 %v20916_v22, %v20915_v6  ;;  %v6889_v52 = vsel %vm1280_vm1, %v6870_v33, %v6888_v40  ;;  %v6529_v28 = vsel %vm1280_vm1, %v6510_v42, %v6528_v62  ;;  %v6924_v56 = vrot.slane %v6289_v39, 7  ;;  %v7427_v44 = vpop.f32.mrf.mxu0  ;;  %v20919_v42 = vld [vmem:[#allocation265_spill] sm:$0xff]  ;;  %v20951_v22 = vld [vmem:[#allocation31_spill] sm:$0xff] }
 0x565   : > { %v6564_v35 = vrot.slane %v6250_v55, 7  ;;  %8869 = vmatmul.mubr.f32.gmra.mxu1 %v6889_v52  ;;  %v6907_v57 = vsel %vm1280_vm1, %v6888_v40, %v6906_v21  ;;  %v6547_v49 = vsel %vm1280_vm1, %v6528_v62, %v6546_v0  ;;  %v6582_v50 = vrot.slane %v6252_v59, 7  ;;  %8839 = vmatmul.mubr.f32.gmra.mxu0 %v6529_v28  ;;  %v20920_v52 = vld [vmem:[#allocation74_spill] sm:$0xff] }
 0x566   : > { %v5722_v18 = vmul.f32 %v20918_v61, %v20917_v2  ;;  %8871 = vmatprep.mubr.f32.mxu1 %v6907_v57  ;;  %v6254_v36 = vsel %vm2758_vm2, %v6251_v51, %v6253_v1  ;;  %v6256_v33 = vsel %vm2758_vm2, %v6253_v1, %v6255_v20  ;;  %v6257_v6 = vrot.slane %v5720_v34, 2  ;;  %8841 = vmatprep.mubr.f32.mxu0 %v6547_v49  ;;  %v7650_v57 = vpop.f32.mrf.mxu1  ;;  %v20945_v61 = vld [vmem:[#allocation6_spill] sm:$0xff] }
 0x567   : > { %v5723_v39 = vmul.f32 %v20768_v46, %v20919_v42  ;;  %v6259_v55 = vrot.slane %v5721_v5, 2  ;;  %v7426_v40 = vadd.f32 %v18112_v9, %v7425_v16  ;;  %v6925_v62 = vsel %vm1280_vm1, %v6906_v21, %v6924_v56  ;;  %v20921_v21 = vld [vmem:[#allocation268_spill] sm:$0xff]  ;;  %v20922_v42 = vld [vmem:[#allocation269_spill] sm:$0xff]  ;;  %v20947_v46 = vld [vmem:[#allocation67_spill] sm:$0xff] }
 0x568   : > { %v6565_v59 = vsel %vm1280_vm1, %v6546_v0, %v6564_v35  ;;  %v6940_v28 = vsel %vm1280_vm1, %v6924_v56, %v20920_v52  ;;  %v6583_v51 = vsel %vm1280_vm1, %v6564_v35, %v6582_v50  ;;  %v6600_v1 = vrot.slane %v6254_v36, 7  ;;  %v7652_v49 = vpop.f32.mrf.mxu1  ;;  %v7430_v36 = vpop.f32.mrf.mxu0 }
 0x569   : > { %8872 = vmatmul.mubr.f32.gmra.mxu1 %v6925_v62  ;;  %v6618_v34 = vrot.slane %v6256_v33, 7  ;;  %v6261_v2 = vrot.slane %v5722_v18, 2  ;;  %v18616_v44 = vadd.f32 %v7650_v57, %v7426_v40  ;;  %8842 = vmatmul.mubr.f32.gmra.mxu0 %v6565_v59  ;;  %v6258_v5 = vsel %vm2758_vm2, %v6255_v20, %v6257_v6  ;;  %v20923_v62 = vld [vmem:[#allocation137_spill] sm:$0xff]  ;;  %v20924_v33 = vld [vmem:[#allocation11_spill] sm:$0xff]  ;;  %v20925_v20 = vld [vmem:[#allocation272_spill] sm:$0xff] }
 0x56a   : > { %8874 = vmatprep.mubr.f32.mxu1 %v6940_v28  ;;  %v6263_v16 = vrot.slane %v5723_v39, 2  ;;  %v5724_v0 = vmul.f32 %v20775_v41, %v20921_v21  ;;  %8844 = vmatprep.mubr.f32.mxu0 %v6583_v51  ;;  %v6260_v56 = vsel %vm2758_vm2, %v6257_v6, %v6259_v55  ;;  %v5725_v35 = vmul.f32 %v20923_v62, %v20922_v42  ;;  %v20926_v39 = vld [vmem:[#allocation141_spill] sm:$0xff]  ;;  %v7432_v28 = vpop.f32.mrf.mxu0  ;;  %v20941_v41 = vld [vmem:[#allocation30_spill] sm:$0xff] }
 0x56b   : > { %v6601_v18 = vsel %vm1280_vm1, %v6582_v50, %v6600_v1  ;;  %v6619_v40 = vsel %vm1280_vm1, %v6600_v1, %v6618_v34  ;;  %v6636_v59 = vrot.slane %v6258_v5, 7  ;;  %v5726_v52 = vmul.f32 %v20926_v39, %v20925_v20  ;;  %v20927_v42 = vld [vmem:[#allocation273_spill] sm:$0xff]  ;;  %v20928_v28 = vld [vmem:[#allocation276_spill] sm:$0xff] }
 0x56c   : > { %v6654_v57 = vrot.slane %v6260_v56, 7  ;;  %v6262_v51 = vsel %vm2758_vm2, %v6259_v55, %v6261_v2  ;;  %v6264_v6 = vsel %vm2758_vm2, %v6261_v2, %v6263_v16  ;;  %v6265_v21 = vrot.slane %v5724_v0, 2  ;;  %v20937_v39 = vld [vmem:[#allocation5_spill] sm:$0xff] }
 0x56d   : > { %8875 = vmatmul.mubr.f32.gmra.mxu1 %v20924_v33  ;;  %8845 = vmatmul.mubr.f32.gmra.mxu0 %v6601_v18  ;;  %v6267_v49 = vrot.slane %v5725_v35, 2  ;;  %v5727_v33 = vmul.f32 %v20807_v11, %v20927_v42  ;;  %v6637_v50 = vsel %vm1280_vm1, %v6618_v34, %v6636_v59  ;;  %v6672_v1 = vrot.slane %v6262_v51, 7  ;;  %v20939_v11 = vld [vmem:[#allocation157_spill] sm:$0xff] }
 0x56e   : > { %8847 = vmatprep.mubr.f32.mxu0 %v6619_v40  ;;  %v6690_v5 = vrot.slane %v6264_v6, 7  ;;  %v6655_v20 = vsel %vm1280_vm1, %v6636_v59, %v6654_v57  ;;  %v6266_v18 = vsel %vm2758_vm2, %v6263_v16, %v6265_v21  ;;  %v6269_v56 = vrot.slane %v5726_v52, 2  ;;  %v7655_v40 = vpop.f32.mrf.mxu1  ;;  %v20943_v62 = vld [vmem:[#allocation65_spill] sm:$0xff] }
 0x56f   : > { %v5728_v55 = vmul.f32 %v20824_v8, %v20928_v28  ;;  %v7431_v2 = vadd.f32 %v18112_v9, %v7430_v36  ;;  %v6268_v0 = vsel %vm2758_vm2, %v6265_v21, %v6267_v49  ;;  %v6271_v35 = vrot.slane %v5727_v33, 2  ;;  %v7435_v28 = vpop.f32.mrf.mxu0 }
 0x570   : > { %v6673_v34 = vsel %vm1280_vm1, %v6654_v57, %v6672_v1  ;;  %v6708_v51 = vrot.slane %v6266_v18, 7  ;;  %v7657_v6 = vpop.f32.mrf.mxu1  ;;  %v6691_v16 = vsel %vm1280_vm1, %v6672_v1, %v6690_v5  ;;  %v6726_v59 = vrot.slane %v6268_v0, 7 }
 0x571   : > { %8848 = vmatmul.mubr.f32.gmra.mxu0 %v6637_v50  ;;  %v18640_v42 = vadd.f32 %v7655_v40, %v7431_v2  ;;  %v6270_v52 = vsel %vm2758_vm2, %v6267_v49, %v6269_v56  ;;  %v6273_v50 = vrot.slane %v5728_v55, 2  ;;  %v6272_v36 = vsel %vm2758_vm2, %v6269_v56, %v6271_v35  ;;  %v7437_v21 = vpop.f32.mrf.mxu0 }
 0x572   : > { %8850 = vmatprep.mubr.f32.mxu0 %v6655_v20  ;;  %v6709_v33 = vsel %vm1280_vm1, %v6690_v5, %v6708_v51  ;;  %v6744_v20 = vrot.slane %v6270_v52, 7  ;;  %v6727_v57 = vsel %vm1280_vm1, %v6708_v51, %v6726_v59  ;;  %v6762_v18 = vrot.slane %v6272_v36, 7  ;;  %v7660_v0 = vpop.f32.mrf.mxu1 }
 0x573   : > { %v6274_v2 = vsel %vm2758_vm2, %v6271_v35, %v6273_v50  ;;  %v7436_v1 = vadd.f32 %v18112_v9, %v7435_v28  ;;  %v20929_v49 = vrot.slane %v18504_v15, 2 }
 0x574   : > { %v6745_v56 = vsel %vm1280_vm1, %v6726_v59, %v6744_v20  ;;  %v6780_v5 = vrot.slane %v6274_v2, 7  ;;  %v6763_v51 = vsel %vm1280_vm1, %v6744_v20, %v6762_v18 }
 0x575   : > { %8851 = vmatmul.mubr.f32.gmra.mxu0 %v6673_v34  ;;  %v6276_v55 = vsel %vm2758_vm2, %v6273_v50, %v20929_v49  ;;  %v18653_v40 = vadd.f32 %v7660_v0, %v7436_v1  ;;  %v7662_v34 = vpop.f32.mrf.mxu1  ;;  %v20930_v49 = vld [vmem:[#allocation91_spill] sm:$0xff] }
 0x576   : > { %8853 = vmatprep.mubr.f32.mxu0 %v6691_v16  ;;  %v6798_v6 = vrot.slane %v6276_v55, 7  ;;  %v7440_v16 = vpop.f32.mrf.mxu0  ;;  %v6781_v52 = vsel %vm1280_vm1, %v6762_v18, %v6780_v5  ;;  %v20931_v34 = vld [vmem:[#allocation4_spill] sm:$0xff] }
 0x577   : > { %v7441_v59 = vadd.f32 %v18112_v9, %v7440_v16  ;;  %v7665_v28 = vpop.f32.mrf.mxu1  ;;  %v20932_v16 = vld [vmem:[#allocation3_spill] sm:$0xff] }
 0x578   : > { %v7442_v35 = vpop.f32.mrf.mxu0  ;;  %v6799_v15 = vsel %vm1280_vm1, %v6780_v5, %v6798_v6  ;;  %v6817_v50 = vsel %vm1280_vm1, %v6798_v6, %v6816_v4 }
 0x579   : > { %8854 = vmatmul.mubr.f32.gmra.mxu0 %v6709_v33  ;;  %v18663_v36 = vadd.f32 %v7665_v28, %v7441_v59  ;;  %v7667_v21 = vpop.f32.mrf.mxu1 }
 0x57a   : > { %8856 = vmatprep.mubr.f32.mxu0 %v6727_v57  ;;  %v7445_v33 = vpop.f32.mrf.mxu0  ;;  %v18668_v57 = vld [vmem:[%s18913_s7] ss:$0 sm:$0xff] }
 0x57b   : > { %v7446_v18 = vadd.f32 %v18668_v57, %v7445_v33  ;;  %v7301_v55 = vadd.f32 %v18668_v57, %v20930_v49  ;;  %v20933_v33 = vld [vmem:[#allocation155_spill] sm:$0xff] }
 0x57c   : > { %v7447_v20 = vpop.f32.mrf.mxu0 }
 0x57d   : > { %8857 = vmatmul.mubr.f32.gmra.mxu0 %v6745_v56  ;;  %v7526_v35 = vadd.f32 %v20932_v16, %v7301_v55  ;;  %v7311_v20 = vadd.f32 %v18668_v57, %v20933_v33  ;;  %v20936_v16 = vld [vmem:[#allocation150_spill] sm:$0xff] }
 0x57e   : > { %8859 = vmatprep.mubr.f32.mxu0 %v6763_v51  ;;  %v7306_v51 = vadd.f32 %v18668_v57, %v20931_v34 }
 0x580   : > { %v7670_v2 = vpop.f32.mrf.mxu1 }
 0x581   : > { %8860 = vmatmul.mubr.f32.gmra.mxu0 %v6781_v52  ;;  %v18671_v25 = vadd.f32 %v7670_v2, %v7446_v18  ;;  %v20934_v2 = vld [vmem:[#allocation105_spill] sm:$0xff] }
 0x582   : > { %8862 = vmatprep.mubr.f32.mxu0 %v6799_v15  ;;  %v7672_v4 = vpop.f32.mrf.mxu1 }
 0x583   : > { %v7531_v4 = vadd.f32 %v20934_v2, %v7306_v51  ;;  %v7321_v51 = vadd.f32 %v18668_v57, %v20937_v39 }
 0x584   : > { %v7450_v1 = vpop.f32.mrf.mxu0 }
 0x585   : > { %8863 = vmatmul.mubr.f32.gmra.mxu0 %v6817_v50  ;;  %v7451_v56 = vadd.f32 %v18668_v57, %v7450_v1 }
 0x586   : > { %v7452_v9 = vpop.f32.mrf.mxu0 }
 0x588   : > { %v7455_v0 = vpop.f32.mrf.mxu0 }
 0x589   : > { %v7456_v28 = vadd.f32 %v18668_v57, %v7455_v0 }
 0x58a   : > { %v7457_v5 = vpop.f32.mrf.mxu0 }
 0x58b   : > { %v7675_v6 = vpop.f32.mrf.mxu1 }
 0x58c   : > { %v18679_v52 = vadd.f32 %v7675_v6, %v7451_v56  ;;  %v7750_v15 = vpop.f32.mrf.mxu0  ;;  %v20935_v56 = vld [vmem:[#allocation59_spill] sm:$0xff] }
 0x58d   : > { %v7751_v50 = vadd.f32 %v7750_v15, %v7526_v35  ;;  %v7677_v59 = vpop.f32.mrf.mxu1  ;;  %v7316_v34 = vadd.f32 %v18668_v57, %v20935_v56  ;;  %v7536_v35 = vadd.f32 %v20936_v16, %v7311_v20 }
 0x58e   : > { %v7752_v21 = vpop.f32.mrf.mxu0 }
 0x590   : > { %v7680_v18 = vpop.f32.mrf.mxu1  ;;  %v7755_v9 = vpop.f32.mrf.mxu0 }
 0x591   : > { %v18685_v1 = vadd.f32 %v7680_v18, %v7456_v28  ;;  %v7756_v49 = vadd.f32 %v7755_v9, %v7531_v4  ;;  %v20938_v18 = vld [vmem:[#allocation47_spill] sm:$0xff] }
 0x592   : > { %v7682_v5 = vpop.f32.mrf.mxu1  ;;  %v7757_v55 = vpop.f32.mrf.mxu0  ;;  %v7541_v2 = vadd.f32 %v20938_v18, %v7316_v34 }
 0x594   : > { %v7975_v6 = vpop.f32.mrf.mxu1 }
 0x595   : > { %v18690_v0 = vadd.f32 %v7975_v6, %v7751_v50  ;;  %v7760_v15 = vpop.f32.mrf.mxu0  ;;  %v7326_v50 = vadd.f32 %v18668_v57, %v20939_v11  ;;  %v20940_v6 = vld [vmem:[#allocation28_spill] sm:$0xff] }
 0x596   : > { %v7761_v59 = vadd.f32 %v7760_v15, %v7536_v35  ;;  %v7977_v21 = vpop.f32.mrf.mxu1  ;;  %v7546_v16 = vadd.f32 %v20940_v6, %v7321_v51 }
 0x597   : > { %v7762_v33 = vpop.f32.mrf.mxu0 }
 0x598   : > { %v7980_v28 = vpop.f32.mrf.mxu1 }
 0x599   : > { %v18695_v4 = vadd.f32 %v7980_v28, %v7756_v49  ;;  %v7765_v9 = vpop.f32.mrf.mxu0  ;;  %v7331_v49 = vadd.f32 %v18668_v57, %v20941_v41  ;;  %v20942_v28 = vld [vmem:[#allocation151_spill] sm:$0xff] }
 0x59a   : > { %v7766_v5 = vadd.f32 %v7765_v9, %v7541_v2  ;;  %v7982_v55 = vpop.f32.mrf.mxu1  ;;  %v7551_v18 = vadd.f32 %v20942_v28, %v7326_v50 }
 0x59b   : > { %v7767_v56 = vpop.f32.mrf.mxu0 }
 0x59d   : > { %v7985_v20 = vpop.f32.mrf.mxu1  ;;  %v7770_v15 = vpop.f32.mrf.mxu0 }
 0x59e   : > { %v18700_v35 = vadd.f32 %v7985_v20, %v7761_v59  ;;  %v7771_v21 = vadd.f32 %v7770_v15, %v7546_v16  ;;  %v7336_v59 = vadd.f32 %v18668_v57, %v20943_v62  ;;  %v20944_v20 = vld [vmem:[#allocation57_spill] sm:$0xff] }
 0x59f   : > { %v7987_v39 = vpop.f32.mrf.mxu1  ;;  %v7772_v33 = vpop.f32.mrf.mxu0  ;;  %v7556_v6 = vadd.f32 %v20944_v20, %v7331_v49 }
 0x5a1   : > { %v7990_v34 = vpop.f32.mrf.mxu1 }
 0x5a2   : > { %v18705_v2 = vadd.f32 %v7990_v34, %v7766_v5  ;;  %v7775_v9 = vpop.f32.mrf.mxu0  ;;  %v7341_v5 = vadd.f32 %v18668_v57, %v20945_v61  ;;  %v20946_v34 = vld [vmem:[#allocation152_spill] sm:$0xff] }
 0x5a3   : > { %v7776_v55 = vadd.f32 %v7775_v9, %v7551_v18  ;;  %v7992_v11 = vpop.f32.mrf.mxu1  ;;  %v7561_v28 = vadd.f32 %v20946_v34, %v7336_v59 }
 0x5a4   : > { %v7777_v56 = vpop.f32.mrf.mxu0 }
 0x5a6   : > { %v7995_v51 = vpop.f32.mrf.mxu1 }
 0x5a7   : > { %v18710_v16 = vadd.f32 %v7995_v51, %v7771_v21  ;;  %v7780_v15 = vpop.f32.mrf.mxu0  ;;  %v7346_v21 = vadd.f32 %v18668_v57, %v20947_v46  ;;  %v20948_v51 = vld [vmem:[#allocation29_spill] sm:$0xff] }
 0x5a8   : > { %v7781_v39 = vadd.f32 %v7780_v15, %v7556_v6  ;;  %v7997_v41 = vpop.f32.mrf.mxu1  ;;  %v7566_v20 = vadd.f32 %v20948_v51, %v7341_v5 }
 0x5a9   : > { %v7782_v33 = vpop.f32.mrf.mxu0 }
 0x5aa   : > { %v8000_v50 = vpop.f32.mrf.mxu1 }
 0x5ab   : > { %v18715_v18 = vadd.f32 %v8000_v50, %v7776_v55  ;;  %v7785_v9 = vpop.f32.mrf.mxu0  ;;  %v7351_v55 = vadd.f32 %v18668_v57, %v20949_v63  ;;  %v20950_v50 = vld [vmem:[#allocation225_spill] sm:$0xff] }
 0x5ac   : > { %v7786_v11 = vadd.f32 %v7785_v9, %v7561_v28  ;;  %v8002_v62 = vpop.f32.mrf.mxu1  ;;  %v7571_v34 = vadd.f32 %v20950_v50, %v7346_v21 }
 0x5ad   : > { %v7787_v56 = vpop.f32.mrf.mxu0 }
 0x5af   : > { %v8005_v49 = vpop.f32.mrf.mxu1  ;;  %v7790_v15 = vpop.f32.mrf.mxu0 }
 0x5b0   : > { %v18720_v6 = vadd.f32 %v8005_v49, %v7781_v39  ;;  %v7791_v41 = vadd.f32 %v7790_v15, %v7566_v20  ;;  %v7356_v39 = vadd.f32 %v18668_v57, %v20951_v22  ;;  %v20952_v49 = vld [vmem:[#allocation63_spill] sm:$0xff] }
 0x5b1   : > { %v8007_v61 = vpop.f32.mrf.mxu1  ;;  %v7792_v33 = vpop.f32.mrf.mxu0  ;;  %v7576_v51 = vadd.f32 %v20952_v49, %v7351_v55 }
 0x5b3   : > { %v8010_v59 = vpop.f32.mrf.mxu1 }
 0x5b4   : > { %v18725_v28 = vadd.f32 %v8010_v59, %v7786_v11  ;;  %v7795_v9 = vpop.f32.mrf.mxu0  ;;  %v7361_v11 = vadd.f32 %v18668_v57, %v20953_v45  ;;  %v20954_v59 = vld [vmem:[#allocation159_spill] sm:$0xff] }
 0x5b5   : > { %v7796_v62 = vadd.f32 %v7795_v9, %v7571_v34  ;;  %v8012_v46 = vpop.f32.mrf.mxu1  ;;  %v7581_v50 = vadd.f32 %v20954_v59, %v7356_v39 }
 0x5b6   : > { %v7797_v56 = vpop.f32.mrf.mxu0 }
 0x5b7   : > { %v8015_v5 = vpop.f32.mrf.mxu1 }
 0x5b8   : > { %v18730_v20 = vadd.f32 %v8015_v5, %v7791_v41  ;;  %v7800_v15 = vpop.f32.mrf.mxu0  ;;  %v7366_v41 = vadd.f32 %v18668_v57, %v20955_v30  ;;  %v20956_v5 = vld [vmem:[#allocation167_spill] sm:$0xff] }
 0x5b9   : > { %v7801_v61 = vadd.f32 %v7800_v15, %v7576_v51  ;;  %v8017_v63 = vpop.f32.mrf.mxu1  ;;  %v7586_v49 = vadd.f32 %v20956_v5, %v7361_v11 }
 0x5ba   : > { %v7802_v33 = vpop.f32.mrf.mxu0 }
 0x5bc   : > { %v8020_v21 = vpop.f32.mrf.mxu1 }
 0x5bd   : > { %v18735_v34 = vadd.f32 %v8020_v21, %v7796_v62  ;;  %v7805_v9 = vpop.f32.mrf.mxu0  ;;  %v7371_v62 = vadd.f32 %v18668_v57, %v20957_v23  ;;  %v20958_v21 = vld [vmem:[#allocation160_spill] sm:$0xff] }
 0x5be   : > { %v7806_v46 = vadd.f32 %v7805_v9, %v7581_v50  ;;  %v8022_v22 = vpop.f32.mrf.mxu1  ;;  %v7591_v59 = vadd.f32 %v20958_v21, %v7366_v41 }
 0x5bf   : > { %v7807_v56 = vpop.f32.mrf.mxu0 }
 0x5c0   : > { %v8025_v55 = vpop.f32.mrf.mxu1 }
 0x5c1   : > { %v18740_v51 = vadd.f32 %v8025_v55, %v7801_v61  ;;  %v7810_v15 = vpop.f32.mrf.mxu0  ;;  %v7376_v61 = vadd.f32 %v18668_v57, %v20959_v31  ;;  %v20960_v55 = vld [vmem:[#allocation69_spill] sm:$0xff] }
 0x5c2   : > { %v7811_v63 = vadd.f32 %v7810_v15, %v7586_v49  ;;  %v8027_v45 = vpop.f32.mrf.mxu1  ;;  %v7596_v5 = vadd.f32 %v20960_v55, %v7371_v62  ;;  %v20964_v62 = vld [vmem:[#allocation72_spill] sm:$0xff] }
 0x5c3   : > { %v7812_v33 = vpop.f32.mrf.mxu0 }
 0x5c6   : > { %v8030_v39 = vpop.f32.mrf.mxu1  ;;  %v7815_v9 = vpop.f32.mrf.mxu0 }
 0x5c7   : > { %v18745_v50 = vadd.f32 %v8030_v39, %v7806_v46  ;;  %v7816_v22 = vadd.f32 %v7815_v9, %v7591_v59  ;;  %v7381_v46 = vadd.f32 %v18668_v57, %v20962_v12  ;;  %v20963_v39 = vld [vmem:[#allocation71_spill] sm:$0xff] }
 0x5c8   : > { %v8032_v30 = vpop.f32.mrf.mxu1  ;;  %v7817_v56 = vpop.f32.mrf.mxu0  ;;  %v7601_v21 = vadd.f32 %v20963_v39, %v7376_v61 }
 0x5ca   : > { %v8035_v11 = vpop.f32.mrf.mxu1 }
 0x5cb   : > { %v18750_v49 = vadd.f32 %v8035_v11, %v7811_v63  ;;  %v7820_v15 = vpop.f32.mrf.mxu0  ;;  %v7606_v63 = vadd.f32 %v20964_v62, %v7381_v46 }
 0x5cc   : > { %v7821_v45 = vadd.f32 %v7820_v15, %v7596_v5  ;;  %v8037_v23 = vpop.f32.mrf.mxu1 }
 0x5cd   : > { %20961 = vst [vmem:[#allocation8_spill] sm:$0xff] %v18750_v49  ;;  %v7822_v33 = vpop.f32.mrf.mxu0  ;;  %v20977_v49 = vld [vmem:[#allocation92_spill] sm:$0xff] }
 0x5ce   : > { %v8040_v41 = vpop.f32.mrf.mxu1 }
 0x5cf   : > { %v18755_v59 = vadd.f32 %v8040_v41, %v7816_v22  ;;  %v7825_v9 = vpop.f32.mrf.mxu0 }
 0x5d0   : > { %v7826_v30 = vadd.f32 %v7825_v9, %v7601_v21  ;;  %v8042_v31 = vpop.f32.mrf.mxu1 }
 0x5d1   : > { %v7827_v56 = vpop.f32.mrf.mxu0 }
 0x5d2   : > { %v8045_v58 = vpop.f32.mrf.mxu1 }
 0x5d3   : > { %v18758_v11 = vadd.f32 %v8045_v58, %v7821_v45  ;;  %v7830_v55 = vpop.f32.mrf.mxu0 }
 0x5d4   : > { %v7831_v5 = vadd.f32 %v7830_v55, %v7606_v63  ;;  %v8047_v15 = vpop.f32.mrf.mxu1 }
 0x5d5   : > { %20965 = vst [vmem:[#allocation237_spill] sm:$0xff] %v18758_v11  ;;  %v7832_v23 = vpop.f32.mrf.mxu0 }
 0x5d6   : > { %v8050_v33 = vpop.f32.mrf.mxu1 }
 0x5d7   : > { %v18760_v12 = vadd.f32 %v8050_v33, %v7826_v30  ;;  %v7835_v57 = vpop.f32.mrf.mxu0 }
 0x5d8   : > { %v7836_v22 = vadd.f32 %v7835_v57, %v18154_v14  ;;  %v8052_v61 = vpop.f32.mrf.mxu1 }
 0x5d9   : > { %20966 = vst [vmem:[#allocation78_spill] sm:$0xff] %v18760_v12  ;;  %v7837_v41 = vpop.f32.mrf.mxu0 }
 0x5da   : > { %v8055_v39 = vpop.f32.mrf.mxu1 }
 0x5db   : > { %v18763_v21 = vadd.f32 %v8055_v39, %v7831_v5  ;;  %v7840_v9 = vpop.f32.mrf.mxu0 }
 0x5dc   : > { %v7841_v46 = vadd.f32 %v7840_v9, %v18254_v17  ;;  %v8057_v58 = vpop.f32.mrf.mxu1 }
 0x5dd   : > { %20967 = vst [vmem:[#allocation168_spill] sm:$0xff] %v18763_v21  ;;  %v7842_v45 = vpop.f32.mrf.mxu0 }
 0x5de   : > { %v8060_v31 = vpop.f32.mrf.mxu1 }
 0x5df   : > { %v18766_v56 = vadd.f32 %v8060_v31, %v7836_v22  ;;  %v7845_v62 = vpop.f32.mrf.mxu0 }
 0x5e0   : > { %v7846_v30 = vadd.f32 %v7845_v62, %v18330_v26  ;;  %v8062_v63 = vpop.f32.mrf.mxu1 }
 0x5e1   : > { %20968 = vst [vmem:[#allocation33_spill] sm:$0xff] %v18766_v56  ;;  %v7847_v55 = vpop.f32.mrf.mxu0 }
 0x5e2   : > { %v8065_v15 = vpop.f32.mrf.mxu1 }
 0x5e3   : > { %v18769_v14 = vadd.f32 %v8065_v15, %v7841_v46  ;;  %v7850_v23 = vpop.f32.mrf.mxu0 }
 0x5e4   : > { %v7851_v5 = vadd.f32 %v7850_v23, %v18414_v13  ;;  %v8067_v33 = vpop.f32.mrf.mxu1 }
 0x5e5   : > { %20969 = vst [vmem:[#allocation79_spill] sm:$0xff] %v18769_v14  ;;  %v7852_v57 = vpop.f32.mrf.mxu0 }
 0x5e6   : > { %v8070_v61 = vpop.f32.mrf.mxu1 }
 0x5e7   : > { %v18772_v17 = vadd.f32 %v8070_v61, %v7846_v30  ;;  %v7855_v41 = vpop.f32.mrf.mxu0 }
 0x5e8   : > { %v7856_v22 = vadd.f32 %v7855_v41, %v18453_v19  ;;  %v8072_v39 = vpop.f32.mrf.mxu1 }
 0x5e9   : > { %20970 = vst [vmem:[#allocation172_spill] sm:$0xff] %v18772_v17  ;;  %v7857_v9 = vpop.f32.mrf.mxu0 }
 0x5ea   : > { %v8075_v58 = vpop.f32.mrf.mxu1 }
 0x5eb   : > { %v18775_v26 = vadd.f32 %v8075_v58, %v7851_v5 }
 0x5ec   : > { %v7860_v45 = vpop.f32.mrf.mxu0  ;;  %v8077_v31 = vpop.f32.mrf.mxu1 }
 0x5ed   : > { %20971 = vst [vmem:[#allocation86_spill] sm:$0xff] %v18775_v26  ;;  %v7861_v46 = vadd.f32 %v7860_v45, %v18508_v38 }
 0x5ee   : > { %v7862_v62 = vpop.f32.mrf.mxu0  ;;  %v8080_v63 = vpop.f32.mrf.mxu1 }
 0x5ef   : > { %v18778_v13 = vadd.f32 %v8080_v63, %v7856_v22 }
 0x5f0   : > { %v7865_v55 = vpop.f32.mrf.mxu0  ;;  %v8082_v15 = vpop.f32.mrf.mxu1 }
 0x5f1   : > { %20972 = vst [vmem:[#allocation48_spill] sm:$0xff] %v18778_v13  ;;  %v7866_v30 = vadd.f32 %v7865_v55, %v18550_v32 }
 0x5f2   : > { %v7867_v23 = vpop.f32.mrf.mxu0  ;;  %v8085_v33 = vpop.f32.mrf.mxu1 }
 0x5f3   : > { %v18781_v19 = vadd.f32 %v8085_v33, %v7861_v46 }
 0x5f4   : > { %v8087_v61 = vpop.f32.mrf.mxu1 }
 0x5f5   : > { %20973 = vst [vmem:[#allocation87_spill] sm:$0xff] %v18781_v19  ;;  %v7870_v57 = vpop.f32.mrf.mxu0 }
 0x5f6   : > { %v7871_v56 = vadd.f32 %v7870_v57, %v18594_v43 }
 0x5f7   : > { %v7872_v5 = vpop.f32.mrf.mxu0 }
 0x5f9   : > { %v8090_v41 = vpop.f32.mrf.mxu1  ;;  %v7875_v38 = vpop.f32.mrf.mxu0 }
 0x5fa   : > { %v18783_v39 = vadd.f32 %v8090_v41, %v7866_v30 }
 0x5fb   : > { %v8092_v9 = vpop.f32.mrf.mxu1  ;;  %v7877_v58 = vpop.f32.mrf.mxu0 }
 0x5fc   : > { %20974 = vst [vmem:[#allocation175_spill] sm:$0xff] %v18783_v39 }
 0x5fd   : > { %v8095_v45 = vpop.f32.mrf.mxu1 }
 0x5fe   : > { %v7880_v22 = vpop.f32.mrf.mxu0 }
 0x5ff   : > { %v8097_v31 = vpop.f32.mrf.mxu1 }
 0x600   : > { %v7882_v62 = vpop.f32.mrf.mxu0 }
 0x601   : > { %v8100_v63 = vpop.f32.mrf.mxu1 }
 0x602   : > { %v7885_v32 = vpop.f32.mrf.mxu0 }
 0x603   : > { %v8102_v55 = vpop.f32.mrf.mxu1 }
 0x604   : > { %v7887_v15 = vpop.f32.mrf.mxu0 }
 0x605   : > { %v8105_v23 = vpop.f32.mrf.mxu1 }
 0x606   : > { %v18785_v46 = vpop.f32.mrf.mxu0 }
 0x607   : > { %v8107_v33 = vpop.f32.mrf.mxu1 }
 0x608   : > { %v7892_v61 = vpop.f32.mrf.mxu0 }
 0x60a   : > { %v8110_v5 = vpop.f32.mrf.mxu1  ;;  %v7895_v30 = vpop.f32.mrf.mxu0 }
 0x60c   : > { %v8112_v41 = vpop.f32.mrf.mxu1  ;;  %v7897_v19 = vpop.f32.mrf.mxu0 }
 0x60d   : > { %v20975_v41 = vld [vmem:[#allocation301_spill] sm:$0xff] }
 0x60e   : > { %v18787_v9 = vpop.f32.mrf.mxu1 }
 0x60f   : > { %v18789_v58 = vpop.f32.mrf.mxu0 }
 0x610   : > { %v8117_v31 = vpop.f32.mrf.mxu1 }
 0x611   : > { %v7902_v62 = vpop.f32.mrf.mxu0 }
 0x613   : > { %v18791_v26 = vpop.f32.mrf.mxu0 }
 0x615   : > { %v8120_v39 = vpop.f32.mrf.mxu1  ;;  %v7907_v15 = vpop.f32.mrf.mxu0 }
 0x616   : > { %v7876_v15 = vadd.f32 %v7875_v38, %v18616_v44  ;;  %v8096_v44 = vadd.f32 %v8095_v45, %v7871_v56  ;;  %v7886_v38 = vadd.f32 %v7885_v32, %v18653_v40 }
 0x617   : > { %v8122_v55 = vpop.f32.mrf.mxu1 }
 0x618   : > { %v8831_v33 = vpop.f32.mrf.mxu0  ;;  %v8101_v11 = vadd.f32 %v8100_v63, %v7876_v15 }
 0x619   : > { %v18793_v13 = vpop.f32.mrf.mxu1  ;;  %v8206_v61 = vadd.f32 %v8831_v33, %v18695_v4  ;;  %v20976_v4 = vld [vmem:[#allocation299_spill] sm:$0xff] }
 0x61a   : > { %v8200_v19 = vpop.f32.mrf.mxu0 }
 0x61b   : > { %v8127_v14 = vpop.f32.mrf.mxu1  ;;  %v8360_v31 = vadd.f32 %v8206_v61, %v20975_v41  ;;  %v8201_v62 = vadd.f32 %v8200_v19, %v18690_v0 }
 0x61d   : > { %v8130_v55 = vpop.f32.mrf.mxu1  ;;  %v8834_v17 = vpop.f32.mrf.mxu0  ;;  %8392 = vst [vmem:[%s18801_s9 + $0x8] sm:$0xff] %v8360_v31  ;;  %v8359_v14 = vadd.f32 %v8201_v62, %v20976_v4 }
 0x61e   : > { %v8216_v33 = vadd.f32 %v8834_v17, %v18705_v2  ;;  %v7881_v17 = vadd.f32 %v7880_v22, %v18640_v42 }
 0x61f   : > { %v8132_v21 = vpop.f32.mrf.mxu1  ;;  %v8210_v12 = vpop.f32.mrf.mxu0  ;;  %8391 = vst [vmem:[%s18801_s9] sm:$0xff] %v8359_v14 }
 0x620   : > { %v8362_v61 = vadd.f32 %v8216_v33, %v20977_v49  ;;  %v8211_v0 = vadd.f32 %v8210_v12, %v18700_v35  ;;  %v8111_v49 = vadd.f32 %v8110_v5, %v7886_v38  ;;  %v8106_v45 = vadd.f32 %v8105_v23, %v7881_v17  ;;  %v20982_v17 = vld [vmem:[#allocation115_spill] sm:$0xff] }
 0x621   : > { %v8867_v19 = vpop.f32.mrf.mxu1  ;;  %v8837_v31 = vpop.f32.mrf.mxu0 }
 0x622   : > { %v8326_v41 = vadd.f32 %v8867_v19, %v8101_v11  ;;  %8394 = vst [vmem:[%s18801_s9 + $0x18] sm:$0xff] %v8362_v61  ;;  %v8361_v2 = vadd.f32 %v8211_v0, %v20883_v60  ;;  %v8226_v43 = vadd.f32 %v8837_v31, %v18715_v18  ;;  %v7896_v60 = vadd.f32 %v7895_v30, %v18671_v25 }
 0x623   : > { %v8320_v21 = vpop.f32.mrf.mxu1  ;;  %v8220_v12 = vpop.f32.mrf.mxu0 }
 0x624   : > { %v8384_v57 = vadd.f32 %v8326_v41, %v20829_v48  ;;  %v8321_v35 = vadd.f32 %v8320_v21, %v8096_v44  ;;  %8393 = vst [vmem:[%s18801_s9 + $0x10] sm:$0xff] %v8361_v2  ;;  %v8364_v40 = vadd.f32 %v8226_v43, %v20887_v3  ;;  %v8221_v11 = vadd.f32 %v8220_v12, %v18710_v16  ;;  %v20978_v48 = vld [vmem:[#allocation103_spill] sm:$0xff]  ;;  %v20980_v41 = vld [vmem:[#allocation50_spill] sm:$0xff] }
 0x625   : > { %v8870_v56 = vpop.f32.mrf.mxu1  ;;  %v8840_v22 = vpop.f32.mrf.mxu0  ;;  %v7891_v3 = vadd.f32 %v18785_v46, %v18663_v36  ;;  %v8121_v16 = vadd.f32 %v8120_v39, %v7896_v60  ;;  %v7906_v36 = vadd.f32 %v18791_v26, %v18685_v1  ;;  %v20987_v60 = vld [vmem:[#allocation237_spill] sm:$0xff] }
 0x626   : > { %8416 = vst [vmem:[%s18801_s9 + $0xc8] sm:$0xff] %v8384_v57  ;;  %v8383_v18 = vadd.f32 %v8321_v35, %v20824_v8  ;;  %v8336_v42 = vadd.f32 %v8870_v56, %v8111_v49  ;;  %8396 = vst [vmem:[%s18801_s9 + $0x28] sm:$0xff] %v8364_v40  ;;  %v8363_v63 = vadd.f32 %v8221_v11, %v20978_v48  ;;  %v20984_v35 = vld [vmem:[#allocation22_spill] sm:$0xff] }
 0x627   : > { %v8236_v32 = vadd.f32 %v8840_v22, %v18725_v28  ;;  %v8330_v5 = vpop.f32.mrf.mxu1  ;;  %v8230_v30 = vpop.f32.mrf.mxu0  ;;  %v8116_v28 = vadd.f32 %v18787_v9, %v7891_v3  ;;  %v8131_v9 = vadd.f32 %v8130_v55, %v7906_v36  ;;  %v20985_v40 = vld [vmem:[#allocation78_spill] sm:$0xff]  ;;  %v20990_v3 = vld [vmem:[#allocation129_spill] sm:$0xff] }
 0x628   : > { %8415 = vst [vmem:[%s18801_s9 + $0xc0] sm:$0xff] %v8383_v18  ;;  %v8386_v25 = vadd.f32 %v8336_v42, %v20847_v54  ;;  %v8331_v23 = vadd.f32 %v8330_v5, %v8106_v45  ;;  %8395 = vst [vmem:[%s18801_s9 + $0x20] sm:$0xff] %v8363_v63  ;;  %v8231_v62 = vadd.f32 %v8230_v30, %v18720_v6  ;;  %v20986_v45 = vld [vmem:[#allocation24_spill] sm:$0xff]  ;;  %v20988_v22 = vld [vmem:[#allocation122_spill] sm:$0xff] }
 0x629   : > { %v8366_v8 = vadd.f32 %v8236_v32, %v15442_v53  ;;  %v8873_v15 = vpop.f32.mrf.mxu1  ;;  %v8843_v54 = vpop.f32.mrf.mxu0  ;;  %v7901_v6 = vadd.f32 %v18789_v58, %v18679_v52  ;;  %v20989_v63 = vld [vmem:[#allocation33_spill] sm:$0xff] }
 0x62a   : > { %8418 = vst [vmem:[%s18801_s9 + $0xd8] sm:$0xff] %v8386_v25  ;;  %v8385_v39 = vadd.f32 %v8331_v23, %v20843_v27  ;;  %v8346_v46 = vadd.f32 %v8873_v15, %v8121_v16  ;;  %v8365_v4 = vadd.f32 %v8231_v62, %v20891_v24  ;;  %v8246_v53 = vadd.f32 %v8843_v54, %v18735_v34  ;;  %v20991_v25 = vld [vmem:[#allocation168_spill] sm:$0xff]  ;;  %v20995_v54 = vld [vmem:[#allocation79_spill] sm:$0xff] }
 0x62b   : > { %8398 = vst [vmem:[%s18801_s9 + $0x38] sm:$0xff] %v8366_v8  ;;  %v8340_v14 = vpop.f32.mrf.mxu1  ;;  %v8240_v27 = vpop.f32.mrf.mxu0  ;;  %v8126_v34 = vadd.f32 %v18793_v13, %v7901_v6  ;;  %v20992_v8 = vld [vmem:[#allocation135_spill] sm:$0xff]  ;;  %v20993_v15 = vld [vmem:[#allocation172_spill] sm:$0xff] }
 0x62c   : > { %8417 = vst [vmem:[%s18801_s9 + $0xd0] sm:$0xff] %v8385_v39  ;;  %v8388_v1 = vadd.f32 %v8346_v46, %v16876_v37  ;;  %v8341_v26 = vadd.f32 %v8340_v14, %v8116_v28  ;;  %8397 = vst [vmem:[%s18801_s9 + $0x30] sm:$0xff] %v8365_v4  ;;  %v8368_v33 = vadd.f32 %v8246_v53, %v15520_v7  ;;  %v20979_v37 = vld [vmem:[#allocation114_spill] sm:$0xff]  ;;  %v20994_v39 = vld [vmem:[#allocation39_spill] sm:$0xff] }
 0x62d   : > { %v8241_v24 = vadd.f32 %v8240_v27, %v18730_v20  ;;  %v8876_v61 = vpop.f32.mrf.mxu1  ;;  %v8846_v55 = vpop.f32.mrf.mxu0  ;;  %v20996_v14 = vld [vmem:[#allocation21_spill] sm:$0xff] }
 0x62e   : > { %8420 = vst [vmem:[%s18801_s9 + $0xe8] sm:$0xff] %v8388_v1  ;;  %v8387_v52 = vadd.f32 %v8341_v26, %v20858_v47  ;;  %v8356_v58 = vadd.f32 %v8876_v61, %v8131_v9  ;;  %8400 = vst [vmem:[%s18801_s9 + $0x48] sm:$0xff] %v8368_v33  ;;  %v8256_v19 = vadd.f32 %v8846_v55, %v18745_v50  ;;  %v20981_v50 = vld [vmem:[#allocation84_spill] sm:$0xff]  ;;  %v20998_v27 = vld [vmem:[#allocation137_spill] sm:$0xff] }
 0x62f   : > { %v8367_v0 = vadd.f32 %v8241_v24, %v20979_v37  ;;  %v8350_v7 = vpop.f32.mrf.mxu1  ;;  %v8250_v13 = vpop.f32.mrf.mxu0  ;;  %v20997_v9 = vld [vmem:[#allocation48_spill] sm:$0xff]  ;;  %v20999_v24 = vld [vmem:[#allocation86_spill] sm:$0xff]  ;;  %v21001_v55 = vld [vmem:[#allocation175_spill] sm:$0xff] }
 0x630   : > { %8419 = vst [vmem:[%s18801_s9 + $0xe0] sm:$0xff] %v8387_v52  ;;  %v8390_v20 = vadd.f32 %v8356_v58, %v17042_v29  ;;  %v8351_v44 = vadd.f32 %v8350_v7, %v8126_v34  ;;  %v8370_v47 = vadd.f32 %v8256_v19, %v15615_v10  ;;  %v8251_v38 = vadd.f32 %v8250_v13, %v18740_v51  ;;  %v20983_v10 = vld [vmem:[#allocation8_spill] sm:$0xff]  ;;  %v21000_v52 = vld [vmem:[#allocation2_spill] sm:$0xff]  ;;  %v21002_v19 = vld [vmem:[#allocation45_spill] sm:$0xff] }
 0x631   : > { %8399 = vst [vmem:[%s18801_s9 + $0x40] sm:$0xff] %v8367_v0  ;;  %v8849_v2 = vpop.f32.mrf.mxu0  ;;  %v21004_v13 = vld [vmem:[#allocation141_spill] sm:$0xff] }
 0x632   : > { %8422 = vst [vmem:[%s18801_s9 + $0xf8] sm:$0xff] %v8390_v20  ;;  %v8389_v31 = vadd.f32 %v8351_v44, %v20980_v41  ;;  %8402 = vst [vmem:[%s18801_s9 + $0x58] sm:$0xff] %v8370_v47  ;;  %v8369_v43 = vadd.f32 %v8251_v38, %v20981_v50  ;;  %v8266_v21 = vadd.f32 %v8849_v2, %v18755_v59  ;;  %v21003_v20 = vld [vmem:[#allocation87_spill] sm:$0xff] }
 0x633   : > { %v8260_v29 = vpop.f32.mrf.mxu0 }
 0x634   : > { %8421 = vst [vmem:[%s18801_s9 + $0xf0] sm:$0xff] %v8389_v31  ;;  %8401 = vst [vmem:[%s18801_s9 + $0x50] sm:$0xff] %v8369_v43  ;;  %v8372_v49 = vadd.f32 %v8266_v21, %v20982_v17  ;;  %v8261_v57 = vadd.f32 %v8260_v29, %v20983_v10 }
 0x635   : > { %v8852_v51 = vpop.f32.mrf.mxu0 }
 0x636   : > { %8404 = vst [vmem:[%s18801_s9 + $0x68] sm:$0xff] %v8372_v49  ;;  %v8371_v12 = vadd.f32 %v8261_v57, %v20984_v35  ;;  %v8276_v11 = vadd.f32 %v8852_v51, %v20985_v40 }
 0x637   : > { %v8270_v56 = vpop.f32.mrf.mxu0 }
 0x638   : > { %8403 = vst [vmem:[%s18801_s9 + $0x60] sm:$0xff] %v8371_v12  ;;  %v8374_v59 = vadd.f32 %v8276_v11, %v20986_v45  ;;  %v8271_v18 = vadd.f32 %v8270_v56, %v20987_v60 }
 0x639   : > { %v8855_v42 = vpop.f32.mrf.mxu0 }
 0x63a   : > { %8406 = vst [vmem:[%s18801_s9 + $0x78] sm:$0xff] %v8374_v59  ;;  %v8373_v48 = vadd.f32 %v8271_v18, %v20988_v22  ;;  %v8286_v32 = vadd.f32 %v8855_v42, %v20989_v63 }
 0x63b   : > { %v8280_v5 = vpop.f32.mrf.mxu0 }
 0x63c   : > { %8405 = vst [vmem:[%s18801_s9 + $0x70] sm:$0xff] %v8373_v48  ;;  %v8376_v16 = vadd.f32 %v8286_v32, %v20990_v3  ;;  %v8281_v23 = vadd.f32 %v8280_v5, %v20991_v25 }
 0x63d   : > { %v8858_v30 = vpop.f32.mrf.mxu0 }
 0x63e   : > { %8408 = vst [vmem:[%s18801_s9 + $0x88] sm:$0xff] %v8376_v16  ;;  %v8375_v62 = vadd.f32 %v8281_v23, %v20992_v8  ;;  %v8296_v28 = vadd.f32 %v8858_v30, %v20993_v15 }
 0x63f   : > { %v8290_v36 = vpop.f32.mrf.mxu0 }
 0x640   : > { %8407 = vst [vmem:[%s18801_s9 + $0x80] sm:$0xff] %v8375_v62  ;;  %v8378_v46 = vadd.f32 %v8296_v28, %v20994_v39  ;;  %v8291_v4 = vadd.f32 %v8290_v36, %v20995_v54 }
 0x641   : > { %v8861_v53 = vpop.f32.mrf.mxu0 }
 0x642   : > { %8410 = vst [vmem:[%s18801_s9 + $0x98] sm:$0xff] %v8378_v46  ;;  %v8377_v6 = vadd.f32 %v8291_v4, %v20996_v14  ;;  %v8306_v1 = vadd.f32 %v8861_v53, %v20997_v9 }
 0x643   : > { %v8300_v26 = vpop.f32.mrf.mxu0 }
 0x644   : > { %8409 = vst [vmem:[%s18801_s9 + $0x90] sm:$0xff] %v8377_v6  ;;  %v8380_v33 = vadd.f32 %v8306_v1, %v20998_v27  ;;  %v8301_v61 = vadd.f32 %v8300_v26, %v20999_v24 }
 0x645   : > { %v8864_v34 = vpop.f32.mrf.mxu0 }
 0x646   : > { %8412 = vst [vmem:[%s18801_s9 + $0xa8] sm:$0xff] %v8380_v33  ;;  %v8379_v58 = vadd.f32 %v8301_v61, %v21000_v52  ;;  %v8316_v37 = vadd.f32 %v8864_v34, %v21001_v55 }
 0x647   : > { %v8310_v0 = vpop.f32.mrf.mxu0 }
 0x648   : > { %8411 = vst [vmem:[%s18801_s9 + $0xa0] sm:$0xff] %v8379_v58  ;;  %v8382_v7 = vadd.f32 %v8316_v37, %v21002_v19  ;;  %v8311_v44 = vadd.f32 %v8310_v0, %v21003_v20 }
 0x64a   : > { %8414 = vst [vmem:[%s18801_s9 + $0xb8] sm:$0xff] %v8382_v7  ;;  %v8381_v47 = vadd.f32 %v8311_v44, %v21004_v13 }
 0x64c   : > { %8413 = vst [vmem:[%s18801_s9 + $0xb0] sm:$0xff] %v8381_v47 }
 0x64d PF: > { %s18_s27 = sadd.s32 1, %s9177_s27  }
 0x64e   : > { %p15_p4 = scmp.ge.s32.totalorder %s18_s27, 4  }
 0x650   :  { %17 = sbr.rel (!%p15_p4) target bundleno = 1 (0x1), region = 82 }

</bundles_post_ra>
